<compile_context>
chip_gen: v6e
topology: v6e:2x2x1
jax: 0.10.0
libtpu: 0.0.40
codegen_flags: <defaults>
</compile_context>

<pallas_src>
from functools import partial

import jax
import jax.numpy as jnp
from jax.experimental import pallas as pl
from jax.experimental.pallas import tpu as pltpu


# ----------------------------------------------------------------------------- #
# helpers
# ----------------------------------------------------------------------------- #
def _round_up(n, m=128):
    return ((n + m - 1) // m) * m


def _pad_lanes(a, width):
    pad = width - a.shape[-1]
    return a if pad == 0 else jnp.pad(a, ((0, 0), (0, pad)))


def _pad_rows(w, rows):
    return jnp.pad(w, ((0, rows - w.shape[0]), (0, 0)))


def _pad_cols(w, cols):
    return jnp.pad(w, ((0, 0), (0, cols - w.shape[1])))


def _pad_vec(v, width, fill=0.0):
    v = v.astype(jnp.float32)
    pad = width - v.shape[0]
    if pad == 0:
        return v
    return jnp.concatenate([v, jnp.full((pad,), fill, jnp.float32)])


def _quantize_cols(w):
    """Symmetric per-output-channel int8 quantization: w ~= wq * scale[None, :]."""
    amax = jnp.max(jnp.abs(w), axis=0)
    scale = jnp.where(amax > 0, amax / 127.0, 1.0).astype(jnp.float32)
    wq = jnp.clip(jnp.round(w / scale[None, :]), -127, 127).astype(jnp.int8)
    return wq, scale


def _full_spec(shape, buffers=None):
    # whole-array block (grid=(1,)); block == full array so (8,128) tiling rule holds.
    index_map = lambda i, _n=len(shape): (0,) * _n
    if buffers is None:
        return pl.BlockSpec(shape, index_map)
    return pl.BlockSpec(shape, index_map, pipeline_mode=pl.Buffered(buffers))


def _pick_vmem_limit_bytes():
    """Generation-aware scoped-VMEM request: ~3/4 of physical, capped at 100 MiB
    (v5e/v6e: 96 MiB of 128 MiB; v7x: 48 MiB of 64 MiB)."""
    default = 48 * 1024 * 1024
    try:
        info_fn = getattr(pltpu, "get_tpu_info", None)
        phys = getattr(info_fn(), "vmem_capacity_bytes", None) if info_fn else None
    except Exception:
        phys = None
    if not phys:
        return default
    return int(min((phys * 3) // 4, 100 * 1024 * 1024))


_VMEM_LIMIT_BYTES = _pick_vmem_limit_bytes()

_WEIGHT_ORDER = ("e_in", "e_rb1", "e_rb2", "e_out",
                 "b_in", "b_rb1a", "b_rb1b", "b_rb2a", "b_rb2b", "b_head")


# ----------------------------------------------------------------------------- #
# fused Pallas kernel: encoder + standardize/q-sample + backbone + heads
# ----------------------------------------------------------------------------- #
def _fused_kernel(dims,
                  data_ref, sqa_ref, sqb_ref, stats_ref, scbias_ref,
                  e_in_ref, e_rb1_ref, e_rb2_ref, e_out_ref,
                  b_in_ref, b_rb1a_ref, b_rb1b_ref, b_rb2a_ref, b_rb2b_ref, b_head_ref,
                  out_ref):
    f32, bf16 = jnp.float32, jnp.bfloat16
    hp, cp = dims["hand_pad"], dims["contact_pad"]
    yp, tp = dims["y_in_pad"], dims["temb_pad"]
    offs = dims["sb_offsets"]

    def qdot(x, wq_ref, name):
        start, width = offs[name]
        scale = scbias_ref[0:1, start:start + width]
        bias = scbias_ref[1:2, start:start + width]
        # int8 weight -> f32 -> bf16 dequant (small exact integers); MXU matmul in
        # bf16 with f32 accumulation; per-output-channel scale + bias applied in f32.
        w = wq_ref[...].astype(f32).astype(bf16)
        acc = jnp.dot(x.astype(bf16), w, preferred_element_type=f32)
        return acc * scale + bias

    # ---- unpack packed data / stats slabs (static, 128-aligned lane offsets) ------
    o = 0
    x = data_ref[:, o:o + hp]; o += hp
    eps_x = data_ref[:, o:o + hp]; o += hp
    c = data_ref[:, o:o + cp]; o += cp
    eps_c = data_ref[:, o:o + cp]; o += cp
    y = data_ref[:, o:o + yp]; o += yp
    temb = data_ref[:, o:o + tp]

    s = 0
    x_mean = stats_ref[:, s:s + hp]; s += hp
    x_std = stats_ref[:, s:s + hp]; s += hp
    c_mean = stats_ref[:, s:s + cp]; s += cp
    c_std = stats_ref[:, s:s + cp]; s += cp
    y_mean = stats_ref[:, s:s + yp]; s += yp
    y_std = stats_ref[:, s:s + yp]

    sqrt_a = sqa_ref[...]        # (B, 1)
    sqrt_1ma = sqb_ref[...]      # (B, 1)

    # ---- context encoder (MLPResNetEncoderModel): standardize(y) -> fc_in -> resblock -> fc_out
    ys = (y - y_mean) / y_std
    he = jnp.maximum(qdot(ys, e_in_ref, "e_in"), 0.0)
    z = jnp.maximum(qdot(he, e_rb1_ref, "e_rb1"), 0.0)
    z = qdot(z, e_rb2_ref, "e_rb2")
    he = he + z
    y_embed = qdot(he, e_out_ref, "e_out")                     # (B, yemb_pad)

    # ---- backbone prologue: standardize + q-sample (diffusion mixing), all f32 ----
    dx = sqrt_a * ((x - x_mean) / x_std) + sqrt_1ma * eps_x
    dc = sqrt_a * ((c - c_mean) / c_std) + sqrt_1ma * eps_c

    # ---- input layer: torch.cat([x, contacts, t_emb, y_embed]) @ w_in as ONE matmul
    h_in = jnp.concatenate([dx, dc, temb, y_embed], axis=-1)   # (B, 768), 128-aligned
    h = jnp.maximum(qdot(h_in, b_in_ref, "b_in"), 0.0)

    # ---- resblock 1 (skip_connections=True) ----
    z = jnp.maximum(qdot(h, b_rb1a_ref, "b_rb1a"), 0.0)
    z = qdot(z, b_rb1b_ref, "b_rb1b")
    h = h + z
    # ---- resblock 2 ----
    z = jnp.maximum(qdot(h, b_rb2a_ref, "b_rb2a"), 0.0)
    z = qdot(z, b_rb2b_ref, "b_rb2b")
    h = h + z

    # ---- fused hand + contacts heads -> lane-dense (B, hand_pad + contact_pad) ----
    out_ref[...] = qdot(h, b_head_ref, "b_head")


# ----------------------------------------------------------------------------- #
# kernel wrapper
# ----------------------------------------------------------------------------- #
def fused_apply(params, data, sqa, sqb):
    dims = params["dims"]
    B = data.shape[0]
    out_w = dims["hand_pad"] + dims["contact_pad"]
    small = [data, sqa, sqb, params["stats"], params["scbias"]]
    weights = [params["weights"][k] for k in _WEIGHT_ORDER]
    kern = partial(_fused_kernel, dims)

    def run(single_buffer_weights):
        wb = 1 if single_buffer_weights else None
        in_specs = ([_full_spec(a.shape) for a in small] +
                    [_full_spec(w.shape, buffers=wb) for w in weights])
        return pl.pallas_call(
            kern,
            out_shape=jax.ShapeDtypeStruct((B, out_w), jnp.float32),
            grid=(1,),
            in_specs=in_specs,
            out_specs=_full_spec((B, out_w)),
            compiler_params=pltpu.CompilerParams(
                dimension_semantics=("arbitrary",),
                vmem_limit_bytes=_VMEM_LIMIT_BYTES),
        )(*small, *weights)

    # Single-buffered weights: grid has exactly one step, so default double buffering
    # only doubles VMEM.  Fall back to default buffering if Buffered(1) is rejected.
    try:
        return run(True)
    except Exception:
        return run(False)


# ----------------------------------------------------------------------------- #
# glue: time embedding, parameter construction, forward
# ----------------------------------------------------------------------------- #
def sinusoidal_pos_encoding(t, dim):
    # SinusoidalPosEncoder(time_steps, temporal_dim): parameter-free, tiny -> JAX glue.
    half = dim // 2
    freqs = jnp.exp(-jnp.log(10000.0) * jnp.arange(half, dtype=jnp.float32) / half)
    args = t.astype(jnp.float32) * freqs[None, :]
    emb = jnp.concatenate([jnp.sin(args), jnp.cos(args)], axis=-1)
    if dim % 2 == 1:
        emb = jnp.pad(emb, ((0, 0), (0, 1)))
    return emb


def _lin_init(key, din, dout):
    w = jax.random.normal(key, (din, dout), jnp.float32) * (1.0 / jnp.sqrt(din))
    b = jnp.zeros((dout,), jnp.float32)
    return w, b


def make_params(key, *, time_steps, beta_1, beta_T, n_hand_keypoints, temporal_dim,
                y_input_keypoints, y_embed_dim, backbone_hidden, encoder_hidden):
    keys = jax.random.split(key, 20)

    hand_dim = n_hand_keypoints * 3
    contact_dim = 32 * 9
    y_in_dim = y_input_keypoints * 3
    hand_pad, contact_pad = _round_up(hand_dim), _round_up(contact_dim)
    y_in_pad, temb_pad, yemb_pad = _round_up(y_in_dim), _round_up(temporal_dim), _round_up(y_embed_dim)
    Hb, He = backbone_hidden, encoder_hidden

    # diffusion schedule (tril(ones) @ log(1-beta) == cumsum)
    beta = jnp.linspace(beta_1, beta_T, time_steps).astype(jnp.float32)
    alpha = jnp.exp(jnp.cumsum(jnp.log(1.0 - beta)))
    sigma = jnp.sqrt(beta)

    # dataset statistics (set_dataset_stats) -- synthetic, deterministic.
    x_hand_mean = jax.random.normal(keys[0], (3,)) * 0.1
    x_hand_std = jnp.abs(jax.random.normal(keys[1], (3,))) * 0.2 + 0.5
    y_obj_mean = jax.random.normal(keys[2], (3,)) * 0.1
    y_obj_std = jnp.abs(jax.random.normal(keys[3], (3,))) * 0.2 + 0.5
    c_mean = jax.random.normal(keys[4], (9,)) * 0.1
    c_std = jnp.abs(jax.random.normal(keys[5], (9,))) * 0.2 + 0.5

    # TODO(synk): exact internals of ContactMLPResNetBackboneModel / MLPResNetEncoderModel /
    # SinusoidalPosEncoder are not given in the source; standard MLP-ResNet realizations
    # matching the constructor dimensions are used.

    # ---- encoder weights ----------------------------------------------------------- #
    ew_in, eb_in = _lin_init(keys[6], y_in_dim, He)
    erb_w1, erb_b1 = _lin_init(keys[7], He, He)
    erb_w2, erb_b2 = _lin_init(keys[8], He, He)
    ew_out, eb_out = _lin_init(keys[9], He, y_embed_dim)

    # ---- backbone weights ------------------------------------------------------------ #
    w_in_x, _ = _lin_init(keys[10], hand_dim, Hb)
    w_in_c, _ = _lin_init(keys[11], contact_dim, Hb)
    w_in_t, _ = _lin_init(keys[12], temporal_dim, Hb)
    w_in_y, _ = _lin_init(keys[13], y_embed_dim, Hb)
    b_in = jnp.zeros((Hb,), jnp.float32)
    rb1_w1, rb1_b1 = _lin_init(keys[14], Hb, Hb)
    rb1_w2, rb1_b2 = _lin_init(keys[15], Hb, Hb)
    rb2_w1, rb2_b1 = _lin_init(keys[16], Hb, Hb)
    rb2_w2, rb2_b2 = _lin_init(keys[17], Hb, Hb)
    w_hand, b_hand = _lin_init(keys[18], Hb, hand_dim)
    w_ct, b_ct = _lin_init(keys[19], Hb, contact_dim)

    # stacked input layer: [hand | contacts | t_emb | y_embed] rows, each 128-padded.
    w_in_stacked = jnp.concatenate([
        _pad_rows(w_in_x, hand_pad), _pad_rows(w_in_c, contact_pad),
        _pad_rows(w_in_t, temb_pad), _pad_rows(w_in_y, yemb_pad)], axis=0)
    # fused lane-dense head: [hand (pad->128) | contacts (pad->384)]
    w_head = jnp.concatenate([_pad_cols(w_hand, hand_pad), _pad_cols(w_ct, contact_pad)], axis=1)
    b_head = jnp.concatenate([_pad_vec(b_hand, hand_pad), _pad_vec(b_ct, contact_pad)])

    layers = [
        ("e_in",   _pad_rows(ew_in, y_in_pad), eb_in),
        ("e_rb1",  erb_w1, erb_b1),
        ("e_rb2",  erb_w2, erb_b2),
        ("e_out",  _pad_cols(ew_out, yemb_pad), _pad_vec(eb_out, yemb_pad)),
        ("b_in",   w_in_stacked, b_in),
        ("b_rb1a", rb1_w1, rb1_b1),
        ("b_rb1b", rb1_w2, rb1_b2),
        ("b_rb2a", rb2_w1, rb2_b1),
        ("b_rb2b", rb2_w2, rb2_b2),
        ("b_head", w_head, b_head),
    ]

    # int8 weights + one packed (2, N) [scale; bias] slab.
    qweights, scales, biases, sb_offsets = {}, [], [], {}
    off = 0
    for name, w, b in layers:
        wq, sc = _quantize_cols(w)
        qweights[name] = wq
        scales.append(sc)
        biases.append(b.astype(jnp.float32))
        sb_offsets[name] = (off, w.shape[1])
        off += w.shape[1]
    scbias = jnp.stack([jnp.concatenate(scales), jnp.concatenate(biases)], axis=0)

    # one packed stats slab (mean pad 0, std pad 1 -> padded lanes stay exactly 0).
    stats = jnp.concatenate([
        _pad_vec(jnp.tile(x_hand_mean, n_hand_keypoints), hand_pad, 0.0),
        _pad_vec(jnp.tile(x_hand_std, n_hand_keypoints), hand_pad, 1.0),
        _pad_vec(jnp.tile(c_mean, 32), contact_pad, 0.0),
        _pad_vec(jnp.tile(c_std, 32), contact_pad, 1.0),
        _pad_vec(jnp.tile(y_obj_mean, y_input_keypoints), y_in_pad, 0.0),
        _pad_vec(jnp.tile(y_obj_std, y_input_keypoints), y_in_pad, 1.0),
    ]).reshape(1, -1)

    dims = dict(hand_pad=hand_pad, contact_pad=contact_pad, y_in_pad=y_in_pad,
                temb_pad=temb_pad, yemb_pad=yemb_pad, sb_offsets=sb_offsets)

    return {"beta": beta, "alpha": alpha, "sigma": sigma,
            "stats": stats, "scbias": scbias, "weights": qweights, "dims": dims,
            "time_steps": time_steps, "temporal_dim": temporal_dim,
            "hand_dim": hand_dim, "contact_dim": contact_dim, "y_in_dim": y_in_dim}


def kp_contacts_diffusion_forward(params, x, contacts, y, rng):
    """Mirrors KPContactsDiffusionModel.forward with object_in_encoder=False,
    single_modality='object', y_modality='object'."""
    B, K, _ = x.shape
    dims = params["dims"]
    hand_dim, contact_dim = params["hand_dim"], params["contact_dim"]
    hand_pad, contact_pad = dims["hand_pad"], dims["contact_pad"]

    x_flat = x.reshape(B, hand_dim).astype(jnp.float32)
    c_flat = contacts.reshape(B, contact_dim).astype(jnp.float32)
    y_flat = y.reshape(B, -1).astype(jnp.float32)

    k_t, k_ex, k_ec = jax.random.split(rng, 3)
    t = jax.random.randint(k_t, (B, 1), 0, params["time_steps"])       # torch.randint
    # TODO(synk): eps could be drawn in-kernel via pltpu.prng_seed/prng_random_bits to
    # drop two inputs; kept host-side so the returned eps matches torch.randn_like use.
    eps_x = jax.random.normal(k_ex, (B, hand_dim), jnp.float32)
    eps_c = jax.random.normal(k_ec, (B, contact_dim), jnp.float32)

    batched_alpha = params["alpha"][t[:, 0]][:, None]                  # (B, 1)
    sqa = jnp.sqrt(batched_alpha)
    sqb = jnp.sqrt(1.0 - batched_alpha)

    t_emb = sinusoidal_pos_encoding(t, params["temporal_dim"])

    # one packed, lane-padded data slab -> single DMA descriptor for all per-batch data
    data = jnp.concatenate([
        _pad_lanes(x_flat, hand_pad), _pad_lanes(eps_x, hand_pad),
        _pad_lanes(c_flat, contact_pad), _pad_lanes(eps_c, contact_pad),
        _pad_lanes(y_flat, dims["y_in_pad"]), _pad_lanes(t_emb, dims["temb_pad"])],
        axis=-1)

    out = fused_apply(params, data, sqa, sqb)        # (B, hand_pad + contact_pad)

    eps_hat_x = out[:, :hand_dim].reshape(B, K, 3)
    eps_hat_c = out[:, hand_pad:hand_pad + contact_dim]
    return {"udf": (eps_hat_x, eps_x.reshape(B, K, 3)),
            "contacts": (eps_hat_c, eps_c)}


# ----------------------------------------------------------------------------- #
# Demo
# ----------------------------------------------------------------------------- #
if __name__ == "__main__":
    # Small, runnable configuration (real model uses hidden_dim=1024 / 2048).
    TIME_STEPS = 100
    BETA_1, BETA_T = 1e-4, 0.02
    N_HAND_KP = 21
    Y_INPUT_KP = 16
    Y_EMBED_DIM = 64
    TEMPORAL_DIM = 32
    BACKBONE_HIDDEN = 256
    ENCODER_HIDDEN = 512
    B = 8

    root = jax.random.PRNGKey(0)
    k_params, k_x, k_c, k_y, k_fwd = jax.random.split(root, 5)

    params = make_params(
        k_params,
        time_steps=TIME_STEPS, beta_1=BETA_1, beta_T=BETA_T,
        n_hand_keypoints=N_HAND_KP, temporal_dim=TEMPORAL_DIM,
        y_input_keypoints=Y_INPUT_KP, y_embed_dim=Y_EMBED_DIM,
        backbone_hidden=BACKBONE_HIDDEN, encoder_hidden=ENCODER_HIDDEN,
    )

    x = jax.random.normal(k_x, (B, N_HAND_KP, 3), jnp.float32)
    contacts = jax.random.normal(k_c, (B, 32, 9), jnp.float32)
    y = jax.random.normal(k_y, (B, Y_INPUT_KP, 3), jnp.float32)

    out = kp_contacts_diffusion_forward(params, x, contacts, y, k_fwd)
    jax.block_until_ready(jax.tree_util.tree_leaves(out))

    eps_hat_x, eps_x = out["udf"]
    eps_hat_c, eps_c = out["contacts"]
    assert eps_hat_x.shape == (B, N_HAND_KP, 3) and eps_x.shape == (B, N_HAND_KP, 3)
    assert eps_hat_c.shape == (B, 32 * 9) and eps_c.shape == (B, 32 * 9)
    assert not bool(jnp.any(jnp.isnan(eps_hat_x))) and not bool(jnp.any(jnp.isnan(eps_hat_c)))
    print("KERNEL_OK")
</pallas_src>

<mosaic_0001>
module attributes {stable_mosaic.version = 11 : i64} {
  func.func @_fused_kernel(%arg0: i32, %arg1: memref<8x1280xf32, #tpu.memory_space<vmem>>, %arg2: memref<8x1xf32, #tpu.memory_space<vmem>>, %arg3: memref<8x1xf32, #tpu.memory_space<vmem>>, %arg4: memref<1x1280xf32, #tpu.memory_space<vmem>>, %arg5: memref<2x3456xf32, #tpu.memory_space<vmem>>, %arg6: memref<128x512xi8, #tpu.memory_space<vmem>>, %arg7: memref<512x512xi8, #tpu.memory_space<vmem>>, %arg8: memref<512x512xi8, #tpu.memory_space<vmem>>, %arg9: memref<512x128xi8, #tpu.memory_space<vmem>>, %arg10: memref<768x256xi8, #tpu.memory_space<vmem>>, %arg11: memref<256x256xi8, #tpu.memory_space<vmem>>, %arg12: memref<256x256xi8, #tpu.memory_space<vmem>>, %arg13: memref<256x256xi8, #tpu.memory_space<vmem>>, %arg14: memref<256x256xi8, #tpu.memory_space<vmem>>, %arg15: memref<256x512xi8, #tpu.memory_space<vmem>>, %arg16: memref<8x512xf32, #tpu.memory_space<vmem>>) attributes {dimension_semantics = [#tpu.dimension_semantics<arbitrary>], iteration_bounds = array<i64: 1>, scalar_prefetch = 0 : i64, scratch_operands = 0 : i64, tpu.core_type = #tpu.core_type<tc>, window_params = [{pipeline_mode = #tpu.pipeline_mode<synchronous>, transform_indices = @transform_0, window_bounds = array<i64: 8, 1280>}, {pipeline_mode = #tpu.pipeline_mode<synchronous>, transform_indices = @transform_1, window_bounds = array<i64: 8, 1>}, {pipeline_mode = #tpu.pipeline_mode<synchronous>, transform_indices = @transform_2, window_bounds = array<i64: 8, 1>}, {pipeline_mode = #tpu.pipeline_mode<synchronous>, transform_indices = @transform_3, window_bounds = array<i64: 1, 1280>}, {pipeline_mode = #tpu.pipeline_mode<synchronous>, transform_indices = @transform_4, window_bounds = array<i64: 2, 3456>}, {pipeline_mode = #tpu.pipeline_mode<synchronous>, transform_indices = @transform_5, window_bounds = array<i64: 128, 512>}, {pipeline_mode = #tpu.pipeline_mode<synchronous>, transform_indices = @transform_6, window_bounds = array<i64: 512, 512>}, {pipeline_mode = #tpu.pipeline_mode<synchronous>, transform_indices = @transform_7, window_bounds = array<i64: 512, 512>}, {pipeline_mode = #tpu.pipeline_mode<synchronous>, transform_indices = @transform_8, window_bounds = array<i64: 512, 128>}, {pipeline_mode = #tpu.pipeline_mode<synchronous>, transform_indices = @transform_9, window_bounds = array<i64: 768, 256>}, {pipeline_mode = #tpu.pipeline_mode<synchronous>, transform_indices = @transform_10, window_bounds = array<i64: 256, 256>}, {pipeline_mode = #tpu.pipeline_mode<synchronous>, transform_indices = @transform_11, window_bounds = array<i64: 256, 256>}, {pipeline_mode = #tpu.pipeline_mode<synchronous>, transform_indices = @transform_12, window_bounds = array<i64: 256, 256>}, {pipeline_mode = #tpu.pipeline_mode<synchronous>, transform_indices = @transform_13, window_bounds = array<i64: 256, 256>}, {pipeline_mode = #tpu.pipeline_mode<synchronous>, transform_indices = @transform_14, window_bounds = array<i64: 256, 512>}, {pipeline_mode = #tpu.pipeline_mode<synchronous>, transform_indices = @transform_15, window_bounds = array<i64: 8, 512>}]} {
    %c0 = arith.constant 0 : index
    %c0_0 = arith.constant 0 : index
    %0 = vector.load %arg1[%c0, %c0_0] : memref<8x1280xf32, #tpu.memory_space<vmem>>, vector<8x128xf32>
    %c0_1 = arith.constant 0 : index
    %c128 = arith.constant 128 : index
    %1 = vector.load %arg1[%c0_1, %c128] : memref<8x1280xf32, #tpu.memory_space<vmem>>, vector<8x128xf32>
    %c0_2 = arith.constant 0 : index
    %c256 = arith.constant 256 : index
    %2 = vector.load %arg1[%c0_2, %c256] : memref<8x1280xf32, #tpu.memory_space<vmem>>, vector<8x384xf32>
    %c0_3 = arith.constant 0 : index
    %c640 = arith.constant 640 : index
    %3 = vector.load %arg1[%c0_3, %c640] : memref<8x1280xf32, #tpu.memory_space<vmem>>, vector<8x384xf32>
    %c0_4 = arith.constant 0 : index
    %c1024 = arith.constant 1024 : index
    %4 = vector.load %arg1[%c0_4, %c1024] : memref<8x1280xf32, #tpu.memory_space<vmem>>, vector<8x128xf32>
    %c0_5 = arith.constant 0 : index
    %c1152 = arith.constant 1152 : index
    %5 = vector.load %arg1[%c0_5, %c1152] : memref<8x1280xf32, #tpu.memory_space<vmem>>, vector<8x128xf32>
    %c0_6 = arith.constant 0 : index
    %c0_7 = arith.constant 0 : index
    %6 = vector.load %arg4[%c0_6, %c0_7] : memref<1x1280xf32, #tpu.memory_space<vmem>>, vector<1x128xf32>
    %c0_8 = arith.constant 0 : index
    %c128_9 = arith.constant 128 : index
    %7 = vector.load %arg4[%c0_8, %c128_9] : memref<1x1280xf32, #tpu.memory_space<vmem>>, vector<1x128xf32>
    %c0_10 = arith.constant 0 : index
    %c256_11 = arith.constant 256 : index
    %8 = vector.load %arg4[%c0_10, %c256_11] : memref<1x1280xf32, #tpu.memory_space<vmem>>, vector<1x384xf32>
    %c0_12 = arith.constant 0 : index
    %c640_13 = arith.constant 640 : index
    %9 = vector.load %arg4[%c0_12, %c640_13] : memref<1x1280xf32, #tpu.memory_space<vmem>>, vector<1x384xf32>
    %c0_14 = arith.constant 0 : index
    %c1024_15 = arith.constant 1024 : index
    %10 = vector.load %arg4[%c0_14, %c1024_15] : memref<1x1280xf32, #tpu.memory_space<vmem>>, vector<1x128xf32>
    %c0_16 = arith.constant 0 : index
    %c1152_17 = arith.constant 1152 : index
    %11 = vector.load %arg4[%c0_16, %c1152_17] : memref<1x1280xf32, #tpu.memory_space<vmem>>, vector<1x128xf32>
    %c0_18 = arith.constant 0 : index
    %c0_19 = arith.constant 0 : index
    %12 = vector.load %arg2[%c0_18, %c0_19] : memref<8x1xf32, #tpu.memory_space<vmem>>, vector<8x1xf32>
    %c0_20 = arith.constant 0 : index
    %c0_21 = arith.constant 0 : index
    %13 = vector.load %arg3[%c0_20, %c0_21] : memref<8x1xf32, #tpu.memory_space<vmem>>, vector<8x1xf32>
    %14 = vector.broadcast %10 : vector<1x128xf32> to vector<8x128xf32>
    %15 = arith.subf %4, %14 : vector<8x128xf32>
    %16 = vector.broadcast %11 : vector<1x128xf32> to vector<8x128xf32>
    %17 = arith.divf %15, %16 : vector<8x128xf32>
    %c0_22 = arith.constant 0 : index
    %c0_23 = arith.constant 0 : index
    %18 = vector.load %arg5[%c0_22, %c0_23] : memref<2x3456xf32, #tpu.memory_space<vmem>>, vector<1x512xf32>
    %c1 = arith.constant 1 : index
    %c0_24 = arith.constant 0 : index
    %19 = vector.load %arg5[%c1, %c0_24] : memref<2x3456xf32, #tpu.memory_space<vmem>>, vector<1x512xf32>
    %c0_25 = arith.constant 0 : index
    %c0_26 = arith.constant 0 : index
    %20 = vector.load %arg6[%c0_25, %c0_26] : memref<128x512xi8, #tpu.memory_space<vmem>>, vector<128x512xi8>
    %21 = arith.sitofp %20 : vector<128x512xi8> to vector<128x512xf32>
    %22 = arith.truncf %21 : vector<128x512xf32> to vector<128x512xbf16>
    %23 = arith.truncf %17 : vector<8x128xf32> to vector<8x128xbf16>
    %cst = arith.constant dense<0.000000e+00> : vector<8x512xf32>
    %24 = tpu.matmul %23, %22, %cst {dimension_numbers = #tpu.dot_dimension_numbers<[1], [0], [0], [1], [0, 0, 1, 1], [], []>} : vector<8x128xbf16>, vector<128x512xbf16>, vector<8x512xf32> -> vector<8x512xf32>
    %25 = vector.broadcast %18 : vector<1x512xf32> to vector<8x512xf32>
    %26 = arith.mulf %24, %25 : vector<8x512xf32>
    %27 = vector.broadcast %19 : vector<1x512xf32> to vector<8x512xf32>
    %28 = arith.addf %26, %27 : vector<8x512xf32>
    %cst_27 = arith.constant 0.000000e+00 : f32
    %29 = vector.broadcast %cst_27 : f32 to vector<8x512xf32>
    %30 = arith.maximumf %28, %29 : vector<8x512xf32>
    %c0_28 = arith.constant 0 : index
    %c512 = arith.constant 512 : index
    %31 = vector.load %arg5[%c0_28, %c512] : memref<2x3456xf32, #tpu.memory_space<vmem>>, vector<1x512xf32>
    %c1_29 = arith.constant 1 : index
    %c512_30 = arith.constant 512 : index
    %32 = vector.load %arg5[%c1_29, %c512_30] : memref<2x3456xf32, #tpu.memory_space<vmem>>, vector<1x512xf32>
    %c0_31 = arith.constant 0 : index
    %c0_32 = arith.constant 0 : index
    %33 = vector.load %arg7[%c0_31, %c0_32] : memref<512x512xi8, #tpu.memory_space<vmem>>, vector<512x512xi8>
    %34 = arith.sitofp %33 : vector<512x512xi8> to vector<512x512xf32>
    %35 = arith.truncf %34 : vector<512x512xf32> to vector<512x512xbf16>
    %36 = arith.truncf %30 : vector<8x512xf32> to vector<8x512xbf16>
    %cst_33 = arith.constant dense<0.000000e+00> : vector<8x512xf32>
    %37 = tpu.matmul %36, %35, %cst_33 {dimension_numbers = #tpu.dot_dimension_numbers<[1], [0], [0], [1], [0, 0, 1, 1], [], []>} : vector<8x512xbf16>, vector<512x512xbf16>, vector<8x512xf32> -> vector<8x512xf32>
    %38 = vector.broadcast %31 : vector<1x512xf32> to vector<8x512xf32>
    %39 = arith.mulf %37, %38 : vector<8x512xf32>
    %40 = vector.broadcast %32 : vector<1x512xf32> to vector<8x512xf32>
    %41 = arith.addf %39, %40 : vector<8x512xf32>
    %cst_34 = arith.constant 0.000000e+00 : f32
    %42 = vector.broadcast %cst_34 : f32 to vector<8x512xf32>
    %43 = arith.maximumf %41, %42 : vector<8x512xf32>
    %c0_35 = arith.constant 0 : index
    %c1024_36 = arith.constant 1024 : index
    %44 = vector.load %arg5[%c0_35, %c1024_36] : memref<2x3456xf32, #tpu.memory_space<vmem>>, vector<1x512xf32>
    %c1_37 = arith.constant 1 : index
    %c1024_38 = arith.constant 1024 : index
    %45 = vector.load %arg5[%c1_37, %c1024_38] : memref<2x3456xf32, #tpu.memory_space<vmem>>, vector<1x512xf32>
    %c0_39 = arith.constant 0 : index
    %c0_40 = arith.constant 0 : index
    %46 = vector.load %arg8[%c0_39, %c0_40] : memref<512x512xi8, #tpu.memory_space<vmem>>, vector<512x512xi8>
    %47 = arith.sitofp %46 : vector<512x512xi8> to vector<512x512xf32>
    %48 = arith.truncf %47 : vector<512x512xf32> to vector<512x512xbf16>
    %49 = arith.truncf %43 : vector<8x512xf32> to vector<8x512xbf16>
    %cst_41 = arith.constant dense<0.000000e+00> : vector<8x512xf32>
    %50 = tpu.matmul %49, %48, %cst_41 {dimension_numbers = #tpu.dot_dimension_numbers<[1], [0], [0], [1], [0, 0, 1, 1], [], []>} : vector<8x512xbf16>, vector<512x512xbf16>, vector<8x512xf32> -> vector<8x512xf32>
    %51 = vector.broadcast %44 : vector<1x512xf32> to vector<8x512xf32>
    %52 = arith.mulf %50, %51 : vector<8x512xf32>
    %53 = vector.broadcast %45 : vector<1x512xf32> to vector<8x512xf32>
    %54 = arith.addf %52, %53 : vector<8x512xf32>
    %55 = arith.addf %30, %54 : vector<8x512xf32>
    %c0_42 = arith.constant 0 : index
    %c1536 = arith.constant 1536 : index
    %56 = vector.load %arg5[%c0_42, %c1536] : memref<2x3456xf32, #tpu.memory_space<vmem>>, vector<1x128xf32>
    %c1_43 = arith.constant 1 : index
    %c1536_44 = arith.constant 1536 : index
    %57 = vector.load %arg5[%c1_43, %c1536_44] : memref<2x3456xf32, #tpu.memory_space<vmem>>, vector<1x128xf32>
    %c0_45 = arith.constant 0 : index
    %c0_46 = arith.constant 0 : index
    %58 = vector.load %arg9[%c0_45, %c0_46] : memref<512x128xi8, #tpu.memory_space<vmem>>, vector<512x128xi8>
    %59 = arith.sitofp %58 : vector<512x128xi8> to vector<512x128xf32>
    %60 = arith.truncf %59 : vector<512x128xf32> to vector<512x128xbf16>
    %61 = arith.truncf %55 : vector<8x512xf32> to vector<8x512xbf16>
    %cst_47 = arith.constant dense<0.000000e+00> : vector<8x128xf32>
    %62 = tpu.matmul %61, %60, %cst_47 {dimension_numbers = #tpu.dot_dimension_numbers<[1], [0], [0], [1], [0, 0, 1, 1], [], []>} : vector<8x512xbf16>, vector<512x128xbf16>, vector<8x128xf32> -> vector<8x128xf32>
    %63 = vector.broadcast %56 : vector<1x128xf32> to vector<8x128xf32>
    %64 = arith.mulf %62, %63 : vector<8x128xf32>
    %65 = vector.broadcast %57 : vector<1x128xf32> to vector<8x128xf32>
    %66 = arith.addf %64, %65 : vector<8x128xf32>
    %67 = vector.broadcast %6 : vector<1x128xf32> to vector<8x128xf32>
    %68 = arith.subf %0, %67 : vector<8x128xf32>
    %69 = vector.broadcast %7 : vector<1x128xf32> to vector<8x128xf32>
    %70 = arith.divf %68, %69 : vector<8x128xf32>
    %71 = vector.broadcast %12 : vector<8x1xf32> to vector<8x128xf32>
    %72 = arith.mulf %71, %70 : vector<8x128xf32>
    %73 = vector.broadcast %13 : vector<8x1xf32> to vector<8x128xf32>
    %74 = arith.mulf %73, %1 : vector<8x128xf32>
    %75 = arith.addf %72, %74 : vector<8x128xf32>
    %76 = vector.broadcast %8 : vector<1x384xf32> to vector<8x384xf32>
    %77 = arith.subf %2, %76 : vector<8x384xf32>
    %78 = vector.broadcast %9 : vector<1x384xf32> to vector<8x384xf32>
    %79 = arith.divf %77, %78 : vector<8x384xf32>
    %80 = vector.broadcast %12 : vector<8x1xf32> to vector<8x384xf32>
    %81 = arith.mulf %80, %79 : vector<8x384xf32>
    %82 = vector.broadcast %13 : vector<8x1xf32> to vector<8x384xf32>
    %83 = arith.mulf %82, %3 : vector<8x384xf32>
    %84 = arith.addf %81, %83 : vector<8x384xf32>
    %85 = tpu.concatenate %75, %84, %5, %66 in 1 : vector<8x128xf32>, vector<8x384xf32>, vector<8x128xf32>, vector<8x128xf32> -> vector<8x768xf32>
    %c0_48 = arith.constant 0 : index
    %c1664 = arith.constant 1664 : index
    %86 = vector.load %arg5[%c0_48, %c1664] : memref<2x3456xf32, #tpu.memory_space<vmem>>, vector<1x256xf32>
    %c1_49 = arith.constant 1 : index
    %c1664_50 = arith.constant 1664 : index
    %87 = vector.load %arg5[%c1_49, %c1664_50] : memref<2x3456xf32, #tpu.memory_space<vmem>>, vector<1x256xf32>
    %c0_51 = arith.constant 0 : index
    %c0_52 = arith.constant 0 : index
    %88 = vector.load %arg10[%c0_51, %c0_52] : memref<768x256xi8, #tpu.memory_space<vmem>>, vector<768x256xi8>
    %89 = arith.sitofp %88 : vector<768x256xi8> to vector<768x256xf32>
    %90 = arith.truncf %89 : vector<768x256xf32> to vector<768x256xbf16>
    %91 = arith.truncf %85 : vector<8x768xf32> to vector<8x768xbf16>
    %cst_53 = arith.constant dense<0.000000e+00> : vector<8x256xf32>
    %92 = tpu.matmul %91, %90, %cst_53 {dimension_numbers = #tpu.dot_dimension_numbers<[1], [0], [0], [1], [0, 0, 1, 1], [], []>} : vector<8x768xbf16>, vector<768x256xbf16>, vector<8x256xf32> -> vector<8x256xf32>
    %93 = vector.broadcast %86 : vector<1x256xf32> to vector<8x256xf32>
    %94 = arith.mulf %92, %93 : vector<8x256xf32>
    %95 = vector.broadcast %87 : vector<1x256xf32> to vector<8x256xf32>
    %96 = arith.addf %94, %95 : vector<8x256xf32>
    %cst_54 = arith.constant 0.000000e+00 : f32
    %97 = vector.broadcast %cst_54 : f32 to vector<8x256xf32>
    %98 = arith.maximumf %96, %97 : vector<8x256xf32>
    %c0_55 = arith.constant 0 : index
    %c1920 = arith.constant 1920 : index
    %99 = vector.load %arg5[%c0_55, %c1920] : memref<2x3456xf32, #tpu.memory_space<vmem>>, vector<1x256xf32>
    %c1_56 = arith.constant 1 : index
    %c1920_57 = arith.constant 1920 : index
    %100 = vector.load %arg5[%c1_56, %c1920_57] : memref<2x3456xf32, #tpu.memory_space<vmem>>, vector<1x256xf32>
    %c0_58 = arith.constant 0 : index
    %c0_59 = arith.constant 0 : index
    %101 = vector.load %arg11[%c0_58, %c0_59] : memref<256x256xi8, #tpu.memory_space<vmem>>, vector<256x256xi8>
    %102 = arith.sitofp %101 : vector<256x256xi8> to vector<256x256xf32>
    %103 = arith.truncf %102 : vector<256x256xf32> to vector<256x256xbf16>
    %104 = arith.truncf %98 : vector<8x256xf32> to vector<8x256xbf16>
    %cst_60 = arith.constant dense<0.000000e+00> : vector<8x256xf32>
    %105 = tpu.matmul %104, %103, %cst_60 {dimension_numbers = #tpu.dot_dimension_numbers<[1], [0], [0], [1], [0, 0, 1, 1], [], []>} : vector<8x256xbf16>, vector<256x256xbf16>, vector<8x256xf32> -> vector<8x256xf32>
    %106 = vector.broadcast %99 : vector<1x256xf32> to vector<8x256xf32>
    %107 = arith.mulf %105, %106 : vector<8x256xf32>
    %108 = vector.broadcast %100 : vector<1x256xf32> to vector<8x256xf32>
    %109 = arith.addf %107, %108 : vector<8x256xf32>
    %cst_61 = arith.constant 0.000000e+00 : f32
    %110 = vector.broadcast %cst_61 : f32 to vector<8x256xf32>
    %111 = arith.maximumf %109, %110 : vector<8x256xf32>
    %c0_62 = arith.constant 0 : index
    %c2176 = arith.constant 2176 : index
    %112 = vector.load %arg5[%c0_62, %c2176] : memref<2x3456xf32, #tpu.memory_space<vmem>>, vector<1x256xf32>
    %c1_63 = arith.constant 1 : index
    %c2176_64 = arith.constant 2176 : index
    %113 = vector.load %arg5[%c1_63, %c2176_64] : memref<2x3456xf32, #tpu.memory_space<vmem>>, vector<1x256xf32>
    %c0_65 = arith.constant 0 : index
    %c0_66 = arith.constant 0 : index
    %114 = vector.load %arg12[%c0_65, %c0_66] : memref<256x256xi8, #tpu.memory_space<vmem>>, vector<256x256xi8>
    %115 = arith.sitofp %114 : vector<256x256xi8> to vector<256x256xf32>
    %116 = arith.truncf %115 : vector<256x256xf32> to vector<256x256xbf16>
    %117 = arith.truncf %111 : vector<8x256xf32> to vector<8x256xbf16>
    %cst_67 = arith.constant dense<0.000000e+00> : vector<8x256xf32>
    %118 = tpu.matmul %117, %116, %cst_67 {dimension_numbers = #tpu.dot_dimension_numbers<[1], [0], [0], [1], [0, 0, 1, 1], [], []>} : vector<8x256xbf16>, vector<256x256xbf16>, vector<8x256xf32> -> vector<8x256xf32>
    %119 = vector.broadcast %112 : vector<1x256xf32> to vector<8x256xf32>
    %120 = arith.mulf %118, %119 : vector<8x256xf32>
    %121 = vector.broadcast %113 : vector<1x256xf32> to vector<8x256xf32>
    %122 = arith.addf %120, %121 : vector<8x256xf32>
    %123 = arith.addf %98, %122 : vector<8x256xf32>
    %c0_68 = arith.constant 0 : index
    %c2432 = arith.constant 2432 : index
    %124 = vector.load %arg5[%c0_68, %c2432] : memref<2x3456xf32, #tpu.memory_space<vmem>>, vector<1x256xf32>
    %c1_69 = arith.constant 1 : index
    %c2432_70 = arith.constant 2432 : index
    %125 = vector.load %arg5[%c1_69, %c2432_70] : memref<2x3456xf32, #tpu.memory_space<vmem>>, vector<1x256xf32>
    %c0_71 = arith.constant 0 : index
    %c0_72 = arith.constant 0 : index
    %126 = vector.load %arg13[%c0_71, %c0_72] : memref<256x256xi8, #tpu.memory_space<vmem>>, vector<256x256xi8>
    %127 = arith.sitofp %126 : vector<256x256xi8> to vector<256x256xf32>
    %128 = arith.truncf %127 : vector<256x256xf32> to vector<256x256xbf16>
    %129 = arith.truncf %123 : vector<8x256xf32> to vector<8x256xbf16>
    %cst_73 = arith.constant dense<0.000000e+00> : vector<8x256xf32>
    %130 = tpu.matmul %129, %128, %cst_73 {dimension_numbers = #tpu.dot_dimension_numbers<[1], [0], [0], [1], [0, 0, 1, 1], [], []>} : vector<8x256xbf16>, vector<256x256xbf16>, vector<8x256xf32> -> vector<8x256xf32>
    %131 = vector.broadcast %124 : vector<1x256xf32> to vector<8x256xf32>
    %132 = arith.mulf %130, %131 : vector<8x256xf32>
    %133 = vector.broadcast %125 : vector<1x256xf32> to vector<8x256xf32>
    %134 = arith.addf %132, %133 : vector<8x256xf32>
    %cst_74 = arith.constant 0.000000e+00 : f32
    %135 = vector.broadcast %cst_74 : f32 to vector<8x256xf32>
    %136 = arith.maximumf %134, %135 : vector<8x256xf32>
    %c0_75 = arith.constant 0 : index
    %c2688 = arith.constant 2688 : index
    %137 = vector.load %arg5[%c0_75, %c2688] : memref<2x3456xf32, #tpu.memory_space<vmem>>, vector<1x256xf32>
    %c1_76 = arith.constant 1 : index
    %c2688_77 = arith.constant 2688 : index
    %138 = vector.load %arg5[%c1_76, %c2688_77] : memref<2x3456xf32, #tpu.memory_space<vmem>>, vector<1x256xf32>
    %c0_78 = arith.constant 0 : index
    %c0_79 = arith.constant 0 : index
    %139 = vector.load %arg14[%c0_78, %c0_79] : memref<256x256xi8, #tpu.memory_space<vmem>>, vector<256x256xi8>
    %140 = arith.sitofp %139 : vector<256x256xi8> to vector<256x256xf32>
    %141 = arith.truncf %140 : vector<256x256xf32> to vector<256x256xbf16>
    %142 = arith.truncf %136 : vector<8x256xf32> to vector<8x256xbf16>
    %cst_80 = arith.constant dense<0.000000e+00> : vector<8x256xf32>
    %143 = tpu.matmul %142, %141, %cst_80 {dimension_numbers = #tpu.dot_dimension_numbers<[1], [0], [0], [1], [0, 0, 1, 1], [], []>} : vector<8x256xbf16>, vector<256x256xbf16>, vector<8x256xf32> -> vector<8x256xf32>
    %144 = vector.broadcast %137 : vector<1x256xf32> to vector<8x256xf32>
    %145 = arith.mulf %143, %144 : vector<8x256xf32>
    %146 = vector.broadcast %138 : vector<1x256xf32> to vector<8x256xf32>
    %147 = arith.addf %145, %146 : vector<8x256xf32>
    %148 = arith.addf %123, %147 : vector<8x256xf32>
    %c0_81 = arith.constant 0 : index
    %c2944 = arith.constant 2944 : index
    %149 = vector.load %arg5[%c0_81, %c2944] : memref<2x3456xf32, #tpu.memory_space<vmem>>, vector<1x512xf32>
    %c1_82 = arith.constant 1 : index
    %c2944_83 = arith.constant 2944 : index
    %150 = vector.load %arg5[%c1_82, %c2944_83] : memref<2x3456xf32, #tpu.memory_space<vmem>>, vector<1x512xf32>
    %c0_84 = arith.constant 0 : index
    %c0_85 = arith.constant 0 : index
    %151 = vector.load %arg15[%c0_84, %c0_85] : memref<256x512xi8, #tpu.memory_space<vmem>>, vector<256x512xi8>
    %152 = arith.sitofp %151 : vector<256x512xi8> to vector<256x512xf32>
    %153 = arith.truncf %152 : vector<256x512xf32> to vector<256x512xbf16>
    %154 = arith.truncf %148 : vector<8x256xf32> to vector<8x256xbf16>
    %cst_86 = arith.constant dense<0.000000e+00> : vector<8x512xf32>
    %155 = tpu.matmul %154, %153, %cst_86 {dimension_numbers = #tpu.dot_dimension_numbers<[1], [0], [0], [1], [0, 0, 1, 1], [], []>} : vector<8x256xbf16>, vector<256x512xbf16>, vector<8x512xf32> -> vector<8x512xf32>
    %156 = vector.broadcast %149 : vector<1x512xf32> to vector<8x512xf32>
    %157 = arith.mulf %155, %156 : vector<8x512xf32>
    %158 = vector.broadcast %150 : vector<1x512xf32> to vector<8x512xf32>
    %159 = arith.addf %157, %158 : vector<8x512xf32>
    %c0_87 = arith.constant 0 : index
    %c0_88 = arith.constant 0 : index
    %160 = vector.load %arg16[%c0_87, %c0_88] : memref<8x512xf32, #tpu.memory_space<vmem>>, vector<8x512xf32>
    tpu.vector_store %arg16[%c0_87, %c0_88], %159 {strides = array<i32>} : memref<8x512xf32, #tpu.memory_space<vmem>>, vector<8x512xf32>,
    return
  }
  func.func @transform_0(%arg0: i32) -> (i32, i32) {
    %c0_i32 = arith.constant 0 : i32
    %c0_i32_0 = arith.constant 0 : i32
    %c0_i32_1 = arith.constant 0 : i32
    return %c0_i32, %c0_i32_0 : i32, i32
  }
  func.func @transform_1(%arg0: i32) -> (i32, i32) {
    %c0_i32 = arith.constant 0 : i32
    %c0_i32_0 = arith.constant 0 : i32
    %c0_i32_1 = arith.constant 0 : i32
    return %c0_i32, %c0_i32_0 : i32, i32
  }
  func.func @transform_2(%arg0: i32) -> (i32, i32) {
    %c0_i32 = arith.constant 0 : i32
    %c0_i32_0 = arith.constant 0 : i32
    %c0_i32_1 = arith.constant 0 : i32
    return %c0_i32, %c0_i32_0 : i32, i32
  }
  func.func @transform_3(%arg0: i32) -> (i32, i32) {
    %c0_i32 = arith.constant 0 : i32
    %c0_i32_0 = arith.constant 0 : i32
    %c0_i32_1 = arith.constant 0 : i32
    return %c0_i32, %c0_i32_0 : i32, i32
  }
  func.func @transform_4(%arg0: i32) -> (i32, i32) {
    %c0_i32 = arith.constant 0 : i32
    %c0_i32_0 = arith.constant 0 : i32
    %c0_i32_1 = arith.constant 0 : i32
    return %c0_i32, %c0_i32_0 : i32, i32
  }
  func.func @transform_5(%arg0: i32) -> (i32, i32) {
    %c0_i32 = arith.constant 0 : i32
    %c0_i32_0 = arith.constant 0 : i32
    %c0_i32_1 = arith.constant 0 : i32
    return %c0_i32, %c0_i32_0 : i32, i32
  }
  func.func @transform_6(%arg0: i32) -> (i32, i32) {
    %c0_i32 = arith.constant 0 : i32
    %c0_i32_0 = arith.constant 0 : i32
    %c0_i32_1 = arith.constant 0 : i32
    return %c0_i32, %c0_i32_0 : i32, i32
  }
  func.func @transform_7(%arg0: i32) -> (i32, i32) {
    %c0_i32 = arith.constant 0 : i32
    %c0_i32_0 = arith.constant 0 : i32
    %c0_i32_1 = arith.constant 0 : i32
    return %c0_i32, %c0_i32_0 : i32, i32
  }
  func.func @transform_8(%arg0: i32) -> (i32, i32) {
    %c0_i32 = arith.constant 0 : i32
    %c0_i32_0 = arith.constant 0 : i32
    %c0_i32_1 = arith.constant 0 : i32
    return %c0_i32, %c0_i32_0 : i32, i32
  }
  func.func @transform_9(%arg0: i32) -> (i32, i32) {
    %c0_i32 = arith.constant 0 : i32
    %c0_i32_0 = arith.constant 0 : i32
    %c0_i32_1 = arith.constant 0 : i32
    return %c0_i32, %c0_i32_0 : i32, i32
  }
  func.func @transform_10(%arg0: i32) -> (i32, i32) {
    %c0_i32 = arith.constant 0 : i32
    %c0_i32_0 = arith.constant 0 : i32
    %c0_i32_1 = arith.constant 0 : i32
    return %c0_i32, %c0_i32_0 : i32, i32
  }
  func.func @transform_11(%arg0: i32) -> (i32, i32) {
    %c0_i32 = arith.constant 0 : i32
    %c0_i32_0 = arith.constant 0 : i32
    %c0_i32_1 = arith.constant 0 : i32
    return %c0_i32, %c0_i32_0 : i32, i32
  }
  func.func @transform_12(%arg0: i32) -> (i32, i32) {
    %c0_i32 = arith.constant 0 : i32
    %c0_i32_0 = arith.constant 0 : i32
    %c0_i32_1 = arith.constant 0 : i32
    return %c0_i32, %c0_i32_0 : i32, i32
  }
  func.func @transform_13(%arg0: i32) -> (i32, i32) {
    %c0_i32 = arith.constant 0 : i32
    %c0_i32_0 = arith.constant 0 : i32
    %c0_i32_1 = arith.constant 0 : i32
    return %c0_i32, %c0_i32_0 : i32, i32
  }
  func.func @transform_14(%arg0: i32) -> (i32, i32) {
    %c0_i32 = arith.constant 0 : i32
    %c0_i32_0 = arith.constant 0 : i32
    %c0_i32_1 = arith.constant 0 : i32
    return %c0_i32, %c0_i32_0 : i32, i32
  }
  func.func @transform_15(%arg0: i32) -> (i32, i32) {
    %c0_i32 = arith.constant 0 : i32
    %c0_i32_0 = arith.constant 0 : i32
    %c0_i32_1 = arith.constant 0 : i32
    return %c0_i32, %c0_i32_0 : i32, i32
  }
}

module attributes {stable_mosaic.version = 11 : i64} {
  func.func @_fused_kernel(%arg0: i32, %arg1: memref<8x1280xf32, #tpu.memory_space<vmem>>, %arg2: memref<8x1xf32, #tpu.memory_space<vmem>>, %arg3: memref<8x1xf32, #tpu.memory_space<vmem>>, %arg4: memref<1x1280xf32, #tpu.memory_space<vmem>>, %arg5: memref<2x3456xf32, #tpu.memory_space<vmem>>, %arg6: memref<128x512xi8, #tpu.memory_space<vmem>>, %arg7: memref<512x512xi8, #tpu.memory_space<vmem>>, %arg8: memref<512x512xi8, #tpu.memory_space<vmem>>, %arg9: memref<512x128xi8, #tpu.memory_space<vmem>>, %arg10: memref<768x256xi8, #tpu.memory_space<vmem>>, %arg11: memref<256x256xi8, #tpu.memory_space<vmem>>, %arg12: memref<256x256xi8, #tpu.memory_space<vmem>>, %arg13: memref<256x256xi8, #tpu.memory_space<vmem>>, %arg14: memref<256x256xi8, #tpu.memory_space<vmem>>, %arg15: memref<256x512xi8, #tpu.memory_space<vmem>>, %arg16: memref<8x512xf32, #tpu.memory_space<vmem>>) attributes {dimension_semantics = [#tpu.dimension_semantics<arbitrary>], iteration_bounds = array<i64: 1>, scalar_prefetch = 0 : i64, scratch_operands = 0 : i64, tpu.core_type = #tpu.core_type<tc>, window_params = [{pipeline_mode = #tpu.pipeline_mode<synchronous>, transform_indices = @transform_0, window_bounds = array<i64: 8, 1280>}, {pipeline_mode = #tpu.pipeline_mode<synchronous>, transform_indices = @transform_1, window_bounds = array<i64: 8, 1>}, {pipeline_mode = #tpu.pipeline_mode<synchronous>, transform_indices = @transform_2, window_bounds = array<i64: 8, 1>}, {pipeline_mode = #tpu.pipeline_mode<synchronous>, transform_indices = @transform_3, window_bounds = array<i64: 1, 1280>}, {pipeline_mode = #tpu.pipeline_mode<synchronous>, transform_indices = @transform_4, window_bounds = array<i64: 2, 3456>}, {pipeline_mode = #tpu.pipeline_mode<synchronous>, transform_indices = @transform_5, window_bounds = array<i64: 128, 512>}, {pipeline_mode = #tpu.pipeline_mode<synchronous>, transform_indices = @transform_6, window_bounds = array<i64: 512, 512>}, {pipeline_mode = #tpu.pipeline_mode<synchronous>, transform_indices = @transform_7, window_bounds = array<i64: 512, 512>}, {pipeline_mode = #tpu.pipeline_mode<synchronous>, transform_indices = @transform_8, window_bounds = array<i64: 512, 128>}, {pipeline_mode = #tpu.pipeline_mode<synchronous>, transform_indices = @transform_9, window_bounds = array<i64: 768, 256>}, {pipeline_mode = #tpu.pipeline_mode<synchronous>, transform_indices = @transform_10, window_bounds = array<i64: 256, 256>}, {pipeline_mode = #tpu.pipeline_mode<synchronous>, transform_indices = @transform_11, window_bounds = array<i64: 256, 256>}, {pipeline_mode = #tpu.pipeline_mode<synchronous>, transform_indices = @transform_12, window_bounds = array<i64: 256, 256>}, {pipeline_mode = #tpu.pipeline_mode<synchronous>, transform_indices = @transform_13, window_bounds = array<i64: 256, 256>}, {pipeline_mode = #tpu.pipeline_mode<synchronous>, transform_indices = @transform_14, window_bounds = array<i64: 256, 512>}, {pipeline_mode = #tpu.pipeline_mode<synchronous>, transform_indices = @transform_15, window_bounds = array<i64: 8, 512>}]} {
    %c0 = arith.constant 0 : index
    %c0_0 = arith.constant 0 : index
    %0 = vector.load %arg1[%c0, %c0_0] : memref<8x1280xf32, #tpu.memory_space<vmem>>, vector<8x128xf32>
    %c0_1 = arith.constant 0 : index
    %c128 = arith.constant 128 : index
    %1 = vector.load %arg1[%c0_1, %c128] : memref<8x1280xf32, #tpu.memory_space<vmem>>, vector<8x128xf32>
    %c0_2 = arith.constant 0 : index
    %c256 = arith.constant 256 : index
    %2 = vector.load %arg1[%c0_2, %c256] : memref<8x1280xf32, #tpu.memory_space<vmem>>, vector<8x384xf32>
    %c0_3 = arith.constant 0 : index
    %c640 = arith.constant 640 : index
    %3 = vector.load %arg1[%c0_3, %c640] : memref<8x1280xf32, #tpu.memory_space<vmem>>, vector<8x384xf32>
    %c0_4 = arith.constant 0 : index
    %c1024 = arith.constant 1024 : index
    %4 = vector.load %arg1[%c0_4, %c1024] : memref<8x1280xf32, #tpu.memory_space<vmem>>, vector<8x128xf32>
    %c0_5 = arith.constant 0 : index
    %c1152 = arith.constant 1152 : index
    %5 = vector.load %arg1[%c0_5, %c1152] : memref<8x1280xf32, #tpu.memory_space<vmem>>, vector<8x128xf32>
    %c0_6 = arith.constant 0 : index
    %c0_7 = arith.constant 0 : index
    %6 = vector.load %arg4[%c0_6, %c0_7] : memref<1x1280xf32, #tpu.memory_space<vmem>>, vector<1x128xf32>
    %c0_8 = arith.constant 0 : index
    %c128_9 = arith.constant 128 : index
    %7 = vector.load %arg4[%c0_8, %c128_9] : memref<1x1280xf32, #tpu.memory_space<vmem>>, vector<1x128xf32>
    %c0_10 = arith.constant 0 : index
    %c256_11 = arith.constant 256 : index
    %8 = vector.load %arg4[%c0_10, %c256_11] : memref<1x1280xf32, #tpu.memory_space<vmem>>, vector<1x384xf32>
    %c0_12 = arith.constant 0 : index
    %c640_13 = arith.constant 640 : index
    %9 = vector.load %arg4[%c0_12, %c640_13] : memref<1x1280xf32, #tpu.memory_space<vmem>>, vector<1x384xf32>
    %c0_14 = arith.constant 0 : index
    %c1024_15 = arith.constant 1024 : index
    %10 = vector.load %arg4[%c0_14, %c1024_15] : memref<1x1280xf32, #tpu.memory_space<vmem>>, vector<1x128xf32>
    %c0_16 = arith.constant 0 : index
    %c1152_17 = arith.constant 1152 : index
    %11 = vector.load %arg4[%c0_16, %c1152_17] : memref<1x1280xf32, #tpu.memory_space<vmem>>, vector<1x128xf32>
    %c0_18 = arith.constant 0 : index
    %c0_19 = arith.constant 0 : index
    %12 = vector.load %arg2[%c0_18, %c0_19] : memref<8x1xf32, #tpu.memory_space<vmem>>, vector<8x1xf32>
    %c0_20 = arith.constant 0 : index
    %c0_21 = arith.constant 0 : index
    %13 = vector.load %arg3[%c0_20, %c0_21] : memref<8x1xf32, #tpu.memory_space<vmem>>, vector<8x1xf32>
    %14 = vector.broadcast %10 : vector<1x128xf32> to vector<8x128xf32>
    %15 = arith.subf %4, %14 : vector<8x128xf32>
    %16 = vector.broadcast %11 : vector<1x128xf32> to vector<8x128xf32>
    %17 = arith.divf %15, %16 : vector<8x128xf32>
    %c0_22 = arith.constant 0 : index
    %c0_23 = arith.constant 0 : index
    %18 = vector.load %arg5[%c0_22, %c0_23] : memref<2x3456xf32, #tpu.memory_space<vmem>>, vector<1x512xf32>
    %c1 = arith.constant 1 : index
    %c0_24 = arith.constant 0 : index
    %19 = vector.load %arg5[%c1, %c0_24] : memref<2x3456xf32, #tpu.memory_space<vmem>>, vector<1x512xf32>
    %c0_25 = arith.constant 0 : index
    %c0_26 = arith.constant 0 : index
    %20 = vector.load %arg6[%c0_25, %c0_26] : memref<128x512xi8, #tpu.memory_space<vmem>>, vector<128x512xi8>
    %21 = arith.sitofp %20 : vector<128x512xi8> to vector<128x512xf32>
    %22 = arith.truncf %21 : vector<128x512xf32> to vector<128x512xbf16>
    %23 = arith.truncf %17 : vector<8x128xf32> to vector<8x128xbf16>
    %cst = arith.constant dense<0.000000e+00> : vector<8x512xf32>
    %24 = tpu.matmul %23, %22, %cst {dimension_numbers = #tpu.dot_dimension_numbers<[1], [0], [0], [1], [0, 0, 1, 1], [], []>} : vector<8x128xbf16>, vector<128x512xbf16>, vector<8x512xf32> -> vector<8x512xf32>
    %25 = vector.broadcast %18 : vector<1x512xf32> to vector<8x512xf32>
    %26 = arith.mulf %24, %25 : vector<8x512xf32>
    %27 = vector.broadcast %19 : vector<1x512xf32> to vector<8x512xf32>
    %28 = arith.addf %26, %27 : vector<8x512xf32>
    %cst_27 = arith.constant 0.000000e+00 : f32
    %29 = vector.broadcast %cst_27 : f32 to vector<8x512xf32>
    %30 = arith.maximumf %28, %29 : vector<8x512xf32>
    %c0_28 = arith.constant 0 : index
    %c512 = arith.constant 512 : index
    %31 = vector.load %arg5[%c0_28, %c512] : memref<2x3456xf32, #tpu.memory_space<vmem>>, vector<1x512xf32>
    %c1_29 = arith.constant 1 : index
    %c512_30 = arith.constant 512 : index
    %32 = vector.load %arg5[%c1_29, %c512_30] : memref<2x3456xf32, #tpu.memory_space<vmem>>, vector<1x512xf32>
    %c0_31 = arith.constant 0 : index
    %c0_32 = arith.constant 0 : index
    %33 = vector.load %arg7[%c0_31, %c0_32] : memref<512x512xi8, #tpu.memory_space<vmem>>, vector<512x512xi8>
    %34 = arith.sitofp %33 : vector<512x512xi8> to vector<512x512xf32>
    %35 = arith.truncf %34 : vector<512x512xf32> to vector<512x512xbf16>
    %36 = arith.truncf %30 : vector<8x512xf32> to vector<8x512xbf16>
    %cst_33 = arith.constant dense<0.000000e+00> : vector<8x512xf32>
    %37 = tpu.matmul %36, %35, %cst_33 {dimension_numbers = #tpu.dot_dimension_numbers<[1], [0], [0], [1], [0, 0, 1, 1], [], []>} : vector<8x512xbf16>, vector<512x512xbf16>, vector<8x512xf32> -> vector<8x512xf32>
    %38 = vector.broadcast %31 : vector<1x512xf32> to vector<8x512xf32>
    %39 = arith.mulf %37, %38 : vector<8x512xf32>
    %40 = vector.broadcast %32 : vector<1x512xf32> to vector<8x512xf32>
    %41 = arith.addf %39, %40 : vector<8x512xf32>
    %cst_34 = arith.constant 0.000000e+00 : f32
    %42 = vector.broadcast %cst_34 : f32 to vector<8x512xf32>
    %43 = arith.maximumf %41, %42 : vector<8x512xf32>
    %c0_35 = arith.constant 0 : index
    %c1024_36 = arith.constant 1024 : index
    %44 = vector.load %arg5[%c0_35, %c1024_36] : memref<2x3456xf32, #tpu.memory_space<vmem>>, vector<1x512xf32>
    %c1_37 = arith.constant 1 : index
    %c1024_38 = arith.constant 1024 : index
    %45 = vector.load %arg5[%c1_37, %c1024_38] : memref<2x3456xf32, #tpu.memory_space<vmem>>, vector<1x512xf32>
    %c0_39 = arith.constant 0 : index
    %c0_40 = arith.constant 0 : index
    %46 = vector.load %arg8[%c0_39, %c0_40] : memref<512x512xi8, #tpu.memory_space<vmem>>, vector<512x512xi8>
    %47 = arith.sitofp %46 : vector<512x512xi8> to vector<512x512xf32>
    %48 = arith.truncf %47 : vector<512x512xf32> to vector<512x512xbf16>
    %49 = arith.truncf %43 : vector<8x512xf32> to vector<8x512xbf16>
    %cst_41 = arith.constant dense<0.000000e+00> : vector<8x512xf32>
    %50 = tpu.matmul %49, %48, %cst_41 {dimension_numbers = #tpu.dot_dimension_numbers<[1], [0], [0], [1], [0, 0, 1, 1], [], []>} : vector<8x512xbf16>, vector<512x512xbf16>, vector<8x512xf32> -> vector<8x512xf32>
    %51 = vector.broadcast %44 : vector<1x512xf32> to vector<8x512xf32>
    %52 = arith.mulf %50, %51 : vector<8x512xf32>
    %53 = vector.broadcast %45 : vector<1x512xf32> to vector<8x512xf32>
    %54 = arith.addf %52, %53 : vector<8x512xf32>
    %55 = arith.addf %30, %54 : vector<8x512xf32>
    %c0_42 = arith.constant 0 : index
    %c1536 = arith.constant 1536 : index
    %56 = vector.load %arg5[%c0_42, %c1536] : memref<2x3456xf32, #tpu.memory_space<vmem>>, vector<1x128xf32>
    %c1_43 = arith.constant 1 : index
    %c1536_44 = arith.constant 1536 : index
    %57 = vector.load %arg5[%c1_43, %c1536_44] : memref<2x3456xf32, #tpu.memory_space<vmem>>, vector<1x128xf32>
    %c0_45 = arith.constant 0 : index
    %c0_46 = arith.constant 0 : index
    %58 = vector.load %arg9[%c0_45, %c0_46] : memref<512x128xi8, #tpu.memory_space<vmem>>, vector<512x128xi8>
    %59 = arith.sitofp %58 : vector<512x128xi8> to vector<512x128xf32>
    %60 = arith.truncf %59 : vector<512x128xf32> to vector<512x128xbf16>
    %61 = arith.truncf %55 : vector<8x512xf32> to vector<8x512xbf16>
    %cst_47 = arith.constant dense<0.000000e+00> : vector<8x128xf32>
    %62 = tpu.matmul %61, %60, %cst_47 {dimension_numbers = #tpu.dot_dimension_numbers<[1], [0], [0], [1], [0, 0, 1, 1], [], []>} : vector<8x512xbf16>, vector<512x128xbf16>, vector<8x128xf32> -> vector<8x128xf32>
    %63 = vector.broadcast %56 : vector<1x128xf32> to vector<8x128xf32>
    %64 = arith.mulf %62, %63 : vector<8x128xf32>
    %65 = vector.broadcast %57 : vector<1x128xf32> to vector<8x128xf32>
    %66 = arith.addf %64, %65 : vector<8x128xf32>
    %67 = vector.broadcast %6 : vector<1x128xf32> to vector<8x128xf32>
    %68 = arith.subf %0, %67 : vector<8x128xf32>
    %69 = vector.broadcast %7 : vector<1x128xf32> to vector<8x128xf32>
    %70 = arith.divf %68, %69 : vector<8x128xf32>
    %71 = vector.broadcast %12 : vector<8x1xf32> to vector<8x128xf32>
    %72 = arith.mulf %71, %70 : vector<8x128xf32>
    %73 = vector.broadcast %13 : vector<8x1xf32> to vector<8x128xf32>
    %74 = arith.mulf %73, %1 : vector<8x128xf32>
    %75 = arith.addf %72, %74 : vector<8x128xf32>
    %76 = vector.broadcast %8 : vector<1x384xf32> to vector<8x384xf32>
    %77 = arith.subf %2, %76 : vector<8x384xf32>
    %78 = vector.broadcast %9 : vector<1x384xf32> to vector<8x384xf32>
    %79 = arith.divf %77, %78 : vector<8x384xf32>
    %80 = vector.broadcast %12 : vector<8x1xf32> to vector<8x384xf32>
    %81 = arith.mulf %80, %79 : vector<8x384xf32>
    %82 = vector.broadcast %13 : vector<8x1xf32> to vector<8x384xf32>
    %83 = arith.mulf %82, %3 : vector<8x384xf32>
    %84 = arith.addf %81, %83 : vector<8x384xf32>
    %85 = tpu.concatenate %75, %84, %5, %66 in 1 : vector<8x128xf32>, vector<8x384xf32>, vector<8x128xf32>, vector<8x128xf32> -> vector<8x768xf32>
    %c0_48 = arith.constant 0 : index
    %c1664 = arith.constant 1664 : index
    %86 = vector.load %arg5[%c0_48, %c1664] : memref<2x3456xf32, #tpu.memory_space<vmem>>, vector<1x256xf32>
    %c1_49 = arith.constant 1 : index
    %c1664_50 = arith.constant 1664 : index
    %87 = vector.load %arg5[%c1_49, %c1664_50] : memref<2x3456xf32, #tpu.memory_space<vmem>>, vector<1x256xf32>
    %c0_51 = arith.constant 0 : index
    %c0_52 = arith.constant 0 : index
    %88 = vector.load %arg10[%c0_51, %c0_52] : memref<768x256xi8, #tpu.memory_space<vmem>>, vector<768x256xi8>
    %89 = arith.sitofp %88 : vector<768x256xi8> to vector<768x256xf32>
    %90 = arith.truncf %89 : vector<768x256xf32> to vector<768x256xbf16>
    %91 = arith.truncf %85 : vector<8x768xf32> to vector<8x768xbf16>
    %cst_53 = arith.constant dense<0.000000e+00> : vector<8x256xf32>
    %92 = tpu.matmul %91, %90, %cst_53 {dimension_numbers = #tpu.dot_dimension_numbers<[1], [0], [0], [1], [0, 0, 1, 1], [], []>} : vector<8x768xbf16>, vector<768x256xbf16>, vector<8x256xf32> -> vector<8x256xf32>
    %93 = vector.broadcast %86 : vector<1x256xf32> to vector<8x256xf32>
    %94 = arith.mulf %92, %93 : vector<8x256xf32>
    %95 = vector.broadcast %87 : vector<1x256xf32> to vector<8x256xf32>
    %96 = arith.addf %94, %95 : vector<8x256xf32>
    %cst_54 = arith.constant 0.000000e+00 : f32
    %97 = vector.broadcast %cst_54 : f32 to vector<8x256xf32>
    %98 = arith.maximumf %96, %97 : vector<8x256xf32>
    %c0_55 = arith.constant 0 : index
    %c1920 = arith.constant 1920 : index
    %99 = vector.load %arg5[%c0_55, %c1920] : memref<2x3456xf32, #tpu.memory_space<vmem>>, vector<1x256xf32>
    %c1_56 = arith.constant 1 : index
    %c1920_57 = arith.constant 1920 : index
    %100 = vector.load %arg5[%c1_56, %c1920_57] : memref<2x3456xf32, #tpu.memory_space<vmem>>, vector<1x256xf32>
    %c0_58 = arith.constant 0 : index
    %c0_59 = arith.constant 0 : index
    %101 = vector.load %arg11[%c0_58, %c0_59] : memref<256x256xi8, #tpu.memory_space<vmem>>, vector<256x256xi8>
    %102 = arith.sitofp %101 : vector<256x256xi8> to vector<256x256xf32>
    %103 = arith.truncf %102 : vector<256x256xf32> to vector<256x256xbf16>
    %104 = arith.truncf %98 : vector<8x256xf32> to vector<8x256xbf16>
    %cst_60 = arith.constant dense<0.000000e+00> : vector<8x256xf32>
    %105 = tpu.matmul %104, %103, %cst_60 {dimension_numbers = #tpu.dot_dimension_numbers<[1], [0], [0], [1], [0, 0, 1, 1], [], []>} : vector<8x256xbf16>, vector<256x256xbf16>, vector<8x256xf32> -> vector<8x256xf32>
    %106 = vector.broadcast %99 : vector<1x256xf32> to vector<8x256xf32>
    %107 = arith.mulf %105, %106 : vector<8x256xf32>
    %108 = vector.broadcast %100 : vector<1x256xf32> to vector<8x256xf32>
    %109 = arith.addf %107, %108 : vector<8x256xf32>
    %cst_61 = arith.constant 0.000000e+00 : f32
    %110 = vector.broadcast %cst_61 : f32 to vector<8x256xf32>
    %111 = arith.maximumf %109, %110 : vector<8x256xf32>
    %c0_62 = arith.constant 0 : index
    %c2176 = arith.constant 2176 : index
    %112 = vector.load %arg5[%c0_62, %c2176] : memref<2x3456xf32, #tpu.memory_space<vmem>>, vector<1x256xf32>
    %c1_63 = arith.constant 1 : index
    %c2176_64 = arith.constant 2176 : index
    %113 = vector.load %arg5[%c1_63, %c2176_64] : memref<2x3456xf32, #tpu.memory_space<vmem>>, vector<1x256xf32>
    %c0_65 = arith.constant 0 : index
    %c0_66 = arith.constant 0 : index
    %114 = vector.load %arg12[%c0_65, %c0_66] : memref<256x256xi8, #tpu.memory_space<vmem>>, vector<256x256xi8>
    %115 = arith.sitofp %114 : vector<256x256xi8> to vector<256x256xf32>
    %116 = arith.truncf %115 : vector<256x256xf32> to vector<256x256xbf16>
    %117 = arith.truncf %111 : vector<8x256xf32> to vector<8x256xbf16>
    %cst_67 = arith.constant dense<0.000000e+00> : vector<8x256xf32>
    %118 = tpu.matmul %117, %116, %cst_67 {dimension_numbers = #tpu.dot_dimension_numbers<[1], [0], [0], [1], [0, 0, 1, 1], [], []>} : vector<8x256xbf16>, vector<256x256xbf16>, vector<8x256xf32> -> vector<8x256xf32>
    %119 = vector.broadcast %112 : vector<1x256xf32> to vector<8x256xf32>
    %120 = arith.mulf %118, %119 : vector<8x256xf32>
    %121 = vector.broadcast %113 : vector<1x256xf32> to vector<8x256xf32>
    %122 = arith.addf %120, %121 : vector<8x256xf32>
    %123 = arith.addf %98, %122 : vector<8x256xf32>
    %c0_68 = arith.constant 0 : index
    %c2432 = arith.constant 2432 : index
    %124 = vector.load %arg5[%c0_68, %c2432] : memref<2x3456xf32, #tpu.memory_space<vmem>>, vector<1x256xf32>
    %c1_69 = arith.constant 1 : index
    %c2432_70 = arith.constant 2432 : index
    %125 = vector.load %arg5[%c1_69, %c2432_70] : memref<2x3456xf32, #tpu.memory_space<vmem>>, vector<1x256xf32>
    %c0_71 = arith.constant 0 : index
    %c0_72 = arith.constant 0 : index
    %126 = vector.load %arg13[%c0_71, %c0_72] : memref<256x256xi8, #tpu.memory_space<vmem>>, vector<256x256xi8>
    %127 = arith.sitofp %126 : vector<256x256xi8> to vector<256x256xf32>
    %128 = arith.truncf %127 : vector<256x256xf32> to vector<256x256xbf16>
    %129 = arith.truncf %123 : vector<8x256xf32> to vector<8x256xbf16>
    %cst_73 = arith.constant dense<0.000000e+00> : vector<8x256xf32>
    %130 = tpu.matmul %129, %128, %cst_73 {dimension_numbers = #tpu.dot_dimension_numbers<[1], [0], [0], [1], [0, 0, 1, 1], [], []>} : vector<8x256xbf16>, vector<256x256xbf16>, vector<8x256xf32> -> vector<8x256xf32>
    %131 = vector.broadcast %124 : vector<1x256xf32> to vector<8x256xf32>
    %132 = arith.mulf %130, %131 : vector<8x256xf32>
    %133 = vector.broadcast %125 : vector<1x256xf32> to vector<8x256xf32>
    %134 = arith.addf %132, %133 : vector<8x256xf32>
    %cst_74 = arith.constant 0.000000e+00 : f32
    %135 = vector.broadcast %cst_74 : f32 to vector<8x256xf32>
    %136 = arith.maximumf %134, %135 : vector<8x256xf32>
    %c0_75 = arith.constant 0 : index
    %c2688 = arith.constant 2688 : index
    %137 = vector.load %arg5[%c0_75, %c2688] : memref<2x3456xf32, #tpu.memory_space<vmem>>, vector<1x256xf32>
    %c1_76 = arith.constant 1 : index
    %c2688_77 = arith.constant 2688 : index
    %138 = vector.load %arg5[%c1_76, %c2688_77] : memref<2x3456xf32, #tpu.memory_space<vmem>>, vector<1x256xf32>
    %c0_78 = arith.constant 0 : index
    %c0_79 = arith.constant 0 : index
    %139 = vector.load %arg14[%c0_78, %c0_79] : memref<256x256xi8, #tpu.memory_space<vmem>>, vector<256x256xi8>
    %140 = arith.sitofp %139 : vector<256x256xi8> to vector<256x256xf32>
    %141 = arith.truncf %140 : vector<256x256xf32> to vector<256x256xbf16>
    %142 = arith.truncf %136 : vector<8x256xf32> to vector<8x256xbf16>
    %cst_80 = arith.constant dense<0.000000e+00> : vector<8x256xf32>
    %143 = tpu.matmul %142, %141, %cst_80 {dimension_numbers = #tpu.dot_dimension_numbers<[1], [0], [0], [1], [0, 0, 1, 1], [], []>} : vector<8x256xbf16>, vector<256x256xbf16>, vector<8x256xf32> -> vector<8x256xf32>
    %144 = vector.broadcast %137 : vector<1x256xf32> to vector<8x256xf32>
    %145 = arith.mulf %143, %144 : vector<8x256xf32>
    %146 = vector.broadcast %138 : vector<1x256xf32> to vector<8x256xf32>
    %147 = arith.addf %145, %146 : vector<8x256xf32>
    %148 = arith.addf %123, %147 : vector<8x256xf32>
    %c0_81 = arith.constant 0 : index
    %c2944 = arith.constant 2944 : index
    %149 = vector.load %arg5[%c0_81, %c2944] : memref<2x3456xf32, #tpu.memory_space<vmem>>, vector<1x512xf32>
    %c1_82 = arith.constant 1 : index
    %c2944_83 = arith.constant 2944 : index
    %150 = vector.load %arg5[%c1_82, %c2944_83] : memref<2x3456xf32, #tpu.memory_space<vmem>>, vector<1x512xf32>
    %c0_84 = arith.constant 0 : index
    %c0_85 = arith.constant 0 : index
    %151 = vector.load %arg15[%c0_84, %c0_85] : memref<256x512xi8, #tpu.memory_space<vmem>>, vector<256x512xi8>
    %152 = arith.sitofp %151 : vector<256x512xi8> to vector<256x512xf32>
    %153 = arith.truncf %152 : vector<256x512xf32> to vector<256x512xbf16>
    %154 = arith.truncf %148 : vector<8x256xf32> to vector<8x256xbf16>
    %cst_86 = arith.constant dense<0.000000e+00> : vector<8x512xf32>
    %155 = tpu.matmul %154, %153, %cst_86 {dimension_numbers = #tpu.dot_dimension_numbers<[1], [0], [0], [1], [0, 0, 1, 1], [], []>} : vector<8x256xbf16>, vector<256x512xbf16>, vector<8x512xf32> -> vector<8x512xf32>
    %156 = vector.broadcast %149 : vector<1x512xf32> to vector<8x512xf32>
    %157 = arith.mulf %155, %156 : vector<8x512xf32>
    %158 = vector.broadcast %150 : vector<1x512xf32> to vector<8x512xf32>
    %159 = arith.addf %157, %158 : vector<8x512xf32>
    %c0_87 = arith.constant 0 : index
    %c0_88 = arith.constant 0 : index
    %160 = vector.load %arg16[%c0_87, %c0_88] : memref<8x512xf32, #tpu.memory_space<vmem>>, vector<8x512xf32>
    tpu.vector_store %arg16[%c0_87, %c0_88], %159 {strides = array<i32>} : memref<8x512xf32, #tpu.memory_space<vmem>>, vector<8x512xf32>,
    return
  }
  func.func @transform_0(%arg0: i32) -> (i32, i32) {
    %c0_i32 = arith.constant 0 : i32
    %c0_i32_0 = arith.constant 0 : i32
    %c0_i32_1 = arith.constant 0 : i32
    return %c0_i32, %c0_i32_0 : i32, i32
  }
  func.func @transform_1(%arg0: i32) -> (i32, i32) {
    %c0_i32 = arith.constant 0 : i32
    %c0_i32_0 = arith.constant 0 : i32
    %c0_i32_1 = arith.constant 0 : i32
    return %c0_i32, %c0_i32_0 : i32, i32
  }
  func.func @transform_2(%arg0: i32) -> (i32, i32) {
    %c0_i32 = arith.constant 0 : i32
    %c0_i32_0 = arith.constant 0 : i32
    %c0_i32_1 = arith.constant 0 : i32
    return %c0_i32, %c0_i32_0 : i32, i32
  }
  func.func @transform_3(%arg0: i32) -> (i32, i32) {
    %c0_i32 = arith.constant 0 : i32
    %c0_i32_0 = arith.constant 0 : i32
    %c0_i32_1 = arith.constant 0 : i32
    return %c0_i32, %c0_i32_0 : i32, i32
  }
  func.func @transform_4(%arg0: i32) -> (i32, i32) {
    %c0_i32 = arith.constant 0 : i32
    %c0_i32_0 = arith.constant 0 : i32
    %c0_i32_1 = arith.constant 0 : i32
    return %c0_i32, %c0_i32_0 : i32, i32
  }
  func.func @transform_5(%arg0: i32) -> (i32, i32) {
    %c0_i32 = arith.constant 0 : i32
    %c0_i32_0 = arith.constant 0 : i32
    %c0_i32_1 = arith.constant 0 : i32
    return %c0_i32, %c0_i32_0 : i32, i32
  }
  func.func @transform_6(%arg0: i32) -> (i32, i32) {
    %c0_i32 = arith.constant 0 : i32
    %c0_i32_0 = arith.constant 0 : i32
    %c0_i32_1 = arith.constant 0 : i32
    return %c0_i32, %c0_i32_0 : i32, i32
  }
  func.func @transform_7(%arg0: i32) -> (i32, i32) {
    %c0_i32 = arith.constant 0 : i32
    %c0_i32_0 = arith.constant 0 : i32
    %c0_i32_1 = arith.constant 0 : i32
    return %c0_i32, %c0_i32_0 : i32, i32
  }
  func.func @transform_8(%arg0: i32) -> (i32, i32) {
    %c0_i32 = arith.constant 0 : i32
    %c0_i32_0 = arith.constant 0 : i32
    %c0_i32_1 = arith.constant 0 : i32
    return %c0_i32, %c0_i32_0 : i32, i32
  }
  func.func @transform_9(%arg0: i32) -> (i32, i32) {
    %c0_i32 = arith.constant 0 : i32
    %c0_i32_0 = arith.constant 0 : i32
    %c0_i32_1 = arith.constant 0 : i32
    return %c0_i32, %c0_i32_0 : i32, i32
  }
  func.func @transform_10(%arg0: i32) -> (i32, i32) {
    %c0_i32 = arith.constant 0 : i32
    %c0_i32_0 = arith.constant 0 : i32
    %c0_i32_1 = arith.constant 0 : i32
    return %c0_i32, %c0_i32_0 : i32, i32
  }
  func.func @transform_11(%arg0: i32) -> (i32, i32) {
    %c0_i32 = arith.constant 0 : i32
    %c0_i32_0 = arith.constant 0 : i32
    %c0_i32_1 = arith.constant 0 : i32
    return %c0_i32, %c0_i32_0 : i32, i32
  }
  func.func @transform_12(%arg0: i32) -> (i32, i32) {
    %c0_i32 = arith.constant 0 : i32
    %c0_i32_0 = arith.constant 0 : i32
    %c0_i32_1 = arith.constant 0 : i32
    return %c0_i32, %c0_i32_0 : i32, i32
  }
  func.func @transform_13(%arg0: i32) -> (i32, i32) {
    %c0_i32 = arith.constant 0 : i32
    %c0_i32_0 = arith.constant 0 : i32
    %c0_i32_1 = arith.constant 0 : i32
    return %c0_i32, %c0_i32_0 : i32, i32
  }
  func.func @transform_14(%arg0: i32) -> (i32, i32) {
    %c0_i32 = arith.constant 0 : i32
    %c0_i32_0 = arith.constant 0 : i32
    %c0_i32_1 = arith.constant 0 : i32
    return %c0_i32, %c0_i32_0 : i32, i32
  }
  func.func @transform_15(%arg0: i32) -> (i32, i32) {
    %c0_i32 = arith.constant 0 : i32
    %c0_i32_0 = arith.constant 0 : i32
    %c0_i32_1 = arith.constant 0 : i32
    return %c0_i32, %c0_i32_0 : i32, i32
  }
}

</mosaic_0001>

<bundles_post_ra>
// kernel: tpu_custom_call.1
= control target key start
LH: loop header
LB: loop body
LE: loop exit
PB: predicated region body
PF: predicated region fallthrough
CT: control target
= control target key end

     0   :  { %20 = vsyncpa [#allocation3], 0  ;;  %s3331_s0 = inlined_call_operand.hbm [shape: f32[8,1280], index: 0, kind: input, shape index: {}]   ;;  %s3332_s1 = inlined_call_operand.vmem [shape: f32[8,1], index: 1, kind: input, shape index: {}]   ;;  %s3333_s2 = inlined_call_operand.vmem [shape: f32[8,1], index: 2, kind: input, shape index: {}]   ;;  %s3334_s3 = inlined_call_operand.vmem [shape: f32[1,1280], index: 3, kind: input, shape index: {}]   ;;  %s3335_s4 = inlined_call_operand.hbm [shape: f32[2,3456], index: 4, kind: input, shape index: {}]   ;;  %s3336_s5 = inlined_call_operand.hbm [shape: s8[128,512], index: 5, kind: input, shape index: {}]   ;;  %s3337_s6 = inlined_call_operand.hbm [shape: s8[512,512], index: 6, kind: input, shape index: {}]   ;;  %s3338_s7 = inlined_call_operand.hbm [shape: s8[512,512], index: 7, kind: input, shape index: {}]   ;;  %s3339_s8 = inlined_call_operand.hbm [shape: s8[512,128], index: 8, kind: input, shape index: {}]   ;;  %s3340_s9 = inlined_call_operand.hbm [shape: s8[768,256], index: 9, kind: input, shape index: {}]   ;;  %s3341_s10 = inlined_call_operand.hbm [shape: s8[256,256], index: 10, kind: input, shape index: {}]   ;;  %s3342_s11 = inlined_call_operand.hbm [shape: s8[256,256], index: 11, kind: input, shape index: {}]   ;;  %s3343_s12 = inlined_call_operand.hbm [shape: s8[256,256], index: 12, kind: input, shape index: {}]   ;;  %s3344_s13 = inlined_call_operand.hbm [shape: s8[256,256], index: 13, kind: input, shape index: {}]   ;;  %s3345_s14 = inlined_call_operand.hbm [shape: s8[256,512], index: 14, kind: input, shape index: {}]   ;;  %s3346_s15 = inlined_call_operand.hbm [shape: f32[8,512], index: 15, kind: output, shape index: {}]  }
   0x1   :  { %21 = vsyncpa [#allocation6], 0 }
   0x2   :  { %22 = vsyncpa [#allocation9], 0 }
   0x3   :  { %23 = vsyncpa [#allocation12], 0 }
   0x4   :  { %24 = vsyncpa [#allocation15], 0 }
   0x5   :  { %25 = vsyncpa [#allocation18], 0 }
   0x6   :  { %26 = vsyncpa [#allocation21], 0 }
   0x7   :  { %27 = vsyncpa [#allocation4], 0  ;;  %s2903_s18 = smov [#allocation5]  }
   0x8   :  { %s50_s19 = sshll.u32 %s2903_s18, 4  ;;  %s51_s19 = int_to_ptr.vmem [resolvable:$true] %s50_s19 }
   0x9   :  { %s2635_s20 = scalar_lea.vmem %s51_s19, 864  ;;  %p2640_p1 = scmp.lt.s32.totalorder %s51_s19, %s51_s19 }
   0xa   :  { %p2636_p0 = scmp.ne.s32.totalorder %s51_s19, %s2635_s20  ;;  %p2641_p2 = scmp.lt.s32.totalorder %s2635_s20, %s2635_s20 }
   0xc   :  { %p2642_p3 = por %p2641_p2, %p2640_p1 }
   0xe   :  { %p2643_p4 = pnand %p2642_p3, %p2636_p0 }
  0x10   :  { %2646 = shalt.err (!%p2643_p4)
}
  0x11   :  { %53 = dma.hbm_to_vmem [thread:$0]  %s3335_s4, 864, %s51_s19, [#allocation6]  }
  0x12   :  { %s2904_s23 = smov [#allocation8]   ;;  %s2905_s25 = smov [#allocation11]  }
  0x13   :  { %s71_s24 = sshll.u32 %s2904_s23, 4  ;;  %s95_s26 = sshll.u32 %s2905_s25, 4  ;;  %s72_s24 = int_to_ptr.vmem [resolvable:$true] %s71_s24  ;;  %s96_s26 = int_to_ptr.vmem [resolvable:$true] %s95_s26 }
  0x14   :  { %s2655_s27 = scalar_lea.vmem %s72_s24, 8192  ;;  %p2660_p6 = scmp.lt.s32.totalorder %s72_s24, %s72_s24 }
  0x15   :  { %p2656_p5 = scmp.ne.s32.totalorder %s72_s24, %s2655_s27  ;;  %p2661_p7 = scmp.lt.s32.totalorder %s2655_s27, %s2655_s27 }
  0x17   :  { %p2662_p8 = por %p2661_p7, %p2660_p6 }
  0x19   :  { %p2663_p9 = pnand %p2662_p8, %p2656_p5 }
  0x1b   :  { %2666 = shalt.err (!%p2663_p9)
}
  0x1c   :  { %s2906_s28 = smov 512   ;;  %s2907_s29 = smov 32  }
  0x1d   :  { %77 = dma.hbm_to_vmem [thread:$0]  %s3337_s6, 8192, %s72_s24, [#allocation9], %s2906_s28, %s2906_s28, %s2907_s29  }
  0x1e   :  { %s2675_s4 = scalar_lea.vmem %s96_s26, 2048  ;;  %p2680_p11 = scmp.lt.s32.totalorder %s96_s26, %s96_s26 }
  0x1f   :  { %p2676_p10 = scmp.ne.s32.totalorder %s96_s26, %s2675_s4  ;;  %p2681_p12 = scmp.lt.s32.totalorder %s2675_s4, %s2675_s4 }
  0x21   :  { %p2682_p13 = por %p2681_p12, %p2680_p11 }
  0x23   :  { %p2683_p0 = pnand %p2682_p13, %p2676_p10 }
  0x25   :  { %2686 = shalt.err (!%p2683_p0)
}
  0x26   :  { %s2908_s17 = smov 128   ;;  %s2909_s18 = smov 8  }
  0x27   :  { %101 = dma.hbm_to_vmem [thread:$0]  %s3339_s8, 2048, %s96_s26, [#allocation12], %s2908_s17, %s2908_s17, %s2909_s18  }
  0x28   :  { %s2910_s21 = smov [#allocation14]   ;;  %s2911_s23 = smov [#allocation17]  }
  0x29   :  { %s119_s22 = sshll.u32 %s2910_s21, 4  ;;  %s143_s25 = sshll.u32 %s2911_s23, 4  ;;  %s120_s22 = int_to_ptr.vmem [resolvable:$true] %s119_s22  ;;  %s144_s25 = int_to_ptr.vmem [resolvable:$true] %s143_s25 }
  0x2a   :  { %s2695_s6 = scalar_lea.vmem %s120_s22, 2048  ;;  %p2700_p2 = scmp.lt.s32.totalorder %s120_s22, %s120_s22 }
  0x2b   :  { %p2696_p1 = scmp.ne.s32.totalorder %s120_s22, %s2695_s6  ;;  %p2701_p3 = scmp.lt.s32.totalorder %s2695_s6, %s2695_s6 }
  0x2d   :  { %p2702_p4 = por %p2701_p3, %p2700_p2 }
  0x2f   :  { %p2703_p5 = pnand %p2702_p4, %p2696_p1 }
  0x31   :  { %2706 = shalt.err (!%p2703_p5)
}
  0x32   :  { %s2912_s24 = smov 256   ;;  %s2913_s27 = smov 16  }
  0x33   :  { %125 = dma.hbm_to_vmem [thread:$0]  %s3341_s10, 2048, %s120_s22, [#allocation15], %s2912_s24, %s2912_s24, %s2913_s27  }
  0x34   :  { %s2715_s8 = scalar_lea.vmem %s144_s25, 2048  ;;  %p2720_p7 = scmp.lt.s32.totalorder %s144_s25, %s144_s25 }
  0x35   :  { %p2716_p6 = scmp.ne.s32.totalorder %s144_s25, %s2715_s8  ;;  %p2721_p8 = scmp.lt.s32.totalorder %s2715_s8, %s2715_s8 }
  0x37   :  { %p2722_p9 = por %p2721_p8, %p2720_p7 }
  0x39   :  { %p2723_p10 = pnand %p2722_p9, %p2716_p6 }
  0x3b   :  { %2726 = shalt.err (!%p2723_p10)
}
  0x3c   :  { %149 = dma.hbm_to_vmem [thread:$0]  %s3343_s12, 2048, %s144_s25, [#allocation18], %s2912_s24, %s2912_s24, %s2913_s27  }
  0x3d   :  { %s2914_s17 = smov [#allocation2]   ;;  %s2915_s19 = smov [#allocation7]  }
  0x3e   :  { %s34_s18 = sshll.u32 %s2914_s17, 4  ;;  %s59_s10 = sshll.u32 %s2915_s19, 4  ;;  %s35_s18 = int_to_ptr.vmem [resolvable:$true] %s34_s18  ;;  %s60_s10 = int_to_ptr.vmem [resolvable:$true] %s59_s10 }
  0x3f   :  { %s2735_s20 = scalar_lea.vmem %s35_s18, 1280  ;;  %p2740_p12 = scmp.lt.s32.totalorder %s35_s18, %s35_s18 }
  0x40   :  { %p2736_p11 = scmp.ne.s32.totalorder %s35_s18, %s2735_s20  ;;  %p2741_p13 = scmp.lt.s32.totalorder %s2735_s20, %s2735_s20 }
  0x42   :  { %p2742_p0 = por %p2741_p13, %p2740_p12 }
  0x44   :  { %p2743_p1 = pnand %p2742_p0, %p2736_p11 }
  0x46   :  { %2746 = shalt.err (!%p2743_p1)
}
  0x47   :  { %37 = dma.hbm_to_vmem [thread:$0]  %s3331_s0, 1280, %s35_s18, [#allocation3]  }
  0x48   :  { %s2755_s23 = scalar_lea.vmem %s60_s10, 2048  ;;  %p2760_p3 = scmp.lt.s32.totalorder %s60_s10, %s60_s10 }
  0x49   :  { %p2756_p2 = scmp.ne.s32.totalorder %s60_s10, %s2755_s23  ;;  %p2761_p4 = scmp.lt.s32.totalorder %s2755_s23, %s2755_s23 }
  0x4b   :  { %p2762_p5 = por %p2761_p4, %p2760_p3 }
  0x4d   :  { %p2763_p6 = pnand %p2762_p5, %p2756_p2 }
  0x4f   :  { %2766 = shalt.err (!%p2763_p6)
}
  0x50   :  { %65 = dma.hbm_to_vmem [thread:$0]  %s3336_s5, 2048, %s60_s10, [#allocation6], %s2906_s28, %s2906_s28, %s2907_s29  }
  0x51   :  { %s2916_s6 = smov [#allocation10]   ;;  %s2917_s16 = smov [#allocation13]  }
  0x52   :  { %s83_s30 = sshll.u32 %s2916_s6, 4  ;;  %s107_s0 = sshll.u32 %s2917_s16, 4  ;;  %s84_s30 = int_to_ptr.vmem [resolvable:$true] %s83_s30  ;;  %s108_s0 = int_to_ptr.vmem [resolvable:$true] %s107_s0 }
  0x53   :  { %s2775_s8 = scalar_lea.vmem %s84_s30, 8192  ;;  %p2780_p8 = scmp.lt.s32.totalorder %s84_s30, %s84_s30 }
  0x54   :  { %p2776_p7 = scmp.ne.s32.totalorder %s84_s30, %s2775_s8  ;;  %p2781_p9 = scmp.lt.s32.totalorder %s2775_s8, %s2775_s8 }
  0x56   :  { %p2782_p10 = por %p2781_p9, %p2780_p8 }
  0x58   :  { %p2783_p11 = pnand %p2782_p10, %p2776_p7 }
  0x5a   :  { %2786 = shalt.err (!%p2783_p11)
}
  0x5b   :  { %89 = dma.hbm_to_vmem [thread:$0]  %s3338_s7, 8192, %s84_s30, [#allocation9], %s2906_s28, %s2906_s28, %s2907_s29  }
  0x5c   :  { %s2795_s5 = scalar_lea.vmem %s108_s0, 6144  ;;  %p2800_p13 = scmp.lt.s32.totalorder %s108_s0, %s108_s0 }
  0x5d   :  { %p2796_p12 = scmp.ne.s32.totalorder %s108_s0, %s2795_s5  ;;  %p2801_p0 = scmp.lt.s32.totalorder %s2795_s5, %s2795_s5 }
  0x5f   :  { %p2802_p1 = por %p2801_p0, %p2800_p13 }
  0x61   :  { %p2803_p2 = pnand %p2802_p1, %p2796_p12 }
  0x63   :  { %2806 = shalt.err (!%p2803_p2)
}
  0x64   :  { %113 = dma.hbm_to_vmem [thread:$0]  %s3340_s9, 6144, %s108_s0, [#allocation12], %s2912_s24, %s2912_s24, %s2913_s27  }
  0x65   :  { %s2918_s19 = smov [#allocation16]   ;;  %s2919_s20 = smov [#allocation19]  }
  0x66   :  { %s131_s10 = sshll.u32 %s2918_s19, 4  ;;  %s155_s7 = sshll.u32 %s2919_s20, 4  ;;  %s132_s10 = int_to_ptr.vmem [resolvable:$true] %s131_s10  ;;  %s156_s7 = int_to_ptr.vmem [resolvable:$true] %s155_s7 }
  0x67   :  { %s2815_s21 = scalar_lea.vmem %s132_s10, 2048  ;;  %p2820_p4 = scmp.lt.s32.totalorder %s132_s10, %s132_s10 }
  0x68   :  { %p2816_p3 = scmp.ne.s32.totalorder %s132_s10, %s2815_s21  ;;  %p2821_p5 = scmp.lt.s32.totalorder %s2815_s21, %s2815_s21 }
  0x6a   :  { %p2822_p6 = por %p2821_p5, %p2820_p4 }
  0x6c   :  { %p2823_p7 = pnand %p2822_p6, %p2816_p3 }
  0x6e   :  { %2826 = shalt.err (!%p2823_p7)
}
  0x6f   :  { %137 = dma.hbm_to_vmem [thread:$0]  %s3342_s11, 2048, %s132_s10, [#allocation15], %s2912_s24, %s2912_s24, %s2913_s27  }
  0x70   :  { %s2835_s9 = scalar_lea.vmem %s156_s7, 2048  ;;  %p2840_p9 = scmp.lt.s32.totalorder %s156_s7, %s156_s7 }
  0x71   :  { %p2836_p8 = scmp.ne.s32.totalorder %s156_s7, %s2835_s9  ;;  %p2841_p10 = scmp.lt.s32.totalorder %s2835_s9, %s2835_s9 }
  0x73   :  { %p2842_p11 = por %p2841_p10, %p2840_p9 }
  0x75   :  { %p2843_p12 = pnand %p2842_p11, %p2836_p8 }
  0x77   :  { %2846 = shalt.err (!%p2843_p12)
}
  0x78   :  { %161 = dma.hbm_to_vmem [thread:$0]  %s3344_s13, 2048, %s156_s7, [#allocation18], %s2912_s24, %s2912_s24, %s2913_s27  }
  0x79   :  { %s2920_s6 = smov [#allocation20]  }
  0x7a   :  { %s167_s30 = sshll.u32 %s2920_s6, 4  ;;  %s168_s30 = int_to_ptr.vmem [resolvable:$true] %s167_s30 }
  0x7b   :  { %s2855_s16 = scalar_lea.vmem %s168_s30, 4096  ;;  %p2860_p0 = scmp.lt.s32.totalorder %s168_s30, %s168_s30 }
  0x7c   :  { %p2856_p13 = scmp.ne.s32.totalorder %s168_s30, %s2855_s16  ;;  %p2861_p1 = scmp.lt.s32.totalorder %s2855_s16, %s2855_s16 }
  0x7e   :  { %p2862_p2 = por %p2861_p1, %p2860_p0 }
  0x80   :  { %p2863_p3 = pnand %p2862_p2, %p2856_p13 }
  0x82   :  { %2866 = shalt.err (!%p2863_p3)
}
  0x83   :  { %173 = dma.hbm_to_vmem [thread:$0]  %s3345_s14, 4096, %s168_s30, [#allocation21], %s2906_s28, %s2906_s28, %s2907_s29  }
  0x84   :  { %2887 = dma.done.wait [#allocation3], 1280  }
  0x85   :  { %2888 = vsyncadd [#allocation3], 4294966016 }
  0x86   :  { %2889 = dma.done.wait [#allocation6], 2912  }
  0x87   :  { %2890 = vsyncadd [#allocation6], 4294964384 }
  0x88   :  { %2891 = dma.done.wait [#allocation9], 16384  }
  0x89   :  { %2892 = vsyncadd [#allocation9], 4294950912 }
  0x8a   :  { %2893 = dma.done.wait [#allocation12], 8192  }
  0x8b   :  { %2894 = vsyncadd [#allocation12], 4294959104 }
  0x8c   :  { %2895 = dma.done.wait [#allocation15], 4096  }
  0x8d   :  { %2896 = vsyncadd [#allocation15], 4294963200 }
  0x8e   :  { %2897 = dma.done.wait [#allocation18], 4096  }
  0x8f   :  { %2898 = vsyncadd [#allocation18], 4294963200 }
  0x90   :  { %2899 = dma.done.wait [#allocation21], 4096  }
  0x91   :  { %2900 = vsyncadd [#allocation21], 4294963200  ;;  %v2921_v0 = vmov 0   ;;  %v260_v1 = vld [vmem:[#allocation7 + $0x68] sm:$0xff]  ;;  %v259_v2 = vld [vmem:[#allocation7 + $0x60] sm:$0xff] }
  0x92   :  { %328 = vmatprep.mubr.bf16.mxu1 %v2921_v0  ;;  %2616 = vset.pattern.permute.xlu0 %v2921_v0  ;;  %v288_v3 = vunpack.c.l.s8.bf16 %v260_v1  ;;  %v292_v4 = vunpack.c.h.s8.bf16 %v260_v1  ;;  %v291_v5 = vunpack.c.h.s8.bf16 %v259_v2  ;;  %v256_v6 = vld [vmem:[#allocation7 + $0x48] sm:$0xff]  ;;  %v287_v7 = vunpack.c.l.s8.bf16 %v259_v2  ;;  %v255_v9 = vld [vmem:[#allocation7 + $0x40] sm:$0xff]  ;;  %v262_v46 = vld [vmem:[#allocation7 + $0x78] sm:$0xff] }
  0x93   :  { %v284_v8 = vunpack.c.h.s8.bf16 %v256_v6  ;;  %v449_v10 = vld [vmem:[#allocation8 + $0x68] sm:$0xff]  ;;  %v448_v11 = vld [vmem:[#allocation8 + $0x60] sm:$0xff]  ;;  %v283_v12 = vunpack.c.h.s8.bf16 %v255_v9  ;;  %v280_v14 = vunpack.c.l.s8.bf16 %v256_v6  ;;  %v279_v20 = vunpack.c.l.s8.bf16 %v255_v9  ;;  %v261_v52 = vld [vmem:[#allocation7 + $0x70] sm:$0xff] }
  0x94   :  { %296 = vmatprep.subr.bf16.mxu1 %v292_v4  ;;  %v2547_v13 = vld [vmem:[%s3334_s3 + $0x9] ss:$0 sm:$0xff]  ;;  %v525_v15 = vunpack.c.l.s8.bf16 %v449_v10  ;;  %v529_v16 = vunpack.c.h.s8.bf16 %v449_v10  ;;  %v252_v17 = vld [vmem:[#allocation7 + $0x28] sm:$0xff]  ;;  %v528_v18 = vunpack.c.h.s8.bf16 %v448_v11  ;;  %v524_v21 = vunpack.c.l.s8.bf16 %v448_v11  ;;  %v219_v33 = vld [vmem:[#allocation2 + $0x40] sm:$0xff] }
  0x95   :  { %297 = vmatpush1.bf16.msra.mxu1 %v291_v5  ;;  %v445_v19 = vld [vmem:[#allocation8 + $0x48] sm:$0xff]  ;;  %2617 = vrcp.f32 %v2547_v13  ;;  %v276_v22 = vunpack.c.h.s8.bf16 %v252_v17  ;;  %v251_v23 = vld [vmem:[#allocation7 + $0x20] sm:$0xff]  ;;  %v272_v28 = vunpack.c.l.s8.bf16 %v252_v17  ;;  %v294_v51 = vunpack.c.h.s8.bf16 %v262_v46  ;;  %v258_v59 = vld [vmem:[#allocation7 + $0x58] sm:$0xff] }
  0x96   :  { %298 = vmatprep.subr.bf16.mxu1 %v288_v3  ;;  %632 = vmatprep.subr.bf16.mxu0 %v529_v16  ;;  %v521_v24 = vunpack.c.h.s8.bf16 %v445_v19  ;;  %v444_v25 = vld [vmem:[#allocation8 + $0x40] sm:$0xff]  ;;  %v275_v26 = vunpack.c.h.s8.bf16 %v251_v23  ;;  %v517_v29 = vunpack.c.l.s8.bf16 %v445_v19  ;;  %v248_v30 = vld [vmem:[#allocation7 + $0x8] sm:$0xff]  ;;  %v271_v32 = vunpack.c.l.s8.bf16 %v251_v23  ;;  %v257_v1 = vld [vmem:[#allocation7 + $0x50] sm:$0xff] }
  0x97   :  { %633 = vmatpush1.bf16.msra.mxu0 %v528_v18  ;;  %v520_v27 = vunpack.c.h.s8.bf16 %v444_v25  ;;  %v441_v31 = vld [vmem:[#allocation8 + $0x28] sm:$0xff]  ;;  %v2546_v34 = vld [vmem:[%s3334_s3 + $0x8] ss:$0 sm:$0xff]  ;;  %v516_v35 = vunpack.c.l.s8.bf16 %v444_v25  ;;  %v268_v36 = vunpack.c.h.s8.bf16 %v248_v30  ;;  %v264_v44 = vunpack.c.l.s8.bf16 %v248_v30  ;;  %v250_v19 = vld [vmem:[#allocation7 + $0x18] sm:$0xff] }
  0x98   :  { %634 = vmatprep.subr.bf16.mxu0 %v525_v15  ;;  %v247_v37 = vld [vmem:[#allocation7] sm:$0xff]  ;;  %v513_v38 = vunpack.c.h.s8.bf16 %v441_v31  ;;  %v235_v40 = vsub.f32 %v219_v33, %v2546_v34  ;;  %v509_v45 = vunpack.c.l.s8.bf16 %v441_v31  ;;  %v437_v47 = vld [vmem:[#allocation8 + $0x8] sm:$0xff]  ;;  %v293_v56 = vunpack.c.h.s8.bf16 %v261_v52 }
  0x99   :  { %299 = vmatpush1.bf16.msra.mxu1 %v287_v7  ;;  %v440_v39 = vld [vmem:[#allocation8 + $0x20] sm:$0xff]  ;;  %v267_v42 = vunpack.c.h.s8.bf16 %v247_v37  ;;  %v263_v49 = vunpack.c.l.s8.bf16 %v247_v37  ;;  %v505_v53 = vunpack.c.h.s8.bf16 %v437_v47  ;;  %v290_v57 = vunpack.c.l.s8.bf16 %v262_v46  ;;  %v465_v61 = vld [vmem:[#allocation8 + $0xe8] sm:$0xff] }
  0x9a   :  { %300 = vmatprep.subr.bf16.mxu1 %v284_v8  ;;  %v512_v43 = vunpack.c.h.s8.bf16 %v440_v39  ;;  %v508_v50 = vunpack.c.l.s8.bf16 %v440_v39  ;;  %v436_v54 = vld [vmem:[#allocation8] sm:$0xff]  ;;  %v501_v60 = vunpack.c.l.s8.bf16 %v437_v47  ;;  %v289_v62 = vunpack.c.l.s8.bf16 %v261_v52  ;;  %v254_v8 = vld [vmem:[#allocation7 + $0x38] sm:$0xff]  ;;  %v461_v10 = vld [vmem:[#allocation8 + $0xc8] sm:$0xff] }
  0x9b   :  { %635 = vmatpush1.bf16.msra.mxu0 %v524_v21  ;;  %v504_v58 = vunpack.c.h.s8.bf16 %v436_v54  ;;  %v286_v63 = vunpack.c.h.s8.bf16 %v258_v59  ;;  %v500_v2 = vunpack.c.l.s8.bf16 %v436_v54  ;;  %v561_v3 = vunpack.c.h.s8.bf16 %v465_v61  ;;  %v464_v4 = vld [vmem:[#allocation8 + $0xe0] sm:$0xff]  ;;  %v457_v21 = vld [vmem:[#allocation8 + $0xa8] sm:$0xff] }
  0x9c   :  { %636 = vmatprep.subr.bf16.mxu0 %v521_v24  ;;  %v285_v5 = vunpack.c.h.s8.bf16 %v257_v1  ;;  %v282_v6 = vunpack.c.l.s8.bf16 %v258_v59  ;;  %v560_v7 = vunpack.c.h.s8.bf16 %v464_v4  ;;  %v557_v9 = vunpack.c.l.s8.bf16 %v465_v61  ;;  %v460_v15 = vld [vmem:[#allocation8 + $0xc0] sm:$0xff]  ;;  %v249_v24 = vld [vmem:[#allocation7 + $0x10] sm:$0xff]  ;;  %v481_v31 = vld [vmem:[#allocation8 + $0x168] sm:$0xff] }
  0x9d   :  { %301 = vmatpush1.bf16.msra.mxu1 %v283_v12  ;;  %v278_v11 = vunpack.c.h.s8.bf16 %v254_v8  ;;  %v253_v12 = vld [vmem:[#allocation7 + $0x30] sm:$0xff]  ;;  %v556_v13 = vunpack.c.l.s8.bf16 %v464_v4  ;;  %v274_v17 = vunpack.c.l.s8.bf16 %v254_v8  ;;  %v552_v18 = vunpack.c.h.s8.bf16 %v460_v15  ;;  %v472_v47 = vld [vmem:[#allocation8 + $0x120] sm:$0xff]  ;;  %v453_v52 = vld [vmem:[#allocation8 + $0x88] sm:$0xff] }
  0x9e   :  { %302 = vmatprep.subr.bf16.mxu1 %v280_v14  ;;  %v553_v14 = vunpack.c.h.s8.bf16 %v461_v10  ;;  %v277_v16 = vunpack.c.h.s8.bf16 %v253_v12  ;;  %v270_v23 = vunpack.c.h.s8.bf16 %v250_v19  ;;  %v548_v25 = vunpack.c.l.s8.bf16 %v460_v15 }
  0x9f   :  { %637 = vmatpush1.bf16.msra.mxu0 %v520_v27  ;;  %v456_v27 = vld [vmem:[#allocation8 + $0xa0] sm:$0xff]  ;;  %v265_v33 = vunpack.c.l.s8.bf16 %v249_v24  ;;  %v593_v34 = vunpack.c.h.s8.bf16 %v481_v31  ;;  %v589_v37 = vunpack.c.l.s8.bf16 %v481_v31  ;;  %v537_v54 = vunpack.c.h.s8.bf16 %v453_v52  ;;  %v3087_v31 = vld [vmem:[#allocation5] ss:$2 sm:$0xf] }
  0xa0   :  { %638 = vmatprep.subr.bf16.mxu0 %v517_v29  ;;  %v266_v29 = vunpack.c.l.s8.bf16 %v250_v19  ;;  %v544_v30 = vunpack.c.h.s8.bf16 %v456_v27 }
  0xa1   :  { %303 = vmatpush1.bf16.msra.mxu1 %v279_v20  ;;  %v549_v20 = vunpack.c.l.s8.bf16 %v461_v10 }
  0xa2   :  { %304 = vmatprep.subr.bf16.mxu1 %v276_v22  ;;  %v2618_v41 = vpop.eup %2617  ;;  %v273_v22 = vunpack.c.l.s8.bf16 %v253_v12 }
  0xa3   :  { %639 = vmatpush1.bf16.msra.mxu0 %v516_v35  ;;  %v243_v48 = vmul.f32 %v2618_v41, %v235_v40  ;;  %v480_v35 = vld [vmem:[#allocation8 + $0x160] sm:$0xff] }
  0xa4   :  { %640 = vmatprep.subr.bf16.mxu0 %v513_v38  ;;  %v477_v38 = vld [vmem:[#allocation8 + $0x148] sm:$0xff]  ;;  %v588_v39 = vunpack.c.l.s8.bf16 %v480_v35  ;;  %v476_v41 = vld [vmem:[#allocation8 + $0x140] sm:$0xff] }
  0xa5   :  { %305 = vmatpush1.bf16.msra.mxu1 %v275_v26  ;;  %v3074_v55 = vpack.c.bf16 %v243_v48, %v243_v48  ;;  %v545_v26 = vunpack.c.h.s8.bf16 %v457_v21  ;;  %v585_v40 = vunpack.c.h.s8.bf16 %v477_v38  ;;  %v576_v48 = vunpack.c.h.s8.bf16 %v472_v47 }
  0xa6   :  { %306 = vmatprep.subr.bf16.mxu1 %v272_v28  ;;  %v269_v28 = vunpack.c.h.s8.bf16 %v249_v24 }
  0xa7   :  { %641 = vmatpush1.bf16.msra.mxu0 %v512_v43  ;;  %v581_v43 = vunpack.c.l.s8.bf16 %v477_v38 }
  0xa8   :  { %642 = vmatprep.subr.bf16.mxu0 %v509_v45  ;;  %v580_v45 = vunpack.c.l.s8.bf16 %v476_v41 }
  0xa9   :  { %307 = vmatpush1.bf16.msra.mxu1 %v271_v32  ;;  %v541_v32 = vunpack.c.l.s8.bf16 %v457_v21 }
  0xaa   :  { %308 = vmatprep.subr.bf16.mxu1 %v268_v36  ;;  %v592_v36 = vunpack.c.h.s8.bf16 %v480_v35 }
  0xab   :  { %643 = vmatpush1.bf16.msra.mxu0 %v508_v50  ;;  %v540_v50 = vunpack.c.l.s8.bf16 %v456_v27 }
  0xac   :  { %644 = vmatprep.subr.bf16.mxu0 %v505_v53  ;;  %v469_v53 = vld [vmem:[#allocation8 + $0x108] sm:$0xff] }
  0xad   :  { %309 = vmatpush1.bf16.msra.mxu1 %v267_v42  ;;  %v584_v42 = vunpack.c.h.s8.bf16 %v476_v41  ;;  %v565_v61 = vunpack.c.l.s8.bf16 %v469_v53 }
  0xae   :  { %310 = vmatprep.subr.bf16.mxu1 %v264_v44  ;;  %v473_v44 = vld [vmem:[#allocation8 + $0x128] sm:$0xff] }
  0xaf   :  { %645 = vmatpush1.bf16.msra.mxu0 %v504_v58  ;;  %v577_v46 = vunpack.c.h.s8.bf16 %v473_v44 }
  0xb0   :  { %646 = vmatprep.subr.bf16.mxu0 %v501_v60  ;;  %v533_v60 = vunpack.c.l.s8.bf16 %v453_v52 }
  0xb1   :  { %311 = vmatpush1.bf16.msra.mxu1 %v263_v49  ;;  %v573_v49 = vunpack.c.l.s8.bf16 %v473_v44 }
  0xb2   :  { %337 = vmatprep.subr.bf16.mxu1 %v294_v51  ;;  %v572_v51 = vunpack.c.l.s8.bf16 %v472_v47  ;;  %v450_v47 = vld [vmem:[#allocation8 + $0x70] sm:$0xff] }
  0xb3   :  { %647 = vmatpush1.bf16.msra.mxu0 %v500_v2  ;;  %v3079_v2 = vld [vmem:[#allocation8 + $0x78] sm:$0xff] }
  0xb4   :  { %329 = vmatmul.mubr.bf16.vlgmr.msra.gmra.mxu1 %v3074_v55  ;;  %648 = vmatprep.subr.bf16.mxu0 %v561_v3  ;;  %v531_v4 = vunpack.c.h.s8.bf16 %v3079_v2  ;;  %v527_v52 = vunpack.c.l.s8.bf16 %v3079_v2 }
  0xb5   :  { %338 = vmatpush1.bf16.msra.mxu1 %v293_v56  ;;  %369 = vmatprep.mubr.bf16.mxu1 %v2921_v0  ;;  %v281_v0 = vunpack.c.l.s8.bf16 %v257_v1  ;;  %v452_v56 = vld [vmem:[#allocation8 + $0x80] sm:$0xff]  ;;  %v497_v1 = vld [vmem:[#allocation8 + $0x1e8] sm:$0xff] }
  0xb6   :  { %339 = vmatprep.subr.bf16.mxu1 %v290_v57  ;;  %v468_v57 = vld [vmem:[#allocation8 + $0x100] sm:$0xff]  ;;  %v536_v58 = vunpack.c.h.s8.bf16 %v452_v56  ;;  %v625_v3 = vunpack.c.h.s8.bf16 %v497_v1 }
  0xb7   :  { %649 = vmatpush2.bf16.msra.mxu0 %v560_v7  ;;  %v568_v59 = vunpack.c.h.s8.bf16 %v468_v57  ;;  %v621_v7 = vunpack.c.l.s8.bf16 %v497_v1 }
  0xb8   :  { %650 = vmatprep.subr.bf16.mxu0 %v557_v9  ;;  %v493_v9 = vld [vmem:[#allocation8 + $0x1c8] sm:$0xff] }
  0xb9   :  { %340 = vmatpush1.bf16.msra.mxu1 %v289_v62  ;;  %v532_v62 = vunpack.c.l.s8.bf16 %v452_v56  ;;  %v617_v10 = vunpack.c.h.s8.bf16 %v493_v9  ;;  %v613_v12 = vunpack.c.l.s8.bf16 %v493_v9  ;;  %v446_v56 = vld [vmem:[#allocation8 + $0x50] sm:$0xff] }
  0xba   :  { %341 = vmatprep.subr.bf16.mxu1 %v286_v63  ;;  %v564_v63 = vunpack.c.l.s8.bf16 %v468_v57  ;;  %v522_v57 = vunpack.c.h.s8.bf16 %v446_v56 }
  0xbb   :  { %651 = vmatpush2.bf16.msra.mxu0 %v556_v13 }
  0xbc   :  { %652 = vmatprep.subr.bf16.mxu0 %v553_v14  ;;  %v489_v14 = vld [vmem:[#allocation8 + $0x1a8] sm:$0xff] }
  0xbd   :  { %342 = vmatpush1.bf16.msra.mxu1 %v285_v5  ;;  %v496_v5 = vld [vmem:[#allocation8 + $0x1e0] sm:$0xff]  ;;  %v609_v15 = vunpack.c.h.s8.bf16 %v489_v14 }
  0xbe   :  { %343 = vmatprep.subr.bf16.mxu1 %v282_v6  ;;  %v624_v6 = vunpack.c.h.s8.bf16 %v496_v5  ;;  %v620_v8 = vunpack.c.l.s8.bf16 %v496_v5 }
  0xbf   :  { %653 = vmatpush2.bf16.msra.mxu0 %v552_v18  ;;  %v605_v18 = vunpack.c.l.s8.bf16 %v489_v14 }
  0xc0   :  { %654 = vmatprep.subr.bf16.mxu0 %v549_v20  ;;  %v485_v20 = vld [vmem:[#allocation8 + $0x188] sm:$0xff] }
  0xc1   :  { %344 = vmatpush1.bf16.msra.mxu1 %v281_v0  ;;  %v492_v0 = vld [vmem:[#allocation8 + $0x1c0] sm:$0xff]  ;;  %v601_v21 = vunpack.c.h.s8.bf16 %v485_v20  ;;  %v597_v24 = vunpack.c.l.s8.bf16 %v485_v20 }
  0xc2   :  { %345 = vmatprep.subr.bf16.mxu1 %v278_v11  ;;  %v616_v11 = vunpack.c.h.s8.bf16 %v492_v0  ;;  %v612_v13 = vunpack.c.l.s8.bf16 %v492_v0 }
  0xc3   :  { %655 = vmatpush2.bf16.msra.mxu0 %v548_v25 }
  0xc4   :  { %656 = vmatprep.subr.bf16.mxu0 %v545_v26  ;;  %v3082_v26 = vld [vmem:[#allocation8 + $0x178] sm:$0xff] }
  0xc5   :  { %346 = vmatpush1.bf16.msra.mxu1 %v277_v16  ;;  %v488_v16 = vld [vmem:[#allocation8 + $0x1a0] sm:$0xff]  ;;  %v595_v27 = vunpack.c.h.s8.bf16 %v3082_v26 }
  0xc6   :  { %347 = vmatprep.subr.bf16.mxu1 %v274_v17  ;;  %v608_v17 = vunpack.c.h.s8.bf16 %v488_v16  ;;  %v604_v19 = vunpack.c.l.s8.bf16 %v488_v16 }
  0xc7   :  { %657 = vmatpush2.bf16.msra.mxu0 %v544_v30 }
  0xc8   :  { %658 = vmatprep.subr.bf16.mxu0 %v541_v32 }
  0xc9   :  { %348 = vmatpush1.bf16.msra.mxu1 %v273_v22  ;;  %v484_v22 = vld [vmem:[#allocation8 + $0x180] sm:$0xff] }
  0xca   :  { %349 = vmatprep.subr.bf16.mxu1 %v270_v23  ;;  %v600_v23 = vunpack.c.h.s8.bf16 %v484_v22  ;;  %v596_v25 = vunpack.c.l.s8.bf16 %v484_v22 }
  0xcb   :  { %659 = vmatpush2.bf16.msra.mxu0 %v540_v50  ;;  %v530_v50 = vunpack.c.h.s8.bf16 %v450_v47 }
  0xcc   :  { %660 = vmatprep.subr.bf16.mxu0 %v537_v54  ;;  %v526_v54 = vunpack.c.l.s8.bf16 %v450_v47 }
  0xcd   :  { %350 = vmatpush1.bf16.msra.mxu1 %v269_v28  ;;  %v379_v28 = vlaneseq }
  0xce   :  { %351 = vmatprep.subr.bf16.mxu1 %v266_v29 }
  0xcf   :  { %661 = vmatpush2.bf16.msra.mxu0 %v536_v58  ;;  %v380_v29 = vshrl.u32 %v379_v28, 7 }
  0xd0   :  { %662 = vmatprep.subr.bf16.mxu0 %v533_v60  ;;  %v518_v60 = vunpack.c.l.s8.bf16 %v446_v56 }
  0xd1   :  { %352 = vmatpush1.bf16.msra.mxu1 %v265_v33  ;;  %v3085_v30 = vsub.s32 0, %v380_v29  ;;  %v3089_v32 = vsub.s32 1, %v380_v29  ;;  %v3091_v33 = vld [vmem:[#allocation5 + $0x1] ss:$2 sm:$0xf]  ;;  %v3113_v1 = vsub.s32 2, %v380_v29 }
  0xd2   :  { %673 = vmatprep.subr.bf16.mxu1 %v593_v34 }
  0xd3   :  { %663 = vmatpush2.bf16.msra.mxu0 %v532_v62  ;;  %v382_v34 = vrot.slane %v3087_v31, %v3085_v30  ;;  %v407_v35 = vrot.slane %v3091_v33, %v3085_v30  ;;  %v442_v62 = vld [vmem:[#allocation8 + $0x30] sm:$0xff]  ;;  %v390_v5 = vrot.slane %v3087_v31, %v3113_v1  ;;  %v415_v9 = vrot.slane %v3091_v33, %v3113_v1 }
  0xd4   :  { %370 = vmatmul.mubr.bf16.vlgmr.msra.gmra.mxu1 %v3074_v55  ;;  %v569_v55 = vunpack.c.h.s8.bf16 %v469_v53  ;;  %714 = vmatprep.subr.bf16.mxu0 %v531_v4  ;;  %v447_v53 = vld [vmem:[#allocation8 + $0x58] sm:$0xff] }
  0xd5   :  { %674 = vmatpush1.bf16.msra.mxu1 %v592_v36  ;;  %v386_v36 = vrot.slane %v3087_v31, %v3089_v32  ;;  %v519_v58 = vunpack.c.l.s8.bf16 %v447_v53  ;;  %v439_v4 = vld [vmem:[#allocation8 + $0x18] sm:$0xff] }
  0xd6   :  { %675 = vmatprep.subr.bf16.mxu1 %v589_v37 }
  0xd9   :  { %676 = vmatpush1.bf16.msra.mxu1 %v588_v39  ;;  %v411_v39 = vrot.slane %v3091_v33, %v3089_v32 }
  0xda   :  { %677 = vmatprep.subr.bf16.mxu1 %v585_v40 }
  0xdd   :  { %678 = vmatpush1.bf16.msra.mxu1 %v584_v42 }
  0xde   :  { %679 = vmatprep.subr.bf16.mxu1 %v581_v43 }
  0xe1   :  { %680 = vmatpush1.bf16.msra.mxu1 %v580_v45 }
  0xe2   :  { %681 = vmatprep.subr.bf16.mxu1 %v577_v46 }
  0xe5   :  { %682 = vmatpush1.bf16.msra.mxu1 %v576_v48 }
  0xe6   :  { %683 = vmatprep.subr.bf16.mxu1 %v573_v49 }
  0xe9   :  { %684 = vmatpush1.bf16.msra.mxu1 %v572_v51 }
  0xea   :  { %685 = vmatprep.subr.bf16.mxu1 %v569_v55  ;;  %v523_v55 = vunpack.c.h.s8.bf16 %v447_v53 }
  0xed   :  { %686 = vmatpush1.bf16.msra.mxu1 %v568_v59  ;;  %v443_v59 = vld [vmem:[#allocation8 + $0x38] sm:$0xff] }
  0xee   :  { %687 = vmatprep.subr.bf16.mxu1 %v565_v61  ;;  %v515_v61 = vunpack.c.h.s8.bf16 %v443_v59  ;;  %v511_v2 = vunpack.c.l.s8.bf16 %v443_v59 }
  0xf1   :  { %688 = vmatpush1.bf16.msra.mxu1 %v564_v63  ;;  %v514_v63 = vunpack.c.h.s8.bf16 %v442_v62 }
  0xf2   :  { %689 = vmatprep.subr.bf16.mxu1 %v625_v3  ;;  %v3115_v3 = vsub.s32 3, %v380_v29 }
  0xf5   :  { %690 = vmatpush2.bf16.msra.mxu1 %v624_v6  ;;  %v510_v6 = vunpack.c.l.s8.bf16 %v442_v62 }
  0xf6   :  { %691 = vmatprep.subr.bf16.mxu1 %v621_v7  ;;  %v507_v7 = vunpack.c.h.s8.bf16 %v439_v4 }
  0xf9   :  { %692 = vmatpush2.bf16.msra.mxu1 %v620_v8  ;;  %v438_v8 = vld [vmem:[#allocation8 + $0x10] sm:$0xff] }
  0xfa   :  { %693 = vmatprep.subr.bf16.mxu1 %v617_v10  ;;  %v394_v10 = vrot.slane %v3087_v31, %v3115_v3 }
  0xfd   :  { %694 = vmatpush2.bf16.msra.mxu1 %v616_v11 }
  0xfe   :  { %695 = vmatprep.subr.bf16.mxu1 %v613_v12  ;;  %v419_v12 = vrot.slane %v3091_v33, %v3115_v3 }
 0x101   :  { %696 = vmatpush2.bf16.msra.mxu1 %v612_v13  ;;  %v506_v13 = vunpack.c.h.s8.bf16 %v438_v8 }
 0x102   :  { %697 = vmatprep.subr.bf16.mxu1 %v609_v15  ;;  %v503_v15 = vunpack.c.l.s8.bf16 %v439_v4 }
 0x105   :  { %698 = vmatpush2.bf16.msra.mxu1 %v608_v17 }
 0x106   :  { %699 = vmatprep.subr.bf16.mxu1 %v605_v18  ;;  %v467_v18 = vld [vmem:[#allocation8 + $0xf8] sm:$0xff] }
 0x109   :  { %700 = vmatpush2.bf16.msra.mxu1 %v604_v19 }
 0x10a   :  { %701 = vmatprep.subr.bf16.mxu1 %v601_v21  ;;  %v502_v21 = vunpack.c.l.s8.bf16 %v438_v8  ;;  %v454_v8 = vld [vmem:[#allocation8 + $0x90] sm:$0xff] }
 0x10d   :  { %702 = vmatpush2.bf16.msra.mxu1 %v600_v23 }
 0x10e   :  { %703 = vmatprep.subr.bf16.mxu1 %v597_v24  ;;  %v563_v24 = vunpack.c.h.s8.bf16 %v467_v18 }
 0x111   :  { %704 = vmatpush2.bf16.msra.mxu1 %v596_v25  ;;  %v466_v25 = vld [vmem:[#allocation8 + $0xf0] sm:$0xff] }
 0x112   :  { %755 = vmatprep.subr.bf16.mxu1 %v595_v27  ;;  %v482_v27 = vld [vmem:[#allocation8 + $0x170] sm:$0xff]  ;;  %v562_v31 = vunpack.c.h.s8.bf16 %v466_v25 }
 0x113   :  { %v594_v33 = vunpack.c.h.s8.bf16 %v482_v27 }
 0x174   :  { %v330_v37 = vpop.f32.mrf.mxu1 }
 0x175   :  { %v399_v38 = vmul.f32 %v382_v34, %v330_v37  ;;  %v463_v37 = vld [vmem:[#allocation8 + $0xd8] sm:$0xff] }
 0x176   :  { %v332_v40 = vpop.f32.mrf.mxu1 }
 0x177   :  { %v424_v41 = vadd.f32 %v407_v35, %v399_v38  ;;  %v400_v42 = vmul.f32 %v386_v36, %v332_v40  ;;  %v559_v35 = vunpack.c.l.s8.bf16 %v467_v18  ;;  %v591_v36 = vunpack.c.l.s8.bf16 %v3082_v26  ;;  %v479_v38 = vld [vmem:[#allocation8 + $0x158] sm:$0xff]  ;;  %v498_v18 = vld [vmem:[#allocation8 + $0x1f0] sm:$0xff] }
 0x178   :  { %v334_v43 = vpop.f32.mrf.mxu1  ;;  %v590_v40 = vunpack.c.l.s8.bf16 %v482_v27  ;;  %v551_v26 = vunpack.c.l.s8.bf16 %v463_v37  ;;  %v495_v27 = vld [vmem:[#allocation8 + $0x1d8] sm:$0xff] }
 0x179   :  { %v425_v44 = vadd.f32 %v411_v39, %v400_v42  ;;  %v3101_v45 = vmax.f32 %v424_v41, 0.0  ;;  %v558_v39 = vunpack.c.l.s8.bf16 %v466_v25  ;;  %v555_v41 = vunpack.c.h.s8.bf16 %v463_v37  ;;  %v462_v43 = vld [vmem:[#allocation8 + $0xd0] sm:$0xff] }
 0x17a   :  { %v335_v46 = vpop.f32.mrf.mxu1  ;;  %v587_v42 = vunpack.c.h.s8.bf16 %v479_v38  ;;  %v550_v53 = vunpack.c.l.s8.bf16 %v462_v43 }
 0x17b   :  { %v3103_v48 = vmax.f32 %v425_v44, 0.0  ;;  %v3109_v51 = vpack.c.bf16 %v3101_v45, %v3101_v45  ;;  %v478_v44 = vld [vmem:[#allocation8 + $0x150] sm:$0xff]  ;;  %v554_v46 = vunpack.c.h.s8.bf16 %v462_v43  ;;  %v491_v43 = vld [vmem:[#allocation8 + $0x1b8] sm:$0xff] }
 0x17c   :  { %v586_v47 = vunpack.c.h.s8.bf16 %v478_v44 }
 0x17d   :  { %v629_v49 = vpack.c.bf16 %v3103_v48, %v3103_v48 }
 0x17f   :  { %664 = vmatprep.mubr.bf16.mxu0 %v629_v49 }
 0x180   :  { %665 = vmatmul.mubr.bf16.vlgmr.msra.gmra.mxu0 %v3109_v51 }
 0x181   :  { %715 = vmatpush1.bf16.msra.mxu0 %v530_v50  ;;  %746 = vmatprep.mubr.bf16.mxu0 %v629_v49  ;;  %v583_v49 = vunpack.c.l.s8.bf16 %v479_v38  ;;  %v459_v50 = vld [vmem:[#allocation8 + $0xb8] sm:$0xff]  ;;  %v862_v38 = vld [vmem:[#allocation10 + $0x40] sm:$0xff] }
 0x182   :  { %716 = vmatprep.subr.bf16.mxu0 %v527_v52  ;;  %v475_v52 = vld [vmem:[#allocation8 + $0x138] sm:$0xff] }
 0x183   :  { %v579_v56 = vunpack.c.h.s8.bf16 %v475_v52  ;;  %v575_v62 = vunpack.c.l.s8.bf16 %v475_v52 }
 0x185   :  { %717 = vmatpush1.bf16.msra.mxu0 %v526_v54  ;;  %v582_v54 = vunpack.c.l.s8.bf16 %v478_v44 }
 0x186   :  { %718 = vmatprep.subr.bf16.mxu0 %v523_v55  ;;  %v547_v55 = vunpack.c.h.s8.bf16 %v459_v50 }
 0x189   :  { %719 = vmatpush1.bf16.msra.mxu0 %v522_v57  ;;  %v458_v57 = vld [vmem:[#allocation8 + $0xb0] sm:$0xff] }
 0x18a   :  { %720 = vmatprep.subr.bf16.mxu0 %v519_v58  ;;  %v474_v58 = vld [vmem:[#allocation8 + $0x130] sm:$0xff]  ;;  %v546_v59 = vunpack.c.h.s8.bf16 %v458_v57  ;;  %v542_v4 = vunpack.c.l.s8.bf16 %v458_v57  ;;  %v855_v57 = vld [vmem:[#allocation10 + $0x8] sm:$0xff] }
 0x18d   :  { %721 = vmatpush1.bf16.msra.mxu0 %v518_v60  ;;  %v578_v60 = vunpack.c.h.s8.bf16 %v474_v58 }
 0x18e   :  { %722 = vmatprep.subr.bf16.mxu0 %v515_v61  ;;  %v543_v61 = vunpack.c.l.s8.bf16 %v459_v50  ;;  %v858_v50 = vld [vmem:[#allocation10 + $0x20] sm:$0xff] }
 0x191   :  { %723 = vmatpush1.bf16.msra.mxu0 %v514_v63  ;;  %v455_v63 = vld [vmem:[#allocation8 + $0x98] sm:$0xff] }
 0x192   :  { %724 = vmatprep.subr.bf16.mxu0 %v511_v2  ;;  %v471_v2 = vld [vmem:[#allocation8 + $0x118] sm:$0xff] }
 0x194   :  { %v371_v0 = vpop.f32.mrf.mxu1 }
 0x195   :  { %v401_v11 = vmul.f32 %v390_v5, %v371_v0  ;;  %725 = vmatpush1.bf16.msra.mxu0 %v510_v6  ;;  %v574_v5 = vunpack.c.l.s8.bf16 %v474_v58  ;;  %v539_v6 = vunpack.c.h.s8.bf16 %v455_v63 }
 0x196   :  { %v373_v14 = vpop.f32.mrf.mxu1  ;;  %726 = vmatprep.subr.bf16.mxu0 %v507_v7  ;;  %v571_v7 = vunpack.c.h.s8.bf16 %v471_v2 }
 0x197   :  { %v426_v16 = vadd.f32 %v415_v9, %v401_v11  ;;  %v402_v17 = vmul.f32 %v394_v10, %v373_v14  ;;  %v470_v9 = vld [vmem:[#allocation8 + $0x110] sm:$0xff]  ;;  %v538_v10 = vunpack.c.h.s8.bf16 %v454_v8  ;;  %v535_v11 = vunpack.c.l.s8.bf16 %v455_v63  ;;  %v867_v14 = vld [vmem:[#allocation10 + $0x68] sm:$0xff]  ;;  %v854_v63 = vld [vmem:[#allocation10] sm:$0xff] }
 0x198   :  { %v375_v19 = vpop.f32.mrf.mxu1  ;;  %v570_v0 = vunpack.c.h.s8.bf16 %v470_v9  ;;  %v943_v25 = vunpack.c.l.s8.bf16 %v867_v14 }
 0x199   :  { %v427_v20 = vadd.f32 %v419_v12, %v402_v17  ;;  %727 = vmatpush1.bf16.msra.mxu0 %v506_v13  ;;  %v3125_v22 = vmax.f32 %v426_v16, 0.0  ;;  %v567_v12 = vunpack.c.l.s8.bf16 %v471_v2  ;;  %v499_v13 = vld [vmem:[#allocation8 + $0x1f8] sm:$0xff]  ;;  %v566_v16 = vunpack.c.l.s8.bf16 %v470_v9 }
 0x19a   :  { %v376_v23 = vpop.f32.mrf.mxu1  ;;  %728 = vmatprep.subr.bf16.mxu0 %v503_v15  ;;  %v534_v15 = vunpack.c.l.s8.bf16 %v454_v8  ;;  %v627_v17 = vunpack.c.h.s8.bf16 %v499_v13  ;;  %v947_v19 = vunpack.c.h.s8.bf16 %v867_v14  ;;  %v918_v9 = vunpack.c.l.s8.bf16 %v854_v63 }
 0x19b   :  { %v3127_v28 = vmax.f32 %v427_v20, 0.0  ;;  %v3133_v34 = vpack.c.bf16 %v3125_v22, %v3125_v22  ;;  %v866_v20 = vld [vmem:[#allocation10 + $0x60] sm:$0xff] }
 0x19c   :  { %v946_v23 = vunpack.c.h.s8.bf16 %v866_v20 }
 0x19d   :  { %729 = vmatpush1.bf16.msra.mxu0 %v502_v21  ;;  %v631_v29 = vpack.c.bf16 %v3127_v28, %v3127_v28  ;;  %v626_v21 = vunpack.c.h.s8.bf16 %v498_v18 }
 0x19e   :  { %730 = vmatprep.subr.bf16.mxu0 %v563_v24  ;;  %v623_v24 = vunpack.c.l.s8.bf16 %v499_v13  ;;  %v879_v13 = vld [vmem:[#allocation10 + $0xc8] sm:$0xff] }
 0x19f   :  { %705 = vmatprep.mubr.bf16.mxu1 %v631_v29 }
 0x1a0   :  { %706 = vmatmul.mubr.bf16.vlgmr.msra.gmra.mxu1 %v3133_v34 }
 0x1a1   :  { %731 = vmatpush2.bf16.msra.mxu0 %v562_v31  ;;  %756 = vmatpush1.bf16.msra.mxu1 %v594_v33  ;;  %v622_v31 = vunpack.c.l.s8.bf16 %v498_v18  ;;  %v942_v33 = vunpack.c.l.s8.bf16 %v866_v20  ;;  %v967_v18 = vunpack.c.l.s8.bf16 %v879_v13 }
 0x1a2   :  { %787 = vmatprep.mubr.bf16.mxu1 %v631_v29  ;;  %732 = vmatprep.subr.bf16.mxu0 %v559_v35  ;;  %v863_v29 = vld [vmem:[#allocation10 + $0x48] sm:$0xff]  ;;  %v619_v35 = vunpack.c.h.s8.bf16 %v495_v27 }
 0x1a3   :  { %757 = vmatprep.subr.bf16.mxu1 %v591_v36  ;;  %v494_v36 = vld [vmem:[#allocation8 + $0x1d0] sm:$0xff]  ;;  %v939_v37 = vunpack.c.h.s8.bf16 %v863_v29 }
 0x1a4   :  { %v614_v44 = vunpack.c.l.s8.bf16 %v494_v36 }
 0x1a5   :  { %733 = vmatpush2.bf16.msra.mxu0 %v558_v39  ;;  %758 = vmatpush1.bf16.msra.mxu1 %v590_v40  ;;  %v618_v39 = vunpack.c.h.s8.bf16 %v494_v36  ;;  %v938_v40 = vunpack.c.h.s8.bf16 %v862_v38 }
 0x1a6   :  { %734 = vmatprep.subr.bf16.mxu0 %v555_v41  ;;  %759 = vmatprep.subr.bf16.mxu1 %v587_v42  ;;  %v615_v41 = vunpack.c.l.s8.bf16 %v495_v27  ;;  %v935_v42 = vunpack.c.l.s8.bf16 %v863_v29  ;;  %v898_v27 = vld [vmem:[#allocation10 + $0x160] sm:$0xff] }
 0x1a7   :  { %v1006_v36 = vunpack.c.l.s8.bf16 %v898_v27 }
 0x1a9   :  { %735 = vmatpush2.bf16.msra.mxu0 %v554_v46  ;;  %760 = vmatpush1.bf16.msra.mxu1 %v586_v47  ;;  %v934_v46 = vunpack.c.l.s8.bf16 %v862_v38  ;;  %v611_v47 = vunpack.c.h.s8.bf16 %v491_v43 }
 0x1aa   :  { %736 = vmatprep.subr.bf16.mxu0 %v551_v26  ;;  %761 = vmatprep.subr.bf16.mxu1 %v583_v49  ;;  %v490_v26 = vld [vmem:[#allocation8 + $0x1b0] sm:$0xff] }
 0x1ab   :  { %v610_v52 = vunpack.c.h.s8.bf16 %v490_v26  ;;  %v606_v58 = vunpack.c.l.s8.bf16 %v490_v26 }
 0x1ad   :  { %737 = vmatpush2.bf16.msra.mxu0 %v550_v53  ;;  %762 = vmatpush1.bf16.msra.mxu1 %v582_v54  ;;  %v930_v53 = vunpack.c.h.s8.bf16 %v858_v50  ;;  %v607_v54 = vunpack.c.l.s8.bf16 %v491_v43 }
 0x1ae   :  { %738 = vmatprep.subr.bf16.mxu0 %v547_v55  ;;  %763 = vmatprep.subr.bf16.mxu1 %v579_v56  ;;  %v487_v56 = vld [vmem:[#allocation8 + $0x198] sm:$0xff] }
 0x1b1   :  { %739 = vmatpush2.bf16.msra.mxu0 %v546_v59  ;;  %764 = vmatpush1.bf16.msra.mxu1 %v578_v60  ;;  %v926_v59 = vunpack.c.l.s8.bf16 %v858_v50  ;;  %v603_v60 = vunpack.c.h.s8.bf16 %v487_v56 }
 0x1b2   :  { %740 = vmatprep.subr.bf16.mxu0 %v543_v61  ;;  %765 = vmatprep.subr.bf16.mxu1 %v575_v62  ;;  %v486_v61 = vld [vmem:[#allocation8 + $0x190] sm:$0xff]  ;;  %v923_v62 = vunpack.c.h.s8.bf16 %v855_v57 }
 0x1b3   :  { %v602_v2 = vunpack.c.h.s8.bf16 %v486_v61  ;;  %v598_v8 = vunpack.c.l.s8.bf16 %v486_v61 }
 0x1b5   :  { %741 = vmatpush2.bf16.msra.mxu0 %v542_v4  ;;  %766 = vmatpush1.bf16.msra.mxu1 %v574_v5  ;;  %v922_v4 = vunpack.c.h.s8.bf16 %v854_v63  ;;  %v599_v5 = vunpack.c.l.s8.bf16 %v487_v56 }
 0x1b6   :  { %742 = vmatprep.subr.bf16.mxu0 %v539_v6  ;;  %767 = vmatprep.subr.bf16.mxu1 %v571_v7  ;;  %v919_v6 = vunpack.c.l.s8.bf16 %v855_v57  ;;  %v883_v7 = vld [vmem:[#allocation10 + $0xe8] sm:$0xff] }
 0x1b9   :  { %743 = vmatpush2.bf16.msra.mxu0 %v538_v10  ;;  %768 = vmatpush1.bf16.msra.mxu1 %v570_v0  ;;  %v979_v10 = vunpack.c.h.s8.bf16 %v883_v7  ;;  %v882_v0 = vld [vmem:[#allocation10 + $0xe0] sm:$0xff] }
 0x1ba   :  { %744 = vmatprep.subr.bf16.mxu0 %v535_v11  ;;  %769 = vmatprep.subr.bf16.mxu1 %v567_v12  ;;  %v978_v11 = vunpack.c.h.s8.bf16 %v882_v0  ;;  %v975_v12 = vunpack.c.l.s8.bf16 %v883_v7  ;;  %v974_v14 = vunpack.c.l.s8.bf16 %v882_v0  ;;  %v910_v0 = vld [vmem:[#allocation10 + $0x1c0] sm:$0xff] }
 0x1bd   :  { %745 = vmatpush2.bf16.msra.mxu0 %v534_v15  ;;  %770 = vmatpush1.bf16.msra.mxu1 %v566_v16  ;;  %v971_v15 = vunpack.c.h.s8.bf16 %v879_v13  ;;  %v878_v16 = vld [vmem:[#allocation10 + $0xc0] sm:$0xff]  ;;  %v1030_v13 = vunpack.c.l.s8.bf16 %v910_v0 }
 0x1be   :  { %771 = vmatprep.subr.bf16.mxu1 %v627_v17  ;;  %1050 = vmatprep.subr.bf16.mxu0 %v947_v19  ;;  %v970_v17 = vunpack.c.h.s8.bf16 %v878_v16  ;;  %v875_v19 = vld [vmem:[#allocation10 + $0xa8] sm:$0xff]  ;;  %v966_v20 = vunpack.c.l.s8.bf16 %v878_v16  ;;  %v906_v16 = vld [vmem:[#allocation10 + $0x1a0] sm:$0xff] }
 0x1c0   :  { %747 = vmatmul.mubr.bf16.vlgmr.msra.gmra.mxu0 %v3109_v51  ;;  %v859_v51 = vld [vmem:[#allocation10 + $0x28] sm:$0xff] }
 0x1c1   :  { %772 = vmatpush2.bf16.msra.mxu1 %v626_v21  ;;  %1051 = vmatpush1.bf16.msra.mxu0 %v946_v23  ;;  %v931_v49 = vunpack.c.h.s8.bf16 %v859_v51  ;;  %v927_v55 = vunpack.c.l.s8.bf16 %v859_v51  ;;  %v899_v21 = vld [vmem:[#allocation10 + $0x168] sm:$0xff]  ;;  %v963_v23 = vunpack.c.h.s8.bf16 %v875_v19 }
 0x1c2   :  { %773 = vmatprep.subr.bf16.mxu1 %v623_v24  ;;  %1052 = vmatprep.subr.bf16.mxu0 %v943_v25  ;;  %v874_v24 = vld [vmem:[#allocation10 + $0xa0] sm:$0xff]  ;;  %v1011_v25 = vunpack.c.h.s8.bf16 %v899_v21 }
 0x1c3   :  { %v962_v29 = vunpack.c.h.s8.bf16 %v874_v24 }
 0x1c5   :  { %774 = vmatpush2.bf16.msra.mxu1 %v622_v31  ;;  %1053 = vmatpush1.bf16.msra.mxu0 %v942_v33  ;;  %v959_v31 = vunpack.c.l.s8.bf16 %v875_v19  ;;  %v871_v33 = vld [vmem:[#allocation10 + $0x88] sm:$0xff]  ;;  %v1022_v19 = vunpack.c.l.s8.bf16 %v906_v16 }
 0x1c6   :  { %775 = vmatprep.subr.bf16.mxu1 %v619_v35  ;;  %1054 = vmatprep.subr.bf16.mxu0 %v939_v37  ;;  %v1007_v35 = vunpack.c.l.s8.bf16 %v899_v21  ;;  %v958_v37 = vunpack.c.l.s8.bf16 %v874_v24  ;;  %v955_v38 = vunpack.c.h.s8.bf16 %v871_v33 }
 0x1c9   :  { %776 = vmatpush2.bf16.msra.mxu1 %v618_v39  ;;  %1055 = vmatpush1.bf16.msra.mxu0 %v938_v40  ;;  %v870_v39 = vld [vmem:[#allocation10 + $0x80] sm:$0xff]  ;;  %v895_v40 = vld [vmem:[#allocation10 + $0x148] sm:$0xff] }
 0x1ca   :  { %777 = vmatprep.subr.bf16.mxu1 %v615_v41  ;;  %1056 = vmatprep.subr.bf16.mxu0 %v935_v42  ;;  %v1003_v41 = vunpack.c.h.s8.bf16 %v895_v40  ;;  %v894_v42 = vld [vmem:[#allocation10 + $0x140] sm:$0xff]  ;;  %v954_v51 = vunpack.c.h.s8.bf16 %v870_v39 }
 0x1cb   :  { %v1002_v43 = vunpack.c.h.s8.bf16 %v894_v42  ;;  %v998_v26 = vunpack.c.l.s8.bf16 %v894_v42 }
 0x1cd   :  { %778 = vmatpush2.bf16.msra.mxu1 %v614_v44  ;;  %1057 = vmatpush1.bf16.msra.mxu0 %v934_v46  ;;  %v951_v44 = vunpack.c.l.s8.bf16 %v871_v33  ;;  %v3139_v46 = vld [vmem:[#allocation10 + $0x78] sm:$0xff] }
 0x1ce   :  { %779 = vmatprep.subr.bf16.mxu1 %v611_v47  ;;  %1058 = vmatprep.subr.bf16.mxu0 %v931_v49  ;;  %v999_v47 = vunpack.c.l.s8.bf16 %v895_v40  ;;  %v950_v49 = vunpack.c.l.s8.bf16 %v870_v39  ;;  %v949_v50 = vunpack.c.h.s8.bf16 %v3139_v46 }
 0x1d1   :  { %780 = vmatpush2.bf16.msra.mxu1 %v610_v52  ;;  %1059 = vmatpush1.bf16.msra.mxu0 %v930_v53  ;;  %v891_v52 = vld [vmem:[#allocation10 + $0x128] sm:$0xff] }
 0x1d2   :  { %781 = vmatprep.subr.bf16.mxu1 %v607_v54  ;;  %1060 = vmatprep.subr.bf16.mxu0 %v927_v55  ;;  %v995_v53 = vunpack.c.h.s8.bf16 %v891_v52  ;;  %v890_v54 = vld [vmem:[#allocation10 + $0x120] sm:$0xff]  ;;  %v991_v56 = vunpack.c.l.s8.bf16 %v891_v52 }
 0x1d3   :  { %v994_v55 = vunpack.c.h.s8.bf16 %v890_v54  ;;  %v990_v57 = vunpack.c.l.s8.bf16 %v890_v54 }
 0x1d5   :  { %782 = vmatpush2.bf16.msra.mxu1 %v606_v58  ;;  %1061 = vmatpush1.bf16.msra.mxu0 %v926_v59  ;;  %v887_v58 = vld [vmem:[#allocation10 + $0x108] sm:$0xff] }
 0x1d6   :  { %783 = vmatprep.subr.bf16.mxu1 %v603_v60  ;;  %1062 = vmatprep.subr.bf16.mxu0 %v923_v62  ;;  %v987_v59 = vunpack.c.h.s8.bf16 %v887_v58  ;;  %v886_v60 = vld [vmem:[#allocation10 + $0x100] sm:$0xff]  ;;  %v983_v62 = vunpack.c.l.s8.bf16 %v887_v58 }
 0x1d7   :  { %v986_v61 = vunpack.c.h.s8.bf16 %v886_v60  ;;  %v982_v63 = vunpack.c.l.s8.bf16 %v886_v60 }
 0x1d9   :  { %784 = vmatpush2.bf16.msra.mxu1 %v602_v2  ;;  %1063 = vmatpush1.bf16.msra.mxu0 %v922_v4  ;;  %v915_v2 = vld [vmem:[#allocation10 + $0x1e8] sm:$0xff] }
 0x1da   :  { %785 = vmatprep.subr.bf16.mxu1 %v599_v5  ;;  %1064 = vmatprep.subr.bf16.mxu0 %v919_v6  ;;  %v1043_v4 = vunpack.c.h.s8.bf16 %v915_v2  ;;  %v914_v5 = vld [vmem:[#allocation10 + $0x1e0] sm:$0xff]  ;;  %v1039_v7 = vunpack.c.l.s8.bf16 %v915_v2 }
 0x1db   :  { %v1042_v6 = vunpack.c.h.s8.bf16 %v914_v5 }
 0x1dd   :  { %786 = vmatpush2.bf16.msra.mxu1 %v598_v8  ;;  %1065 = vmatpush1.bf16.msra.mxu0 %v918_v9  ;;  %v1038_v8 = vunpack.c.l.s8.bf16 %v914_v5  ;;  %v911_v9 = vld [vmem:[#allocation10 + $0x1c8] sm:$0xff] }
 0x1de   :  { %1066 = vmatprep.subr.bf16.mxu0 %v979_v10  ;;  %1091 = vmatprep.subr.bf16.mxu1 %v1011_v25  ;;  %v1035_v10 = vunpack.c.h.s8.bf16 %v911_v9 }
 0x1e0   :  { %788 = vmatmul.mubr.bf16.vlgmr.msra.gmra.mxu1 %v3133_v34  ;;  %v1010_v34 = vunpack.c.h.s8.bf16 %v898_v27 }
 0x1e1   :  { %1067 = vmatpush2.bf16.msra.mxu0 %v978_v11  ;;  %v1034_v11 = vunpack.c.h.s8.bf16 %v910_v0 }
 0x1e2   :  { %1068 = vmatprep.subr.bf16.mxu0 %v975_v12  ;;  %1092 = vmatpush1.bf16.msra.mxu1 %v1010_v34  ;;  %v1031_v12 = vunpack.c.l.s8.bf16 %v911_v9  ;;  %v3142_v34 = vld [vmem:[#allocation10 + $0x178] sm:$0xff] }
 0x1e3   :  { %1093 = vmatprep.subr.bf16.mxu1 %v1007_v35 }
 0x1e5   :  { %1069 = vmatpush2.bf16.msra.mxu0 %v974_v14  ;;  %v907_v14 = vld [vmem:[#allocation10 + $0x1a8] sm:$0xff] }
 0x1e6   :  { %1070 = vmatprep.subr.bf16.mxu0 %v971_v15  ;;  %1094 = vmatpush1.bf16.msra.mxu1 %v1006_v36  ;;  %v1027_v15 = vunpack.c.h.s8.bf16 %v907_v14 }
 0x1e7   :  { %1095 = vmatprep.subr.bf16.mxu1 %v1003_v41 }
 0x1e9   :  { %1071 = vmatpush2.bf16.msra.mxu0 %v970_v17  ;;  %v1026_v17 = vunpack.c.h.s8.bf16 %v906_v16 }
 0x1ea   :  { %1072 = vmatprep.subr.bf16.mxu0 %v967_v18  ;;  %1096 = vmatpush1.bf16.msra.mxu1 %v1002_v43  ;;  %v1023_v18 = vunpack.c.l.s8.bf16 %v907_v14 }
 0x1eb   :  { %1097 = vmatprep.subr.bf16.mxu1 %v999_v47 }
 0x1ed   :  { %1073 = vmatpush2.bf16.msra.mxu0 %v966_v20  ;;  %v903_v20 = vld [vmem:[#allocation10 + $0x188] sm:$0xff] }
 0x1ee   :  { %1074 = vmatprep.subr.bf16.mxu0 %v963_v23  ;;  %1098 = vmatpush1.bf16.msra.mxu1 %v998_v26  ;;  %v1019_v21 = vunpack.c.h.s8.bf16 %v903_v20  ;;  %v902_v23 = vld [vmem:[#allocation10 + $0x180] sm:$0xff]  ;;  %v1015_v25 = vunpack.c.l.s8.bf16 %v903_v20  ;;  %v885_v20 = vld [vmem:[#allocation10 + $0xf8] sm:$0xff] }
 0x1ef   :  { %1099 = vmatprep.subr.bf16.mxu1 %v995_v53  ;;  %v1018_v24 = vunpack.c.h.s8.bf16 %v902_v23  ;;  %v1014_v27 = vunpack.c.l.s8.bf16 %v902_v23 }
 0x1f1   :  { %1075 = vmatpush2.bf16.msra.mxu0 %v962_v29  ;;  %v1013_v29 = vunpack.c.h.s8.bf16 %v3142_v34 }
 0x1f2   :  { %1076 = vmatprep.subr.bf16.mxu0 %v959_v31  ;;  %1100 = vmatpush1.bf16.msra.mxu1 %v994_v55 }
 0x1f3   :  { %1101 = vmatprep.subr.bf16.mxu1 %v991_v56  ;;  %v868_v56 = vld [vmem:[#allocation10 + $0x70] sm:$0xff] }
 0x1f5   :  { %1077 = vmatpush2.bf16.msra.mxu0 %v958_v37  ;;  %v3145_v37 = vld [vmem:[#allocation5 + $0x8] ss:$2 sm:$0xf] }
 0x1f6   :  { %1078 = vmatprep.subr.bf16.mxu0 %v955_v38  ;;  %1102 = vmatpush1.bf16.msra.mxu1 %v990_v57  ;;  %v3147_v38 = vld [vmem:[#allocation5 + $0x9] ss:$2 sm:$0xf]  ;;  %v800_v39 = vrot.slane %v3145_v37, %v3085_v30  ;;  %v804_v43 = vrot.slane %v3145_v37, %v3089_v32 }
 0x1f7   :  { %1103 = vmatprep.subr.bf16.mxu1 %v987_v59  ;;  %v825_v42 = vrot.slane %v3147_v38, %v3085_v30  ;;  %v829_v26 = vrot.slane %v3147_v38, %v3089_v32  ;;  %v948_v59 = vunpack.c.h.s8.bf16 %v868_v56 }
 0x1f9   :  { %1079 = vmatpush2.bf16.msra.mxu0 %v954_v51 }
 0x1fa   :  { %1080 = vmatprep.subr.bf16.mxu0 %v951_v44  ;;  %1104 = vmatpush1.bf16.msra.mxu1 %v986_v61  ;;  %v945_v61 = vunpack.c.l.s8.bf16 %v3139_v46  ;;  %v860_v46 = vld [vmem:[#allocation10 + $0x30] sm:$0xff] }
 0x1fb   :  { %1105 = vmatprep.subr.bf16.mxu1 %v983_v62  ;;  %v865_v62 = vld [vmem:[#allocation10 + $0x58] sm:$0xff] }
 0x1fc   :  { %v941_v2 = vunpack.c.h.s8.bf16 %v865_v62 }
 0x1fd   :  { %1081 = vmatpush2.bf16.msra.mxu0 %v950_v49 }
 0x1fe   :  { %1132 = vmatprep.subr.bf16.mxu0 %v949_v50  ;;  %1106 = vmatpush1.bf16.msra.mxu1 %v982_v63  ;;  %v944_v63 = vunpack.c.l.s8.bf16 %v868_v56  ;;  %v833_v56 = vrot.slane %v3147_v38, %v3113_v1 }
 0x1ff   :  { %1107 = vmatprep.subr.bf16.mxu1 %v1043_v4  ;;  %v864_v4 = vld [vmem:[#allocation10 + $0x50] sm:$0xff] }
 0x200   :  { %v940_v5 = vunpack.c.h.s8.bf16 %v864_v4 }
 0x202   :  { %1108 = vmatpush2.bf16.msra.mxu1 %v1042_v6  ;;  %v937_v6 = vunpack.c.l.s8.bf16 %v865_v62  ;;  %v837_v62 = vrot.slane %v3147_v38, %v3115_v3  ;;  %v1009_v38 = vunpack.c.l.s8.bf16 %v3142_v34 }
 0x203   :  { %1109 = vmatprep.subr.bf16.mxu1 %v1039_v7  ;;  %v861_v7 = vld [vmem:[#allocation10 + $0x38] sm:$0xff] }
 0x204   :  { %v933_v9 = vunpack.c.h.s8.bf16 %v861_v7  ;;  %v929_v0 = vunpack.c.l.s8.bf16 %v861_v7 }
 0x206   :  { %1110 = vmatpush2.bf16.msra.mxu1 %v1038_v8  ;;  %v936_v8 = vunpack.c.l.s8.bf16 %v864_v4 }
 0x207   :  { %1111 = vmatprep.subr.bf16.mxu1 %v1035_v10  ;;  %v932_v10 = vunpack.c.h.s8.bf16 %v860_v46 }
 0x20a   :  { %1112 = vmatpush2.bf16.msra.mxu1 %v1034_v11  ;;  %v857_v11 = vld [vmem:[#allocation10 + $0x18] sm:$0xff] }
 0x20b   :  { %1113 = vmatprep.subr.bf16.mxu1 %v1031_v12  ;;  %v928_v12 = vunpack.c.l.s8.bf16 %v860_v46  ;;  %v925_v14 = vunpack.c.h.s8.bf16 %v857_v11 }
 0x20e   :  { %1114 = vmatpush2.bf16.msra.mxu1 %v1030_v13 }
 0x20f   :  { %1115 = vmatprep.subr.bf16.mxu1 %v1027_v15  ;;  %v856_v15 = vld [vmem:[#allocation10 + $0x10] sm:$0xff] }
 0x210   :  { %v920_v23 = vunpack.c.l.s8.bf16 %v856_v15 }
 0x212   :  { %1116 = vmatpush2.bf16.msra.mxu1 %v1026_v17  ;;  %v924_v17 = vunpack.c.h.s8.bf16 %v856_v15 }
 0x213   :  { %1117 = vmatprep.subr.bf16.mxu1 %v1023_v18 }
 0x216   :  { %1118 = vmatpush2.bf16.msra.mxu1 %v1022_v19  ;;  %v921_v19 = vunpack.c.l.s8.bf16 %v857_v11 }
 0x217   :  { %1119 = vmatprep.subr.bf16.mxu1 %v1019_v21 }
 0x21a   :  { %1120 = vmatpush2.bf16.msra.mxu1 %v1018_v24  ;;  %v981_v24 = vunpack.c.h.s8.bf16 %v885_v20 }
 0x21b   :  { %1121 = vmatprep.subr.bf16.mxu1 %v1015_v25  ;;  %v884_v25 = vld [vmem:[#allocation10 + $0xf0] sm:$0xff] }
 0x21e   :  { %1122 = vmatpush2.bf16.msra.mxu1 %v1014_v27  ;;  %v980_v27 = vunpack.c.h.s8.bf16 %v884_v25 }
 0x21f   :  { %1173 = vmatprep.subr.bf16.mxu1 %v1013_v29  ;;  %v977_v29 = vunpack.c.l.s8.bf16 %v885_v20  ;;  %v1273_v20 = vld [vmem:[#allocation11 + $0x18] sm:$0xff] }
 0x240   :  { %v666_v31 = vpop.f32.mrf.mxu0 }
 0x242   :  { %v668_v33 = vpop.f32.mrf.mxu0 }
 0x244   :  { %v670_v35 = vpop.f32.mrf.mxu0 }
 0x246   :  { %v671_v36 = vpop.f32.mrf.mxu0 }
 0x247   :  { %v880_v36 = vld [vmem:[#allocation10 + $0xd0] sm:$0xff] }
 0x260   :  { %v707_v40 = vpop.f32.mrf.mxu1 }
 0x261   :  { %v708_v41 = vadd.f32 %v707_v40, %v666_v31  ;;  %v881_v31 = vld [vmem:[#allocation10 + $0xd8] sm:$0xff] }
 0x262   :  { %v709_v51 = vpop.f32.mrf.mxu1  ;;  %v973_v35 = vunpack.c.h.s8.bf16 %v881_v31  ;;  %v969_v40 = vunpack.c.l.s8.bf16 %v881_v31  ;;  %v1292_v31 = vunpack.c.l.s8.bf16 %v1273_v20 }
 0x263   :  { %v817_v44 = vmul.f32 %v800_v39, %v708_v41  ;;  %v710_v47 = vadd.f32 %v709_v51, %v668_v33  ;;  %v976_v33 = vunpack.c.l.s8.bf16 %v884_v25  ;;  %v972_v39 = vunpack.c.h.s8.bf16 %v880_v36  ;;  %v877_v41 = vld [vmem:[#allocation10 + $0xb8] sm:$0xff]  ;;  %v876_v51 = vld [vmem:[#allocation10 + $0xb0] sm:$0xff] }
 0x264   :  { %v711_v49 = vpop.f32.mrf.mxu1  ;;  %v1276_v25 = vld [vmem:[#allocation11 + $0x30] sm:$0xff] }
 0x265   :  { %v842_v50 = vadd.f32 %v825_v42, %v817_v44  ;;  %v818_v52 = vmul.f32 %v804_v43, %v710_v47  ;;  %v968_v42 = vunpack.c.l.s8.bf16 %v880_v36  ;;  %v965_v43 = vunpack.c.h.s8.bf16 %v877_v41 }
 0x266   :  { %v712_v53 = vpop.f32.mrf.mxu1  ;;  %v964_v44 = vunpack.c.h.s8.bf16 %v876_v51  ;;  %v961_v47 = vunpack.c.l.s8.bf16 %v877_v41  ;;  %v808_v49 = vrot.slane %v3145_v37, %v3113_v1  ;;  %v889_v41 = vld [vmem:[#allocation10 + $0x118] sm:$0xff] }
 0x267   :  { %v843_v54 = vadd.f32 %v829_v26, %v818_v52  ;;  %v846_v55 = vmax.f32 %v842_v50, 0.0  ;;  %v873_v26 = vld [vmem:[#allocation10 + $0x98] sm:$0xff]  ;;  %v960_v50 = vunpack.c.l.s8.bf16 %v876_v51 }
 0x268   :  { %v957_v53 = vunpack.c.h.s8.bf16 %v873_v26  ;;  %v953_v4 = vunpack.c.l.s8.bf16 %v873_v26 }
 0x269   :  { %v847_v57 = vmax.f32 %v843_v54, 0.0  ;;  %v3157_v60 = vpack.c.bf16 %v846_v55, %v846_v55  ;;  %v872_v54 = vld [vmem:[#allocation10 + $0x90] sm:$0xff] }
 0x26b   :  { %v1047_v58 = vpack.c.bf16 %v847_v57, %v847_v57  ;;  %v812_v57 = vrot.slane %v3145_v37, %v3115_v3  ;;  %v900_v37 = vld [vmem:[#allocation10 + $0x170] sm:$0xff] }
 0x26c   :  { %v1012_v11 = vunpack.c.h.s8.bf16 %v900_v37 }
 0x26d   :  { %1082 = vmatprep.mubr.bf16.mxu0 %v1047_v58 }
 0x26e   :  { %1083 = vmatmul.mubr.bf16.vlgmr.msra.gmra.mxu0 %v3157_v60 }
 0x26f   :  { %1133 = vmatpush1.bf16.msra.mxu0 %v948_v59  ;;  %1164 = vmatprep.mubr.bf16.mxu0 %v1047_v58 }
 0x270   :  { %1134 = vmatprep.subr.bf16.mxu0 %v945_v61 }
 0x273   :  { %1135 = vmatpush1.bf16.msra.mxu0 %v944_v63  ;;  %v956_v63 = vunpack.c.h.s8.bf16 %v872_v54 }
 0x274   :  { %1136 = vmatprep.subr.bf16.mxu0 %v941_v2 }
 0x277   :  { %1137 = vmatpush1.bf16.msra.mxu0 %v940_v5 }
 0x278   :  { %1138 = vmatprep.subr.bf16.mxu0 %v937_v6 }
 0x27b   :  { %1139 = vmatpush1.bf16.msra.mxu0 %v936_v8 }
 0x27c   :  { %1140 = vmatprep.subr.bf16.mxu0 %v933_v9  ;;  %v952_v9 = vunpack.c.l.s8.bf16 %v872_v54 }
 0x27f   :  { %1141 = vmatpush1.bf16.msra.mxu0 %v932_v10 }
 0x280   :  { %v748_v13 = vpop.f32.mrf.mxu0  ;;  %1142 = vmatprep.subr.bf16.mxu0 %v929_v0 }
 0x282   :  { %v750_v16 = vpop.f32.mrf.mxu0 }
 0x283   :  { %1143 = vmatpush1.bf16.msra.mxu0 %v928_v12 }
 0x284   :  { %v752_v18 = vpop.f32.mrf.mxu0  ;;  %1144 = vmatprep.subr.bf16.mxu0 %v925_v14  ;;  %v1008_v14 = vunpack.c.l.s8.bf16 %v900_v37 }
 0x286   :  { %v753_v21 = vpop.f32.mrf.mxu0 }
 0x287   :  { %1145 = vmatpush1.bf16.msra.mxu0 %v924_v17  ;;  %v893_v21 = vld [vmem:[#allocation10 + $0x138] sm:$0xff] }
 0x288   :  { %1146 = vmatprep.subr.bf16.mxu0 %v921_v19  ;;  %v1277_v19 = vld [vmem:[#allocation11 + $0x38] sm:$0xff] }
 0x289   :  { %v1301_v34 = vunpack.c.h.s8.bf16 %v1277_v19 }
 0x28b   :  { %1147 = vmatpush1.bf16.msra.mxu0 %v920_v23  ;;  %v1293_v23 = vunpack.c.h.s8.bf16 %v1273_v20 }
 0x28c   :  { %1148 = vmatprep.subr.bf16.mxu0 %v981_v24  ;;  %v1300_v24 = vunpack.c.l.s8.bf16 %v1277_v19  ;;  %v1274_v19 = vld [vmem:[#allocation11 + $0x20] sm:$0xff] }
 0x28d   :  { %v1295_v20 = vunpack.c.h.s8.bf16 %v1274_v19 }
 0x28f   :  { %1149 = vmatpush2.bf16.msra.mxu0 %v980_v27 }
 0x290   :  { %1150 = vmatprep.subr.bf16.mxu0 %v977_v29  ;;  %v892_v29 = vld [vmem:[#allocation10 + $0x130] sm:$0xff] }
 0x291   :  { %v996_v36 = vunpack.c.h.s8.bf16 %v892_v29  ;;  %v992_v51 = vunpack.c.l.s8.bf16 %v892_v29 }
 0x293   :  { %1151 = vmatpush2.bf16.msra.mxu0 %v976_v33  ;;  %v1299_v33 = vunpack.c.h.s8.bf16 %v1276_v25 }
 0x294   :  { %1152 = vmatprep.subr.bf16.mxu0 %v973_v35  ;;  %v1272_v35 = vld [vmem:[#allocation11 + $0x10] sm:$0xff] }
 0x295   :  { %v1290_v26 = vunpack.c.l.s8.bf16 %v1272_v35 }
 0x297   :  { %1153 = vmatpush2.bf16.msra.mxu0 %v972_v39  ;;  %v993_v39 = vunpack.c.l.s8.bf16 %v893_v21 }
 0x298   :  { %1154 = vmatprep.subr.bf16.mxu0 %v969_v40  ;;  %v1291_v40 = vunpack.c.h.s8.bf16 %v1272_v35 }
 0x29b   :  { %1155 = vmatpush2.bf16.msra.mxu0 %v968_v42  ;;  %v1298_v42 = vunpack.c.l.s8.bf16 %v1276_v25  ;;  %v1285_v25 = vld [vmem:[#allocation11 + $0x78] sm:$0xff] }
 0x29c   :  { %1156 = vmatprep.subr.bf16.mxu0 %v965_v43  ;;  %v3174_v43 = vld [vmem:[#allocation11 + $0x28] sm:$0xff] }
 0x29f   :  { %1157 = vmatpush2.bf16.msra.mxu0 %v964_v44  ;;  %v989_v44 = vunpack.c.h.s8.bf16 %v889_v41 }
 0x2a0   :  { %v789_v52 = vpop.f32.mrf.mxu1  ;;  %1158 = vmatprep.subr.bf16.mxu0 %v961_v47  ;;  %v888_v47 = vld [vmem:[#allocation10 + $0x110] sm:$0xff] }
 0x2a1   :  { %v790_v55 = vadd.f32 %v789_v52, %v748_v13  ;;  %v897_v13 = vld [vmem:[#allocation10 + $0x158] sm:$0xff]  ;;  %v988_v52 = vunpack.c.h.s8.bf16 %v888_v47 }
 0x2a2   :  { %v791_v58 = vpop.f32.mrf.mxu1  ;;  %v1005_v15 = vunpack.c.h.s8.bf16 %v897_v13  ;;  %v1001_v18 = vunpack.c.l.s8.bf16 %v897_v13  ;;  %v904_v13 = vld [vmem:[#allocation10 + $0x190] sm:$0xff] }
 0x2a3   :  { %v819_v59 = vmul.f32 %v808_v49, %v790_v55  ;;  %v792_v61 = vadd.f32 %v791_v58, %v750_v16  ;;  %1159 = vmatpush2.bf16.msra.mxu0 %v960_v50  ;;  %v896_v16 = vld [vmem:[#allocation10 + $0x150] sm:$0xff]  ;;  %v1297_v49 = vunpack.c.h.s8.bf16 %v3174_v43  ;;  %v1271_v50 = vld [vmem:[#allocation11 + $0x8] sm:$0xff]  ;;  %v917_v55 = vld [vmem:[#allocation10 + $0x1f8] sm:$0xff] }
 0x2a4   :  { %v793_v2 = vpop.f32.mrf.mxu1  ;;  %1160 = vmatprep.subr.bf16.mxu0 %v957_v53  ;;  %v1004_v17 = vunpack.c.h.s8.bf16 %v896_v16  ;;  %v1000_v27 = vunpack.c.l.s8.bf16 %v896_v16  ;;  %v985_v53 = vunpack.c.l.s8.bf16 %v889_v41  ;;  %v1289_v54 = vunpack.c.h.s8.bf16 %v1271_v50  ;;  %v916_v58 = vld [vmem:[#allocation10 + $0x1f0] sm:$0xff]  ;;  %v1283_v41 = vld [vmem:[#allocation11 + $0x68] sm:$0xff] }
 0x2a5   :  { %v844_v5 = vadd.f32 %v833_v56, %v819_v59  ;;  %v820_v6 = vmul.f32 %v812_v57, %v792_v61  ;;  %v984_v56 = vunpack.c.l.s8.bf16 %v888_v47  ;;  %v1045_v57 = vunpack.c.h.s8.bf16 %v917_v55 }
 0x2a6   :  { %v794_v7 = vpop.f32.mrf.mxu1  ;;  %v1044_v59 = vunpack.c.h.s8.bf16 %v916_v58  ;;  %v1041_v61 = vunpack.c.l.s8.bf16 %v917_v55  ;;  %v1016_v16 = vunpack.c.l.s8.bf16 %v904_v13  ;;  %v1278_v55 = vld [vmem:[#allocation11 + $0x40] sm:$0xff] }
 0x2a7   :  { %v845_v8 = vadd.f32 %v837_v62, %v820_v6  ;;  %1161 = vmatpush2.bf16.msra.mxu0 %v956_v63  ;;  %v848_v46 = vmax.f32 %v844_v5, 0.0  ;;  %v913_v62 = vld [vmem:[#allocation10 + $0x1d8] sm:$0xff]  ;;  %v1040_v63 = vunpack.c.l.s8.bf16 %v916_v58 }
 0x2a8   :  { %1162 = vmatprep.subr.bf16.mxu0 %v953_v4  ;;  %v1037_v2 = vunpack.c.h.s8.bf16 %v913_v62  ;;  %v912_v4 = vld [vmem:[#allocation10 + $0x1d0] sm:$0xff]  ;;  %v1033_v6 = vunpack.c.l.s8.bf16 %v913_v62  ;;  %v909_v7 = vld [vmem:[#allocation10 + $0x1b8] sm:$0xff] }
 0x2a9   :  { %v849_v10 = vmax.f32 %v845_v8, 0.0  ;;  %v3169_v12 = vpack.c.bf16 %v848_v46, %v848_v46  ;;  %v1036_v5 = vunpack.c.h.s8.bf16 %v912_v4  ;;  %v1032_v8 = vunpack.c.l.s8.bf16 %v912_v4  ;;  %v908_v46 = vld [vmem:[#allocation10 + $0x1b0] sm:$0xff]  ;;  %v228_v62 = vld [vmem:[%s3333_s2] sm:$0xff] }
 0x2aa   :  { %v1028_v37 = vunpack.c.h.s8.bf16 %v908_v46 }
 0x2ab   :  { %1163 = vmatpush2.bf16.msra.mxu0 %v952_v9  ;;  %v1049_v0 = vpack.c.bf16 %v849_v10, %v849_v10  ;;  %v1029_v9 = vunpack.c.h.s8.bf16 %v909_v7  ;;  %v1025_v10 = vunpack.c.l.s8.bf16 %v909_v7  ;;  %v3190_v7 = vld [vmem:[#allocation5 + $0x11] ss:$2 sm:$0xf] }
 0x2ac   :  { %2552 = vmatprep.subr.bf16.mxu0 %v1301_v34 }
 0x2ad   :  { %1123 = vmatprep.mubr.bf16.mxu1 %v1049_v0 }
 0x2ae   :  { %1124 = vmatmul.mubr.bf16.vlgmr.msra.gmra.mxu1 %v3169_v12  ;;  %1165 = vmatmul.mubr.bf16.vlgmr.msra.gmra.mxu0 %v3157_v60  ;;  %v997_v60 = vunpack.c.h.s8.bf16 %v893_v21  ;;  %v1270_v21 = vld [vmem:[#allocation11] sm:$0xff] }
 0x2af   :  { %1174 = vmatpush1.bf16.msra.mxu1 %v1012_v11  ;;  %1205 = vmatprep.mubr.bf16.mxu1 %v1049_v0  ;;  %v905_v0 = vld [vmem:[#allocation10 + $0x198] sm:$0xff]  ;;  %v1024_v11 = vunpack.c.l.s8.bf16 %v908_v46  ;;  %v1287_v34 = vunpack.c.h.s8.bf16 %v1270_v21 }
 0x2b0   :  { %1175 = vmatprep.subr.bf16.mxu1 %v1009_v38  ;;  %2553 = vmatpush3.bf16.msra.mxu0 %v1293_v23  ;;  %v1021_v38 = vunpack.c.h.s8.bf16 %v905_v0  ;;  %v1294_v23 = vunpack.c.l.s8.bf16 %v1274_v19 }
 0x2b1   :  { %2554 = vmatprep.subr.bf16.mxu0 %v1300_v24  ;;  %v1286_v24 = vunpack.c.l.s8.bf16 %v1270_v21 }
 0x2b3   :  { %1176 = vmatpush1.bf16.msra.mxu1 %v1008_v14  ;;  %v1020_v14 = vunpack.c.h.s8.bf16 %v904_v13 }
 0x2b4   :  { %1177 = vmatprep.subr.bf16.mxu1 %v1005_v15  ;;  %2555 = vmatpush3.bf16.msra.mxu0 %v1292_v31  ;;  %v1017_v15 = vunpack.c.l.s8.bf16 %v905_v0  ;;  %v1284_v31 = vld [vmem:[#allocation11 + $0x70] sm:$0xff] }
 0x2b5   :  { %2556 = vmatprep.subr.bf16.mxu0 %v1299_v33  ;;  %v1315_v35 = vunpack.c.h.s8.bf16 %v1284_v31 }
 0x2b7   :  { %1178 = vmatpush1.bf16.msra.mxu1 %v1004_v17  ;;  %v1296_v17 = vunpack.c.l.s8.bf16 %v3174_v43  ;;  %v1313_v43 = vunpack.c.h.s8.bf16 %v1283_v41 }
 0x2b8   :  { %1179 = vmatprep.subr.bf16.mxu1 %v1001_v18  ;;  %2557 = vmatpush3.bf16.msra.mxu0 %v1291_v40  ;;  %v1288_v18 = vunpack.c.l.s8.bf16 %v1271_v50  ;;  %v1314_v40 = vunpack.c.l.s8.bf16 %v1284_v31  ;;  %v1499_v31 = vld [vmem:[#allocation13 + $0x28] sm:$0xff] }
 0x2b9   :  { %2558 = vmatprep.subr.bf16.mxu0 %v1298_v42 }
 0x2bb   :  { %1180 = vmatpush1.bf16.msra.mxu1 %v1000_v27  ;;  %v1281_v27 = vld [vmem:[#allocation11 + $0x58] sm:$0xff] }
 0x2bc   :  { %1181 = vmatprep.subr.bf16.mxu1 %v997_v60  ;;  %2559 = vmatpush3.bf16.msra.mxu0 %v1290_v26  ;;  %v1317_v60 = vunpack.c.h.s8.bf16 %v1285_v25  ;;  %v1309_v29 = vunpack.c.h.s8.bf16 %v1281_v27  ;;  %v1308_v33 = vunpack.c.l.s8.bf16 %v1281_v27  ;;  %v1312_v26 = vunpack.c.l.s8.bf16 %v1283_v41 }
 0x2bd   :  { %2560 = vmatprep.subr.bf16.mxu0 %v1297_v49 }
 0x2bf   :  { %1182 = vmatpush1.bf16.msra.mxu1 %v996_v36  ;;  %v1280_v36 = vld [vmem:[#allocation11 + $0x50] sm:$0xff] }
 0x2c0   :  { %1183 = vmatprep.subr.bf16.mxu1 %v993_v39  ;;  %2561 = vmatpush3.bf16.msra.mxu0 %v1289_v54  ;;  %v1307_v39 = vunpack.c.h.s8.bf16 %v1280_v36  ;;  %v1306_v42 = vunpack.c.l.s8.bf16 %v1280_v36  ;;  %v1498_v36 = vld [vmem:[#allocation13 + $0x20] sm:$0xff] }
 0x2c1   :  { %2562 = vmatprep.subr.bf16.mxu0 %v1296_v17  ;;  %v1550_v41 = vunpack.c.l.s8.bf16 %v1498_v36 }
 0x2c3   :  { %1184 = vmatpush1.bf16.msra.mxu1 %v992_v51  ;;  %v1279_v51 = vld [vmem:[#allocation11 + $0x48] sm:$0xff] }
 0x2c4   :  { %1185 = vmatprep.subr.bf16.mxu1 %v989_v44  ;;  %2563 = vmatpush3.bf16.msra.mxu0 %v1288_v18  ;;  %v1305_v44 = vunpack.c.h.s8.bf16 %v1279_v51  ;;  %v1304_v49 = vunpack.c.l.s8.bf16 %v1279_v51 }
 0x2c5   :  { %2564 = vmatprep.subr.bf16.mxu0 %v1295_v20 }
 0x2c7   :  { %1186 = vmatpush1.bf16.msra.mxu1 %v988_v52  ;;  %v1282_v52 = vld [vmem:[#allocation11 + $0x60] sm:$0xff] }
 0x2c8   :  { %1187 = vmatprep.subr.bf16.mxu1 %v985_v53  ;;  %2565 = vmatpush3.bf16.msra.mxu0 %v1287_v34  ;;  %v1311_v54 = vunpack.c.h.s8.bf16 %v1282_v52  ;;  %v1310_v58 = vunpack.c.l.s8.bf16 %v1282_v52 }
 0x2c9   :  { %2566 = vmatprep.subr.bf16.mxu0 %v1294_v23 }
 0x2cb   :  { %1188 = vmatpush1.bf16.msra.mxu1 %v984_v56  ;;  %v1303_v56 = vunpack.c.h.s8.bf16 %v1278_v55 }
 0x2cc   :  { %1189 = vmatprep.subr.bf16.mxu1 %v1045_v57  ;;  %2567 = vmatpush3.bf16.msra.mxu0 %v1286_v24  ;;  %v1500_v24 = vld [vmem:[#allocation13 + $0x30] sm:$0xff] }
 0x2cf   :  { %1190 = vmatpush2.bf16.msra.mxu1 %v1044_v59  ;;  %v227_v59 = vld [vmem:[%s3332_s1] sm:$0xff] }
 0x2d0   :  { %1191 = vmatprep.subr.bf16.mxu1 %v1041_v61  ;;  %v1302_v61 = vunpack.c.l.s8.bf16 %v1278_v55  ;;  %1429 = vperm.xlu0 %2616, %v227_v59   ;;  %v1507_v59 = vld [vmem:[#allocation13 + $0x68] sm:$0xff] }
 0x2d3   :  { %1192 = vmatpush2.bf16.msra.mxu1 %v1040_v63  ;;  %v1501_v63 = vld [vmem:[#allocation13 + $0x38] sm:$0xff] }
 0x2d4   :  { %1193 = vmatprep.subr.bf16.mxu1 %v1037_v2  ;;  %v3185_v2 = vld [vmem:[#allocation13 + $0xb8] sm:$0xff]  ;;  %1435 = vperm.xlu0 %2616, %v228_v62   ;;  %v1557_v4 = vunpack.c.h.s8.bf16 %v1501_v63 }
 0x2d6   :  { %1644 = vmatprep.subr.bf16.mxu0 %v1557_v4  ;;  %v1506_v4 = vld [vmem:[#allocation13 + $0x60] sm:$0xff] }
 0x2d7   :  { %1194 = vmatpush2.bf16.msra.mxu1 %v1036_v5  ;;  %v1589_v5 = vunpack.c.h.s8.bf16 %v3185_v2 }
 0x2d8   :  { %1195 = vmatprep.subr.bf16.mxu1 %v1033_v6  ;;  %v3188_v6 = vld [vmem:[#allocation5 + $0x10] ss:$2 sm:$0xf] }
 0x2d9   :  { %v1222_v0 = vrot.slane %v3188_v6, %v3089_v32 }
 0x2db   :  { %1196 = vmatpush2.bf16.msra.mxu1 %v1032_v8  ;;  %v1218_v8 = vrot.slane %v3188_v6, %v3085_v30 }
 0x2dc   :  { %1197 = vmatprep.subr.bf16.mxu1 %v1029_v9 }
 0x2df   :  { %1198 = vmatpush2.bf16.msra.mxu1 %v1028_v37 }
 0x2e0   :  { %1199 = vmatprep.subr.bf16.mxu1 %v1025_v10  ;;  %v1243_v10 = vrot.slane %v3190_v7, %v3085_v30 }
 0x2e3   :  { %1200 = vmatpush2.bf16.msra.mxu1 %v1024_v11 }
 0x2e4   :  { %1201 = vmatprep.subr.bf16.mxu1 %v1021_v38 }
 0x2e7   :  { %1202 = vmatpush2.bf16.msra.mxu1 %v1020_v14 }
 0x2e8   :  { %1203 = vmatprep.subr.bf16.mxu1 %v1017_v15  ;;  %v1247_v15 = vrot.slane %v3190_v7, %v3089_v32 }
 0x2eb   :  { %1204 = vmatpush2.bf16.msra.mxu1 %v1016_v16 }
 0x2ec   :  { %2574 = vmatprep.subr.bf16.mxu1 %v1317_v60  ;;  %v1556_v60 = vunpack.c.h.s8.bf16 %v1500_v24 }
 0x2ee   :  { %1206 = vmatmul.mubr.bf16.vlgmr.msra.gmra.mxu1 %v3169_v12  ;;  %v1316_v12 = vunpack.c.l.s8.bf16 %v1285_v25 }
 0x2ef   :  { %2575 = vmatpush3.bf16.msra.mxu1 %v1309_v29 }
 0x2f0   :  { %2576 = vmatprep.subr.bf16.mxu1 %v1316_v12  ;;  %v1555_v12 = vunpack.c.l.s8.bf16 %v1501_v63  ;;  %v1569_v63 = vunpack.c.h.s8.bf16 %v1507_v59 }
 0x2f3   :  { %2577 = vmatpush3.bf16.msra.mxu1 %v1308_v33  ;;  %v1554_v33 = vunpack.c.l.s8.bf16 %v1500_v24  ;;  %v213_v24 = vld [vmem:[#allocation2 + $0x10] sm:$0xff] }
 0x2f4   :  { %2578 = vmatprep.subr.bf16.mxu1 %v1315_v35  ;;  %v1553_v35 = vunpack.c.h.s8.bf16 %v1499_v31 }
 0x2f7   :  { %2579 = vmatpush3.bf16.msra.mxu1 %v1307_v39  ;;  %v1552_v39 = vunpack.c.h.s8.bf16 %v1498_v36  ;;  %v1230_v36 = vrot.slane %v3188_v6, %v3115_v3 }
 0x2f8   :  { %2580 = vmatprep.subr.bf16.mxu1 %v1314_v40  ;;  %v1551_v40 = vunpack.c.l.s8.bf16 %v1499_v31 }
 0x2fb   :  { %2581 = vmatpush3.bf16.msra.mxu1 %v1306_v42  ;;  %v1496_v42 = vld [vmem:[#allocation13 + $0x10] sm:$0xff] }
 0x2fc   :  { %2582 = vmatprep.subr.bf16.mxu1 %v1313_v43  ;;  %v1548_v43 = vunpack.c.h.s8.bf16 %v1496_v42 }
 0x2ff   :  { %2583 = vmatpush3.bf16.msra.mxu1 %v1305_v44  ;;  %v1495_v44 = vld [vmem:[#allocation13 + $0x8] sm:$0xff] }
 0x300   :  { %2584 = vmatprep.subr.bf16.mxu1 %v1312_v26  ;;  %v1545_v26 = vunpack.c.h.s8.bf16 %v1495_v44  ;;  %v1543_v52 = vunpack.c.l.s8.bf16 %v1495_v44  ;;  %v1255_v44 = vrot.slane %v3190_v7, %v3115_v3 }
 0x303   :  { %2585 = vmatpush3.bf16.msra.mxu1 %v1304_v49  ;;  %v1494_v49 = vld [vmem:[#allocation13] sm:$0xff] }
 0x304   :  { %2586 = vmatprep.subr.bf16.mxu1 %v1311_v54  ;;  %v1542_v54 = vunpack.c.l.s8.bf16 %v1494_v49 }
 0x307   :  { %2587 = vmatpush3.bf16.msra.mxu1 %v1303_v56  ;;  %v1508_v56 = vld [vmem:[#allocation13 + $0x70] sm:$0xff] }
 0x308   :  { %2588 = vmatprep.subr.bf16.mxu1 %v1310_v58  ;;  %v1570_v62 = vunpack.c.l.s8.bf16 %v1508_v56 }
 0x30b   :  { %2589 = vmatpush3.bf16.msra.mxu1 %v1302_v61  ;;  %v3209_v61 = vld [vmem:[%s3334_s3 + $0x5] sm:$0x7] }
 0x30c   :  { %1685 = vmatprep.subr.bf16.mxu1 %v1589_v5  ;;  %v2551_v5 = vld [vmem:[%s3334_s3 + $0x1] ss:$0 sm:$0xff] }
 0x30d   :  { %2619 = vrcp.f32 %v2551_v5 }
 0x31a   :  { %v2620_v31 = vpop.eup %2619 }
 0x32e   :  { %v1084_v47 = vpop.f32.mrf.mxu0 }
 0x330   :  { %v1086_v50 = vpop.f32.mrf.mxu0 }
 0x332   :  { %v1088_v53 = vpop.f32.mrf.mxu0 }
 0x333   :  { %v1509_v53 = vld [vmem:[#allocation13 + $0x78] sm:$0xff] }
 0x334   :  { %v1089_v57 = vpop.f32.mrf.mxu0  ;;  %v1573_v55 = vunpack.c.h.s8.bf16 %v1509_v53  ;;  %v1571_v58 = vunpack.c.l.s8.bf16 %v1509_v53 }
 0x335   :  { %v1572_v57 = vunpack.c.h.s8.bf16 %v1508_v56 }
 0x36e   :  { %v1125_v9 = vpop.f32.mrf.mxu1  ;;  %v3194_v46 = vpop.f32.mrf.mxu0 }
 0x36f   :  { %v1126_v37 = vadd.f32 %v1125_v9, %v1084_v47  ;;  %v1546_v47 = vunpack.c.l.s8.bf16 %v1496_v42  ;;  %v1471_v9 = vrot.slane %v3209_v61, %v3113_v1 }
 0x370   :  { %v1127_v11 = vpop.f32.mrf.mxu1  ;;  %v3200_v38 = vpop.f32.mrf.mxu0 }
 0x371   :  { %v1235_v13 = vmul.f32 %v1218_v8, %v1126_v37  ;;  %v1128_v14 = vadd.f32 %v1127_v11, %v1086_v50  ;;  %v1544_v50 = vunpack.c.h.s8.bf16 %v1494_v49  ;;  %v1463_v8 = vrot.slane %v3209_v61, %v3085_v30 }
 0x372   :  { %v1129_v16 = vpop.f32.mrf.mxu1  ;;  %v1170_v17 = vpop.f32.mrf.mxu0  ;;  %v1568_v37 = vunpack.c.h.s8.bf16 %v1506_v4  ;;  %v1566_v11 = vunpack.c.l.s8.bf16 %v1506_v4 }
 0x373   :  { %v1260_v18 = vadd.f32 %v1243_v10, %v1235_v13  ;;  %v1236_v19 = vmul.f32 %v1222_v0, %v1128_v14  ;;  %v1567_v10 = vunpack.c.l.s8.bf16 %v1507_v59  ;;  %v1505_v0 = vld [vmem:[#allocation13 + $0x58] sm:$0xff]  ;;  %2621 = vrcp.f32 %v1463_v8  ;;  %v1504_v14 = vld [vmem:[#allocation13 + $0x50] sm:$0xff] }
 0x374   :  { %v1130_v20 = vpop.f32.mrf.mxu1  ;;  %v1171_v21 = vpop.f32.mrf.mxu0  ;;  %2623 = vrcp.f32 %v1471_v9  ;;  %v1565_v13 = vunpack.c.h.s8.bf16 %v1505_v0  ;;  %v3221_v16 = vld [vmem:[%s3334_s3 + $0x2] sm:$0x7]  ;;  %v1563_v17 = vunpack.c.l.s8.bf16 %v1505_v0 }
 0x375   :  { %v1261_v34 = vadd.f32 %v1247_v15, %v1236_v19  ;;  %v1264_v23 = vadd.f32 %v1260_v18, %v3101_v45  ;;  %v1497_v45 = vld [vmem:[#allocation13 + $0x18] sm:$0xff]  ;;  %v1564_v15 = vunpack.c.h.s8.bf16 %v1504_v14  ;;  %v1503_v18 = vld [vmem:[#allocation13 + $0x48] sm:$0xff]  ;;  %v1444_v21 = vrot.slane %v3221_v16, %v3085_v30 }
 0x376   :  { %v1547_v51 = vunpack.c.l.s8.bf16 %v1497_v45  ;;  %v211_v19 = vld [vmem:[#allocation2] sm:$0xff] }
 0x377   :  { %v1265_v25 = vadd.f32 %v1261_v34, %v3103_v48  ;;  %v1318_v29 = vpack.c.bf16 %v1264_v23, %v1264_v23  ;;  %v1549_v48 = vunpack.c.h.s8.bf16 %v1497_v45  ;;  %v2550_v20 = vld [vmem:[%s3334_s3] ss:$0 sm:$0xff]  ;;  %v1452_v34 = vrot.slane %v3221_v16, %v3113_v1  ;;  %s2922_s3 = smov [#allocation22]  }
 0x378   :  { %v1226_v23 = vrot.slane %v3188_v6, %v3113_v1  ;;  %v3240_v6 = vpop.permute.xlu0 %1429  ;;  %s2531_s20 = sshll.u32 %s2922_s3, 4  ;;  %s2532_s20 = int_to_ptr.vmem [resolvable:$true] %s2531_s20 }
 0x379   :  { %v1319_v27 = vpack.c.bf16 %v1265_v25, %v1265_v25  ;;  %v215_v25 = vld [vmem:[#allocation2 + $0x20] sm:$0xff]  ;;  %s2867_s7 = scalar_lea.vmem %s2532_s20, 512  ;;  %p2872_p5 = scmp.lt.s32.totalorder %s2532_s20, %s2532_s20 }
 0x37a   :  { %p2868_p4 = scmp.ne.s32.totalorder %s2532_s20, %s2867_s7  ;;  %p2873_p6 = scmp.lt.s32.totalorder %s2867_s7, %s2867_s7 }
 0x37b   :  { %1354 = vmatprep.mubr.bf16.mxu0 %v1319_v27  ;;  %v1562_v27 = vunpack.c.l.s8.bf16 %v1504_v14 }
 0x37c   :  { %1355 = vmatmul.mubr.bf16.vlgmr.msra.gmra.mxu0 %v1318_v29  ;;  %v1561_v29 = vunpack.c.h.s8.bf16 %v1503_v18  ;;  %v3247_v8 = vpop.permute.xlu0 %1435  ;;  %p2874_p7 = por %p2873_p6, %p2872_p5 }
 0x37d   :  { %1645 = vmatpush1.bf16.msra.mxu0 %v1556_v60 }
 0x37e   :  { %1646 = vmatprep.subr.bf16.mxu0 %v1555_v12  ;;  %v1502_v12 = vld [vmem:[#allocation13 + $0x40] sm:$0xff]  ;;  %p2875_p8 = pnand %p2874_p7, %p2868_p4 }
 0x381   :  { %1647 = vmatpush1.bf16.msra.mxu0 %v1554_v33 }
 0x382   :  { %1648 = vmatprep.subr.bf16.mxu0 %v1553_v35  ;;  %v1251_v35 = vrot.slane %v3190_v7, %v3113_v1  ;;  %v216_v7 = vld [vmem:[#allocation2 + $0x28] sm:$0xff] }
 0x385   :  { %1649 = vmatpush1.bf16.msra.mxu0 %v1552_v39  ;;  %v1418_v39 = vsub.f32 %v211_v19, %v2550_v20 }
 0x386   :  { %1650 = vmatprep.subr.bf16.mxu0 %v1551_v40  ;;  %v2622_v40 = vpop.eup %2621 }
 0x387   :  { %v2624_v42 = vpop.eup %2623 }
 0x389   :  { %1651 = vmatpush1.bf16.msra.mxu0 %v1550_v41  ;;  %v1456_v41 = vsub.f32 %v213_v24, %v1444_v21 }
 0x38a   :  { %1652 = vmatprep.subr.bf16.mxu0 %v1549_v48  ;;  %v1458_v48 = vsub.f32 %v215_v25, %v1452_v34  ;;  %v1514_v34 = vld [vmem:[#allocation13 + $0xa0] sm:$0xff] }
 0x38d   :  { %1653 = vmatpush1.bf16.msra.mxu0 %v1548_v43 }
 0x38e   :  { %1654 = vmatprep.subr.bf16.mxu0 %v1547_v51 }
 0x391   :  { %1655 = vmatpush1.bf16.msra.mxu0 %v1546_v47 }
 0x392   :  { %1656 = vmatprep.subr.bf16.mxu0 %v1545_v26  ;;  %v1559_v26 = vunpack.c.l.s8.bf16 %v1503_v18 }
 0x395   :  { %1657 = vmatpush1.bf16.msra.mxu0 %v1544_v50 }
 0x396   :  { %1658 = vmatprep.subr.bf16.mxu0 %v1543_v52  ;;  %v1426_v52 = vmul.f32 %v2620_v31, %v1418_v39 }
 0x399   :  { %1659 = vmatpush1.bf16.msra.mxu0 %v1542_v54  ;;  %v1476_v54 = vmul.f32 %v2622_v40, %v1456_v41  ;;  %v1512_v40 = vld [vmem:[#allocation13 + $0x90] sm:$0xff] }
 0x39a   :  { %1660 = vmatprep.subr.bf16.mxu0 %v1573_v55  ;;  %v1480_v55 = vmul.f32 %v2624_v42, %v1458_v48  ;;  %v1530_v48 = vld [vmem:[#allocation13 + $0x120] sm:$0xff]  ;;  %v1580_v42 = vunpack.c.h.s8.bf16 %v1512_v40 }
 0x39b   :  { %v1481_v4 = vmul.f32 %v1476_v54, %v3240_v6  ;;  %v1528_v54 = vld [vmem:[#allocation13 + $0x110] sm:$0xff] }
 0x39c   :  { %v1483_v5 = vmul.f32 %v1480_v55, %v3240_v6 }
 0x39d   :  { %1661 = vmatpush2.bf16.msra.mxu0 %v1572_v57  ;;  %v1516_v57 = vld [vmem:[#allocation13 + $0xb0] sm:$0xff] }
 0x39e   :  { %1662 = vmatprep.subr.bf16.mxu0 %v1571_v58  ;;  %v212_v58 = vld [vmem:[#allocation2 + $0x8] sm:$0xff]  ;;  %v1586_v19 = vunpack.c.l.s8.bf16 %v1516_v57 }
 0x3a1   :  { %1663 = vmatpush2.bf16.msra.mxu0 %v1570_v62  ;;  %v1432_v62 = vmul.f32 %v3240_v6, %v1426_v52  ;;  %v1614_v52 = vunpack.c.l.s8.bf16 %v1530_v48 }
 0x3a2   :  { %1664 = vmatprep.subr.bf16.mxu0 %v1569_v63  ;;  %v218_v63 = vld [vmem:[#allocation2 + $0x38] sm:$0xff] }
 0x3a5   :  { %1665 = vmatpush2.bf16.msra.mxu0 %v1568_v37  ;;  %v1588_v37 = vunpack.c.h.s8.bf16 %v1516_v57  ;;  %v1525_v57 = vld [vmem:[#allocation13 + $0xf8] sm:$0xff] }
 0x3a6   :  { %1666 = vmatprep.subr.bf16.mxu0 %v1567_v10  ;;  %v1438_v10 = vmul.f32 %v3247_v8, %v212_v58 }
 0x3a8   :  { %v1439_v14 = vadd.f32 %v1438_v10, %v1432_v62  ;;  %v1605_v62 = vunpack.c.h.s8.bf16 %v1525_v57 }
 0x3a9   :  { %1667 = vmatpush2.bf16.msra.mxu0 %v1566_v11  ;;  %v1587_v11 = vunpack.c.l.s8.bf16 %v3185_v2  ;;  %v1584_v2 = vunpack.c.h.s8.bf16 %v1514_v34 }
 0x3aa   :  { %1668 = vmatprep.subr.bf16.mxu0 %v1565_v13  ;;  %v1515_v13 = vld [vmem:[#allocation13 + $0xa8] sm:$0xff]  ;;  %v1638_v20 = vpack.c.bf16 %v1439_v14, %v1439_v14 }
 0x3ab   :  { %v1585_v21 = vunpack.c.h.s8.bf16 %v1515_v13  ;;  %v1583_v25 = vunpack.c.l.s8.bf16 %v1515_v13  ;;  %v1541_v13 = vld [vmem:[#allocation13 + $0x178] sm:$0xff] }
 0x3ad   :  { %1669 = vmatpush2.bf16.msra.mxu0 %v1564_v15  ;;  %v1558_v15 = vunpack.c.l.s8.bf16 %v1502_v12 }
 0x3ae   :  { %v1207_v60 = vpop.f32.mrf.mxu1  ;;  %1670 = vmatprep.subr.bf16.mxu0 %v1563_v17 }
 0x3af   :  { %v1208_v33 = vadd.f32 %v1207_v60, %v3194_v46  ;;  %v1560_v46 = vunpack.c.h.s8.bf16 %v1502_v12  ;;  %v1532_v60 = vld [vmem:[#allocation13 + $0x130] sm:$0xff] }
 0x3b0   :  { %v1209_v45 = vpop.f32.mrf.mxu1  ;;  %v1620_v31 = vunpack.c.h.s8.bf16 %v1532_v60 }
 0x3b1   :  { %v1237_v43 = vmul.f32 %v1226_v23, %v1208_v33  ;;  %v1210_v51 = vadd.f32 %v1209_v45, %v3200_v38  ;;  %1671 = vmatpush2.bf16.msra.mxu0 %v1562_v27  ;;  %v1533_v27 = vld [vmem:[#allocation13 + $0x138] sm:$0xff]  ;;  %v1618_v45 = vunpack.c.l.s8.bf16 %v1532_v60 }
 0x3b2   :  { %v1211_v47 = vpop.f32.mrf.mxu1  ;;  %1672 = vmatprep.subr.bf16.mxu0 %v1561_v29  ;;  %v1513_v29 = vld [vmem:[#allocation13 + $0x98] sm:$0xff]  ;;  %v1621_v12 = vunpack.c.h.s8.bf16 %v1533_v27  ;;  %v1619_v33 = vunpack.c.l.s8.bf16 %v1533_v27 }
 0x3b3   :  { %v1262_v49 = vadd.f32 %v1251_v35, %v1237_v43  ;;  %v1238_v50 = vmul.f32 %v1230_v36, %v1210_v51  ;;  %v1531_v35 = vld [vmem:[#allocation13 + $0x128] sm:$0xff]  ;;  %v1582_v36 = vunpack.c.l.s8.bf16 %v1514_v34  ;;  %v1581_v39 = vunpack.c.h.s8.bf16 %v1513_v29  ;;  %v1529_v47 = vld [vmem:[#allocation13 + $0x118] sm:$0xff] }
 0x3b4   :  { %v1212_v53 = vpop.f32.mrf.mxu1  ;;  %v1617_v41 = vunpack.c.h.s8.bf16 %v1531_v35  ;;  %v1579_v43 = vunpack.c.l.s8.bf16 %v1513_v29  ;;  %v1616_v51 = vunpack.c.h.s8.bf16 %v1530_v48  ;;  %v1611_v58 = vunpack.c.l.s8.bf16 %v1529_v47  ;;  %v214_v60 = vld [vmem:[#allocation2 + $0x18] sm:$0xff] }
 0x3b5   :  { %v1263_v56 = vadd.f32 %v1255_v44, %v1238_v50  ;;  %1673 = vmatpush2.bf16.msra.mxu0 %v1560_v46  ;;  %v1266_v38 = vadd.f32 %v1262_v49, %v3125_v22  ;;  %v1484_v22 = vmul.f32 %v3247_v8, %v216_v7  ;;  %v1511_v44 = vld [vmem:[#allocation13 + $0x88] sm:$0xff]  ;;  %v1615_v46 = vunpack.c.l.s8.bf16 %v1531_v35  ;;  %v1510_v50 = vld [vmem:[#allocation13 + $0x80] sm:$0xff] }
 0x3b6   :  { %1674 = vmatprep.subr.bf16.mxu0 %v1559_v26  ;;  %v1578_v26 = vunpack.c.l.s8.bf16 %v1512_v40  ;;  %v1577_v49 = vunpack.c.h.s8.bf16 %v1511_v44  ;;  %v1613_v53 = vunpack.c.h.s8.bf16 %v1529_v47  ;;  %v1576_v55 = vunpack.c.h.s8.bf16 %v1510_v50  ;;  %v1527_v7 = vld [vmem:[#allocation13 + $0x108] sm:$0xff]  ;;  %v1538_v35 = vld [vmem:[#allocation13 + $0x160] sm:$0xff] }
 0x3b7   :  { %v1267_v59 = vadd.f32 %v1263_v56, %v3127_v28  ;;  %v1320_v0 = vpack.c.bf16 %v1266_v38, %v1266_v38  ;;  %v1486_v28 = vmul.f32 %v3247_v8, %v218_v63  ;;  %v1487_v17 = vadd.f32 %v1484_v22, %v1481_v4  ;;  %v1524_v63 = vld [vmem:[#allocation13 + $0xf0] sm:$0xff]  ;;  %v1518_v47 = vld [vmem:[#allocation13 + $0xc0] sm:$0xff] }
 0x3b8   :  { %v1575_v56 = vunpack.c.l.s8.bf16 %v1511_v44  ;;  %v1612_v38 = vunpack.c.h.s8.bf16 %v1528_v54  ;;  %v1610_v4 = vunpack.c.l.s8.bf16 %v1528_v54  ;;  %v1604_v10 = vunpack.c.h.s8.bf16 %v1524_v63  ;;  %v217_v44 = vld [vmem:[#allocation2 + $0x30] sm:$0xff] }
 0x3b9   :  { %v1321_v9 = vpack.c.bf16 %v1267_v59, %v1267_v59  ;;  %v1489_v18 = vadd.f32 %v1486_v28, %v1483_v5  ;;  %1675 = vmatpush2.bf16.msra.mxu0 %v1558_v15  ;;  %v1639_v23 = vpack.c.bf16 %v1487_v17, %v1487_v17  ;;  %v1574_v59 = vunpack.c.l.s8.bf16 %v1510_v50  ;;  %v1522_v17 = vld [vmem:[#allocation13 + $0xe0] sm:$0xff]  ;;  %v1536_v50 = vld [vmem:[#allocation13 + $0x150] sm:$0xff] }
 0x3ba   :  { %1726 = vmatprep.subr.bf16.mxu0 %v1621_v12  ;;  %v1609_v5 = vunpack.c.h.s8.bf16 %v1527_v7  ;;  %v1603_v22 = vunpack.c.l.s8.bf16 %v1525_v57  ;;  %v1607_v28 = vunpack.c.l.s8.bf16 %v1527_v7  ;;  %v1602_v14 = vunpack.c.l.s8.bf16 %v1524_v63  ;;  %v1520_v12 = vld [vmem:[#allocation13 + $0xd0] sm:$0xff] }
 0x3bb   :  { %1394 = vmatprep.mubr.bf16.mxu1 %v1321_v9  ;;  %v1641_v24 = vpack.c.bf16 %v1489_v18, %v1489_v18  ;;  %1676 = vmatprep.mubr.bf16.mxu0 %v1639_v23  ;;  %v1526_v9 = vld [vmem:[#allocation13 + $0x100] sm:$0xff]  ;;  %v1521_v23 = vld [vmem:[#allocation13 + $0xd8] sm:$0xff]  ;;  %v1598_v27 = vunpack.c.l.s8.bf16 %v1522_v17  ;;  %v1596_v40 = vunpack.c.h.s8.bf16 %v1520_v12  ;;  %v1592_v54 = vunpack.c.h.s8.bf16 %v1518_v47 }
 0x3bc   :  { %1395 = vmatmul.mubr.bf16.vlgmr.msra.gmra.mxu1 %v1320_v0  ;;  %1677 = vmatmul.mubr.bf16.vlgmr.msra.gmra.mxu0 %v1638_v20  ;;  %v1608_v0 = vunpack.c.h.s8.bf16 %v1526_v9  ;;  %v1606_v18 = vunpack.c.l.s8.bf16 %v1526_v9  ;;  %v1600_v20 = vunpack.c.h.s8.bf16 %v1522_v17  ;;  %v1597_v29 = vunpack.c.h.s8.bf16 %v1521_v23  ;;  %v1804_v17 = vld [vmem:[#allocation14 + $0x28] sm:$0xff] }
 0x3bd   :  { %1686 = vmatpush1.bf16.msra.mxu1 %v1588_v37  ;;  %1717 = vmatprep.mubr.bf16.mxu1 %v1641_v24  ;;  %v1467_v37 = vrot.slane %v3209_v61, %v3089_v32  ;;  %v1637_v61 = vunpack.c.h.s8.bf16 %v1541_v13  ;;  %v1635_v24 = vunpack.c.l.s8.bf16 %v1541_v13  ;;  %v1590_v57 = vunpack.c.l.s8.bf16 %v1518_v47  ;;  %v1810_v47 = vld [vmem:[#allocation14 + $0x58] sm:$0xff] }
 0x3be   :  { %1687 = vmatprep.subr.bf16.mxu1 %v1587_v11  ;;  %1727 = vmatpush1.bf16.msra.mxu0 %v1620_v31  ;;  %v1523_v11 = vld [vmem:[#allocation13 + $0xe8] sm:$0xff] }
 0x3bf   :  { %1728 = vmatprep.subr.bf16.mxu0 %v1619_v33  ;;  %2625 = vrcp.f32 %v1467_v37  ;;  %v1601_v15 = vunpack.c.h.s8.bf16 %v1523_v11 }
 0x3c1   :  { %1688 = vmatpush1.bf16.msra.mxu1 %v1586_v19  ;;  %v1540_v19 = vld [vmem:[#allocation13 + $0x170] sm:$0xff] }
 0x3c2   :  { %1689 = vmatprep.subr.bf16.mxu1 %v1585_v21  ;;  %1729 = vmatpush1.bf16.msra.mxu0 %v1618_v45  ;;  %v1599_v21 = vunpack.c.l.s8.bf16 %v1523_v11  ;;  %v1636_v34 = vunpack.c.h.s8.bf16 %v1540_v19  ;;  %v1634_v31 = vunpack.c.l.s8.bf16 %v1540_v19  ;;  %v1595_v45 = vunpack.c.l.s8.bf16 %v1521_v23  ;;  %v1806_v11 = vld [vmem:[#allocation14 + $0x38] sm:$0xff]  ;;  %v1803_v19 = vld [vmem:[#allocation14 + $0x20] sm:$0xff] }
 0x3c3   :  { %1730 = vmatprep.subr.bf16.mxu0 %v1617_v41  ;;  %v1519_v41 = vld [vmem:[#allocation13 + $0xc8] sm:$0xff]  ;;  %v1830_v13 = vunpack.c.h.s8.bf16 %v1806_v11  ;;  %v1823_v23 = vunpack.c.l.s8.bf16 %v1803_v19 }
 0x3c5   :  { %1690 = vmatpush1.bf16.msra.mxu1 %v1584_v2  ;;  %v1448_v2 = vrot.slane %v3221_v16, %v3089_v32  ;;  %v1632_v16 = vunpack.c.h.s8.bf16 %v1538_v35 }
 0x3c6   :  { %1691 = vmatprep.subr.bf16.mxu1 %v1583_v25  ;;  %1731 = vmatpush1.bf16.msra.mxu0 %v1616_v51  ;;  %v1539_v25 = vld [vmem:[#allocation13 + $0x168] sm:$0xff]  ;;  %v1594_v51 = vunpack.c.l.s8.bf16 %v1520_v12 }
 0x3c7   :  { %1732 = vmatprep.subr.bf16.mxu0 %v1615_v46  ;;  %v1633_v33 = vunpack.c.h.s8.bf16 %v1539_v25  ;;  %v1631_v48 = vunpack.c.l.s8.bf16 %v1539_v25  ;;  %v1593_v46 = vunpack.c.h.s8.bf16 %v1519_v41 }
 0x3c9   :  { %1692 = vmatpush1.bf16.msra.mxu1 %v1582_v36  ;;  %v1457_v36 = vsub.f32 %v214_v60, %v1448_v2  ;;  %v1801_v2 = vld [vmem:[#allocation14 + $0x10] sm:$0xff]  ;;  %v1800_v60 = vld [vmem:[#allocation14 + $0x8] sm:$0xff] }
 0x3ca   :  { %1693 = vmatprep.subr.bf16.mxu1 %v1581_v39  ;;  %1733 = vmatpush1.bf16.msra.mxu0 %v1614_v52  ;;  %v1821_v25 = vunpack.c.h.s8.bf16 %v1801_v2  ;;  %v1818_v12 = vunpack.c.h.s8.bf16 %v1800_v60 }
 0x3cb   :  { %1734 = vmatprep.subr.bf16.mxu0 %v1613_v53  ;;  %v1485_v53 = vmul.f32 %v3247_v8, %v217_v44 }
 0x3cc   :  { %v2626_v39 = vpop.eup %2625 }
 0x3cd   :  { %1694 = vmatpush1.bf16.msra.mxu1 %v1580_v42  ;;  %v1478_v42 = vmul.f32 %v2626_v39, %v1457_v36  ;;  %v1814_v36 = vld [vmem:[#allocation14 + $0x78] sm:$0xff] }
 0x3ce   :  { %1695 = vmatprep.subr.bf16.mxu1 %v1579_v43  ;;  %1735 = vmatpush1.bf16.msra.mxu0 %v1612_v38  ;;  %v1537_v43 = vld [vmem:[#allocation13 + $0x158] sm:$0xff] }
 0x3cf   :  { %1736 = vmatprep.subr.bf16.mxu0 %v1611_v58  ;;  %v1482_v52 = vmul.f32 %v1478_v42, %v3240_v6  ;;  %v1627_v7 = vunpack.c.l.s8.bf16 %v1537_v43  ;;  %v1535_v6 = vld [vmem:[#allocation13 + $0x148] sm:$0xff] }
 0x3d0   :  { %v1625_v8 = vunpack.c.h.s8.bf16 %v1535_v6 }
 0x3d1   :  { %1696 = vmatpush1.bf16.msra.mxu1 %v1578_v26  ;;  %v1630_v26 = vunpack.c.l.s8.bf16 %v1538_v35  ;;  %v1488_v38 = vadd.f32 %v1485_v53, %v1482_v52  ;;  %v1816_v35 = vunpack.c.l.s8.bf16 %v1800_v60 }
 0x3d2   :  { %1697 = vmatprep.subr.bf16.mxu1 %v1577_v49  ;;  %1737 = vmatpush1.bf16.msra.mxu0 %v1610_v4  ;;  %v1629_v49 = vunpack.c.h.s8.bf16 %v1537_v43  ;;  %v1623_v4 = vunpack.c.l.s8.bf16 %v1535_v6 }
 0x3d3   :  { %1738 = vmatprep.subr.bf16.mxu0 %v1609_v5  ;;  %v1640_v58 = vpack.c.bf16 %v1488_v38, %v1488_v38 }
 0x3d5   :  { %1698 = vmatpush1.bf16.msra.mxu1 %v1576_v55  ;;  %v1591_v55 = vunpack.c.l.s8.bf16 %v1519_v41  ;;  %v1844_v41 = vunpack.c.l.s8.bf16 %v1814_v36 }
 0x3d6   :  { %1699 = vmatprep.subr.bf16.mxu1 %v1575_v56  ;;  %1739 = vmatpush1.bf16.msra.mxu0 %v1608_v0  ;;  %v1628_v56 = vunpack.c.h.s8.bf16 %v1536_v50 }
 0x3d7   :  { %1740 = vmatprep.subr.bf16.mxu0 %v1607_v28  ;;  %v1805_v28 = vld [vmem:[#allocation14 + $0x30] sm:$0xff] }
 0x3d9   :  { %1700 = vmatpush1.bf16.msra.mxu1 %v1574_v59  ;;  %v1626_v59 = vunpack.c.l.s8.bf16 %v1536_v50  ;;  %v1809_v50 = vld [vmem:[#allocation14 + $0x50] sm:$0xff] }
 0x3da   :  { %1701 = vmatprep.subr.bf16.mxu1 %v1605_v62  ;;  %1741 = vmatpush1.bf16.msra.mxu0 %v1606_v18  ;;  %v1534_v62 = vld [vmem:[#allocation13 + $0x140] sm:$0xff]  ;;  %v1827_v18 = vunpack.c.l.s8.bf16 %v1805_v28  ;;  %v1837_v52 = vunpack.c.h.s8.bf16 %v1809_v50 }
 0x3db   :  { %1742 = vmatprep.subr.bf16.mxu0 %v1637_v61  ;;  %v1624_v63 = vunpack.c.h.s8.bf16 %v1534_v62  ;;  %v1622_v5 = vunpack.c.l.s8.bf16 %v1534_v62  ;;  %v1826_v61 = vunpack.c.h.s8.bf16 %v1804_v17 }
 0x3dd   :  { %1702 = vmatpush2.bf16.msra.mxu1 %v1604_v10 }
 0x3de   :  { %1703 = vmatprep.subr.bf16.mxu1 %v1603_v22  ;;  %1743 = vmatpush2.bf16.msra.mxu0 %v1636_v34  ;;  %v1802_v34 = vld [vmem:[#allocation14 + $0x18] sm:$0xff] }
 0x3df   :  { %1744 = vmatprep.subr.bf16.mxu0 %v1635_v24  ;;  %v1822_v24 = vunpack.c.h.s8.bf16 %v1802_v34 }
 0x3e1   :  { %1704 = vmatpush2.bf16.msra.mxu1 %v1602_v14  ;;  %v1829_v14 = vunpack.c.h.s8.bf16 %v1805_v28 }
 0x3e2   :  { %1705 = vmatprep.subr.bf16.mxu1 %v1601_v15  ;;  %1745 = vmatpush2.bf16.msra.mxu0 %v1634_v31  ;;  %v1828_v15 = vunpack.c.l.s8.bf16 %v1806_v11  ;;  %v1799_v31 = vld [vmem:[#allocation14] sm:$0xff] }
 0x3e3   :  { %1746 = vmatprep.subr.bf16.mxu0 %v1633_v33  ;;  %v1817_v33 = vunpack.c.h.s8.bf16 %v1799_v31  ;;  %v1815_v39 = vunpack.c.l.s8.bf16 %v1799_v31 }
 0x3e5   :  { %1706 = vmatpush2.bf16.msra.mxu1 %v1600_v20  ;;  %v1825_v20 = vunpack.c.h.s8.bf16 %v1803_v19 }
 0x3e6   :  { %1707 = vmatprep.subr.bf16.mxu1 %v1599_v21  ;;  %1747 = vmatpush2.bf16.msra.mxu0 %v1632_v16  ;;  %v1824_v21 = vunpack.c.l.s8.bf16 %v1804_v17  ;;  %v1808_v17 = vld [vmem:[#allocation14 + $0x48] sm:$0xff] }
 0x3e7   :  { %1748 = vmatprep.subr.bf16.mxu0 %v1631_v48  ;;  %v1812_v48 = vld [vmem:[#allocation14 + $0x68] sm:$0xff] }
 0x3e8   :  { %v1842_v43 = vunpack.c.h.s8.bf16 %v1812_v48 }
 0x3e9   :  { %1708 = vmatpush2.bf16.msra.mxu1 %v1598_v27  ;;  %v1820_v27 = vunpack.c.l.s8.bf16 %v1802_v34  ;;  %v1929_v34 = vld [vmem:[#allocation16 + $0x38] sm:$0xff] }
 0x3ea   :  { %1709 = vmatprep.subr.bf16.mxu1 %v1597_v29  ;;  %1749 = vmatpush2.bf16.msra.mxu0 %v1630_v26  ;;  %v1819_v29 = vunpack.c.l.s8.bf16 %v1801_v2 }
 0x3eb   :  { %1750 = vmatprep.subr.bf16.mxu0 %v1629_v49  ;;  %v1838_v49 = vunpack.c.h.s8.bf16 %v1810_v47 }
 0x3ed   :  { %1710 = vmatpush2.bf16.msra.mxu1 %v1596_v40  ;;  %v1846_v40 = vunpack.c.h.s8.bf16 %v1814_v36 }
 0x3ee   :  { %1711 = vmatprep.subr.bf16.mxu1 %v1595_v45  ;;  %1751 = vmatpush2.bf16.msra.mxu0 %v1628_v56  ;;  %v1813_v45 = vld [vmem:[#allocation14 + $0x70] sm:$0xff]  ;;  %v2548_v56 = vld [vmem:[#allocation5 + $0x18] ss:$0 sm:$0xff] }
 0x3ef   :  { %1752 = vmatprep.subr.bf16.mxu0 %v1627_v7  ;;  %v1845_v16 = vunpack.c.h.s8.bf16 %v1813_v45  ;;  %v1843_v42 = vunpack.c.l.s8.bf16 %v1813_v45 }
 0x3f1   :  { %1712 = vmatpush2.bf16.msra.mxu1 %v1594_v51  ;;  %v1811_v51 = vld [vmem:[#allocation14 + $0x60] sm:$0xff] }
 0x3f2   :  { %1713 = vmatprep.subr.bf16.mxu1 %v1593_v46  ;;  %1753 = vmatpush2.bf16.msra.mxu0 %v1626_v59  ;;  %v1841_v44 = vunpack.c.h.s8.bf16 %v1811_v51  ;;  %v1840_v46 = vunpack.c.l.s8.bf16 %v1812_v48  ;;  %v1839_v26 = vunpack.c.l.s8.bf16 %v1811_v51  ;;  %v2549_v59 = vld [vmem:[#allocation5 + $0x19] ss:$0 sm:$0xff] }
 0x3f3   :  { %1754 = vmatprep.subr.bf16.mxu0 %v1625_v8  ;;  %v220_v8 = vld [vmem:[#allocation2 + $0x48] sm:$0xff] }
 0x3f5   :  { %1714 = vmatpush2.bf16.msra.mxu1 %v1592_v54 }
 0x3f6   :  { %1715 = vmatprep.subr.bf16.mxu1 %v1591_v55  ;;  %1755 = vmatpush2.bf16.msra.mxu0 %v1624_v63 }
 0x3f7   :  { %1756 = vmatprep.subr.bf16.mxu0 %v1623_v4 }
 0x3f9   :  { %1716 = vmatpush2.bf16.msra.mxu1 %v1590_v57 }
 0x3fa   :  { %1757 = vmatpush2.bf16.msra.mxu0 %v1622_v5  ;;  %1849 = vmatprep.subr.bf16.mxu1 %v1830_v13  ;;  %v1642_v5 = vpack.c.bf16 %v220_v8, %v220_v8 }
 0x3fc   :  { %1718 = vmatmul.mubr.bf16.vlgmr.msra.gmra.mxu1 %v1640_v58 }
 0x3fd   :  { %1850 = vmatpush1.bf16.msra.mxu1 %v1829_v14  ;;  %v1836_v14 = vunpack.c.l.s8.bf16 %v1810_v47 }
 0x3fe   :  { %1851 = vmatprep.subr.bf16.mxu1 %v1828_v15  ;;  %v1835_v15 = vunpack.c.l.s8.bf16 %v1809_v50 }
 0x401   :  { %1852 = vmatpush1.bf16.msra.mxu1 %v1827_v18  ;;  %v1834_v18 = vunpack.c.h.s8.bf16 %v1808_v17 }
 0x402   :  { %1853 = vmatprep.subr.bf16.mxu1 %v1826_v61  ;;  %v1807_v61 = vld [vmem:[#allocation14 + $0x40] sm:$0xff] }
 0x403   :  { %v1833_v19 = vunpack.c.h.s8.bf16 %v1807_v61 }
 0x405   :  { %1854 = vmatpush1.bf16.msra.mxu1 %v1825_v20  ;;  %v1832_v20 = vunpack.c.l.s8.bf16 %v1808_v17 }
 0x406   :  { %1855 = vmatprep.subr.bf16.mxu1 %v1824_v21  ;;  %v1831_v21 = vunpack.c.l.s8.bf16 %v1807_v61 }
 0x409   :  { %1856 = vmatpush1.bf16.msra.mxu1 %v1823_v23  ;;  %v1928_v23 = vld [vmem:[#allocation16 + $0x30] sm:$0xff] }
 0x40a   :  { %1857 = vmatprep.subr.bf16.mxu1 %v1822_v24  ;;  %v1953_v24 = vunpack.c.h.s8.bf16 %v1929_v34  ;;  %v1952_v2 = vunpack.c.h.s8.bf16 %v1928_v23  ;;  %v1950_v60 = vunpack.c.l.s8.bf16 %v1928_v23 }
 0x40c   :  { %1972 = vmatprep.subr.bf16.mxu0 %v1953_v24  ;;  %v1931_v24 = vld [vmem:[#allocation16 + $0x48] sm:$0xff] }
 0x40d   :  { %1858 = vmatpush1.bf16.msra.mxu1 %v1821_v25  ;;  %v1951_v25 = vunpack.c.l.s8.bf16 %v1929_v34 }
 0x40e   :  { %1859 = vmatprep.subr.bf16.mxu1 %v1820_v27  ;;  %v1927_v27 = vld [vmem:[#allocation16 + $0x28] sm:$0xff] }
 0x411   :  { %1860 = vmatpush1.bf16.msra.mxu1 %v1819_v29  ;;  %v1949_v29 = vunpack.c.h.s8.bf16 %v1927_v27 }
 0x412   :  { %1861 = vmatprep.subr.bf16.mxu1 %v1818_v12  ;;  %v1926_v12 = vld [vmem:[#allocation16 + $0x20] sm:$0xff] }
 0x413   :  { %v1948_v31 = vunpack.c.h.s8.bf16 %v1926_v12  ;;  %v1946_v36 = vunpack.c.l.s8.bf16 %v1926_v12  ;;  %v2052_v12 = vld [vmem:[#allocation17 + $0x38] sm:$0xff] }
 0x415   :  { %1862 = vmatpush1.bf16.msra.mxu1 %v1817_v33  ;;  %v1947_v33 = vunpack.c.l.s8.bf16 %v1927_v27 }
 0x416   :  { %1863 = vmatprep.subr.bf16.mxu1 %v1816_v35  ;;  %v1925_v35 = vld [vmem:[#allocation16 + $0x18] sm:$0xff] }
 0x419   :  { %1864 = vmatpush1.bf16.msra.mxu1 %v1815_v39  ;;  %v1945_v39 = vunpack.c.h.s8.bf16 %v1925_v35 }
 0x41a   :  { %1865 = vmatprep.subr.bf16.mxu1 %v1846_v40  ;;  %v1924_v40 = vld [vmem:[#allocation16 + $0x10] sm:$0xff] }
 0x41b   :  { %v1944_v45 = vunpack.c.h.s8.bf16 %v1924_v40  ;;  %v1942_v48 = vunpack.c.l.s8.bf16 %v1924_v40 }
 0x41d   :  { %1866 = vmatpush2.bf16.msra.mxu1 %v1845_v16  ;;  %v1943_v16 = vunpack.c.l.s8.bf16 %v1925_v35 }
 0x41e   :  { %1867 = vmatprep.subr.bf16.mxu1 %v1844_v41  ;;  %v1923_v41 = vld [vmem:[#allocation16 + $0x8] sm:$0xff] }
 0x421   :  { %1868 = vmatpush2.bf16.msra.mxu1 %v1843_v42  ;;  %v1941_v42 = vunpack.c.h.s8.bf16 %v1923_v41 }
 0x422   :  { %1869 = vmatprep.subr.bf16.mxu1 %v1842_v43  ;;  %v1922_v43 = vld [vmem:[#allocation16] sm:$0xff] }
 0x423   :  { %v1940_v51 = vunpack.c.h.s8.bf16 %v1922_v43  ;;  %v1938_v47 = vunpack.c.l.s8.bf16 %v1922_v43 }
 0x425   :  { %1870 = vmatpush2.bf16.msra.mxu1 %v1841_v44  ;;  %v1939_v44 = vunpack.c.l.s8.bf16 %v1923_v41 }
 0x426   :  { %1871 = vmatprep.subr.bf16.mxu1 %v1840_v46  ;;  %v1937_v46 = vld [vmem:[#allocation16 + $0x78] sm:$0xff] }
 0x429   :  { %1872 = vmatpush2.bf16.msra.mxu1 %v1839_v26  ;;  %v1969_v26 = vunpack.c.h.s8.bf16 %v1937_v46 }
 0x42a   :  { %1873 = vmatprep.subr.bf16.mxu1 %v1838_v49  ;;  %v1936_v49 = vld [vmem:[#allocation16 + $0x70] sm:$0xff] }
 0x42b   :  { %v1968_v50 = vunpack.c.h.s8.bf16 %v1936_v49 }
 0x42d   :  { %1874 = vmatpush2.bf16.msra.mxu1 %v1837_v52  ;;  %v1967_v52 = vunpack.c.l.s8.bf16 %v1937_v46 }
 0x42e   :  { %1875 = vmatprep.subr.bf16.mxu1 %v1836_v14 }
 0x431   :  { %1876 = vmatpush2.bf16.msra.mxu1 %v1835_v15 }
 0x432   :  { %1877 = vmatprep.subr.bf16.mxu1 %v1834_v18 }
 0x435   :  { %1878 = vmatpush2.bf16.msra.mxu1 %v1833_v19 }
 0x436   :  { %1879 = vmatprep.subr.bf16.mxu1 %v1832_v20 }
 0x439   :  { %1880 = vmatpush2.bf16.msra.mxu1 %v1831_v21 }
 0x43c   :  { %v2568_v9 = vpop.f32.mrf.mxu0 }
 0x43e   :  { %v2569_v37 = vpop.f32.mrf.mxu0 }
 0x43f   :  { %v3259_v10 = vadd.f32 %v2569_v37, %v2568_v9 }
 0x440   :  { %v2571_v22 = vpop.f32.mrf.mxu0 }
 0x442   :  { %v2572_v0 = vpop.f32.mrf.mxu0 }
 0x47c   :  { %v2590_v53 = vpop.f32.mrf.mxu1  ;;  %v1678_v58 = vpop.f32.mrf.mxu0 }
 0x47e   :  { %v2591_v54 = vpop.f32.mrf.mxu1  ;;  %v1680_v62 = vpop.f32.mrf.mxu0 }
 0x47f   :  { %v2592_v55 = vadd.f32 %v2591_v54, %v2590_v53  ;;  %v1935_v53 = vld [vmem:[#allocation16 + $0x68] sm:$0xff]  ;;  %v1966_v54 = vunpack.c.l.s8.bf16 %v1936_v49 }
 0x480   :  { %v2593_v38 = vpop.f32.mrf.mxu1  ;;  %v1682_v4 = vpop.f32.mrf.mxu0 }
 0x481   :  { %v1397_v57 = vadd.f32 %v2592_v55, %v3259_v10  ;;  %v1965_v55 = vunpack.c.h.s8.bf16 %v1935_v53 }
 0x482   :  { %v2594_v7 = vpop.f32.mrf.mxu1  ;;  %v1683_v37 = vpop.f32.mrf.mxu0 }
 0x483   :  { %v1406_v6 = vmul.f32 %v2548_v56, %v1397_v57  ;;  %v1934_v56 = vld [vmem:[#allocation16 + $0x60] sm:$0xff]  ;;  %v1963_v57 = vunpack.c.l.s8.bf16 %v1935_v53 }
 0x484   :  { %v1964_v38 = vunpack.c.h.s8.bf16 %v1934_v56  ;;  %v1962_v7 = vunpack.c.l.s8.bf16 %v1934_v56 }
 0x485   :  { %v1411_v63 = vadd.f32 %v2549_v59, %v1406_v6  ;;  %v1932_v6 = vld [vmem:[#allocation16 + $0x50] sm:$0xff] }
 0x486   :  { %v1960_v8 = vunpack.c.h.s8.bf16 %v1932_v6  ;;  %v1958_v23 = vunpack.c.l.s8.bf16 %v1932_v6 }
 0x487   :  { %v1643_v9 = vpack.c.bf16 %v1411_v63, %v1411_v63  ;;  %v1493_v63 = vld [vmem:[#allocation5 + $0x1b] ss:$2 sm:$0x3] }
 0x488   :  { %v1784_v37 = vrot.slane %v1493_v63, %v3085_v30  ;;  %v1788_v14 = vrot.slane %v1493_v63, %v3089_v32 }
 0x489   :  { %1758 = vmatprep.mubr.bf16.mxu0 %v1643_v9 }
 0x48a   :  { %1759 = vmatmul.mubr.bf16.vlgmr.msra.gmra.mxu0 %v1642_v5 }
 0x48b   :  { %1973 = vmatpush1.bf16.msra.mxu0 %v1952_v2  ;;  %v1957_v2 = vunpack.c.h.s8.bf16 %v1931_v24 }
 0x48c   :  { %1974 = vmatprep.subr.bf16.mxu0 %v1951_v25  ;;  %v1930_v25 = vld [vmem:[#allocation16 + $0x40] sm:$0xff] }
 0x48d   :  { %v1956_v27 = vunpack.c.h.s8.bf16 %v1930_v25 }
 0x48f   :  { %1975 = vmatpush1.bf16.msra.mxu0 %v1950_v60  ;;  %v1955_v60 = vunpack.c.l.s8.bf16 %v1931_v24 }
 0x490   :  { %1976 = vmatprep.subr.bf16.mxu0 %v1949_v29  ;;  %v1954_v29 = vunpack.c.l.s8.bf16 %v1930_v25 }
 0x493   :  { %1977 = vmatpush1.bf16.msra.mxu0 %v1948_v31  ;;  %v2051_v31 = vld [vmem:[#allocation17 + $0x30] sm:$0xff] }
 0x494   :  { %1978 = vmatprep.subr.bf16.mxu0 %v1947_v33  ;;  %v2076_v33 = vunpack.c.h.s8.bf16 %v2052_v12  ;;  %v2075_v35 = vunpack.c.h.s8.bf16 %v2051_v31  ;;  %v2073_v40 = vunpack.c.l.s8.bf16 %v2051_v31 }
 0x496   :  { %2095 = vmatprep.subr.bf16.mxu1 %v2076_v33  ;;  %v2054_v33 = vld [vmem:[#allocation17 + $0x48] sm:$0xff] }
 0x497   :  { %1979 = vmatpush1.bf16.msra.mxu0 %v1946_v36  ;;  %v2074_v36 = vunpack.c.l.s8.bf16 %v2052_v12 }
 0x498   :  { %1980 = vmatprep.subr.bf16.mxu0 %v1945_v39  ;;  %v2050_v39 = vld [vmem:[#allocation17 + $0x28] sm:$0xff] }
 0x49b   :  { %1981 = vmatpush1.bf16.msra.mxu0 %v1944_v45  ;;  %v2072_v45 = vunpack.c.h.s8.bf16 %v2050_v39 }
 0x49c   :  { %1982 = vmatprep.subr.bf16.mxu0 %v1943_v16  ;;  %v2049_v16 = vld [vmem:[#allocation17 + $0x20] sm:$0xff] }
 0x49d   :  { %v2071_v41 = vunpack.c.h.s8.bf16 %v2049_v16  ;;  %v2069_v43 = vunpack.c.l.s8.bf16 %v2049_v16  ;;  %v2175_v16 = vld [vmem:[#allocation19 + $0x38] sm:$0xff] }
 0x49f   :  { %1983 = vmatpush1.bf16.msra.mxu0 %v1942_v48  ;;  %v2070_v48 = vunpack.c.l.s8.bf16 %v2050_v39 }
 0x4a0   :  { %1984 = vmatprep.subr.bf16.mxu0 %v1941_v42  ;;  %v2048_v42 = vld [vmem:[#allocation17 + $0x18] sm:$0xff] }
 0x4a3   :  { %1985 = vmatpush1.bf16.msra.mxu0 %v1940_v51  ;;  %v2068_v51 = vunpack.c.h.s8.bf16 %v2048_v42 }
 0x4a4   :  { %1986 = vmatprep.subr.bf16.mxu0 %v1939_v44  ;;  %v2047_v44 = vld [vmem:[#allocation17 + $0x10] sm:$0xff] }
 0x4a5   :  { %v2067_v46 = vunpack.c.h.s8.bf16 %v2047_v44  ;;  %v2065_v49 = vunpack.c.l.s8.bf16 %v2047_v44 }
 0x4a7   :  { %1987 = vmatpush1.bf16.msra.mxu0 %v1938_v47  ;;  %v2066_v47 = vunpack.c.l.s8.bf16 %v2048_v42 }
 0x4a8   :  { %1988 = vmatprep.subr.bf16.mxu0 %v1969_v26  ;;  %v2046_v26 = vld [vmem:[#allocation17 + $0x8] sm:$0xff] }
 0x4ab   :  { %1989 = vmatpush2.bf16.msra.mxu0 %v1968_v50  ;;  %v2064_v50 = vunpack.c.h.s8.bf16 %v2046_v26 }
 0x4ac   :  { %1990 = vmatprep.subr.bf16.mxu0 %v1967_v52  ;;  %v2045_v52 = vld [vmem:[#allocation17] sm:$0xff] }
 0x4ad   :  { %v2063_v53 = vunpack.c.h.s8.bf16 %v2045_v52  ;;  %v2061_v56 = vunpack.c.l.s8.bf16 %v2045_v52 }
 0x4af   :  { %1991 = vmatpush2.bf16.msra.mxu0 %v1966_v54  ;;  %v2062_v54 = vunpack.c.l.s8.bf16 %v2046_v26 }
 0x4b0   :  { %1992 = vmatprep.subr.bf16.mxu0 %v1965_v55  ;;  %v2060_v55 = vld [vmem:[#allocation17 + $0x78] sm:$0xff] }
 0x4b3   :  { %1993 = vmatpush2.bf16.msra.mxu0 %v1964_v38  ;;  %v2092_v38 = vunpack.c.h.s8.bf16 %v2060_v55 }
 0x4b4   :  { %1994 = vmatprep.subr.bf16.mxu0 %v1963_v57  ;;  %v2059_v57 = vld [vmem:[#allocation17 + $0x70] sm:$0xff] }
 0x4b5   :  { %v2089_v6 = vunpack.c.l.s8.bf16 %v2059_v57 }
 0x4b7   :  { %1995 = vmatpush2.bf16.msra.mxu0 %v1962_v7  ;;  %v2090_v7 = vunpack.c.l.s8.bf16 %v2060_v55 }
 0x4bc   :  { %v1719_v22 = vpop.f32.mrf.mxu1 }
 0x4bd   :  { %v3262_v0 = vadd.f32 %v1719_v22, %v1678_v58  ;;  %v1933_v58 = vld [vmem:[#allocation16 + $0x58] sm:$0xff] }
 0x4be   :  { %v1721_v11 = vpop.f32.mrf.mxu1  ;;  %v1961_v59 = vunpack.c.h.s8.bf16 %v1933_v58 }
 0x4bf   :  { %v3264_v28 = vadd.f32 %v1721_v11, %v1680_v62  ;;  %v1491_v62 = vld [vmem:[#allocation5 + $0x1a] ss:$2 sm:$0x3] }
 0x4c0   :  { %v1723_v10 = vpop.f32.mrf.mxu1  ;;  %1996 = vmatprep.subr.bf16.mxu0 %v1961_v59  ;;  %v1771_v4 = vrot.slane %v1491_v62, %v3085_v30  ;;  %v1775_v22 = vrot.slane %v1491_v62, %v3089_v32  ;;  %v2058_v59 = vld [vmem:[#allocation17 + $0x68] sm:$0xff]  ;;  %v2057_v62 = vld [vmem:[#allocation17 + $0x60] sm:$0xff] }
 0x4c1   :  { %1997 = vmatpush2.bf16.msra.mxu0 %v1960_v8  ;;  %v2088_v8 = vunpack.c.h.s8.bf16 %v2058_v59  ;;  %v2087_v63 = vunpack.c.h.s8.bf16 %v2057_v62 }
 0x4c2   :  { %v1724_v13 = vpop.f32.mrf.mxu1 }
 0x54a   :  { %v1760_v5 = vpop.f32.mrf.mxu0 }
 0x54b   :  { %v1761_v9 = vadd.f32 %v1760_v5, %v3262_v0  ;;  %v2056_v5 = vld [vmem:[#allocation17 + $0x58] sm:$0xff] }
 0x54c   :  { %v1762_v11 = vpop.f32.mrf.mxu0  ;;  %v2082_v12 = vunpack.c.l.s8.bf16 %v2056_v5 }
 0x54d   :  { %v1778_v10 = vmul.f32 %v1771_v4, %v1761_v9  ;;  %v1763_v13 = vadd.f32 %v1762_v11, %v3264_v28  ;;  %v1959_v28 = vunpack.c.l.s8.bf16 %v1933_v58  ;;  %v2091_v58 = vunpack.c.h.s8.bf16 %v2059_v57 }
 0x54e   :  { %v1764_v15 = vpop.f32.mrf.mxu0  ;;  %v2086_v4 = vunpack.c.l.s8.bf16 %v2058_v59  ;;  %v2085_v9 = vunpack.c.l.s8.bf16 %v2057_v62 }
 0x54f   :  { %v1791_v17 = vadd.f32 %v1784_v37, %v1778_v10  ;;  %v1779_v18 = vmul.f32 %v1775_v22, %v1763_v13  ;;  %1998 = vmatprep.subr.bf16.mxu0 %v1959_v28  ;;  %v2084_v37 = vunpack.c.h.s8.bf16 %v2056_v5  ;;  %v2055_v22 = vld [vmem:[#allocation17 + $0x50] sm:$0xff]  ;;  %v1796_v10 = vld [vmem:[#allocation5 + $0x1e] ss:$2 sm:$0x3] }
 0x550   :  { %v1765_v61 = vpop.f32.mrf.mxu0  ;;  %1999 = vmatpush2.bf16.msra.mxu0 %v1958_v23  ;;  %v2083_v11 = vunpack.c.h.s8.bf16 %v2055_v22  ;;  %v1798_v13 = vld [vmem:[#allocation5 + $0x1f] ss:$2 sm:$0x3]  ;;  %v2081_v31 = vunpack.c.l.s8.bf16 %v2055_v22 }
 0x551   :  { %v1792_v19 = vadd.f32 %v1788_v14, %v1779_v18  ;;  %v3272_v20 = vmax.f32 %v1791_v17, 0.0  ;;  %2000 = vmatprep.subr.bf16.mxu0 %v1957_v2  ;;  %v1894_v14 = vrot.slane %v1796_v10, %v3085_v30  ;;  %v1907_v15 = vrot.slane %v1798_v13, %v3085_v30 }
 0x552   :  { %v1898_v17 = vrot.slane %v1796_v10, %v3089_v32  ;;  %v2180_v10 = vld [vmem:[#allocation19 + $0x60] sm:$0xff] }
 0x553   :  { %v3274_v21 = vmax.f32 %v1792_v19, 0.0  ;;  %v1847_v34 = vpack.c.bf16 %v3272_v20, %v3272_v20  ;;  %v1911_v19 = vrot.slane %v1798_v13, %v3089_v32  ;;  %v2210_v13 = vunpack.c.h.s8.bf16 %v2180_v10 }
 0x554   :  { %2001 = vmatpush2.bf16.msra.mxu0 %v1956_v27 }
 0x555   :  { %v1848_v0 = vpack.c.bf16 %v3274_v21, %v3274_v21  ;;  %2002 = vmatprep.subr.bf16.mxu0 %v1955_v60 }
 0x557   :  { %1881 = vmatprep.mubr.bf16.mxu1 %v1848_v0 }
 0x558   :  { %1882 = vmatmul.mubr.bf16.vlgmr.msra.gmra.mxu1 %v1847_v34  ;;  %2003 = vmatpush2.bf16.msra.mxu0 %v1954_v29 }
 0x559   :  { %2096 = vmatpush1.bf16.msra.mxu1 %v2075_v35  ;;  %v2080_v35 = vunpack.c.h.s8.bf16 %v2054_v33 }
 0x55a   :  { %2097 = vmatprep.subr.bf16.mxu1 %v2074_v36  ;;  %v2053_v36 = vld [vmem:[#allocation17 + $0x40] sm:$0xff] }
 0x55b   :  { %v2079_v39 = vunpack.c.h.s8.bf16 %v2053_v36 }
 0x55d   :  { %2098 = vmatpush1.bf16.msra.mxu1 %v2073_v40  ;;  %v2078_v40 = vunpack.c.l.s8.bf16 %v2054_v33 }
 0x55e   :  { %2099 = vmatprep.subr.bf16.mxu1 %v2072_v45  ;;  %v2077_v45 = vunpack.c.l.s8.bf16 %v2053_v36 }
 0x561   :  { %2100 = vmatpush1.bf16.msra.mxu1 %v2071_v41  ;;  %v2174_v41 = vld [vmem:[#allocation19 + $0x30] sm:$0xff] }
 0x562   :  { %2101 = vmatprep.subr.bf16.mxu1 %v2070_v48  ;;  %v2199_v48 = vunpack.c.h.s8.bf16 %v2175_v16  ;;  %v2198_v42 = vunpack.c.h.s8.bf16 %v2174_v41  ;;  %v2196_v44 = vunpack.c.l.s8.bf16 %v2174_v41 }
 0x564   :  { %2218 = vmatprep.subr.bf16.mxu0 %v2199_v48  ;;  %v2177_v48 = vld [vmem:[#allocation19 + $0x48] sm:$0xff] }
 0x565   :  { %2102 = vmatpush1.bf16.msra.mxu1 %v2069_v43  ;;  %v2197_v43 = vunpack.c.l.s8.bf16 %v2175_v16 }
 0x566   :  { %2103 = vmatprep.subr.bf16.mxu1 %v2068_v51  ;;  %v2173_v51 = vld [vmem:[#allocation19 + $0x28] sm:$0xff] }
 0x569   :  { %2104 = vmatpush1.bf16.msra.mxu1 %v2067_v46  ;;  %v2195_v46 = vunpack.c.h.s8.bf16 %v2173_v51 }
 0x56a   :  { %2105 = vmatprep.subr.bf16.mxu1 %v2066_v47  ;;  %v2172_v47 = vld [vmem:[#allocation19 + $0x20] sm:$0xff] }
 0x56b   :  { %v2194_v26 = vunpack.c.h.s8.bf16 %v2172_v47  ;;  %v2192_v52 = vunpack.c.l.s8.bf16 %v2172_v47  ;;  %v2303_v47 = vld [vmem:[#allocation20 + $0x60] sm:$0xff] }
 0x56d   :  { %2106 = vmatpush1.bf16.msra.mxu1 %v2065_v49  ;;  %v2193_v49 = vunpack.c.l.s8.bf16 %v2173_v51 }
 0x56e   :  { %2107 = vmatprep.subr.bf16.mxu1 %v2064_v50  ;;  %v2171_v50 = vld [vmem:[#allocation19 + $0x18] sm:$0xff] }
 0x571   :  { %2108 = vmatpush1.bf16.msra.mxu1 %v2063_v53  ;;  %v2191_v53 = vunpack.c.h.s8.bf16 %v2171_v50 }
 0x572   :  { %2109 = vmatprep.subr.bf16.mxu1 %v2062_v54  ;;  %v2170_v54 = vld [vmem:[#allocation19 + $0x10] sm:$0xff] }
 0x573   :  { %v2190_v55 = vunpack.c.h.s8.bf16 %v2170_v54  ;;  %v2188_v57 = vunpack.c.l.s8.bf16 %v2170_v54  ;;  %v2300_v54 = vld [vmem:[#allocation20 + $0x48] sm:$0xff] }
 0x575   :  { %2110 = vmatpush1.bf16.msra.mxu1 %v2061_v56  ;;  %v2189_v56 = vunpack.c.l.s8.bf16 %v2171_v50  ;;  %v2351_v50 = vunpack.c.h.s8.bf16 %v2303_v47 }
 0x576   :  { %2111 = vmatprep.subr.bf16.mxu1 %v2092_v38  ;;  %v2169_v38 = vld [vmem:[#allocation19 + $0x8] sm:$0xff] }
 0x579   :  { %2112 = vmatpush2.bf16.msra.mxu1 %v2091_v58  ;;  %v2187_v58 = vunpack.c.h.s8.bf16 %v2169_v38 }
 0x57a   :  { %2113 = vmatprep.subr.bf16.mxu1 %v2090_v7  ;;  %v2168_v7 = vld [vmem:[#allocation19] sm:$0xff] }
 0x57b   :  { %v2186_v59 = vunpack.c.h.s8.bf16 %v2168_v7  ;;  %v2184_v62 = vunpack.c.l.s8.bf16 %v2168_v7  ;;  %v2296_v7 = vld [vmem:[#allocation20 + $0x28] sm:$0xff] }
 0x57d   :  { %2114 = vmatpush2.bf16.msra.mxu1 %v2089_v6  ;;  %v2185_v6 = vunpack.c.l.s8.bf16 %v2169_v38 }
 0x57e   :  { %2115 = vmatprep.subr.bf16.mxu1 %v2088_v8  ;;  %v2183_v8 = vld [vmem:[#allocation19 + $0x78] sm:$0xff] }
 0x581   :  { %2116 = vmatpush2.bf16.msra.mxu1 %v2087_v63  ;;  %v2215_v63 = vunpack.c.h.s8.bf16 %v2183_v8 }
 0x582   :  { %2117 = vmatprep.subr.bf16.mxu1 %v2086_v4  ;;  %v2182_v4 = vld [vmem:[#allocation19 + $0x70] sm:$0xff] }
 0x583   :  { %v2214_v5 = vunpack.c.h.s8.bf16 %v2182_v4  ;;  %v2212_v22 = vunpack.c.l.s8.bf16 %v2182_v4  ;;  %v2292_v4 = vld [vmem:[#allocation20 + $0x8] sm:$0xff] }
 0x585   :  { %2118 = vmatpush2.bf16.msra.mxu1 %v2085_v9  ;;  %v2213_v9 = vunpack.c.l.s8.bf16 %v2183_v8 }
 0x586   :  { %2119 = vmatprep.subr.bf16.mxu1 %v2084_v37  ;;  %v2181_v37 = vld [vmem:[#allocation19 + $0x68] sm:$0xff] }
 0x589   :  { %2120 = vmatpush2.bf16.msra.mxu1 %v2083_v11  ;;  %v2211_v11 = vunpack.c.h.s8.bf16 %v2181_v37 }
 0x58a   :  { %2121 = vmatprep.subr.bf16.mxu1 %v2082_v12 }
 0x58d   :  { %2122 = vmatpush2.bf16.msra.mxu1 %v2081_v31 }
 0x58e   :  { %2123 = vmatprep.subr.bf16.mxu1 %v2080_v35 }
 0x591   :  { %2124 = vmatpush2.bf16.msra.mxu1 %v2079_v39 }
 0x592   :  { %2125 = vmatprep.subr.bf16.mxu1 %v2078_v40 }
 0x595   :  { %2126 = vmatpush2.bf16.msra.mxu1 %v2077_v45 }
 0x618   :  { %v1883_v18 = vpop.f32.mrf.mxu1 }
 0x619   :  { %v1901_v61 = vmul.f32 %v1894_v14, %v1883_v18  ;;  %v2209_v14 = vunpack.c.l.s8.bf16 %v2181_v37 }
 0x61a   :  { %v1885_v0 = vpop.f32.mrf.mxu1 }
 0x61b   :  { %v1914_v34 = vadd.f32 %v1907_v15, %v1901_v61  ;;  %v1902_v28 = vmul.f32 %v1898_v17, %v1885_v0  ;;  %v2179_v15 = vld [vmem:[#allocation19 + $0x58] sm:$0xff]  ;;  %v2208_v17 = vunpack.c.l.s8.bf16 %v2180_v10  ;;  %v2178_v61 = vld [vmem:[#allocation19 + $0x50] sm:$0xff]  ;;  %v1919_v0 = vld [vmem:[#allocation5 + $0x22] ss:$2 sm:$0x3] }
 0x61c   :  { %v1887_v23 = vpop.f32.mrf.mxu1  ;;  %v2207_v18 = vunpack.c.h.s8.bf16 %v2179_v15  ;;  %v2205_v16 = vunpack.c.l.s8.bf16 %v2179_v15  ;;  %v2204_v41 = vunpack.c.l.s8.bf16 %v2178_v61  ;;  %v2320_v10 = vld [vmem:[#allocation20 + $0xe8] sm:$0xff] }
 0x61d   :  { %v1915_v24 = vadd.f32 %v1911_v19, %v1902_v28  ;;  %v1916_v2 = vmax.f32 %v1914_v34, 0.0  ;;  %v2206_v19 = vunpack.c.h.s8.bf16 %v2178_v61  ;;  %v1921_v34 = vld [vmem:[#allocation5 + $0x23] ss:$2 sm:$0x3]  ;;  %v2017_v28 = vrot.slane %v1919_v0, %v3085_v30 }
 0x61e   :  { %v1888_v25 = vpop.f32.mrf.mxu1  ;;  %v2030_v23 = vrot.slane %v1921_v34, %v3085_v30  ;;  %v2316_v61 = vld [vmem:[#allocation20 + $0xc8] sm:$0xff] }
 0x61f   :  { %v1917_v27 = vmax.f32 %v1915_v24, 0.0  ;;  %v1970_v29 = vpack.c.bf16 %v1916_v2, %v1916_v2  ;;  %v2021_v24 = vrot.slane %v1919_v0, %v3089_v32  ;;  %v2315_v0 = vld [vmem:[#allocation20 + $0xc0] sm:$0xff] }
 0x621   :  { %v1971_v60 = vpack.c.bf16 %v1917_v27, %v1917_v27  ;;  %v2034_v27 = vrot.slane %v1921_v34, %v3089_v32  ;;  %v2375_v34 = vunpack.c.h.s8.bf16 %v2315_v0 }
 0x623   :  { %2004 = vmatprep.mubr.bf16.mxu0 %v1971_v60 }
 0x624   :  { %2005 = vmatmul.mubr.bf16.vlgmr.msra.gmra.mxu0 %v1970_v29 }
 0x625   :  { %2219 = vmatpush1.bf16.msra.mxu0 %v2198_v42  ;;  %v2203_v42 = vunpack.c.h.s8.bf16 %v2177_v48 }
 0x626   :  { %2220 = vmatprep.subr.bf16.mxu0 %v2197_v43 }
 0x629   :  { %2221 = vmatpush1.bf16.msra.mxu0 %v2196_v44  ;;  %v2304_v44 = vld [vmem:[#allocation20 + $0x68] sm:$0xff] }
 0x62a   :  { %2222 = vmatprep.subr.bf16.mxu0 %v2195_v46  ;;  %v3298_v46 = vld [vmem:[#allocation20 + $0x78] sm:$0xff] }
 0x62d   :  { %2223 = vmatpush1.bf16.msra.mxu0 %v2194_v26  ;;  %v2352_v26 = vunpack.c.h.s8.bf16 %v2304_v44 }
 0x62e   :  { %2224 = vmatprep.subr.bf16.mxu0 %v2193_v49  ;;  %v2354_v49 = vunpack.c.h.s8.bf16 %v3298_v46 }
 0x62f   :  { %2389 = vmatprep.subr.bf16.mxu1 %v2352_v26 }
 0x631   :  { %2225 = vmatpush1.bf16.msra.mxu0 %v2192_v52  ;;  %v2348_v52 = vunpack.c.l.s8.bf16 %v2304_v44 }
 0x632   :  { %2226 = vmatprep.subr.bf16.mxu0 %v2191_v53  ;;  %v2347_v53 = vunpack.c.l.s8.bf16 %v2303_v47 }
 0x635   :  { %2227 = vmatpush1.bf16.msra.mxu0 %v2190_v55  ;;  %v2344_v55 = vunpack.c.h.s8.bf16 %v2300_v54 }
 0x636   :  { %2228 = vmatprep.subr.bf16.mxu0 %v2189_v56  ;;  %v2299_v56 = vld [vmem:[#allocation20 + $0x40] sm:$0xff] }
 0x637   :  { %v2343_v38 = vunpack.c.h.s8.bf16 %v2299_v56 }
 0x639   :  { %2229 = vmatpush1.bf16.msra.mxu0 %v2188_v57  ;;  %v2340_v57 = vunpack.c.l.s8.bf16 %v2300_v54 }
 0x63a   :  { %2230 = vmatprep.subr.bf16.mxu0 %v2187_v58  ;;  %v2339_v58 = vunpack.c.l.s8.bf16 %v2299_v56 }
 0x63d   :  { %2231 = vmatpush1.bf16.msra.mxu0 %v2186_v59  ;;  %v2336_v59 = vunpack.c.h.s8.bf16 %v2296_v7 }
 0x63e   :  { %2232 = vmatprep.subr.bf16.mxu0 %v2185_v6  ;;  %v2295_v6 = vld [vmem:[#allocation20 + $0x20] sm:$0xff] }
 0x63f   :  { %v2335_v8 = vunpack.c.h.s8.bf16 %v2295_v6 }
 0x641   :  { %2233 = vmatpush1.bf16.msra.mxu0 %v2184_v62  ;;  %v2332_v62 = vunpack.c.l.s8.bf16 %v2296_v7 }
 0x642   :  { %2234 = vmatprep.subr.bf16.mxu0 %v2215_v63  ;;  %v2331_v63 = vunpack.c.l.s8.bf16 %v2295_v6 }
 0x645   :  { %2235 = vmatpush2.bf16.msra.mxu0 %v2214_v5  ;;  %v2328_v5 = vunpack.c.h.s8.bf16 %v2292_v4 }
 0x646   :  { %2236 = vmatprep.subr.bf16.mxu0 %v2213_v9  ;;  %v2291_v9 = vld [vmem:[#allocation20] sm:$0xff] }
 0x647   :  { %v2327_v37 = vunpack.c.h.s8.bf16 %v2291_v9 }
 0x649   :  { %2237 = vmatpush2.bf16.msra.mxu0 %v2212_v22  ;;  %v2324_v22 = vunpack.c.l.s8.bf16 %v2292_v4  ;;  %v2293_v4 = vld [vmem:[#allocation20 + $0x10] sm:$0xff] }
 0x64a   :  { %2238 = vmatprep.subr.bf16.mxu0 %v2211_v11  ;;  %v2323_v11 = vunpack.c.l.s8.bf16 %v2291_v9 }
 0x64d   :  { %2239 = vmatpush2.bf16.msra.mxu0 %v2210_v13  ;;  %v2384_v13 = vunpack.c.h.s8.bf16 %v2320_v10 }
 0x64e   :  { %2240 = vmatprep.subr.bf16.mxu0 %v2209_v14  ;;  %v2319_v14 = vld [vmem:[#allocation20 + $0xe0] sm:$0xff] }
 0x64f   :  { %v2383_v15 = vunpack.c.h.s8.bf16 %v2319_v14 }
 0x651   :  { %2241 = vmatpush2.bf16.msra.mxu0 %v2208_v17  ;;  %v2380_v17 = vunpack.c.l.s8.bf16 %v2320_v10  ;;  %v2321_v10 = vld [vmem:[#allocation20 + $0xf0] sm:$0xff] }
 0x652   :  { %2242 = vmatprep.subr.bf16.mxu0 %v2207_v18  ;;  %v2379_v18 = vunpack.c.l.s8.bf16 %v2319_v14 }
 0x655   :  { %2243 = vmatpush2.bf16.msra.mxu0 %v2206_v19  ;;  %v2376_v19 = vunpack.c.h.s8.bf16 %v2316_v61 }
 0x656   :  { %2244 = vmatprep.subr.bf16.mxu0 %v2205_v16 }
 0x659   :  { %2245 = vmatpush2.bf16.msra.mxu0 %v2204_v41 }
 0x65a   :  { %2246 = vmatprep.subr.bf16.mxu0 %v2203_v42 }
 0x6e4   :  { %v2006_v2 = vpop.f32.mrf.mxu0 }
 0x6e5   :  { %v2024_v25 = vmul.f32 %v2017_v28, %v2006_v2  ;;  %v2372_v28 = vunpack.c.l.s8.bf16 %v2316_v61  ;;  %v2317_v61 = vld [vmem:[#allocation20 + $0xd0] sm:$0xff] }
 0x6e6   :  { %v2008_v60 = vpop.f32.mrf.mxu0 }
 0x6e7   :  { %v2037_v29 = vadd.f32 %v2030_v23, %v2024_v25  ;;  %v2025_v12 = vmul.f32 %v2021_v24, %v2008_v60  ;;  %v2371_v23 = vunpack.c.l.s8.bf16 %v2315_v0  ;;  %v3301_v24 = vld [vmem:[#allocation20 + $0xa8] sm:$0xff]  ;;  %v3304_v25 = vld [vmem:[#allocation20 + $0xa0] sm:$0xff]  ;;  %v2042_v60 = vld [vmem:[#allocation5 + $0x26] ss:$2 sm:$0x3] }
 0x6e8   :  { %v2010_v31 = vpop.f32.mrf.mxu0  ;;  %v2368_v2 = vunpack.c.h.s8.bf16 %v3301_v24 }
 0x6e9   :  { %v2038_v33 = vadd.f32 %v2034_v27, %v2025_v12  ;;  %v3289_v35 = vadd.f32 %v2037_v29, %v3272_v20  ;;  %v2176_v20 = vld [vmem:[#allocation19 + $0x40] sm:$0xff]  ;;  %v2367_v27 = vunpack.c.h.s8.bf16 %v3304_v25  ;;  %v2044_v29 = vld [vmem:[#allocation5 + $0x27] ss:$2 sm:$0x3]  ;;  %v2140_v12 = vrot.slane %v2042_v60, %v3085_v30 }
 0x6ea   :  { %v2011_v36 = vpop.f32.mrf.mxu0  ;;  %v2202_v43 = vunpack.c.h.s8.bf16 %v2176_v20  ;;  %v2200_v51 = vunpack.c.l.s8.bf16 %v2176_v20  ;;  %v2153_v31 = vrot.slane %v2044_v29, %v3085_v30 }
 0x6eb   :  { %v3292_v39 = vadd.f32 %v2038_v33, %v3274_v21  ;;  %v2093_v45 = vpack.c.bf16 %v3289_v35, %v3289_v35  ;;  %v2201_v21 = vunpack.c.l.s8.bf16 %v2177_v48  ;;  %v2144_v33 = vrot.slane %v2042_v60, %v3089_v32 }
 0x6ec   :  { %2247 = vmatpush2.bf16.msra.mxu0 %v2202_v43  ;;  %v2364_v60 = vunpack.c.l.s8.bf16 %v3301_v24 }
 0x6ed   :  { %v2094_v40 = vpack.c.bf16 %v3292_v39, %v3292_v39  ;;  %2248 = vmatprep.subr.bf16.mxu0 %v2201_v21 }
 0x6ef   :  { %2127 = vmatprep.mubr.bf16.mxu1 %v2094_v40 }
 0x6f0   :  { %2128 = vmatmul.mubr.bf16.vlgmr.msra.gmra.mxu1 %v2093_v45  ;;  %2249 = vmatpush2.bf16.msra.mxu0 %v2200_v51  ;;  %v2157_v45 = vrot.slane %v2044_v29, %v3089_v32  ;;  %v2305_v51 = vld [vmem:[#allocation20 + $0x70] sm:$0xff] }
 0x6f1   :  { %2430 = vmatprep.subr.bf16.mxu0 %v2354_v49  ;;  %2390 = vmatpush1.bf16.msra.mxu1 %v2351_v50  ;;  %v2353_v26 = vunpack.c.h.s8.bf16 %v2305_v51  ;;  %v2350_v50 = vunpack.c.l.s8.bf16 %v3298_v46 }
 0x6f2   :  { %2391 = vmatprep.subr.bf16.mxu1 %v2348_v52  ;;  %v2302_v52 = vld [vmem:[#allocation20 + $0x58] sm:$0xff] }
 0x6f3   :  { %v2346_v54 = vunpack.c.h.s8.bf16 %v2302_v52 }
 0x6f5   :  { %2392 = vmatpush1.bf16.msra.mxu1 %v2347_v53  ;;  %v2349_v53 = vunpack.c.l.s8.bf16 %v2305_v51  ;;  %v2167_v51 = vld [vmem:[#allocation5 + $0x2b] ss:$2 sm:$0x3] }
 0x6f6   :  { %2393 = vmatprep.subr.bf16.mxu1 %v2344_v55  ;;  %v2301_v55 = vld [vmem:[#allocation20 + $0x50] sm:$0xff] }
 0x6f7   :  { %v2345_v56 = vunpack.c.h.s8.bf16 %v2301_v55 }
 0x6f9   :  { %2394 = vmatpush1.bf16.msra.mxu1 %v2343_v38  ;;  %v2342_v38 = vunpack.c.l.s8.bf16 %v2302_v52  ;;  %v2280_v52 = vrot.slane %v2167_v51, %v3089_v32 }
 0x6fa   :  { %2395 = vmatprep.subr.bf16.mxu1 %v2340_v57  ;;  %v2298_v57 = vld [vmem:[#allocation20 + $0x38] sm:$0xff] }
 0x6fb   :  { %v2338_v7 = vunpack.c.h.s8.bf16 %v2298_v57  ;;  %v2334_v6 = vunpack.c.l.s8.bf16 %v2298_v57 }
 0x6fd   :  { %2396 = vmatpush1.bf16.msra.mxu1 %v2339_v58  ;;  %v2341_v58 = vunpack.c.l.s8.bf16 %v2301_v55 }
 0x6fe   :  { %2397 = vmatprep.subr.bf16.mxu1 %v2336_v59  ;;  %v2297_v59 = vld [vmem:[#allocation20 + $0x30] sm:$0xff] }
 0x6ff   :  { %v2337_v46 = vunpack.c.h.s8.bf16 %v2297_v59 }
 0x701   :  { %2398 = vmatpush1.bf16.msra.mxu1 %v2335_v8  ;;  %v2294_v8 = vld [vmem:[#allocation20 + $0x18] sm:$0xff] }
 0x702   :  { %2399 = vmatprep.subr.bf16.mxu1 %v2332_v62  ;;  %v2333_v62 = vunpack.c.l.s8.bf16 %v2297_v59  ;;  %v2326_v9 = vunpack.c.l.s8.bf16 %v2294_v8 }
 0x705   :  { %2400 = vmatpush1.bf16.msra.mxu1 %v2331_v63  ;;  %v2330_v63 = vunpack.c.h.s8.bf16 %v2294_v8  ;;  %v2290_v8 = vld [vmem:[#allocation5 + $0x2f] ss:$2 sm:$0xf] }
 0x706   :  { %2401 = vmatprep.subr.bf16.mxu1 %v2328_v5  ;;  %v2329_v5 = vunpack.c.h.s8.bf16 %v2293_v4 }
 0x709   :  { %2402 = vmatpush1.bf16.msra.mxu1 %v2327_v37  ;;  %v2322_v37 = vld [vmem:[#allocation20 + $0xf8] sm:$0xff] }
 0x70a   :  { %2403 = vmatprep.subr.bf16.mxu1 %v2324_v22  ;;  %v2325_v22 = vunpack.c.l.s8.bf16 %v2293_v4  ;;  %v2382_v14 = vunpack.c.l.s8.bf16 %v2322_v37  ;;  %v2500_v4 = vrot.slane %v2290_v8, %v3085_v30 }
 0x70d   :  { %2404 = vmatpush1.bf16.msra.mxu1 %v2323_v11  ;;  %v2386_v11 = vunpack.c.h.s8.bf16 %v2322_v37 }
 0x70e   :  { %2405 = vmatprep.subr.bf16.mxu1 %v2384_v13  ;;  %v2385_v13 = vunpack.c.h.s8.bf16 %v2321_v10 }
 0x711   :  { %2406 = vmatpush2.bf16.msra.mxu1 %v2383_v15  ;;  %v2318_v15 = vld [vmem:[#allocation20 + $0xd8] sm:$0xff] }
 0x712   :  { %2407 = vmatprep.subr.bf16.mxu1 %v2380_v17  ;;  %v2381_v17 = vunpack.c.l.s8.bf16 %v2321_v10  ;;  %v2374_v0 = vunpack.c.l.s8.bf16 %v2318_v15  ;;  %v2504_v10 = vrot.slane %v2290_v8, %v3089_v32 }
 0x715   :  { %2408 = vmatpush2.bf16.msra.mxu1 %v2379_v18  ;;  %v2378_v18 = vunpack.c.h.s8.bf16 %v2318_v15 }
 0x716   :  { %2409 = vmatprep.subr.bf16.mxu1 %v2376_v19  ;;  %v2377_v19 = vunpack.c.h.s8.bf16 %v2317_v61 }
 0x719   :  { %2410 = vmatpush2.bf16.msra.mxu1 %v2375_v34  ;;  %v2314_v34 = vld [vmem:[#allocation20 + $0xb8] sm:$0xff] }
 0x71a   :  { %2411 = vmatprep.subr.bf16.mxu1 %v2372_v28  ;;  %v2373_v28 = vunpack.c.l.s8.bf16 %v2317_v61  ;;  %v2366_v29 = vunpack.c.l.s8.bf16 %v2314_v34 }
 0x71d   :  { %2412 = vmatpush2.bf16.msra.mxu1 %v2371_v23  ;;  %v2370_v23 = vunpack.c.h.s8.bf16 %v2314_v34 }
 0x71e   :  { %2413 = vmatprep.subr.bf16.mxu1 %v2368_v2  ;;  %v2313_v2 = vld [vmem:[#allocation20 + $0xb0] sm:$0xff] }
 0x721   :  { %2414 = vmatpush2.bf16.msra.mxu1 %v2367_v27  ;;  %v2369_v27 = vunpack.c.h.s8.bf16 %v2313_v2 }
 0x722   :  { %2415 = vmatprep.subr.bf16.mxu1 %v2364_v60 }
 0x7b0   :  { %v2129_v36 = vpop.f32.mrf.mxu1 }
 0x7b1   :  { %v2147_v40 = vmul.f32 %v2140_v12, %v2129_v36  ;;  %v2363_v12 = vunpack.c.l.s8.bf16 %v3304_v25  ;;  %v2310_v36 = vld [vmem:[#allocation20 + $0x98] sm:$0xff] }
 0x7b2   :  { %v2131_v16 = vpop.f32.mrf.mxu1 }
 0x7b3   :  { %v2160_v41 = vadd.f32 %v2153_v31, %v2147_v40  ;;  %v2148_v48 = vmul.f32 %v2144_v33, %v2131_v16  ;;  %v2365_v31 = vunpack.c.l.s8.bf16 %v2313_v2  ;;  %2416 = vmatpush2.bf16.msra.mxu1 %v2363_v12  ;;  %v2308_v33 = vld [vmem:[#allocation20 + $0x88] sm:$0xff]  ;;  %v2307_v16 = vld [vmem:[#allocation20 + $0x80] sm:$0xff] }
 0x7b4   :  { %v2133_v42 = vpop.f32.mrf.mxu1  ;;  %v2360_v40 = vunpack.c.h.s8.bf16 %v2308_v33  ;;  %v2356_v24 = vunpack.c.l.s8.bf16 %v2308_v33  ;;  %v2355_v25 = vunpack.c.l.s8.bf16 %v2307_v16 }
 0x7b5   :  { %v2161_v20 = vadd.f32 %v2157_v45, %v2148_v48  ;;  %v2162_v43 = vmax.f32 %v2160_v41, 0.0  ;;  %v2362_v45 = vunpack.c.h.s8.bf16 %v2310_v36  ;;  %v2309_v41 = vld [vmem:[#allocation20 + $0x90] sm:$0xff]  ;;  %v2359_v48 = vunpack.c.h.s8.bf16 %v2307_v16 }
 0x7b6   :  { %v2134_v21 = vpop.f32.mrf.mxu1  ;;  %v2361_v42 = vunpack.c.h.s8.bf16 %v2309_v41  ;;  %2417 = vmatprep.subr.bf16.mxu1 %v2360_v40 }
 0x7b7   :  { %v2163_v44 = vmax.f32 %v2161_v20, 0.0  ;;  %v2216_v49 = vpack.c.bf16 %v2162_v43, %v2162_v43  ;;  %2418 = vmatpush2.bf16.msra.mxu1 %v2359_v48  ;;  %v2358_v20 = vunpack.c.l.s8.bf16 %v2310_v36  ;;  %v2357_v43 = vunpack.c.l.s8.bf16 %v2309_v41  ;;  %v2165_v21 = vld [vmem:[#allocation5 + $0x2a] ss:$2 sm:$0x3] }
 0x7b8   :  { %2419 = vmatprep.subr.bf16.mxu1 %v2356_v24 }
 0x7b9   :  { %v2217_v47 = vpack.c.bf16 %v2163_v44, %v2163_v44  ;;  %v2263_v44 = vrot.slane %v2165_v21, %v3085_v30 }
 0x7bb   :  { %2250 = vmatprep.mubr.bf16.mxu0 %v2217_v47  ;;  %2420 = vmatpush2.bf16.msra.mxu1 %v2355_v25  ;;  %v2276_v47 = vrot.slane %v2167_v51, %v3085_v30 }
 0x7bc   :  { %2251 = vmatmul.mubr.bf16.vlgmr.msra.gmra.mxu0 %v2216_v49 }
 0x7bd   :  { %2431 = vmatpush1.bf16.msra.mxu0 %v2353_v26  ;;  %v2267_v26 = vrot.slane %v2165_v21, %v3089_v32 }
 0x7be   :  { %2432 = vmatprep.subr.bf16.mxu0 %v2350_v50 }
 0x7c1   :  { %2433 = vmatpush1.bf16.msra.mxu0 %v2349_v53 }
 0x7c2   :  { %2434 = vmatprep.subr.bf16.mxu0 %v2346_v54 }
 0x7c5   :  { %2435 = vmatpush1.bf16.msra.mxu0 %v2345_v56 }
 0x7c6   :  { %2436 = vmatprep.subr.bf16.mxu0 %v2342_v38 }
 0x7c9   :  { %2437 = vmatpush1.bf16.msra.mxu0 %v2341_v58 }
 0x7ca   :  { %2438 = vmatprep.subr.bf16.mxu0 %v2338_v7 }
 0x7cd   :  { %2439 = vmatpush1.bf16.msra.mxu0 %v2337_v46 }
 0x7ce   :  { %2440 = vmatprep.subr.bf16.mxu0 %v2334_v6  ;;  %v2288_v6 = vld [vmem:[#allocation5 + $0x2e] ss:$2 sm:$0xf] }
 0x7d1   :  { %2441 = vmatpush1.bf16.msra.mxu0 %v2333_v62  ;;  %v2475_v62 = vrot.slane %v2288_v6, %v3085_v30 }
 0x7d2   :  { %2442 = vmatprep.subr.bf16.mxu0 %v2330_v63  ;;  %v2483_v63 = vrot.slane %v2288_v6, %v3113_v1 }
 0x7d5   :  { %2443 = vmatpush1.bf16.msra.mxu0 %v2329_v5  ;;  %v2508_v5 = vrot.slane %v2290_v8, %v3113_v1 }
 0x7d6   :  { %2444 = vmatprep.subr.bf16.mxu0 %v2326_v9 }
 0x7d9   :  { %2445 = vmatpush1.bf16.msra.mxu0 %v2325_v22 }
 0x7da   :  { %2446 = vmatprep.subr.bf16.mxu0 %v2386_v11 }
 0x7dd   :  { %2447 = vmatpush2.bf16.msra.mxu0 %v2385_v13  ;;  %v2512_v13 = vrot.slane %v2290_v8, %v3115_v3 }
 0x7de   :  { %2448 = vmatprep.subr.bf16.mxu0 %v2382_v14 }
 0x7e1   :  { %2449 = vmatpush2.bf16.msra.mxu0 %v2381_v17 }
 0x7e2   :  { %2450 = vmatprep.subr.bf16.mxu0 %v2378_v18 }
 0x7e5   :  { %2451 = vmatpush2.bf16.msra.mxu0 %v2377_v19 }
 0x7e6   :  { %2452 = vmatprep.subr.bf16.mxu0 %v2374_v0 }
 0x7e9   :  { %2453 = vmatpush2.bf16.msra.mxu0 %v2373_v28 }
 0x7ea   :  { %2454 = vmatprep.subr.bf16.mxu0 %v2370_v23 }
 0x7ed   :  { %2455 = vmatpush2.bf16.msra.mxu0 %v2369_v27 }
 0x7ee   :  { %2456 = vmatprep.subr.bf16.mxu0 %v2366_v29 }
 0x7f1   :  { %2457 = vmatpush2.bf16.msra.mxu0 %v2365_v31 }
 0x7f2   :  { %2458 = vmatprep.subr.bf16.mxu0 %v2362_v45 }
 0x7f5   :  { %2459 = vmatpush2.bf16.msra.mxu0 %v2361_v42 }
 0x7f6   :  { %2460 = vmatprep.subr.bf16.mxu0 %v2358_v20 }
 0x7f9   :  { %2461 = vmatpush2.bf16.msra.mxu0 %v2357_v43 }
 0x87c   :  { %v2252_v49 = vpop.f32.mrf.mxu0 }
 0x87d   :  { %v2270_v50 = vmul.f32 %v2263_v44, %v2252_v49 }
 0x87e   :  { %v2254_v53 = vpop.f32.mrf.mxu0 }
 0x87f   :  { %v2283_v54 = vadd.f32 %v2276_v47, %v2270_v50  ;;  %v2271_v55 = vmul.f32 %v2267_v26, %v2254_v53 }
 0x880   :  { %v2256_v56 = vpop.f32.mrf.mxu0 }
 0x881   :  { %v2284_v38 = vadd.f32 %v2280_v52, %v2271_v55  ;;  %v2285_v57 = vadd.f32 %v2283_v54, %v3289_v35  ;;  %v2479_v35 = vrot.slane %v2288_v6, %v3089_v32 }
 0x882   :  { %v2257_v58 = vpop.f32.mrf.mxu0 }
 0x883   :  { %v2286_v7 = vadd.f32 %v2284_v38, %v3292_v39  ;;  %v2387_v46 = vpack.c.bf16 %v2285_v57, %v2285_v57  ;;  %v2487_v39 = vrot.slane %v2288_v6, %v3115_v3 }
 0x885   :  { %v2388_v59 = vpack.c.bf16 %v2286_v7, %v2286_v7 }
 0x887   :  { %2421 = vmatprep.mubr.bf16.mxu1 %v2388_v59  ;;  %2462 = vmatprep.mubr.bf16.mxu0 %v2388_v59 }
 0x888   :  { %2422 = vmatmul.mubr.bf16.vlgmr.msra.gmra.mxu1 %v2387_v46  ;;  %2463 = vmatmul.mubr.bf16.vlgmr.msra.gmra.mxu0 %v2387_v46 }
 0x948   :  { %v2423_v9 = vpop.f32.mrf.mxu1  ;;  %v2464_v37 = vpop.f32.mrf.mxu0 }
 0x949   :  { %v2492_v22 = vmul.f32 %v2475_v62, %v2423_v9  ;;  %v2494_v11 = vmul.f32 %v2483_v63, %v2464_v37 }
 0x94a   :  { %v2425_v14 = vpop.f32.mrf.mxu1  ;;  %v2466_v15 = vpop.f32.mrf.mxu0 }
 0x94b   :  { %v2517_v17 = vadd.f32 %v2500_v4, %v2492_v22  ;;  %v2519_v30 = vadd.f32 %v2508_v5, %v2494_v11  ;;  %v2493_v18 = vmul.f32 %v2479_v35, %v2425_v14  ;;  %v2495_v1 = vmul.f32 %v2487_v39, %v2466_v15 }
 0x94c   :  { %v2427_v61 = vpop.f32.mrf.mxu1  ;;  %v2468_v19 = vpop.f32.mrf.mxu0 }
 0x94d   :  { %2521 = vst [vmem:[#allocation22] sm:$0xff] %v2517_v17  ;;  %2523 = vst [vmem:[#allocation22 + $0x10] sm:$0xff] %v2519_v30  ;;  %v2518_v0 = vadd.f32 %v2504_v10, %v2493_v18  ;;  %v2520_v34 = vadd.f32 %v2512_v13, %v2495_v1 }
 0x94e   :  { %v2428_v28 = vpop.f32.mrf.mxu1  ;;  %v2469_v23 = vpop.f32.mrf.mxu0 }
 0x94f   :  { %2522 = vst [vmem:[#allocation22 + $0x8] sm:$0xff] %v2518_v0  ;;  %2524 = vst [vmem:[#allocation22 + $0x18] sm:$0xff] %v2520_v34 }
 0x950   :  { %2878 = shalt.err (!%p2875_p8)
}
 0x951   :  { %2534 = dma.vmem_to_hbm [thread:$0]  %s2532_s20, 512, %s3346_s15, [#allocation4]  }
 0x952   :  { %2901 = dma.done.wait [#allocation4], 512  }
 0x953   :  { %2902 = vsyncadd [#allocation4], 4294966784 }
 0x954   :  { %2538 = vsyncpa [#allocation3], 1 }
 0x955   :  { %2539 = vsyncpa [#allocation6], 1 }
 0x956   :  { %2540 = vsyncpa [#allocation9], 1 }
 0x957   :  { %2541 = vsyncpa [#allocation12], 1 }
 0x958   :  { %2542 = vsyncpa [#allocation15], 1 }
 0x959   :  { %2543 = vsyncpa [#allocation18], 1 }
 0x95a   :  { %2544 = vsyncpa [#allocation21], 1 }
 0x95b   :  { %2545 = vsyncpa [#allocation4], 1 }

// kernel: tpu_custom_call.1
= control target key start
LH: loop header
LB: loop body
LE: loop exit
PB: predicated region body
PF: predicated region fallthrough
CT: control target
= control target key end

     0   :  { %20 = vsyncpa [#allocation3], 0  ;;  %s3331_s0 = inlined_call_operand.hbm [shape: f32[8,1280], index: 0, kind: input, shape index: {}]   ;;  %s3332_s1 = inlined_call_operand.vmem [shape: f32[8,1], index: 1, kind: input, shape index: {}]   ;;  %s3333_s2 = inlined_call_operand.vmem [shape: f32[8,1], index: 2, kind: input, shape index: {}]   ;;  %s3334_s3 = inlined_call_operand.vmem [shape: f32[1,1280], index: 3, kind: input, shape index: {}]   ;;  %s3335_s4 = inlined_call_operand.hbm [shape: f32[2,3456], index: 4, kind: input, shape index: {}]   ;;  %s3336_s5 = inlined_call_operand.hbm [shape: s8[128,512], index: 5, kind: input, shape index: {}]   ;;  %s3337_s6 = inlined_call_operand.hbm [shape: s8[512,512], index: 6, kind: input, shape index: {}]   ;;  %s3338_s7 = inlined_call_operand.hbm [shape: s8[512,512], index: 7, kind: input, shape index: {}]   ;;  %s3339_s8 = inlined_call_operand.hbm [shape: s8[512,128], index: 8, kind: input, shape index: {}]   ;;  %s3340_s9 = inlined_call_operand.hbm [shape: s8[768,256], index: 9, kind: input, shape index: {}]   ;;  %s3341_s10 = inlined_call_operand.hbm [shape: s8[256,256], index: 10, kind: input, shape index: {}]   ;;  %s3342_s11 = inlined_call_operand.hbm [shape: s8[256,256], index: 11, kind: input, shape index: {}]   ;;  %s3343_s12 = inlined_call_operand.hbm [shape: s8[256,256], index: 12, kind: input, shape index: {}]   ;;  %s3344_s13 = inlined_call_operand.hbm [shape: s8[256,256], index: 13, kind: input, shape index: {}]   ;;  %s3345_s14 = inlined_call_operand.hbm [shape: s8[256,512], index: 14, kind: input, shape index: {}]   ;;  %s3346_s15 = inlined_call_operand.hbm [shape: f32[8,512], index: 15, kind: output, shape index: {}]  }
   0x1   :  { %21 = vsyncpa [#allocation6], 0 }
   0x2   :  { %22 = vsyncpa [#allocation9], 0 }
   0x3   :  { %23 = vsyncpa [#allocation12], 0 }
   0x4   :  { %24 = vsyncpa [#allocation15], 0 }
   0x5   :  { %25 = vsyncpa [#allocation18], 0 }
   0x6   :  { %26 = vsyncpa [#allocation21], 0 }
   0x7   :  { %27 = vsyncpa [#allocation4], 0  ;;  %s2903_s18 = smov [#allocation5]  }
   0x8   :  { %s50_s19 = sshll.u32 %s2903_s18, 4  ;;  %s51_s19 = int_to_ptr.vmem [resolvable:$true] %s50_s19 }
   0x9   :  { %s2635_s20 = scalar_lea.vmem %s51_s19, 864  ;;  %p2640_p1 = scmp.lt.s32.totalorder %s51_s19, %s51_s19 }
   0xa   :  { %p2636_p0 = scmp.ne.s32.totalorder %s51_s19, %s2635_s20  ;;  %p2641_p2 = scmp.lt.s32.totalorder %s2635_s20, %s2635_s20 }
   0xc   :  { %p2642_p3 = por %p2641_p2, %p2640_p1 }
   0xe   :  { %p2643_p4 = pnand %p2642_p3, %p2636_p0 }
  0x10   :  { %2646 = shalt.err (!%p2643_p4)
}
  0x11   :  { %53 = dma.hbm_to_vmem [thread:$0]  %s3335_s4, 864, %s51_s19, [#allocation6]  }
  0x12   :  { %s2904_s23 = smov [#allocation8]   ;;  %s2905_s25 = smov [#allocation11]  }
  0x13   :  { %s71_s24 = sshll.u32 %s2904_s23, 4  ;;  %s95_s26 = sshll.u32 %s2905_s25, 4  ;;  %s72_s24 = int_to_ptr.vmem [resolvable:$true] %s71_s24  ;;  %s96_s26 = int_to_ptr.vmem [resolvable:$true] %s95_s26 }
  0x14   :  { %s2655_s27 = scalar_lea.vmem %s72_s24, 8192  ;;  %p2660_p6 = scmp.lt.s32.totalorder %s72_s24, %s72_s24 }
  0x15   :  { %p2656_p5 = scmp.ne.s32.totalorder %s72_s24, %s2655_s27  ;;  %p2661_p7 = scmp.lt.s32.totalorder %s2655_s27, %s2655_s27 }
  0x17   :  { %p2662_p8 = por %p2661_p7, %p2660_p6 }
  0x19   :  { %p2663_p9 = pnand %p2662_p8, %p2656_p5 }
  0x1b   :  { %2666 = shalt.err (!%p2663_p9)
}
  0x1c   :  { %s2906_s28 = smov 512   ;;  %s2907_s29 = smov 32  }
  0x1d   :  { %77 = dma.hbm_to_vmem [thread:$0]  %s3337_s6, 8192, %s72_s24, [#allocation9], %s2906_s28, %s2906_s28, %s2907_s29  }
  0x1e   :  { %s2675_s4 = scalar_lea.vmem %s96_s26, 2048  ;;  %p2680_p11 = scmp.lt.s32.totalorder %s96_s26, %s96_s26 }
  0x1f   :  { %p2676_p10 = scmp.ne.s32.totalorder %s96_s26, %s2675_s4  ;;  %p2681_p12 = scmp.lt.s32.totalorder %s2675_s4, %s2675_s4 }
  0x21   :  { %p2682_p13 = por %p2681_p12, %p2680_p11 }
  0x23   :  { %p2683_p0 = pnand %p2682_p13, %p2676_p10 }
  0x25   :  { %2686 = shalt.err (!%p2683_p0)
}
  0x26   :  { %s2908_s17 = smov 128   ;;  %s2909_s18 = smov 8  }
  0x27   :  { %101 = dma.hbm_to_vmem [thread:$0]  %s3339_s8, 2048, %s96_s26, [#allocation12], %s2908_s17, %s2908_s17, %s2909_s18  }
  0x28   :  { %s2910_s21 = smov [#allocation14]   ;;  %s2911_s23 = smov [#allocation17]  }
  0x29   :  { %s119_s22 = sshll.u32 %s2910_s21, 4  ;;  %s143_s25 = sshll.u32 %s2911_s23, 4  ;;  %s120_s22 = int_to_ptr.vmem [resolvable:$true] %s119_s22  ;;  %s144_s25 = int_to_ptr.vmem [resolvable:$true] %s143_s25 }
  0x2a   :  { %s2695_s6 = scalar_lea.vmem %s120_s22, 2048  ;;  %p2700_p2 = scmp.lt.s32.totalorder %s120_s22, %s120_s22 }
  0x2b   :  { %p2696_p1 = scmp.ne.s32.totalorder %s120_s22, %s2695_s6  ;;  %p2701_p3 = scmp.lt.s32.totalorder %s2695_s6, %s2695_s6 }
  0x2d   :  { %p2702_p4 = por %p2701_p3, %p2700_p2 }
  0x2f   :  { %p2703_p5 = pnand %p2702_p4, %p2696_p1 }
  0x31   :  { %2706 = shalt.err (!%p2703_p5)
}
  0x32   :  { %s2912_s24 = smov 256   ;;  %s2913_s27 = smov 16  }
  0x33   :  { %125 = dma.hbm_to_vmem [thread:$0]  %s3341_s10, 2048, %s120_s22, [#allocation15], %s2912_s24, %s2912_s24, %s2913_s27  }
  0x34   :  { %s2715_s8 = scalar_lea.vmem %s144_s25, 2048  ;;  %p2720_p7 = scmp.lt.s32.totalorder %s144_s25, %s144_s25 }
  0x35   :  { %p2716_p6 = scmp.ne.s32.totalorder %s144_s25, %s2715_s8  ;;  %p2721_p8 = scmp.lt.s32.totalorder %s2715_s8, %s2715_s8 }
  0x37   :  { %p2722_p9 = por %p2721_p8, %p2720_p7 }
  0x39   :  { %p2723_p10 = pnand %p2722_p9, %p2716_p6 }
  0x3b   :  { %2726 = shalt.err (!%p2723_p10)
}
  0x3c   :  { %149 = dma.hbm_to_vmem [thread:$0]  %s3343_s12, 2048, %s144_s25, [#allocation18], %s2912_s24, %s2912_s24, %s2913_s27  }
  0x3d   :  { %s2914_s17 = smov [#allocation2]   ;;  %s2915_s19 = smov [#allocation7]  }
  0x3e   :  { %s34_s18 = sshll.u32 %s2914_s17, 4  ;;  %s59_s10 = sshll.u32 %s2915_s19, 4  ;;  %s35_s18 = int_to_ptr.vmem [resolvable:$true] %s34_s18  ;;  %s60_s10 = int_to_ptr.vmem [resolvable:$true] %s59_s10 }
  0x3f   :  { %s2735_s20 = scalar_lea.vmem %s35_s18, 1280  ;;  %p2740_p12 = scmp.lt.s32.totalorder %s35_s18, %s35_s18 }
  0x40   :  { %p2736_p11 = scmp.ne.s32.totalorder %s35_s18, %s2735_s20  ;;  %p2741_p13 = scmp.lt.s32.totalorder %s2735_s20, %s2735_s20 }
  0x42   :  { %p2742_p0 = por %p2741_p13, %p2740_p12 }
  0x44   :  { %p2743_p1 = pnand %p2742_p0, %p2736_p11 }
  0x46   :  { %2746 = shalt.err (!%p2743_p1)
}
  0x47   :  { %37 = dma.hbm_to_vmem [thread:$0]  %s3331_s0, 1280, %s35_s18, [#allocation3]  }
  0x48   :  { %s2755_s23 = scalar_lea.vmem %s60_s10, 2048  ;;  %p2760_p3 = scmp.lt.s32.totalorder %s60_s10, %s60_s10 }
  0x49   :  { %p2756_p2 = scmp.ne.s32.totalorder %s60_s10, %s2755_s23  ;;  %p2761_p4 = scmp.lt.s32.totalorder %s2755_s23, %s2755_s23 }
  0x4b   :  { %p2762_p5 = por %p2761_p4, %p2760_p3 }
  0x4d   :  { %p2763_p6 = pnand %p2762_p5, %p2756_p2 }
  0x4f   :  { %2766 = shalt.err (!%p2763_p6)
}
  0x50   :  { %65 = dma.hbm_to_vmem [thread:$0]  %s3336_s5, 2048, %s60_s10, [#allocation6], %s2906_s28, %s2906_s28, %s2907_s29  }
  0x51   :  { %s2916_s6 = smov [#allocation10]   ;;  %s2917_s16 = smov [#allocation13]  }
  0x52   :  { %s83_s30 = sshll.u32 %s2916_s6, 4  ;;  %s107_s0 = sshll.u32 %s2917_s16, 4  ;;  %s84_s30 = int_to_ptr.vmem [resolvable:$true] %s83_s30  ;;  %s108_s0 = int_to_ptr.vmem [resolvable:$true] %s107_s0 }
  0x53   :  { %s2775_s8 = scalar_lea.vmem %s84_s30, 8192  ;;  %p2780_p8 = scmp.lt.s32.totalorder %s84_s30, %s84_s30 }
  0x54   :  { %p2776_p7 = scmp.ne.s32.totalorder %s84_s30, %s2775_s8  ;;  %p2781_p9 = scmp.lt.s32.totalorder %s2775_s8, %s2775_s8 }
  0x56   :  { %p2782_p10 = por %p2781_p9, %p2780_p8 }
  0x58   :  { %p2783_p11 = pnand %p2782_p10, %p2776_p7 }
  0x5a   :  { %2786 = shalt.err (!%p2783_p11)
}
  0x5b   :  { %89 = dma.hbm_to_vmem [thread:$0]  %s3338_s7, 8192, %s84_s30, [#allocation9], %s2906_s28, %s2906_s28, %s2907_s29  }
  0x5c   :  { %s2795_s5 = scalar_lea.vmem %s108_s0, 6144  ;;  %p2800_p13 = scmp.lt.s32.totalorder %s108_s0, %s108_s0 }
  0x5d   :  { %p2796_p12 = scmp.ne.s32.totalorder %s108_s0, %s2795_s5  ;;  %p2801_p0 = scmp.lt.s32.totalorder %s2795_s5, %s2795_s5 }
  0x5f   :  { %p2802_p1 = por %p2801_p0, %p2800_p13 }
  0x61   :  { %p2803_p2 = pnand %p2802_p1, %p2796_p12 }
  0x63   :  { %2806 = shalt.err (!%p2803_p2)
}
  0x64   :  { %113 = dma.hbm_to_vmem [thread:$0]  %s3340_s9, 6144, %s108_s0, [#allocation12], %s2912_s24, %s2912_s24, %s2913_s27  }
  0x65   :  { %s2918_s19 = smov [#allocation16]   ;;  %s2919_s20 = smov [#allocation19]  }
  0x66   :  { %s131_s10 = sshll.u32 %s2918_s19, 4  ;;  %s155_s7 = sshll.u32 %s2919_s20, 4  ;;  %s132_s10 = int_to_ptr.vmem [resolvable:$true] %s131_s10  ;;  %s156_s7 = int_to_ptr.vmem [resolvable:$true] %s155_s7 }
  0x67   :  { %s2815_s21 = scalar_lea.vmem %s132_s10, 2048  ;;  %p2820_p4 = scmp.lt.s32.totalorder %s132_s10, %s132_s10 }
  0x68   :  { %p2816_p3 = scmp.ne.s32.totalorder %s132_s10, %s2815_s21  ;;  %p2821_p5 = scmp.lt.s32.totalorder %s2815_s21, %s2815_s21 }
  0x6a   :  { %p2822_p6 = por %p2821_p5, %p2820_p4 }
  0x6c   :  { %p2823_p7 = pnand %p2822_p6, %p2816_p3 }
  0x6e   :  { %2826 = shalt.err (!%p2823_p7)
}
  0x6f   :  { %137 = dma.hbm_to_vmem [thread:$0]  %s3342_s11, 2048, %s132_s10, [#allocation15], %s2912_s24, %s2912_s24, %s2913_s27  }
  0x70   :  { %s2835_s9 = scalar_lea.vmem %s156_s7, 2048  ;;  %p2840_p9 = scmp.lt.s32.totalorder %s156_s7, %s156_s7 }
  0x71   :  { %p2836_p8 = scmp.ne.s32.totalorder %s156_s7, %s2835_s9  ;;  %p2841_p10 = scmp.lt.s32.totalorder %s2835_s9, %s2835_s9 }
  0x73   :  { %p2842_p11 = por %p2841_p10, %p2840_p9 }
  0x75   :  { %p2843_p12 = pnand %p2842_p11, %p2836_p8 }
  0x77   :  { %2846 = shalt.err (!%p2843_p12)
}
  0x78   :  { %161 = dma.hbm_to_vmem [thread:$0]  %s3344_s13, 2048, %s156_s7, [#allocation18], %s2912_s24, %s2912_s24, %s2913_s27  }
  0x79   :  { %s2920_s6 = smov [#allocation20]  }
  0x7a   :  { %s167_s30 = sshll.u32 %s2920_s6, 4  ;;  %s168_s30 = int_to_ptr.vmem [resolvable:$true] %s167_s30 }
  0x7b   :  { %s2855_s16 = scalar_lea.vmem %s168_s30, 4096  ;;  %p2860_p0 = scmp.lt.s32.totalorder %s168_s30, %s168_s30 }
  0x7c   :  { %p2856_p13 = scmp.ne.s32.totalorder %s168_s30, %s2855_s16  ;;  %p2861_p1 = scmp.lt.s32.totalorder %s2855_s16, %s2855_s16 }
  0x7e   :  { %p2862_p2 = por %p2861_p1, %p2860_p0 }
  0x80   :  { %p2863_p3 = pnand %p2862_p2, %p2856_p13 }
  0x82   :  { %2866 = shalt.err (!%p2863_p3)
}
  0x83   :  { %173 = dma.hbm_to_vmem [thread:$0]  %s3345_s14, 4096, %s168_s30, [#allocation21], %s2906_s28, %s2906_s28, %s2907_s29  }
  0x84   :  { %2887 = dma.done.wait [#allocation3], 1280  }
  0x85   :  { %2888 = vsyncadd [#allocation3], 4294966016 }
  0x86   :  { %2889 = dma.done.wait [#allocation6], 2912  }
  0x87   :  { %2890 = vsyncadd [#allocation6], 4294964384 }
  0x88   :  { %2891 = dma.done.wait [#allocation9], 16384  }
  0x89   :  { %2892 = vsyncadd [#allocation9], 4294950912 }
  0x8a   :  { %2893 = dma.done.wait [#allocation12], 8192  }
  0x8b   :  { %2894 = vsyncadd [#allocation12], 4294959104 }
  0x8c   :  { %2895 = dma.done.wait [#allocation15], 4096  }
  0x8d   :  { %2896 = vsyncadd [#allocation15], 4294963200 }
  0x8e   :  { %2897 = dma.done.wait [#allocation18], 4096  }
  0x8f   :  { %2898 = vsyncadd [#allocation18], 4294963200 }
  0x90   :  { %2899 = dma.done.wait [#allocation21], 4096  }
  0x91   :  { %2900 = vsyncadd [#allocation21], 4294963200  ;;  %v2921_v0 = vmov 0   ;;  %v260_v1 = vld [vmem:[#allocation7 + $0x68] sm:$0xff]  ;;  %v259_v2 = vld [vmem:[#allocation7 + $0x60] sm:$0xff] }
  0x92   :  { %328 = vmatprep.mubr.bf16.mxu1 %v2921_v0  ;;  %2616 = vset.pattern.permute.xlu0 %v2921_v0  ;;  %v288_v3 = vunpack.c.l.s8.bf16 %v260_v1  ;;  %v292_v4 = vunpack.c.h.s8.bf16 %v260_v1  ;;  %v291_v5 = vunpack.c.h.s8.bf16 %v259_v2  ;;  %v256_v6 = vld [vmem:[#allocation7 + $0x48] sm:$0xff]  ;;  %v287_v7 = vunpack.c.l.s8.bf16 %v259_v2  ;;  %v255_v9 = vld [vmem:[#allocation7 + $0x40] sm:$0xff]  ;;  %v262_v46 = vld [vmem:[#allocation7 + $0x78] sm:$0xff] }
  0x93   :  { %v284_v8 = vunpack.c.h.s8.bf16 %v256_v6  ;;  %v449_v10 = vld [vmem:[#allocation8 + $0x68] sm:$0xff]  ;;  %v448_v11 = vld [vmem:[#allocation8 + $0x60] sm:$0xff]  ;;  %v283_v12 = vunpack.c.h.s8.bf16 %v255_v9  ;;  %v280_v14 = vunpack.c.l.s8.bf16 %v256_v6  ;;  %v279_v20 = vunpack.c.l.s8.bf16 %v255_v9  ;;  %v261_v52 = vld [vmem:[#allocation7 + $0x70] sm:$0xff] }
  0x94   :  { %296 = vmatprep.subr.bf16.mxu1 %v292_v4  ;;  %v2547_v13 = vld [vmem:[%s3334_s3 + $0x9] ss:$0 sm:$0xff]  ;;  %v525_v15 = vunpack.c.l.s8.bf16 %v449_v10  ;;  %v529_v16 = vunpack.c.h.s8.bf16 %v449_v10  ;;  %v252_v17 = vld [vmem:[#allocation7 + $0x28] sm:$0xff]  ;;  %v528_v18 = vunpack.c.h.s8.bf16 %v448_v11  ;;  %v524_v21 = vunpack.c.l.s8.bf16 %v448_v11  ;;  %v219_v33 = vld [vmem:[#allocation2 + $0x40] sm:$0xff] }
  0x95   :  { %297 = vmatpush1.bf16.msra.mxu1 %v291_v5  ;;  %v445_v19 = vld [vmem:[#allocation8 + $0x48] sm:$0xff]  ;;  %2617 = vrcp.f32 %v2547_v13  ;;  %v276_v22 = vunpack.c.h.s8.bf16 %v252_v17  ;;  %v251_v23 = vld [vmem:[#allocation7 + $0x20] sm:$0xff]  ;;  %v272_v28 = vunpack.c.l.s8.bf16 %v252_v17  ;;  %v294_v51 = vunpack.c.h.s8.bf16 %v262_v46  ;;  %v258_v59 = vld [vmem:[#allocation7 + $0x58] sm:$0xff] }
  0x96   :  { %298 = vmatprep.subr.bf16.mxu1 %v288_v3  ;;  %632 = vmatprep.subr.bf16.mxu0 %v529_v16  ;;  %v521_v24 = vunpack.c.h.s8.bf16 %v445_v19  ;;  %v444_v25 = vld [vmem:[#allocation8 + $0x40] sm:$0xff]  ;;  %v275_v26 = vunpack.c.h.s8.bf16 %v251_v23  ;;  %v517_v29 = vunpack.c.l.s8.bf16 %v445_v19  ;;  %v248_v30 = vld [vmem:[#allocation7 + $0x8] sm:$0xff]  ;;  %v271_v32 = vunpack.c.l.s8.bf16 %v251_v23  ;;  %v257_v1 = vld [vmem:[#allocation7 + $0x50] sm:$0xff] }
  0x97   :  { %633 = vmatpush1.bf16.msra.mxu0 %v528_v18  ;;  %v520_v27 = vunpack.c.h.s8.bf16 %v444_v25  ;;  %v441_v31 = vld [vmem:[#allocation8 + $0x28] sm:$0xff]  ;;  %v2546_v34 = vld [vmem:[%s3334_s3 + $0x8] ss:$0 sm:$0xff]  ;;  %v516_v35 = vunpack.c.l.s8.bf16 %v444_v25  ;;  %v268_v36 = vunpack.c.h.s8.bf16 %v248_v30  ;;  %v264_v44 = vunpack.c.l.s8.bf16 %v248_v30  ;;  %v250_v19 = vld [vmem:[#allocation7 + $0x18] sm:$0xff] }
  0x98   :  { %634 = vmatprep.subr.bf16.mxu0 %v525_v15  ;;  %v247_v37 = vld [vmem:[#allocation7] sm:$0xff]  ;;  %v513_v38 = vunpack.c.h.s8.bf16 %v441_v31  ;;  %v235_v40 = vsub.f32 %v219_v33, %v2546_v34  ;;  %v509_v45 = vunpack.c.l.s8.bf16 %v441_v31  ;;  %v437_v47 = vld [vmem:[#allocation8 + $0x8] sm:$0xff]  ;;  %v293_v56 = vunpack.c.h.s8.bf16 %v261_v52 }
  0x99   :  { %299 = vmatpush1.bf16.msra.mxu1 %v287_v7  ;;  %v440_v39 = vld [vmem:[#allocation8 + $0x20] sm:$0xff]  ;;  %v267_v42 = vunpack.c.h.s8.bf16 %v247_v37  ;;  %v263_v49 = vunpack.c.l.s8.bf16 %v247_v37  ;;  %v505_v53 = vunpack.c.h.s8.bf16 %v437_v47  ;;  %v290_v57 = vunpack.c.l.s8.bf16 %v262_v46  ;;  %v465_v61 = vld [vmem:[#allocation8 + $0xe8] sm:$0xff] }
  0x9a   :  { %300 = vmatprep.subr.bf16.mxu1 %v284_v8  ;;  %v512_v43 = vunpack.c.h.s8.bf16 %v440_v39  ;;  %v508_v50 = vunpack.c.l.s8.bf16 %v440_v39  ;;  %v436_v54 = vld [vmem:[#allocation8] sm:$0xff]  ;;  %v501_v60 = vunpack.c.l.s8.bf16 %v437_v47  ;;  %v289_v62 = vunpack.c.l.s8.bf16 %v261_v52  ;;  %v254_v8 = vld [vmem:[#allocation7 + $0x38] sm:$0xff]  ;;  %v461_v10 = vld [vmem:[#allocation8 + $0xc8] sm:$0xff] }
  0x9b   :  { %635 = vmatpush1.bf16.msra.mxu0 %v524_v21  ;;  %v504_v58 = vunpack.c.h.s8.bf16 %v436_v54  ;;  %v286_v63 = vunpack.c.h.s8.bf16 %v258_v59  ;;  %v500_v2 = vunpack.c.l.s8.bf16 %v436_v54  ;;  %v561_v3 = vunpack.c.h.s8.bf16 %v465_v61  ;;  %v464_v4 = vld [vmem:[#allocation8 + $0xe0] sm:$0xff]  ;;  %v457_v21 = vld [vmem:[#allocation8 + $0xa8] sm:$0xff] }
  0x9c   :  { %636 = vmatprep.subr.bf16.mxu0 %v521_v24  ;;  %v285_v5 = vunpack.c.h.s8.bf16 %v257_v1  ;;  %v282_v6 = vunpack.c.l.s8.bf16 %v258_v59  ;;  %v560_v7 = vunpack.c.h.s8.bf16 %v464_v4  ;;  %v557_v9 = vunpack.c.l.s8.bf16 %v465_v61  ;;  %v460_v15 = vld [vmem:[#allocation8 + $0xc0] sm:$0xff]  ;;  %v249_v24 = vld [vmem:[#allocation7 + $0x10] sm:$0xff]  ;;  %v481_v31 = vld [vmem:[#allocation8 + $0x168] sm:$0xff] }
  0x9d   :  { %301 = vmatpush1.bf16.msra.mxu1 %v283_v12  ;;  %v278_v11 = vunpack.c.h.s8.bf16 %v254_v8  ;;  %v253_v12 = vld [vmem:[#allocation7 + $0x30] sm:$0xff]  ;;  %v556_v13 = vunpack.c.l.s8.bf16 %v464_v4  ;;  %v274_v17 = vunpack.c.l.s8.bf16 %v254_v8  ;;  %v552_v18 = vunpack.c.h.s8.bf16 %v460_v15  ;;  %v472_v47 = vld [vmem:[#allocation8 + $0x120] sm:$0xff]  ;;  %v453_v52 = vld [vmem:[#allocation8 + $0x88] sm:$0xff] }
  0x9e   :  { %302 = vmatprep.subr.bf16.mxu1 %v280_v14  ;;  %v553_v14 = vunpack.c.h.s8.bf16 %v461_v10  ;;  %v277_v16 = vunpack.c.h.s8.bf16 %v253_v12  ;;  %v270_v23 = vunpack.c.h.s8.bf16 %v250_v19  ;;  %v548_v25 = vunpack.c.l.s8.bf16 %v460_v15 }
  0x9f   :  { %637 = vmatpush1.bf16.msra.mxu0 %v520_v27  ;;  %v456_v27 = vld [vmem:[#allocation8 + $0xa0] sm:$0xff]  ;;  %v265_v33 = vunpack.c.l.s8.bf16 %v249_v24  ;;  %v593_v34 = vunpack.c.h.s8.bf16 %v481_v31  ;;  %v589_v37 = vunpack.c.l.s8.bf16 %v481_v31  ;;  %v537_v54 = vunpack.c.h.s8.bf16 %v453_v52  ;;  %v3087_v31 = vld [vmem:[#allocation5] ss:$2 sm:$0xf] }
  0xa0   :  { %638 = vmatprep.subr.bf16.mxu0 %v517_v29  ;;  %v266_v29 = vunpack.c.l.s8.bf16 %v250_v19  ;;  %v544_v30 = vunpack.c.h.s8.bf16 %v456_v27 }
  0xa1   :  { %303 = vmatpush1.bf16.msra.mxu1 %v279_v20  ;;  %v549_v20 = vunpack.c.l.s8.bf16 %v461_v10 }
  0xa2   :  { %304 = vmatprep.subr.bf16.mxu1 %v276_v22  ;;  %v2618_v41 = vpop.eup %2617  ;;  %v273_v22 = vunpack.c.l.s8.bf16 %v253_v12 }
  0xa3   :  { %639 = vmatpush1.bf16.msra.mxu0 %v516_v35  ;;  %v243_v48 = vmul.f32 %v2618_v41, %v235_v40  ;;  %v480_v35 = vld [vmem:[#allocation8 + $0x160] sm:$0xff] }
  0xa4   :  { %640 = vmatprep.subr.bf16.mxu0 %v513_v38  ;;  %v477_v38 = vld [vmem:[#allocation8 + $0x148] sm:$0xff]  ;;  %v588_v39 = vunpack.c.l.s8.bf16 %v480_v35  ;;  %v476_v41 = vld [vmem:[#allocation8 + $0x140] sm:$0xff] }
  0xa5   :  { %305 = vmatpush1.bf16.msra.mxu1 %v275_v26  ;;  %v3074_v55 = vpack.c.bf16 %v243_v48, %v243_v48  ;;  %v545_v26 = vunpack.c.h.s8.bf16 %v457_v21  ;;  %v585_v40 = vunpack.c.h.s8.bf16 %v477_v38  ;;  %v576_v48 = vunpack.c.h.s8.bf16 %v472_v47 }
  0xa6   :  { %306 = vmatprep.subr.bf16.mxu1 %v272_v28  ;;  %v269_v28 = vunpack.c.h.s8.bf16 %v249_v24 }
  0xa7   :  { %641 = vmatpush1.bf16.msra.mxu0 %v512_v43  ;;  %v581_v43 = vunpack.c.l.s8.bf16 %v477_v38 }
  0xa8   :  { %642 = vmatprep.subr.bf16.mxu0 %v509_v45  ;;  %v580_v45 = vunpack.c.l.s8.bf16 %v476_v41 }
  0xa9   :  { %307 = vmatpush1.bf16.msra.mxu1 %v271_v32  ;;  %v541_v32 = vunpack.c.l.s8.bf16 %v457_v21 }
  0xaa   :  { %308 = vmatprep.subr.bf16.mxu1 %v268_v36  ;;  %v592_v36 = vunpack.c.h.s8.bf16 %v480_v35 }
  0xab   :  { %643 = vmatpush1.bf16.msra.mxu0 %v508_v50  ;;  %v540_v50 = vunpack.c.l.s8.bf16 %v456_v27 }
  0xac   :  { %644 = vmatprep.subr.bf16.mxu0 %v505_v53  ;;  %v469_v53 = vld [vmem:[#allocation8 + $0x108] sm:$0xff] }
  0xad   :  { %309 = vmatpush1.bf16.msra.mxu1 %v267_v42  ;;  %v584_v42 = vunpack.c.h.s8.bf16 %v476_v41  ;;  %v565_v61 = vunpack.c.l.s8.bf16 %v469_v53 }
  0xae   :  { %310 = vmatprep.subr.bf16.mxu1 %v264_v44  ;;  %v473_v44 = vld [vmem:[#allocation8 + $0x128] sm:$0xff] }
  0xaf   :  { %645 = vmatpush1.bf16.msra.mxu0 %v504_v58  ;;  %v577_v46 = vunpack.c.h.s8.bf16 %v473_v44 }
  0xb0   :  { %646 = vmatprep.subr.bf16.mxu0 %v501_v60  ;;  %v533_v60 = vunpack.c.l.s8.bf16 %v453_v52 }
  0xb1   :  { %311 = vmatpush1.bf16.msra.mxu1 %v263_v49  ;;  %v573_v49 = vunpack.c.l.s8.bf16 %v473_v44 }
  0xb2   :  { %337 = vmatprep.subr.bf16.mxu1 %v294_v51  ;;  %v572_v51 = vunpack.c.l.s8.bf16 %v472_v47  ;;  %v450_v47 = vld [vmem:[#allocation8 + $0x70] sm:$0xff] }
  0xb3   :  { %647 = vmatpush1.bf16.msra.mxu0 %v500_v2  ;;  %v3079_v2 = vld [vmem:[#allocation8 + $0x78] sm:$0xff] }
  0xb4   :  { %329 = vmatmul.mubr.bf16.vlgmr.msra.gmra.mxu1 %v3074_v55  ;;  %648 = vmatprep.subr.bf16.mxu0 %v561_v3  ;;  %v531_v4 = vunpack.c.h.s8.bf16 %v3079_v2  ;;  %v527_v52 = vunpack.c.l.s8.bf16 %v3079_v2 }
  0xb5   :  { %338 = vmatpush1.bf16.msra.mxu1 %v293_v56  ;;  %369 = vmatprep.mubr.bf16.mxu1 %v2921_v0  ;;  %v281_v0 = vunpack.c.l.s8.bf16 %v257_v1  ;;  %v452_v56 = vld [vmem:[#allocation8 + $0x80] sm:$0xff]  ;;  %v497_v1 = vld [vmem:[#allocation8 + $0x1e8] sm:$0xff] }
  0xb6   :  { %339 = vmatprep.subr.bf16.mxu1 %v290_v57  ;;  %v468_v57 = vld [vmem:[#allocation8 + $0x100] sm:$0xff]  ;;  %v536_v58 = vunpack.c.h.s8.bf16 %v452_v56  ;;  %v625_v3 = vunpack.c.h.s8.bf16 %v497_v1 }
  0xb7   :  { %649 = vmatpush2.bf16.msra.mxu0 %v560_v7  ;;  %v568_v59 = vunpack.c.h.s8.bf16 %v468_v57  ;;  %v621_v7 = vunpack.c.l.s8.bf16 %v497_v1 }
  0xb8   :  { %650 = vmatprep.subr.bf16.mxu0 %v557_v9  ;;  %v493_v9 = vld [vmem:[#allocation8 + $0x1c8] sm:$0xff] }
  0xb9   :  { %340 = vmatpush1.bf16.msra.mxu1 %v289_v62  ;;  %v532_v62 = vunpack.c.l.s8.bf16 %v452_v56  ;;  %v617_v10 = vunpack.c.h.s8.bf16 %v493_v9  ;;  %v613_v12 = vunpack.c.l.s8.bf16 %v493_v9  ;;  %v446_v56 = vld [vmem:[#allocation8 + $0x50] sm:$0xff] }
  0xba   :  { %341 = vmatprep.subr.bf16.mxu1 %v286_v63  ;;  %v564_v63 = vunpack.c.l.s8.bf16 %v468_v57  ;;  %v522_v57 = vunpack.c.h.s8.bf16 %v446_v56 }
  0xbb   :  { %651 = vmatpush2.bf16.msra.mxu0 %v556_v13 }
  0xbc   :  { %652 = vmatprep.subr.bf16.mxu0 %v553_v14  ;;  %v489_v14 = vld [vmem:[#allocation8 + $0x1a8] sm:$0xff] }
  0xbd   :  { %342 = vmatpush1.bf16.msra.mxu1 %v285_v5  ;;  %v496_v5 = vld [vmem:[#allocation8 + $0x1e0] sm:$0xff]  ;;  %v609_v15 = vunpack.c.h.s8.bf16 %v489_v14 }
  0xbe   :  { %343 = vmatprep.subr.bf16.mxu1 %v282_v6  ;;  %v624_v6 = vunpack.c.h.s8.bf16 %v496_v5  ;;  %v620_v8 = vunpack.c.l.s8.bf16 %v496_v5 }
  0xbf   :  { %653 = vmatpush2.bf16.msra.mxu0 %v552_v18  ;;  %v605_v18 = vunpack.c.l.s8.bf16 %v489_v14 }
  0xc0   :  { %654 = vmatprep.subr.bf16.mxu0 %v549_v20  ;;  %v485_v20 = vld [vmem:[#allocation8 + $0x188] sm:$0xff] }
  0xc1   :  { %344 = vmatpush1.bf16.msra.mxu1 %v281_v0  ;;  %v492_v0 = vld [vmem:[#allocation8 + $0x1c0] sm:$0xff]  ;;  %v601_v21 = vunpack.c.h.s8.bf16 %v485_v20  ;;  %v597_v24 = vunpack.c.l.s8.bf16 %v485_v20 }
  0xc2   :  { %345 = vmatprep.subr.bf16.mxu1 %v278_v11  ;;  %v616_v11 = vunpack.c.h.s8.bf16 %v492_v0  ;;  %v612_v13 = vunpack.c.l.s8.bf16 %v492_v0 }
  0xc3   :  { %655 = vmatpush2.bf16.msra.mxu0 %v548_v25 }
  0xc4   :  { %656 = vmatprep.subr.bf16.mxu0 %v545_v26  ;;  %v3082_v26 = vld [vmem:[#allocation8 + $0x178] sm:$0xff] }
  0xc5   :  { %346 = vmatpush1.bf16.msra.mxu1 %v277_v16  ;;  %v488_v16 = vld [vmem:[#allocation8 + $0x1a0] sm:$0xff]  ;;  %v595_v27 = vunpack.c.h.s8.bf16 %v3082_v26 }
  0xc6   :  { %347 = vmatprep.subr.bf16.mxu1 %v274_v17  ;;  %v608_v17 = vunpack.c.h.s8.bf16 %v488_v16  ;;  %v604_v19 = vunpack.c.l.s8.bf16 %v488_v16 }
  0xc7   :  { %657 = vmatpush2.bf16.msra.mxu0 %v544_v30 }
  0xc8   :  { %658 = vmatprep.subr.bf16.mxu0 %v541_v32 }
  0xc9   :  { %348 = vmatpush1.bf16.msra.mxu1 %v273_v22  ;;  %v484_v22 = vld [vmem:[#allocation8 + $0x180] sm:$0xff] }
  0xca   :  { %349 = vmatprep.subr.bf16.mxu1 %v270_v23  ;;  %v600_v23 = vunpack.c.h.s8.bf16 %v484_v22  ;;  %v596_v25 = vunpack.c.l.s8.bf16 %v484_v22 }
  0xcb   :  { %659 = vmatpush2.bf16.msra.mxu0 %v540_v50  ;;  %v530_v50 = vunpack.c.h.s8.bf16 %v450_v47 }
  0xcc   :  { %660 = vmatprep.subr.bf16.mxu0 %v537_v54  ;;  %v526_v54 = vunpack.c.l.s8.bf16 %v450_v47 }
  0xcd   :  { %350 = vmatpush1.bf16.msra.mxu1 %v269_v28  ;;  %v379_v28 = vlaneseq }
  0xce   :  { %351 = vmatprep.subr.bf16.mxu1 %v266_v29 }
  0xcf   :  { %661 = vmatpush2.bf16.msra.mxu0 %v536_v58  ;;  %v380_v29 = vshrl.u32 %v379_v28, 7 }
  0xd0   :  { %662 = vmatprep.subr.bf16.mxu0 %v533_v60  ;;  %v518_v60 = vunpack.c.l.s8.bf16 %v446_v56 }
  0xd1   :  { %352 = vmatpush1.bf16.msra.mxu1 %v265_v33  ;;  %v3085_v30 = vsub.s32 0, %v380_v29  ;;  %v3089_v32 = vsub.s32 1, %v380_v29  ;;  %v3091_v33 = vld [vmem:[#allocation5 + $0x1] ss:$2 sm:$0xf]  ;;  %v3113_v1 = vsub.s32 2, %v380_v29 }
  0xd2   :  { %673 = vmatprep.subr.bf16.mxu1 %v593_v34 }
  0xd3   :  { %663 = vmatpush2.bf16.msra.mxu0 %v532_v62  ;;  %v382_v34 = vrot.slane %v3087_v31, %v3085_v30  ;;  %v407_v35 = vrot.slane %v3091_v33, %v3085_v30  ;;  %v442_v62 = vld [vmem:[#allocation8 + $0x30] sm:$0xff]  ;;  %v390_v5 = vrot.slane %v3087_v31, %v3113_v1  ;;  %v415_v9 = vrot.slane %v3091_v33, %v3113_v1 }
  0xd4   :  { %370 = vmatmul.mubr.bf16.vlgmr.msra.gmra.mxu1 %v3074_v55  ;;  %v569_v55 = vunpack.c.h.s8.bf16 %v469_v53  ;;  %714 = vmatprep.subr.bf16.mxu0 %v531_v4  ;;  %v447_v53 = vld [vmem:[#allocation8 + $0x58] sm:$0xff] }
  0xd5   :  { %674 = vmatpush1.bf16.msra.mxu1 %v592_v36  ;;  %v386_v36 = vrot.slane %v3087_v31, %v3089_v32  ;;  %v519_v58 = vunpack.c.l.s8.bf16 %v447_v53  ;;  %v439_v4 = vld [vmem:[#allocation8 + $0x18] sm:$0xff] }
  0xd6   :  { %675 = vmatprep.subr.bf16.mxu1 %v589_v37 }
  0xd9   :  { %676 = vmatpush1.bf16.msra.mxu1 %v588_v39  ;;  %v411_v39 = vrot.slane %v3091_v33, %v3089_v32 }
  0xda   :  { %677 = vmatprep.subr.bf16.mxu1 %v585_v40 }
  0xdd   :  { %678 = vmatpush1.bf16.msra.mxu1 %v584_v42 }
  0xde   :  { %679 = vmatprep.subr.bf16.mxu1 %v581_v43 }
  0xe1   :  { %680 = vmatpush1.bf16.msra.mxu1 %v580_v45 }
  0xe2   :  { %681 = vmatprep.subr.bf16.mxu1 %v577_v46 }
  0xe5   :  { %682 = vmatpush1.bf16.msra.mxu1 %v576_v48 }
  0xe6   :  { %683 = vmatprep.subr.bf16.mxu1 %v573_v49 }
  0xe9   :  { %684 = vmatpush1.bf16.msra.mxu1 %v572_v51 }
  0xea   :  { %685 = vmatprep.subr.bf16.mxu1 %v569_v55  ;;  %v523_v55 = vunpack.c.h.s8.bf16 %v447_v53 }
  0xed   :  { %686 = vmatpush1.bf16.msra.mxu1 %v568_v59  ;;  %v443_v59 = vld [vmem:[#allocation8 + $0x38] sm:$0xff] }
  0xee   :  { %687 = vmatprep.subr.bf16.mxu1 %v565_v61  ;;  %v515_v61 = vunpack.c.h.s8.bf16 %v443_v59  ;;  %v511_v2 = vunpack.c.l.s8.bf16 %v443_v59 }
  0xf1   :  { %688 = vmatpush1.bf16.msra.mxu1 %v564_v63  ;;  %v514_v63 = vunpack.c.h.s8.bf16 %v442_v62 }
  0xf2   :  { %689 = vmatprep.subr.bf16.mxu1 %v625_v3  ;;  %v3115_v3 = vsub.s32 3, %v380_v29 }
  0xf5   :  { %690 = vmatpush2.bf16.msra.mxu1 %v624_v6  ;;  %v510_v6 = vunpack.c.l.s8.bf16 %v442_v62 }
  0xf6   :  { %691 = vmatprep.subr.bf16.mxu1 %v621_v7  ;;  %v507_v7 = vunpack.c.h.s8.bf16 %v439_v4 }
  0xf9   :  { %692 = vmatpush2.bf16.msra.mxu1 %v620_v8  ;;  %v438_v8 = vld [vmem:[#allocation8 + $0x10] sm:$0xff] }
  0xfa   :  { %693 = vmatprep.subr.bf16.mxu1 %v617_v10  ;;  %v394_v10 = vrot.slane %v3087_v31, %v3115_v3 }
  0xfd   :  { %694 = vmatpush2.bf16.msra.mxu1 %v616_v11 }
  0xfe   :  { %695 = vmatprep.subr.bf16.mxu1 %v613_v12  ;;  %v419_v12 = vrot.slane %v3091_v33, %v3115_v3 }
 0x101   :  { %696 = vmatpush2.bf16.msra.mxu1 %v612_v13  ;;  %v506_v13 = vunpack.c.h.s8.bf16 %v438_v8 }
 0x102   :  { %697 = vmatprep.subr.bf16.mxu1 %v609_v15  ;;  %v503_v15 = vunpack.c.l.s8.bf16 %v439_v4 }
 0x105   :  { %698 = vmatpush2.bf16.msra.mxu1 %v608_v17 }
 0x106   :  { %699 = vmatprep.subr.bf16.mxu1 %v605_v18  ;;  %v467_v18 = vld [vmem:[#allocation8 + $0xf8] sm:$0xff] }
 0x109   :  { %700 = vmatpush2.bf16.msra.mxu1 %v604_v19 }
 0x10a   :  { %701 = vmatprep.subr.bf16.mxu1 %v601_v21  ;;  %v502_v21 = vunpack.c.l.s8.bf16 %v438_v8  ;;  %v454_v8 = vld [vmem:[#allocation8 + $0x90] sm:$0xff] }
 0x10d   :  { %702 = vmatpush2.bf16.msra.mxu1 %v600_v23 }
 0x10e   :  { %703 = vmatprep.subr.bf16.mxu1 %v597_v24  ;;  %v563_v24 = vunpack.c.h.s8.bf16 %v467_v18 }
 0x111   :  { %704 = vmatpush2.bf16.msra.mxu1 %v596_v25  ;;  %v466_v25 = vld [vmem:[#allocation8 + $0xf0] sm:$0xff] }
 0x112   :  { %755 = vmatprep.subr.bf16.mxu1 %v595_v27  ;;  %v482_v27 = vld [vmem:[#allocation8 + $0x170] sm:$0xff]  ;;  %v562_v31 = vunpack.c.h.s8.bf16 %v466_v25 }
 0x113   :  { %v594_v33 = vunpack.c.h.s8.bf16 %v482_v27 }
 0x174   :  { %v330_v37 = vpop.f32.mrf.mxu1 }
 0x175   :  { %v399_v38 = vmul.f32 %v382_v34, %v330_v37  ;;  %v463_v37 = vld [vmem:[#allocation8 + $0xd8] sm:$0xff] }
 0x176   :  { %v332_v40 = vpop.f32.mrf.mxu1 }
 0x177   :  { %v424_v41 = vadd.f32 %v407_v35, %v399_v38  ;;  %v400_v42 = vmul.f32 %v386_v36, %v332_v40  ;;  %v559_v35 = vunpack.c.l.s8.bf16 %v467_v18  ;;  %v591_v36 = vunpack.c.l.s8.bf16 %v3082_v26  ;;  %v479_v38 = vld [vmem:[#allocation8 + $0x158] sm:$0xff]  ;;  %v498_v18 = vld [vmem:[#allocation8 + $0x1f0] sm:$0xff] }
 0x178   :  { %v334_v43 = vpop.f32.mrf.mxu1  ;;  %v590_v40 = vunpack.c.l.s8.bf16 %v482_v27  ;;  %v551_v26 = vunpack.c.l.s8.bf16 %v463_v37  ;;  %v495_v27 = vld [vmem:[#allocation8 + $0x1d8] sm:$0xff] }
 0x179   :  { %v425_v44 = vadd.f32 %v411_v39, %v400_v42  ;;  %v3101_v45 = vmax.f32 %v424_v41, 0.0  ;;  %v558_v39 = vunpack.c.l.s8.bf16 %v466_v25  ;;  %v555_v41 = vunpack.c.h.s8.bf16 %v463_v37  ;;  %v462_v43 = vld [vmem:[#allocation8 + $0xd0] sm:$0xff] }
 0x17a   :  { %v335_v46 = vpop.f32.mrf.mxu1  ;;  %v587_v42 = vunpack.c.h.s8.bf16 %v479_v38  ;;  %v550_v53 = vunpack.c.l.s8.bf16 %v462_v43 }
 0x17b   :  { %v3103_v48 = vmax.f32 %v425_v44, 0.0  ;;  %v3109_v51 = vpack.c.bf16 %v3101_v45, %v3101_v45  ;;  %v478_v44 = vld [vmem:[#allocation8 + $0x150] sm:$0xff]  ;;  %v554_v46 = vunpack.c.h.s8.bf16 %v462_v43  ;;  %v491_v43 = vld [vmem:[#allocation8 + $0x1b8] sm:$0xff] }
 0x17c   :  { %v586_v47 = vunpack.c.h.s8.bf16 %v478_v44 }
 0x17d   :  { %v629_v49 = vpack.c.bf16 %v3103_v48, %v3103_v48 }
 0x17f   :  { %664 = vmatprep.mubr.bf16.mxu0 %v629_v49 }
 0x180   :  { %665 = vmatmul.mubr.bf16.vlgmr.msra.gmra.mxu0 %v3109_v51 }
 0x181   :  { %715 = vmatpush1.bf16.msra.mxu0 %v530_v50  ;;  %746 = vmatprep.mubr.bf16.mxu0 %v629_v49  ;;  %v583_v49 = vunpack.c.l.s8.bf16 %v479_v38  ;;  %v459_v50 = vld [vmem:[#allocation8 + $0xb8] sm:$0xff]  ;;  %v862_v38 = vld [vmem:[#allocation10 + $0x40] sm:$0xff] }
 0x182   :  { %716 = vmatprep.subr.bf16.mxu0 %v527_v52  ;;  %v475_v52 = vld [vmem:[#allocation8 + $0x138] sm:$0xff] }
 0x183   :  { %v579_v56 = vunpack.c.h.s8.bf16 %v475_v52  ;;  %v575_v62 = vunpack.c.l.s8.bf16 %v475_v52 }
 0x185   :  { %717 = vmatpush1.bf16.msra.mxu0 %v526_v54  ;;  %v582_v54 = vunpack.c.l.s8.bf16 %v478_v44 }
 0x186   :  { %718 = vmatprep.subr.bf16.mxu0 %v523_v55  ;;  %v547_v55 = vunpack.c.h.s8.bf16 %v459_v50 }
 0x189   :  { %719 = vmatpush1.bf16.msra.mxu0 %v522_v57  ;;  %v458_v57 = vld [vmem:[#allocation8 + $0xb0] sm:$0xff] }
 0x18a   :  { %720 = vmatprep.subr.bf16.mxu0 %v519_v58  ;;  %v474_v58 = vld [vmem:[#allocation8 + $0x130] sm:$0xff]  ;;  %v546_v59 = vunpack.c.h.s8.bf16 %v458_v57  ;;  %v542_v4 = vunpack.c.l.s8.bf16 %v458_v57  ;;  %v855_v57 = vld [vmem:[#allocation10 + $0x8] sm:$0xff] }
 0x18d   :  { %721 = vmatpush1.bf16.msra.mxu0 %v518_v60  ;;  %v578_v60 = vunpack.c.h.s8.bf16 %v474_v58 }
 0x18e   :  { %722 = vmatprep.subr.bf16.mxu0 %v515_v61  ;;  %v543_v61 = vunpack.c.l.s8.bf16 %v459_v50  ;;  %v858_v50 = vld [vmem:[#allocation10 + $0x20] sm:$0xff] }
 0x191   :  { %723 = vmatpush1.bf16.msra.mxu0 %v514_v63  ;;  %v455_v63 = vld [vmem:[#allocation8 + $0x98] sm:$0xff] }
 0x192   :  { %724 = vmatprep.subr.bf16.mxu0 %v511_v2  ;;  %v471_v2 = vld [vmem:[#allocation8 + $0x118] sm:$0xff] }
 0x194   :  { %v371_v0 = vpop.f32.mrf.mxu1 }
 0x195   :  { %v401_v11 = vmul.f32 %v390_v5, %v371_v0  ;;  %725 = vmatpush1.bf16.msra.mxu0 %v510_v6  ;;  %v574_v5 = vunpack.c.l.s8.bf16 %v474_v58  ;;  %v539_v6 = vunpack.c.h.s8.bf16 %v455_v63 }
 0x196   :  { %v373_v14 = vpop.f32.mrf.mxu1  ;;  %726 = vmatprep.subr.bf16.mxu0 %v507_v7  ;;  %v571_v7 = vunpack.c.h.s8.bf16 %v471_v2 }
 0x197   :  { %v426_v16 = vadd.f32 %v415_v9, %v401_v11  ;;  %v402_v17 = vmul.f32 %v394_v10, %v373_v14  ;;  %v470_v9 = vld [vmem:[#allocation8 + $0x110] sm:$0xff]  ;;  %v538_v10 = vunpack.c.h.s8.bf16 %v454_v8  ;;  %v535_v11 = vunpack.c.l.s8.bf16 %v455_v63  ;;  %v867_v14 = vld [vmem:[#allocation10 + $0x68] sm:$0xff]  ;;  %v854_v63 = vld [vmem:[#allocation10] sm:$0xff] }
 0x198   :  { %v375_v19 = vpop.f32.mrf.mxu1  ;;  %v570_v0 = vunpack.c.h.s8.bf16 %v470_v9  ;;  %v943_v25 = vunpack.c.l.s8.bf16 %v867_v14 }
 0x199   :  { %v427_v20 = vadd.f32 %v419_v12, %v402_v17  ;;  %727 = vmatpush1.bf16.msra.mxu0 %v506_v13  ;;  %v3125_v22 = vmax.f32 %v426_v16, 0.0  ;;  %v567_v12 = vunpack.c.l.s8.bf16 %v471_v2  ;;  %v499_v13 = vld [vmem:[#allocation8 + $0x1f8] sm:$0xff]  ;;  %v566_v16 = vunpack.c.l.s8.bf16 %v470_v9 }
 0x19a   :  { %v376_v23 = vpop.f32.mrf.mxu1  ;;  %728 = vmatprep.subr.bf16.mxu0 %v503_v15  ;;  %v534_v15 = vunpack.c.l.s8.bf16 %v454_v8  ;;  %v627_v17 = vunpack.c.h.s8.bf16 %v499_v13  ;;  %v947_v19 = vunpack.c.h.s8.bf16 %v867_v14  ;;  %v918_v9 = vunpack.c.l.s8.bf16 %v854_v63 }
 0x19b   :  { %v3127_v28 = vmax.f32 %v427_v20, 0.0  ;;  %v3133_v34 = vpack.c.bf16 %v3125_v22, %v3125_v22  ;;  %v866_v20 = vld [vmem:[#allocation10 + $0x60] sm:$0xff] }
 0x19c   :  { %v946_v23 = vunpack.c.h.s8.bf16 %v866_v20 }
 0x19d   :  { %729 = vmatpush1.bf16.msra.mxu0 %v502_v21  ;;  %v631_v29 = vpack.c.bf16 %v3127_v28, %v3127_v28  ;;  %v626_v21 = vunpack.c.h.s8.bf16 %v498_v18 }
 0x19e   :  { %730 = vmatprep.subr.bf16.mxu0 %v563_v24  ;;  %v623_v24 = vunpack.c.l.s8.bf16 %v499_v13  ;;  %v879_v13 = vld [vmem:[#allocation10 + $0xc8] sm:$0xff] }
 0x19f   :  { %705 = vmatprep.mubr.bf16.mxu1 %v631_v29 }
 0x1a0   :  { %706 = vmatmul.mubr.bf16.vlgmr.msra.gmra.mxu1 %v3133_v34 }
 0x1a1   :  { %731 = vmatpush2.bf16.msra.mxu0 %v562_v31  ;;  %756 = vmatpush1.bf16.msra.mxu1 %v594_v33  ;;  %v622_v31 = vunpack.c.l.s8.bf16 %v498_v18  ;;  %v942_v33 = vunpack.c.l.s8.bf16 %v866_v20  ;;  %v967_v18 = vunpack.c.l.s8.bf16 %v879_v13 }
 0x1a2   :  { %787 = vmatprep.mubr.bf16.mxu1 %v631_v29  ;;  %732 = vmatprep.subr.bf16.mxu0 %v559_v35  ;;  %v863_v29 = vld [vmem:[#allocation10 + $0x48] sm:$0xff]  ;;  %v619_v35 = vunpack.c.h.s8.bf16 %v495_v27 }
 0x1a3   :  { %757 = vmatprep.subr.bf16.mxu1 %v591_v36  ;;  %v494_v36 = vld [vmem:[#allocation8 + $0x1d0] sm:$0xff]  ;;  %v939_v37 = vunpack.c.h.s8.bf16 %v863_v29 }
 0x1a4   :  { %v614_v44 = vunpack.c.l.s8.bf16 %v494_v36 }
 0x1a5   :  { %733 = vmatpush2.bf16.msra.mxu0 %v558_v39  ;;  %758 = vmatpush1.bf16.msra.mxu1 %v590_v40  ;;  %v618_v39 = vunpack.c.h.s8.bf16 %v494_v36  ;;  %v938_v40 = vunpack.c.h.s8.bf16 %v862_v38 }
 0x1a6   :  { %734 = vmatprep.subr.bf16.mxu0 %v555_v41  ;;  %759 = vmatprep.subr.bf16.mxu1 %v587_v42  ;;  %v615_v41 = vunpack.c.l.s8.bf16 %v495_v27  ;;  %v935_v42 = vunpack.c.l.s8.bf16 %v863_v29  ;;  %v898_v27 = vld [vmem:[#allocation10 + $0x160] sm:$0xff] }
 0x1a7   :  { %v1006_v36 = vunpack.c.l.s8.bf16 %v898_v27 }
 0x1a9   :  { %735 = vmatpush2.bf16.msra.mxu0 %v554_v46  ;;  %760 = vmatpush1.bf16.msra.mxu1 %v586_v47  ;;  %v934_v46 = vunpack.c.l.s8.bf16 %v862_v38  ;;  %v611_v47 = vunpack.c.h.s8.bf16 %v491_v43 }
 0x1aa   :  { %736 = vmatprep.subr.bf16.mxu0 %v551_v26  ;;  %761 = vmatprep.subr.bf16.mxu1 %v583_v49  ;;  %v490_v26 = vld [vmem:[#allocation8 + $0x1b0] sm:$0xff] }
 0x1ab   :  { %v610_v52 = vunpack.c.h.s8.bf16 %v490_v26  ;;  %v606_v58 = vunpack.c.l.s8.bf16 %v490_v26 }
 0x1ad   :  { %737 = vmatpush2.bf16.msra.mxu0 %v550_v53  ;;  %762 = vmatpush1.bf16.msra.mxu1 %v582_v54  ;;  %v930_v53 = vunpack.c.h.s8.bf16 %v858_v50  ;;  %v607_v54 = vunpack.c.l.s8.bf16 %v491_v43 }
 0x1ae   :  { %738 = vmatprep.subr.bf16.mxu0 %v547_v55  ;;  %763 = vmatprep.subr.bf16.mxu1 %v579_v56  ;;  %v487_v56 = vld [vmem:[#allocation8 + $0x198] sm:$0xff] }
 0x1b1   :  { %739 = vmatpush2.bf16.msra.mxu0 %v546_v59  ;;  %764 = vmatpush1.bf16.msra.mxu1 %v578_v60  ;;  %v926_v59 = vunpack.c.l.s8.bf16 %v858_v50  ;;  %v603_v60 = vunpack.c.h.s8.bf16 %v487_v56 }
 0x1b2   :  { %740 = vmatprep.subr.bf16.mxu0 %v543_v61  ;;  %765 = vmatprep.subr.bf16.mxu1 %v575_v62  ;;  %v486_v61 = vld [vmem:[#allocation8 + $0x190] sm:$0xff]  ;;  %v923_v62 = vunpack.c.h.s8.bf16 %v855_v57 }
 0x1b3   :  { %v602_v2 = vunpack.c.h.s8.bf16 %v486_v61  ;;  %v598_v8 = vunpack.c.l.s8.bf16 %v486_v61 }
 0x1b5   :  { %741 = vmatpush2.bf16.msra.mxu0 %v542_v4  ;;  %766 = vmatpush1.bf16.msra.mxu1 %v574_v5  ;;  %v922_v4 = vunpack.c.h.s8.bf16 %v854_v63  ;;  %v599_v5 = vunpack.c.l.s8.bf16 %v487_v56 }
 0x1b6   :  { %742 = vmatprep.subr.bf16.mxu0 %v539_v6  ;;  %767 = vmatprep.subr.bf16.mxu1 %v571_v7  ;;  %v919_v6 = vunpack.c.l.s8.bf16 %v855_v57  ;;  %v883_v7 = vld [vmem:[#allocation10 + $0xe8] sm:$0xff] }
 0x1b9   :  { %743 = vmatpush2.bf16.msra.mxu0 %v538_v10  ;;  %768 = vmatpush1.bf16.msra.mxu1 %v570_v0  ;;  %v979_v10 = vunpack.c.h.s8.bf16 %v883_v7  ;;  %v882_v0 = vld [vmem:[#allocation10 + $0xe0] sm:$0xff] }
 0x1ba   :  { %744 = vmatprep.subr.bf16.mxu0 %v535_v11  ;;  %769 = vmatprep.subr.bf16.mxu1 %v567_v12  ;;  %v978_v11 = vunpack.c.h.s8.bf16 %v882_v0  ;;  %v975_v12 = vunpack.c.l.s8.bf16 %v883_v7  ;;  %v974_v14 = vunpack.c.l.s8.bf16 %v882_v0  ;;  %v910_v0 = vld [vmem:[#allocation10 + $0x1c0] sm:$0xff] }
 0x1bd   :  { %745 = vmatpush2.bf16.msra.mxu0 %v534_v15  ;;  %770 = vmatpush1.bf16.msra.mxu1 %v566_v16  ;;  %v971_v15 = vunpack.c.h.s8.bf16 %v879_v13  ;;  %v878_v16 = vld [vmem:[#allocation10 + $0xc0] sm:$0xff]  ;;  %v1030_v13 = vunpack.c.l.s8.bf16 %v910_v0 }
 0x1be   :  { %771 = vmatprep.subr.bf16.mxu1 %v627_v17  ;;  %1050 = vmatprep.subr.bf16.mxu0 %v947_v19  ;;  %v970_v17 = vunpack.c.h.s8.bf16 %v878_v16  ;;  %v875_v19 = vld [vmem:[#allocation10 + $0xa8] sm:$0xff]  ;;  %v966_v20 = vunpack.c.l.s8.bf16 %v878_v16  ;;  %v906_v16 = vld [vmem:[#allocation10 + $0x1a0] sm:$0xff] }
 0x1c0   :  { %747 = vmatmul.mubr.bf16.vlgmr.msra.gmra.mxu0 %v3109_v51  ;;  %v859_v51 = vld [vmem:[#allocation10 + $0x28] sm:$0xff] }
 0x1c1   :  { %772 = vmatpush2.bf16.msra.mxu1 %v626_v21  ;;  %1051 = vmatpush1.bf16.msra.mxu0 %v946_v23  ;;  %v931_v49 = vunpack.c.h.s8.bf16 %v859_v51  ;;  %v927_v55 = vunpack.c.l.s8.bf16 %v859_v51  ;;  %v899_v21 = vld [vmem:[#allocation10 + $0x168] sm:$0xff]  ;;  %v963_v23 = vunpack.c.h.s8.bf16 %v875_v19 }
 0x1c2   :  { %773 = vmatprep.subr.bf16.mxu1 %v623_v24  ;;  %1052 = vmatprep.subr.bf16.mxu0 %v943_v25  ;;  %v874_v24 = vld [vmem:[#allocation10 + $0xa0] sm:$0xff]  ;;  %v1011_v25 = vunpack.c.h.s8.bf16 %v899_v21 }
 0x1c3   :  { %v962_v29 = vunpack.c.h.s8.bf16 %v874_v24 }
 0x1c5   :  { %774 = vmatpush2.bf16.msra.mxu1 %v622_v31  ;;  %1053 = vmatpush1.bf16.msra.mxu0 %v942_v33  ;;  %v959_v31 = vunpack.c.l.s8.bf16 %v875_v19  ;;  %v871_v33 = vld [vmem:[#allocation10 + $0x88] sm:$0xff]  ;;  %v1022_v19 = vunpack.c.l.s8.bf16 %v906_v16 }
 0x1c6   :  { %775 = vmatprep.subr.bf16.mxu1 %v619_v35  ;;  %1054 = vmatprep.subr.bf16.mxu0 %v939_v37  ;;  %v1007_v35 = vunpack.c.l.s8.bf16 %v899_v21  ;;  %v958_v37 = vunpack.c.l.s8.bf16 %v874_v24  ;;  %v955_v38 = vunpack.c.h.s8.bf16 %v871_v33 }
 0x1c9   :  { %776 = vmatpush2.bf16.msra.mxu1 %v618_v39  ;;  %1055 = vmatpush1.bf16.msra.mxu0 %v938_v40  ;;  %v870_v39 = vld [vmem:[#allocation10 + $0x80] sm:$0xff]  ;;  %v895_v40 = vld [vmem:[#allocation10 + $0x148] sm:$0xff] }
 0x1ca   :  { %777 = vmatprep.subr.bf16.mxu1 %v615_v41  ;;  %1056 = vmatprep.subr.bf16.mxu0 %v935_v42  ;;  %v1003_v41 = vunpack.c.h.s8.bf16 %v895_v40  ;;  %v894_v42 = vld [vmem:[#allocation10 + $0x140] sm:$0xff]  ;;  %v954_v51 = vunpack.c.h.s8.bf16 %v870_v39 }
 0x1cb   :  { %v1002_v43 = vunpack.c.h.s8.bf16 %v894_v42  ;;  %v998_v26 = vunpack.c.l.s8.bf16 %v894_v42 }
 0x1cd   :  { %778 = vmatpush2.bf16.msra.mxu1 %v614_v44  ;;  %1057 = vmatpush1.bf16.msra.mxu0 %v934_v46  ;;  %v951_v44 = vunpack.c.l.s8.bf16 %v871_v33  ;;  %v3139_v46 = vld [vmem:[#allocation10 + $0x78] sm:$0xff] }
 0x1ce   :  { %779 = vmatprep.subr.bf16.mxu1 %v611_v47  ;;  %1058 = vmatprep.subr.bf16.mxu0 %v931_v49  ;;  %v999_v47 = vunpack.c.l.s8.bf16 %v895_v40  ;;  %v950_v49 = vunpack.c.l.s8.bf16 %v870_v39  ;;  %v949_v50 = vunpack.c.h.s8.bf16 %v3139_v46 }
 0x1d1   :  { %780 = vmatpush2.bf16.msra.mxu1 %v610_v52  ;;  %1059 = vmatpush1.bf16.msra.mxu0 %v930_v53  ;;  %v891_v52 = vld [vmem:[#allocation10 + $0x128] sm:$0xff] }
 0x1d2   :  { %781 = vmatprep.subr.bf16.mxu1 %v607_v54  ;;  %1060 = vmatprep.subr.bf16.mxu0 %v927_v55  ;;  %v995_v53 = vunpack.c.h.s8.bf16 %v891_v52  ;;  %v890_v54 = vld [vmem:[#allocation10 + $0x120] sm:$0xff]  ;;  %v991_v56 = vunpack.c.l.s8.bf16 %v891_v52 }
 0x1d3   :  { %v994_v55 = vunpack.c.h.s8.bf16 %v890_v54  ;;  %v990_v57 = vunpack.c.l.s8.bf16 %v890_v54 }
 0x1d5   :  { %782 = vmatpush2.bf16.msra.mxu1 %v606_v58  ;;  %1061 = vmatpush1.bf16.msra.mxu0 %v926_v59  ;;  %v887_v58 = vld [vmem:[#allocation10 + $0x108] sm:$0xff] }
 0x1d6   :  { %783 = vmatprep.subr.bf16.mxu1 %v603_v60  ;;  %1062 = vmatprep.subr.bf16.mxu0 %v923_v62  ;;  %v987_v59 = vunpack.c.h.s8.bf16 %v887_v58  ;;  %v886_v60 = vld [vmem:[#allocation10 + $0x100] sm:$0xff]  ;;  %v983_v62 = vunpack.c.l.s8.bf16 %v887_v58 }
 0x1d7   :  { %v986_v61 = vunpack.c.h.s8.bf16 %v886_v60  ;;  %v982_v63 = vunpack.c.l.s8.bf16 %v886_v60 }
 0x1d9   :  { %784 = vmatpush2.bf16.msra.mxu1 %v602_v2  ;;  %1063 = vmatpush1.bf16.msra.mxu0 %v922_v4  ;;  %v915_v2 = vld [vmem:[#allocation10 + $0x1e8] sm:$0xff] }
 0x1da   :  { %785 = vmatprep.subr.bf16.mxu1 %v599_v5  ;;  %1064 = vmatprep.subr.bf16.mxu0 %v919_v6  ;;  %v1043_v4 = vunpack.c.h.s8.bf16 %v915_v2  ;;  %v914_v5 = vld [vmem:[#allocation10 + $0x1e0] sm:$0xff]  ;;  %v1039_v7 = vunpack.c.l.s8.bf16 %v915_v2 }
 0x1db   :  { %v1042_v6 = vunpack.c.h.s8.bf16 %v914_v5 }
 0x1dd   :  { %786 = vmatpush2.bf16.msra.mxu1 %v598_v8  ;;  %1065 = vmatpush1.bf16.msra.mxu0 %v918_v9  ;;  %v1038_v8 = vunpack.c.l.s8.bf16 %v914_v5  ;;  %v911_v9 = vld [vmem:[#allocation10 + $0x1c8] sm:$0xff] }
 0x1de   :  { %1066 = vmatprep.subr.bf16.mxu0 %v979_v10  ;;  %1091 = vmatprep.subr.bf16.mxu1 %v1011_v25  ;;  %v1035_v10 = vunpack.c.h.s8.bf16 %v911_v9 }
 0x1e0   :  { %788 = vmatmul.mubr.bf16.vlgmr.msra.gmra.mxu1 %v3133_v34  ;;  %v1010_v34 = vunpack.c.h.s8.bf16 %v898_v27 }
 0x1e1   :  { %1067 = vmatpush2.bf16.msra.mxu0 %v978_v11  ;;  %v1034_v11 = vunpack.c.h.s8.bf16 %v910_v0 }
 0x1e2   :  { %1068 = vmatprep.subr.bf16.mxu0 %v975_v12  ;;  %1092 = vmatpush1.bf16.msra.mxu1 %v1010_v34  ;;  %v1031_v12 = vunpack.c.l.s8.bf16 %v911_v9  ;;  %v3142_v34 = vld [vmem:[#allocation10 + $0x178] sm:$0xff] }
 0x1e3   :  { %1093 = vmatprep.subr.bf16.mxu1 %v1007_v35 }
 0x1e5   :  { %1069 = vmatpush2.bf16.msra.mxu0 %v974_v14  ;;  %v907_v14 = vld [vmem:[#allocation10 + $0x1a8] sm:$0xff] }
 0x1e6   :  { %1070 = vmatprep.subr.bf16.mxu0 %v971_v15  ;;  %1094 = vmatpush1.bf16.msra.mxu1 %v1006_v36  ;;  %v1027_v15 = vunpack.c.h.s8.bf16 %v907_v14 }
 0x1e7   :  { %1095 = vmatprep.subr.bf16.mxu1 %v1003_v41 }
 0x1e9   :  { %1071 = vmatpush2.bf16.msra.mxu0 %v970_v17  ;;  %v1026_v17 = vunpack.c.h.s8.bf16 %v906_v16 }
 0x1ea   :  { %1072 = vmatprep.subr.bf16.mxu0 %v967_v18  ;;  %1096 = vmatpush1.bf16.msra.mxu1 %v1002_v43  ;;  %v1023_v18 = vunpack.c.l.s8.bf16 %v907_v14 }
 0x1eb   :  { %1097 = vmatprep.subr.bf16.mxu1 %v999_v47 }
 0x1ed   :  { %1073 = vmatpush2.bf16.msra.mxu0 %v966_v20  ;;  %v903_v20 = vld [vmem:[#allocation10 + $0x188] sm:$0xff] }
 0x1ee   :  { %1074 = vmatprep.subr.bf16.mxu0 %v963_v23  ;;  %1098 = vmatpush1.bf16.msra.mxu1 %v998_v26  ;;  %v1019_v21 = vunpack.c.h.s8.bf16 %v903_v20  ;;  %v902_v23 = vld [vmem:[#allocation10 + $0x180] sm:$0xff]  ;;  %v1015_v25 = vunpack.c.l.s8.bf16 %v903_v20  ;;  %v885_v20 = vld [vmem:[#allocation10 + $0xf8] sm:$0xff] }
 0x1ef   :  { %1099 = vmatprep.subr.bf16.mxu1 %v995_v53  ;;  %v1018_v24 = vunpack.c.h.s8.bf16 %v902_v23  ;;  %v1014_v27 = vunpack.c.l.s8.bf16 %v902_v23 }
 0x1f1   :  { %1075 = vmatpush2.bf16.msra.mxu0 %v962_v29  ;;  %v1013_v29 = vunpack.c.h.s8.bf16 %v3142_v34 }
 0x1f2   :  { %1076 = vmatprep.subr.bf16.mxu0 %v959_v31  ;;  %1100 = vmatpush1.bf16.msra.mxu1 %v994_v55 }
 0x1f3   :  { %1101 = vmatprep.subr.bf16.mxu1 %v991_v56  ;;  %v868_v56 = vld [vmem:[#allocation10 + $0x70] sm:$0xff] }
 0x1f5   :  { %1077 = vmatpush2.bf16.msra.mxu0 %v958_v37  ;;  %v3145_v37 = vld [vmem:[#allocation5 + $0x8] ss:$2 sm:$0xf] }
 0x1f6   :  { %1078 = vmatprep.subr.bf16.mxu0 %v955_v38  ;;  %1102 = vmatpush1.bf16.msra.mxu1 %v990_v57  ;;  %v3147_v38 = vld [vmem:[#allocation5 + $0x9] ss:$2 sm:$0xf]  ;;  %v800_v39 = vrot.slane %v3145_v37, %v3085_v30  ;;  %v804_v43 = vrot.slane %v3145_v37, %v3089_v32 }
 0x1f7   :  { %1103 = vmatprep.subr.bf16.mxu1 %v987_v59  ;;  %v825_v42 = vrot.slane %v3147_v38, %v3085_v30  ;;  %v829_v26 = vrot.slane %v3147_v38, %v3089_v32  ;;  %v948_v59 = vunpack.c.h.s8.bf16 %v868_v56 }
 0x1f9   :  { %1079 = vmatpush2.bf16.msra.mxu0 %v954_v51 }
 0x1fa   :  { %1080 = vmatprep.subr.bf16.mxu0 %v951_v44  ;;  %1104 = vmatpush1.bf16.msra.mxu1 %v986_v61  ;;  %v945_v61 = vunpack.c.l.s8.bf16 %v3139_v46  ;;  %v860_v46 = vld [vmem:[#allocation10 + $0x30] sm:$0xff] }
 0x1fb   :  { %1105 = vmatprep.subr.bf16.mxu1 %v983_v62  ;;  %v865_v62 = vld [vmem:[#allocation10 + $0x58] sm:$0xff] }
 0x1fc   :  { %v941_v2 = vunpack.c.h.s8.bf16 %v865_v62 }
 0x1fd   :  { %1081 = vmatpush2.bf16.msra.mxu0 %v950_v49 }
 0x1fe   :  { %1132 = vmatprep.subr.bf16.mxu0 %v949_v50  ;;  %1106 = vmatpush1.bf16.msra.mxu1 %v982_v63  ;;  %v944_v63 = vunpack.c.l.s8.bf16 %v868_v56  ;;  %v833_v56 = vrot.slane %v3147_v38, %v3113_v1 }
 0x1ff   :  { %1107 = vmatprep.subr.bf16.mxu1 %v1043_v4  ;;  %v864_v4 = vld [vmem:[#allocation10 + $0x50] sm:$0xff] }
 0x200   :  { %v940_v5 = vunpack.c.h.s8.bf16 %v864_v4 }
 0x202   :  { %1108 = vmatpush2.bf16.msra.mxu1 %v1042_v6  ;;  %v937_v6 = vunpack.c.l.s8.bf16 %v865_v62  ;;  %v837_v62 = vrot.slane %v3147_v38, %v3115_v3  ;;  %v1009_v38 = vunpack.c.l.s8.bf16 %v3142_v34 }
 0x203   :  { %1109 = vmatprep.subr.bf16.mxu1 %v1039_v7  ;;  %v861_v7 = vld [vmem:[#allocation10 + $0x38] sm:$0xff] }
 0x204   :  { %v933_v9 = vunpack.c.h.s8.bf16 %v861_v7  ;;  %v929_v0 = vunpack.c.l.s8.bf16 %v861_v7 }
 0x206   :  { %1110 = vmatpush2.bf16.msra.mxu1 %v1038_v8  ;;  %v936_v8 = vunpack.c.l.s8.bf16 %v864_v4 }
 0x207   :  { %1111 = vmatprep.subr.bf16.mxu1 %v1035_v10  ;;  %v932_v10 = vunpack.c.h.s8.bf16 %v860_v46 }
 0x20a   :  { %1112 = vmatpush2.bf16.msra.mxu1 %v1034_v11  ;;  %v857_v11 = vld [vmem:[#allocation10 + $0x18] sm:$0xff] }
 0x20b   :  { %1113 = vmatprep.subr.bf16.mxu1 %v1031_v12  ;;  %v928_v12 = vunpack.c.l.s8.bf16 %v860_v46  ;;  %v925_v14 = vunpack.c.h.s8.bf16 %v857_v11 }
 0x20e   :  { %1114 = vmatpush2.bf16.msra.mxu1 %v1030_v13 }
 0x20f   :  { %1115 = vmatprep.subr.bf16.mxu1 %v1027_v15  ;;  %v856_v15 = vld [vmem:[#allocation10 + $0x10] sm:$0xff] }
 0x210   :  { %v920_v23 = vunpack.c.l.s8.bf16 %v856_v15 }
 0x212   :  { %1116 = vmatpush2.bf16.msra.mxu1 %v1026_v17  ;;  %v924_v17 = vunpack.c.h.s8.bf16 %v856_v15 }
 0x213   :  { %1117 = vmatprep.subr.bf16.mxu1 %v1023_v18 }
 0x216   :  { %1118 = vmatpush2.bf16.msra.mxu1 %v1022_v19  ;;  %v921_v19 = vunpack.c.l.s8.bf16 %v857_v11 }
 0x217   :  { %1119 = vmatprep.subr.bf16.mxu1 %v1019_v21 }
 0x21a   :  { %1120 = vmatpush2.bf16.msra.mxu1 %v1018_v24  ;;  %v981_v24 = vunpack.c.h.s8.bf16 %v885_v20 }
 0x21b   :  { %1121 = vmatprep.subr.bf16.mxu1 %v1015_v25  ;;  %v884_v25 = vld [vmem:[#allocation10 + $0xf0] sm:$0xff] }
 0x21e   :  { %1122 = vmatpush2.bf16.msra.mxu1 %v1014_v27  ;;  %v980_v27 = vunpack.c.h.s8.bf16 %v884_v25 }
 0x21f   :  { %1173 = vmatprep.subr.bf16.mxu1 %v1013_v29  ;;  %v977_v29 = vunpack.c.l.s8.bf16 %v885_v20  ;;  %v1273_v20 = vld [vmem:[#allocation11 + $0x18] sm:$0xff] }
 0x240   :  { %v666_v31 = vpop.f32.mrf.mxu0 }
 0x242   :  { %v668_v33 = vpop.f32.mrf.mxu0 }
 0x244   :  { %v670_v35 = vpop.f32.mrf.mxu0 }
 0x246   :  { %v671_v36 = vpop.f32.mrf.mxu0 }
 0x247   :  { %v880_v36 = vld [vmem:[#allocation10 + $0xd0] sm:$0xff] }
 0x260   :  { %v707_v40 = vpop.f32.mrf.mxu1 }
 0x261   :  { %v708_v41 = vadd.f32 %v707_v40, %v666_v31  ;;  %v881_v31 = vld [vmem:[#allocation10 + $0xd8] sm:$0xff] }
 0x262   :  { %v709_v51 = vpop.f32.mrf.mxu1  ;;  %v973_v35 = vunpack.c.h.s8.bf16 %v881_v31  ;;  %v969_v40 = vunpack.c.l.s8.bf16 %v881_v31  ;;  %v1292_v31 = vunpack.c.l.s8.bf16 %v1273_v20 }
 0x263   :  { %v817_v44 = vmul.f32 %v800_v39, %v708_v41  ;;  %v710_v47 = vadd.f32 %v709_v51, %v668_v33  ;;  %v976_v33 = vunpack.c.l.s8.bf16 %v884_v25  ;;  %v972_v39 = vunpack.c.h.s8.bf16 %v880_v36  ;;  %v877_v41 = vld [vmem:[#allocation10 + $0xb8] sm:$0xff]  ;;  %v876_v51 = vld [vmem:[#allocation10 + $0xb0] sm:$0xff] }
 0x264   :  { %v711_v49 = vpop.f32.mrf.mxu1  ;;  %v1276_v25 = vld [vmem:[#allocation11 + $0x30] sm:$0xff] }
 0x265   :  { %v842_v50 = vadd.f32 %v825_v42, %v817_v44  ;;  %v818_v52 = vmul.f32 %v804_v43, %v710_v47  ;;  %v968_v42 = vunpack.c.l.s8.bf16 %v880_v36  ;;  %v965_v43 = vunpack.c.h.s8.bf16 %v877_v41 }
 0x266   :  { %v712_v53 = vpop.f32.mrf.mxu1  ;;  %v964_v44 = vunpack.c.h.s8.bf16 %v876_v51  ;;  %v961_v47 = vunpack.c.l.s8.bf16 %v877_v41  ;;  %v808_v49 = vrot.slane %v3145_v37, %v3113_v1  ;;  %v889_v41 = vld [vmem:[#allocation10 + $0x118] sm:$0xff] }
 0x267   :  { %v843_v54 = vadd.f32 %v829_v26, %v818_v52  ;;  %v846_v55 = vmax.f32 %v842_v50, 0.0  ;;  %v873_v26 = vld [vmem:[#allocation10 + $0x98] sm:$0xff]  ;;  %v960_v50 = vunpack.c.l.s8.bf16 %v876_v51 }
 0x268   :  { %v957_v53 = vunpack.c.h.s8.bf16 %v873_v26  ;;  %v953_v4 = vunpack.c.l.s8.bf16 %v873_v26 }
 0x269   :  { %v847_v57 = vmax.f32 %v843_v54, 0.0  ;;  %v3157_v60 = vpack.c.bf16 %v846_v55, %v846_v55  ;;  %v872_v54 = vld [vmem:[#allocation10 + $0x90] sm:$0xff] }
 0x26b   :  { %v1047_v58 = vpack.c.bf16 %v847_v57, %v847_v57  ;;  %v812_v57 = vrot.slane %v3145_v37, %v3115_v3  ;;  %v900_v37 = vld [vmem:[#allocation10 + $0x170] sm:$0xff] }
 0x26c   :  { %v1012_v11 = vunpack.c.h.s8.bf16 %v900_v37 }
 0x26d   :  { %1082 = vmatprep.mubr.bf16.mxu0 %v1047_v58 }
 0x26e   :  { %1083 = vmatmul.mubr.bf16.vlgmr.msra.gmra.mxu0 %v3157_v60 }
 0x26f   :  { %1133 = vmatpush1.bf16.msra.mxu0 %v948_v59  ;;  %1164 = vmatprep.mubr.bf16.mxu0 %v1047_v58 }
 0x270   :  { %1134 = vmatprep.subr.bf16.mxu0 %v945_v61 }
 0x273   :  { %1135 = vmatpush1.bf16.msra.mxu0 %v944_v63  ;;  %v956_v63 = vunpack.c.h.s8.bf16 %v872_v54 }
 0x274   :  { %1136 = vmatprep.subr.bf16.mxu0 %v941_v2 }
 0x277   :  { %1137 = vmatpush1.bf16.msra.mxu0 %v940_v5 }
 0x278   :  { %1138 = vmatprep.subr.bf16.mxu0 %v937_v6 }
 0x27b   :  { %1139 = vmatpush1.bf16.msra.mxu0 %v936_v8 }
 0x27c   :  { %1140 = vmatprep.subr.bf16.mxu0 %v933_v9  ;;  %v952_v9 = vunpack.c.l.s8.bf16 %v872_v54 }
 0x27f   :  { %1141 = vmatpush1.bf16.msra.mxu0 %v932_v10 }
 0x280   :  { %v748_v13 = vpop.f32.mrf.mxu0  ;;  %1142 = vmatprep.subr.bf16.mxu0 %v929_v0 }
 0x282   :  { %v750_v16 = vpop.f32.mrf.mxu0 }
 0x283   :  { %1143 = vmatpush1.bf16.msra.mxu0 %v928_v12 }
 0x284   :  { %v752_v18 = vpop.f32.mrf.mxu0  ;;  %1144 = vmatprep.subr.bf16.mxu0 %v925_v14  ;;  %v1008_v14 = vunpack.c.l.s8.bf16 %v900_v37 }
 0x286   :  { %v753_v21 = vpop.f32.mrf.mxu0 }
 0x287   :  { %1145 = vmatpush1.bf16.msra.mxu0 %v924_v17  ;;  %v893_v21 = vld [vmem:[#allocation10 + $0x138] sm:$0xff] }
 0x288   :  { %1146 = vmatprep.subr.bf16.mxu0 %v921_v19  ;;  %v1277_v19 = vld [vmem:[#allocation11 + $0x38] sm:$0xff] }
 0x289   :  { %v1301_v34 = vunpack.c.h.s8.bf16 %v1277_v19 }
 0x28b   :  { %1147 = vmatpush1.bf16.msra.mxu0 %v920_v23  ;;  %v1293_v23 = vunpack.c.h.s8.bf16 %v1273_v20 }
 0x28c   :  { %1148 = vmatprep.subr.bf16.mxu0 %v981_v24  ;;  %v1300_v24 = vunpack.c.l.s8.bf16 %v1277_v19  ;;  %v1274_v19 = vld [vmem:[#allocation11 + $0x20] sm:$0xff] }
 0x28d   :  { %v1295_v20 = vunpack.c.h.s8.bf16 %v1274_v19 }
 0x28f   :  { %1149 = vmatpush2.bf16.msra.mxu0 %v980_v27 }
 0x290   :  { %1150 = vmatprep.subr.bf16.mxu0 %v977_v29  ;;  %v892_v29 = vld [vmem:[#allocation10 + $0x130] sm:$0xff] }
 0x291   :  { %v996_v36 = vunpack.c.h.s8.bf16 %v892_v29  ;;  %v992_v51 = vunpack.c.l.s8.bf16 %v892_v29 }
 0x293   :  { %1151 = vmatpush2.bf16.msra.mxu0 %v976_v33  ;;  %v1299_v33 = vunpack.c.h.s8.bf16 %v1276_v25 }
 0x294   :  { %1152 = vmatprep.subr.bf16.mxu0 %v973_v35  ;;  %v1272_v35 = vld [vmem:[#allocation11 + $0x10] sm:$0xff] }
 0x295   :  { %v1290_v26 = vunpack.c.l.s8.bf16 %v1272_v35 }
 0x297   :  { %1153 = vmatpush2.bf16.msra.mxu0 %v972_v39  ;;  %v993_v39 = vunpack.c.l.s8.bf16 %v893_v21 }
 0x298   :  { %1154 = vmatprep.subr.bf16.mxu0 %v969_v40  ;;  %v1291_v40 = vunpack.c.h.s8.bf16 %v1272_v35 }
 0x29b   :  { %1155 = vmatpush2.bf16.msra.mxu0 %v968_v42  ;;  %v1298_v42 = vunpack.c.l.s8.bf16 %v1276_v25  ;;  %v1285_v25 = vld [vmem:[#allocation11 + $0x78] sm:$0xff] }
 0x29c   :  { %1156 = vmatprep.subr.bf16.mxu0 %v965_v43  ;;  %v3174_v43 = vld [vmem:[#allocation11 + $0x28] sm:$0xff] }
 0x29f   :  { %1157 = vmatpush2.bf16.msra.mxu0 %v964_v44  ;;  %v989_v44 = vunpack.c.h.s8.bf16 %v889_v41 }
 0x2a0   :  { %v789_v52 = vpop.f32.mrf.mxu1  ;;  %1158 = vmatprep.subr.bf16.mxu0 %v961_v47  ;;  %v888_v47 = vld [vmem:[#allocation10 + $0x110] sm:$0xff] }
 0x2a1   :  { %v790_v55 = vadd.f32 %v789_v52, %v748_v13  ;;  %v897_v13 = vld [vmem:[#allocation10 + $0x158] sm:$0xff]  ;;  %v988_v52 = vunpack.c.h.s8.bf16 %v888_v47 }
 0x2a2   :  { %v791_v58 = vpop.f32.mrf.mxu1  ;;  %v1005_v15 = vunpack.c.h.s8.bf16 %v897_v13  ;;  %v1001_v18 = vunpack.c.l.s8.bf16 %v897_v13  ;;  %v904_v13 = vld [vmem:[#allocation10 + $0x190] sm:$0xff] }
 0x2a3   :  { %v819_v59 = vmul.f32 %v808_v49, %v790_v55  ;;  %v792_v61 = vadd.f32 %v791_v58, %v750_v16  ;;  %1159 = vmatpush2.bf16.msra.mxu0 %v960_v50  ;;  %v896_v16 = vld [vmem:[#allocation10 + $0x150] sm:$0xff]  ;;  %v1297_v49 = vunpack.c.h.s8.bf16 %v3174_v43  ;;  %v1271_v50 = vld [vmem:[#allocation11 + $0x8] sm:$0xff]  ;;  %v917_v55 = vld [vmem:[#allocation10 + $0x1f8] sm:$0xff] }
 0x2a4   :  { %v793_v2 = vpop.f32.mrf.mxu1  ;;  %1160 = vmatprep.subr.bf16.mxu0 %v957_v53  ;;  %v1004_v17 = vunpack.c.h.s8.bf16 %v896_v16  ;;  %v1000_v27 = vunpack.c.l.s8.bf16 %v896_v16  ;;  %v985_v53 = vunpack.c.l.s8.bf16 %v889_v41  ;;  %v1289_v54 = vunpack.c.h.s8.bf16 %v1271_v50  ;;  %v916_v58 = vld [vmem:[#allocation10 + $0x1f0] sm:$0xff]  ;;  %v1283_v41 = vld [vmem:[#allocation11 + $0x68] sm:$0xff] }
 0x2a5   :  { %v844_v5 = vadd.f32 %v833_v56, %v819_v59  ;;  %v820_v6 = vmul.f32 %v812_v57, %v792_v61  ;;  %v984_v56 = vunpack.c.l.s8.bf16 %v888_v47  ;;  %v1045_v57 = vunpack.c.h.s8.bf16 %v917_v55 }
 0x2a6   :  { %v794_v7 = vpop.f32.mrf.mxu1  ;;  %v1044_v59 = vunpack.c.h.s8.bf16 %v916_v58  ;;  %v1041_v61 = vunpack.c.l.s8.bf16 %v917_v55  ;;  %v1016_v16 = vunpack.c.l.s8.bf16 %v904_v13  ;;  %v1278_v55 = vld [vmem:[#allocation11 + $0x40] sm:$0xff] }
 0x2a7   :  { %v845_v8 = vadd.f32 %v837_v62, %v820_v6  ;;  %1161 = vmatpush2.bf16.msra.mxu0 %v956_v63  ;;  %v848_v46 = vmax.f32 %v844_v5, 0.0  ;;  %v913_v62 = vld [vmem:[#allocation10 + $0x1d8] sm:$0xff]  ;;  %v1040_v63 = vunpack.c.l.s8.bf16 %v916_v58 }
 0x2a8   :  { %1162 = vmatprep.subr.bf16.mxu0 %v953_v4  ;;  %v1037_v2 = vunpack.c.h.s8.bf16 %v913_v62  ;;  %v912_v4 = vld [vmem:[#allocation10 + $0x1d0] sm:$0xff]  ;;  %v1033_v6 = vunpack.c.l.s8.bf16 %v913_v62  ;;  %v909_v7 = vld [vmem:[#allocation10 + $0x1b8] sm:$0xff] }
 0x2a9   :  { %v849_v10 = vmax.f32 %v845_v8, 0.0  ;;  %v3169_v12 = vpack.c.bf16 %v848_v46, %v848_v46  ;;  %v1036_v5 = vunpack.c.h.s8.bf16 %v912_v4  ;;  %v1032_v8 = vunpack.c.l.s8.bf16 %v912_v4  ;;  %v908_v46 = vld [vmem:[#allocation10 + $0x1b0] sm:$0xff]  ;;  %v228_v62 = vld [vmem:[%s3333_s2] sm:$0xff] }
 0x2aa   :  { %v1028_v37 = vunpack.c.h.s8.bf16 %v908_v46 }
 0x2ab   :  { %1163 = vmatpush2.bf16.msra.mxu0 %v952_v9  ;;  %v1049_v0 = vpack.c.bf16 %v849_v10, %v849_v10  ;;  %v1029_v9 = vunpack.c.h.s8.bf16 %v909_v7  ;;  %v1025_v10 = vunpack.c.l.s8.bf16 %v909_v7  ;;  %v3190_v7 = vld [vmem:[#allocation5 + $0x11] ss:$2 sm:$0xf] }
 0x2ac   :  { %2552 = vmatprep.subr.bf16.mxu0 %v1301_v34 }
 0x2ad   :  { %1123 = vmatprep.mubr.bf16.mxu1 %v1049_v0 }
 0x2ae   :  { %1124 = vmatmul.mubr.bf16.vlgmr.msra.gmra.mxu1 %v3169_v12  ;;  %1165 = vmatmul.mubr.bf16.vlgmr.msra.gmra.mxu0 %v3157_v60  ;;  %v997_v60 = vunpack.c.h.s8.bf16 %v893_v21  ;;  %v1270_v21 = vld [vmem:[#allocation11] sm:$0xff] }
 0x2af   :  { %1174 = vmatpush1.bf16.msra.mxu1 %v1012_v11  ;;  %1205 = vmatprep.mubr.bf16.mxu1 %v1049_v0  ;;  %v905_v0 = vld [vmem:[#allocation10 + $0x198] sm:$0xff]  ;;  %v1024_v11 = vunpack.c.l.s8.bf16 %v908_v46  ;;  %v1287_v34 = vunpack.c.h.s8.bf16 %v1270_v21 }
 0x2b0   :  { %1175 = vmatprep.subr.bf16.mxu1 %v1009_v38  ;;  %2553 = vmatpush3.bf16.msra.mxu0 %v1293_v23  ;;  %v1021_v38 = vunpack.c.h.s8.bf16 %v905_v0  ;;  %v1294_v23 = vunpack.c.l.s8.bf16 %v1274_v19 }
 0x2b1   :  { %2554 = vmatprep.subr.bf16.mxu0 %v1300_v24  ;;  %v1286_v24 = vunpack.c.l.s8.bf16 %v1270_v21 }
 0x2b3   :  { %1176 = vmatpush1.bf16.msra.mxu1 %v1008_v14  ;;  %v1020_v14 = vunpack.c.h.s8.bf16 %v904_v13 }
 0x2b4   :  { %1177 = vmatprep.subr.bf16.mxu1 %v1005_v15  ;;  %2555 = vmatpush3.bf16.msra.mxu0 %v1292_v31  ;;  %v1017_v15 = vunpack.c.l.s8.bf16 %v905_v0  ;;  %v1284_v31 = vld [vmem:[#allocation11 + $0x70] sm:$0xff] }
 0x2b5   :  { %2556 = vmatprep.subr.bf16.mxu0 %v1299_v33  ;;  %v1315_v35 = vunpack.c.h.s8.bf16 %v1284_v31 }
 0x2b7   :  { %1178 = vmatpush1.bf16.msra.mxu1 %v1004_v17  ;;  %v1296_v17 = vunpack.c.l.s8.bf16 %v3174_v43  ;;  %v1313_v43 = vunpack.c.h.s8.bf16 %v1283_v41 }
 0x2b8   :  { %1179 = vmatprep.subr.bf16.mxu1 %v1001_v18  ;;  %2557 = vmatpush3.bf16.msra.mxu0 %v1291_v40  ;;  %v1288_v18 = vunpack.c.l.s8.bf16 %v1271_v50  ;;  %v1314_v40 = vunpack.c.l.s8.bf16 %v1284_v31  ;;  %v1499_v31 = vld [vmem:[#allocation13 + $0x28] sm:$0xff] }
 0x2b9   :  { %2558 = vmatprep.subr.bf16.mxu0 %v1298_v42 }
 0x2bb   :  { %1180 = vmatpush1.bf16.msra.mxu1 %v1000_v27  ;;  %v1281_v27 = vld [vmem:[#allocation11 + $0x58] sm:$0xff] }
 0x2bc   :  { %1181 = vmatprep.subr.bf16.mxu1 %v997_v60  ;;  %2559 = vmatpush3.bf16.msra.mxu0 %v1290_v26  ;;  %v1317_v60 = vunpack.c.h.s8.bf16 %v1285_v25  ;;  %v1309_v29 = vunpack.c.h.s8.bf16 %v1281_v27  ;;  %v1308_v33 = vunpack.c.l.s8.bf16 %v1281_v27  ;;  %v1312_v26 = vunpack.c.l.s8.bf16 %v1283_v41 }
 0x2bd   :  { %2560 = vmatprep.subr.bf16.mxu0 %v1297_v49 }
 0x2bf   :  { %1182 = vmatpush1.bf16.msra.mxu1 %v996_v36  ;;  %v1280_v36 = vld [vmem:[#allocation11 + $0x50] sm:$0xff] }
 0x2c0   :  { %1183 = vmatprep.subr.bf16.mxu1 %v993_v39  ;;  %2561 = vmatpush3.bf16.msra.mxu0 %v1289_v54  ;;  %v1307_v39 = vunpack.c.h.s8.bf16 %v1280_v36  ;;  %v1306_v42 = vunpack.c.l.s8.bf16 %v1280_v36  ;;  %v1498_v36 = vld [vmem:[#allocation13 + $0x20] sm:$0xff] }
 0x2c1   :  { %2562 = vmatprep.subr.bf16.mxu0 %v1296_v17  ;;  %v1550_v41 = vunpack.c.l.s8.bf16 %v1498_v36 }
 0x2c3   :  { %1184 = vmatpush1.bf16.msra.mxu1 %v992_v51  ;;  %v1279_v51 = vld [vmem:[#allocation11 + $0x48] sm:$0xff] }
 0x2c4   :  { %1185 = vmatprep.subr.bf16.mxu1 %v989_v44  ;;  %2563 = vmatpush3.bf16.msra.mxu0 %v1288_v18  ;;  %v1305_v44 = vunpack.c.h.s8.bf16 %v1279_v51  ;;  %v1304_v49 = vunpack.c.l.s8.bf16 %v1279_v51 }
 0x2c5   :  { %2564 = vmatprep.subr.bf16.mxu0 %v1295_v20 }
 0x2c7   :  { %1186 = vmatpush1.bf16.msra.mxu1 %v988_v52  ;;  %v1282_v52 = vld [vmem:[#allocation11 + $0x60] sm:$0xff] }
 0x2c8   :  { %1187 = vmatprep.subr.bf16.mxu1 %v985_v53  ;;  %2565 = vmatpush3.bf16.msra.mxu0 %v1287_v34  ;;  %v1311_v54 = vunpack.c.h.s8.bf16 %v1282_v52  ;;  %v1310_v58 = vunpack.c.l.s8.bf16 %v1282_v52 }
 0x2c9   :  { %2566 = vmatprep.subr.bf16.mxu0 %v1294_v23 }
 0x2cb   :  { %1188 = vmatpush1.bf16.msra.mxu1 %v984_v56  ;;  %v1303_v56 = vunpack.c.h.s8.bf16 %v1278_v55 }
 0x2cc   :  { %1189 = vmatprep.subr.bf16.mxu1 %v1045_v57  ;;  %2567 = vmatpush3.bf16.msra.mxu0 %v1286_v24  ;;  %v1500_v24 = vld [vmem:[#allocation13 + $0x30] sm:$0xff] }
 0x2cf   :  { %1190 = vmatpush2.bf16.msra.mxu1 %v1044_v59  ;;  %v227_v59 = vld [vmem:[%s3332_s1] sm:$0xff] }
 0x2d0   :  { %1191 = vmatprep.subr.bf16.mxu1 %v1041_v61  ;;  %v1302_v61 = vunpack.c.l.s8.bf16 %v1278_v55  ;;  %1429 = vperm.xlu0 %2616, %v227_v59   ;;  %v1507_v59 = vld [vmem:[#allocation13 + $0x68] sm:$0xff] }
 0x2d3   :  { %1192 = vmatpush2.bf16.msra.mxu1 %v1040_v63  ;;  %v1501_v63 = vld [vmem:[#allocation13 + $0x38] sm:$0xff] }
 0x2d4   :  { %1193 = vmatprep.subr.bf16.mxu1 %v1037_v2  ;;  %v3185_v2 = vld [vmem:[#allocation13 + $0xb8] sm:$0xff]  ;;  %1435 = vperm.xlu0 %2616, %v228_v62   ;;  %v1557_v4 = vunpack.c.h.s8.bf16 %v1501_v63 }
 0x2d6   :  { %1644 = vmatprep.subr.bf16.mxu0 %v1557_v4  ;;  %v1506_v4 = vld [vmem:[#allocation13 + $0x60] sm:$0xff] }
 0x2d7   :  { %1194 = vmatpush2.bf16.msra.mxu1 %v1036_v5  ;;  %v1589_v5 = vunpack.c.h.s8.bf16 %v3185_v2 }
 0x2d8   :  { %1195 = vmatprep.subr.bf16.mxu1 %v1033_v6  ;;  %v3188_v6 = vld [vmem:[#allocation5 + $0x10] ss:$2 sm:$0xf] }
 0x2d9   :  { %v1222_v0 = vrot.slane %v3188_v6, %v3089_v32 }
 0x2db   :  { %1196 = vmatpush2.bf16.msra.mxu1 %v1032_v8  ;;  %v1218_v8 = vrot.slane %v3188_v6, %v3085_v30 }
 0x2dc   :  { %1197 = vmatprep.subr.bf16.mxu1 %v1029_v9 }
 0x2df   :  { %1198 = vmatpush2.bf16.msra.mxu1 %v1028_v37 }
 0x2e0   :  { %1199 = vmatprep.subr.bf16.mxu1 %v1025_v10  ;;  %v1243_v10 = vrot.slane %v3190_v7, %v3085_v30 }
 0x2e3   :  { %1200 = vmatpush2.bf16.msra.mxu1 %v1024_v11 }
 0x2e4   :  { %1201 = vmatprep.subr.bf16.mxu1 %v1021_v38 }
 0x2e7   :  { %1202 = vmatpush2.bf16.msra.mxu1 %v1020_v14 }
 0x2e8   :  { %1203 = vmatprep.subr.bf16.mxu1 %v1017_v15  ;;  %v1247_v15 = vrot.slane %v3190_v7, %v3089_v32 }
 0x2eb   :  { %1204 = vmatpush2.bf16.msra.mxu1 %v1016_v16 }
 0x2ec   :  { %2574 = vmatprep.subr.bf16.mxu1 %v1317_v60  ;;  %v1556_v60 = vunpack.c.h.s8.bf16 %v1500_v24 }
 0x2ee   :  { %1206 = vmatmul.mubr.bf16.vlgmr.msra.gmra.mxu1 %v3169_v12  ;;  %v1316_v12 = vunpack.c.l.s8.bf16 %v1285_v25 }
 0x2ef   :  { %2575 = vmatpush3.bf16.msra.mxu1 %v1309_v29 }
 0x2f0   :  { %2576 = vmatprep.subr.bf16.mxu1 %v1316_v12  ;;  %v1555_v12 = vunpack.c.l.s8.bf16 %v1501_v63  ;;  %v1569_v63 = vunpack.c.h.s8.bf16 %v1507_v59 }
 0x2f3   :  { %2577 = vmatpush3.bf16.msra.mxu1 %v1308_v33  ;;  %v1554_v33 = vunpack.c.l.s8.bf16 %v1500_v24  ;;  %v213_v24 = vld [vmem:[#allocation2 + $0x10] sm:$0xff] }
 0x2f4   :  { %2578 = vmatprep.subr.bf16.mxu1 %v1315_v35  ;;  %v1553_v35 = vunpack.c.h.s8.bf16 %v1499_v31 }
 0x2f7   :  { %2579 = vmatpush3.bf16.msra.mxu1 %v1307_v39  ;;  %v1552_v39 = vunpack.c.h.s8.bf16 %v1498_v36  ;;  %v1230_v36 = vrot.slane %v3188_v6, %v3115_v3 }
 0x2f8   :  { %2580 = vmatprep.subr.bf16.mxu1 %v1314_v40  ;;  %v1551_v40 = vunpack.c.l.s8.bf16 %v1499_v31 }
 0x2fb   :  { %2581 = vmatpush3.bf16.msra.mxu1 %v1306_v42  ;;  %v1496_v42 = vld [vmem:[#allocation13 + $0x10] sm:$0xff] }
 0x2fc   :  { %2582 = vmatprep.subr.bf16.mxu1 %v1313_v43  ;;  %v1548_v43 = vunpack.c.h.s8.bf16 %v1496_v42 }
 0x2ff   :  { %2583 = vmatpush3.bf16.msra.mxu1 %v1305_v44  ;;  %v1495_v44 = vld [vmem:[#allocation13 + $0x8] sm:$0xff] }
 0x300   :  { %2584 = vmatprep.subr.bf16.mxu1 %v1312_v26  ;;  %v1545_v26 = vunpack.c.h.s8.bf16 %v1495_v44  ;;  %v1543_v52 = vunpack.c.l.s8.bf16 %v1495_v44  ;;  %v1255_v44 = vrot.slane %v3190_v7, %v3115_v3 }
 0x303   :  { %2585 = vmatpush3.bf16.msra.mxu1 %v1304_v49  ;;  %v1494_v49 = vld [vmem:[#allocation13] sm:$0xff] }
 0x304   :  { %2586 = vmatprep.subr.bf16.mxu1 %v1311_v54  ;;  %v1542_v54 = vunpack.c.l.s8.bf16 %v1494_v49 }
 0x307   :  { %2587 = vmatpush3.bf16.msra.mxu1 %v1303_v56  ;;  %v1508_v56 = vld [vmem:[#allocation13 + $0x70] sm:$0xff] }
 0x308   :  { %2588 = vmatprep.subr.bf16.mxu1 %v1310_v58  ;;  %v1570_v62 = vunpack.c.l.s8.bf16 %v1508_v56 }
 0x30b   :  { %2589 = vmatpush3.bf16.msra.mxu1 %v1302_v61  ;;  %v3209_v61 = vld [vmem:[%s3334_s3 + $0x5] sm:$0x7] }
 0x30c   :  { %1685 = vmatprep.subr.bf16.mxu1 %v1589_v5  ;;  %v2551_v5 = vld [vmem:[%s3334_s3 + $0x1] ss:$0 sm:$0xff] }
 0x30d   :  { %2619 = vrcp.f32 %v2551_v5 }
 0x31a   :  { %v2620_v31 = vpop.eup %2619 }
 0x32e   :  { %v1084_v47 = vpop.f32.mrf.mxu0 }
 0x330   :  { %v1086_v50 = vpop.f32.mrf.mxu0 }
 0x332   :  { %v1088_v53 = vpop.f32.mrf.mxu0 }
 0x333   :  { %v1509_v53 = vld [vmem:[#allocation13 + $0x78] sm:$0xff] }
 0x334   :  { %v1089_v57 = vpop.f32.mrf.mxu0  ;;  %v1573_v55 = vunpack.c.h.s8.bf16 %v1509_v53  ;;  %v1571_v58 = vunpack.c.l.s8.bf16 %v1509_v53 }
 0x335   :  { %v1572_v57 = vunpack.c.h.s8.bf16 %v1508_v56 }
 0x36e   :  { %v1125_v9 = vpop.f32.mrf.mxu1  ;;  %v3194_v46 = vpop.f32.mrf.mxu0 }
 0x36f   :  { %v1126_v37 = vadd.f32 %v1125_v9, %v1084_v47  ;;  %v1546_v47 = vunpack.c.l.s8.bf16 %v1496_v42  ;;  %v1471_v9 = vrot.slane %v3209_v61, %v3113_v1 }
 0x370   :  { %v1127_v11 = vpop.f32.mrf.mxu1  ;;  %v3200_v38 = vpop.f32.mrf.mxu0 }
 0x371   :  { %v1235_v13 = vmul.f32 %v1218_v8, %v1126_v37  ;;  %v1128_v14 = vadd.f32 %v1127_v11, %v1086_v50  ;;  %v1544_v50 = vunpack.c.h.s8.bf16 %v1494_v49  ;;  %v1463_v8 = vrot.slane %v3209_v61, %v3085_v30 }
 0x372   :  { %v1129_v16 = vpop.f32.mrf.mxu1  ;;  %v1170_v17 = vpop.f32.mrf.mxu0  ;;  %v1568_v37 = vunpack.c.h.s8.bf16 %v1506_v4  ;;  %v1566_v11 = vunpack.c.l.s8.bf16 %v1506_v4 }
 0x373   :  { %v1260_v18 = vadd.f32 %v1243_v10, %v1235_v13  ;;  %v1236_v19 = vmul.f32 %v1222_v0, %v1128_v14  ;;  %v1567_v10 = vunpack.c.l.s8.bf16 %v1507_v59  ;;  %v1505_v0 = vld [vmem:[#allocation13 + $0x58] sm:$0xff]  ;;  %2621 = vrcp.f32 %v1463_v8  ;;  %v1504_v14 = vld [vmem:[#allocation13 + $0x50] sm:$0xff] }
 0x374   :  { %v1130_v20 = vpop.f32.mrf.mxu1  ;;  %v1171_v21 = vpop.f32.mrf.mxu0  ;;  %2623 = vrcp.f32 %v1471_v9  ;;  %v1565_v13 = vunpack.c.h.s8.bf16 %v1505_v0  ;;  %v3221_v16 = vld [vmem:[%s3334_s3 + $0x2] sm:$0x7]  ;;  %v1563_v17 = vunpack.c.l.s8.bf16 %v1505_v0 }
 0x375   :  { %v1261_v34 = vadd.f32 %v1247_v15, %v1236_v19  ;;  %v1264_v23 = vadd.f32 %v1260_v18, %v3101_v45  ;;  %v1497_v45 = vld [vmem:[#allocation13 + $0x18] sm:$0xff]  ;;  %v1564_v15 = vunpack.c.h.s8.bf16 %v1504_v14  ;;  %v1503_v18 = vld [vmem:[#allocation13 + $0x48] sm:$0xff]  ;;  %v1444_v21 = vrot.slane %v3221_v16, %v3085_v30 }
 0x376   :  { %v1547_v51 = vunpack.c.l.s8.bf16 %v1497_v45  ;;  %v211_v19 = vld [vmem:[#allocation2] sm:$0xff] }
 0x377   :  { %v1265_v25 = vadd.f32 %v1261_v34, %v3103_v48  ;;  %v1318_v29 = vpack.c.bf16 %v1264_v23, %v1264_v23  ;;  %v1549_v48 = vunpack.c.h.s8.bf16 %v1497_v45  ;;  %v2550_v20 = vld [vmem:[%s3334_s3] ss:$0 sm:$0xff]  ;;  %v1452_v34 = vrot.slane %v3221_v16, %v3113_v1  ;;  %s2922_s3 = smov [#allocation22]  }
 0x378   :  { %v1226_v23 = vrot.slane %v3188_v6, %v3113_v1  ;;  %v3240_v6 = vpop.permute.xlu0 %1429  ;;  %s2531_s20 = sshll.u32 %s2922_s3, 4  ;;  %s2532_s20 = int_to_ptr.vmem [resolvable:$true] %s2531_s20 }
 0x379   :  { %v1319_v27 = vpack.c.bf16 %v1265_v25, %v1265_v25  ;;  %v215_v25 = vld [vmem:[#allocation2 + $0x20] sm:$0xff]  ;;  %s2867_s7 = scalar_lea.vmem %s2532_s20, 512  ;;  %p2872_p5 = scmp.lt.s32.totalorder %s2532_s20, %s2532_s20 }
 0x37a   :  { %p2868_p4 = scmp.ne.s32.totalorder %s2532_s20, %s2867_s7  ;;  %p2873_p6 = scmp.lt.s32.totalorder %s2867_s7, %s2867_s7 }
 0x37b   :  { %1354 = vmatprep.mubr.bf16.mxu0 %v1319_v27  ;;  %v1562_v27 = vunpack.c.l.s8.bf16 %v1504_v14 }
 0x37c   :  { %1355 = vmatmul.mubr.bf16.vlgmr.msra.gmra.mxu0 %v1318_v29  ;;  %v1561_v29 = vunpack.c.h.s8.bf16 %v1503_v18  ;;  %v3247_v8 = vpop.permute.xlu0 %1435  ;;  %p2874_p7 = por %p2873_p6, %p2872_p5 }
 0x37d   :  { %1645 = vmatpush1.bf16.msra.mxu0 %v1556_v60 }
 0x37e   :  { %1646 = vmatprep.subr.bf16.mxu0 %v1555_v12  ;;  %v1502_v12 = vld [vmem:[#allocation13 + $0x40] sm:$0xff]  ;;  %p2875_p8 = pnand %p2874_p7, %p2868_p4 }
 0x381   :  { %1647 = vmatpush1.bf16.msra.mxu0 %v1554_v33 }
 0x382   :  { %1648 = vmatprep.subr.bf16.mxu0 %v1553_v35  ;;  %v1251_v35 = vrot.slane %v3190_v7, %v3113_v1  ;;  %v216_v7 = vld [vmem:[#allocation2 + $0x28] sm:$0xff] }
 0x385   :  { %1649 = vmatpush1.bf16.msra.mxu0 %v1552_v39  ;;  %v1418_v39 = vsub.f32 %v211_v19, %v2550_v20 }
 0x386   :  { %1650 = vmatprep.subr.bf16.mxu0 %v1551_v40  ;;  %v2622_v40 = vpop.eup %2621 }
 0x387   :  { %v2624_v42 = vpop.eup %2623 }
 0x389   :  { %1651 = vmatpush1.bf16.msra.mxu0 %v1550_v41  ;;  %v1456_v41 = vsub.f32 %v213_v24, %v1444_v21 }
 0x38a   :  { %1652 = vmatprep.subr.bf16.mxu0 %v1549_v48  ;;  %v1458_v48 = vsub.f32 %v215_v25, %v1452_v34  ;;  %v1514_v34 = vld [vmem:[#allocation13 + $0xa0] sm:$0xff] }
 0x38d   :  { %1653 = vmatpush1.bf16.msra.mxu0 %v1548_v43 }
 0x38e   :  { %1654 = vmatprep.subr.bf16.mxu0 %v1547_v51 }
 0x391   :  { %1655 = vmatpush1.bf16.msra.mxu0 %v1546_v47 }
 0x392   :  { %1656 = vmatprep.subr.bf16.mxu0 %v1545_v26  ;;  %v1559_v26 = vunpack.c.l.s8.bf16 %v1503_v18 }
 0x395   :  { %1657 = vmatpush1.bf16.msra.mxu0 %v1544_v50 }
 0x396   :  { %1658 = vmatprep.subr.bf16.mxu0 %v1543_v52  ;;  %v1426_v52 = vmul.f32 %v2620_v31, %v1418_v39 }
 0x399   :  { %1659 = vmatpush1.bf16.msra.mxu0 %v1542_v54  ;;  %v1476_v54 = vmul.f32 %v2622_v40, %v1456_v41  ;;  %v1512_v40 = vld [vmem:[#allocation13 + $0x90] sm:$0xff] }
 0x39a   :  { %1660 = vmatprep.subr.bf16.mxu0 %v1573_v55  ;;  %v1480_v55 = vmul.f32 %v2624_v42, %v1458_v48  ;;  %v1530_v48 = vld [vmem:[#allocation13 + $0x120] sm:$0xff]  ;;  %v1580_v42 = vunpack.c.h.s8.bf16 %v1512_v40 }
 0x39b   :  { %v1481_v4 = vmul.f32 %v1476_v54, %v3240_v6  ;;  %v1528_v54 = vld [vmem:[#allocation13 + $0x110] sm:$0xff] }
 0x39c   :  { %v1483_v5 = vmul.f32 %v1480_v55, %v3240_v6 }
 0x39d   :  { %1661 = vmatpush2.bf16.msra.mxu0 %v1572_v57  ;;  %v1516_v57 = vld [vmem:[#allocation13 + $0xb0] sm:$0xff] }
 0x39e   :  { %1662 = vmatprep.subr.bf16.mxu0 %v1571_v58  ;;  %v212_v58 = vld [vmem:[#allocation2 + $0x8] sm:$0xff]  ;;  %v1586_v19 = vunpack.c.l.s8.bf16 %v1516_v57 }
 0x3a1   :  { %1663 = vmatpush2.bf16.msra.mxu0 %v1570_v62  ;;  %v1432_v62 = vmul.f32 %v3240_v6, %v1426_v52  ;;  %v1614_v52 = vunpack.c.l.s8.bf16 %v1530_v48 }
 0x3a2   :  { %1664 = vmatprep.subr.bf16.mxu0 %v1569_v63  ;;  %v218_v63 = vld [vmem:[#allocation2 + $0x38] sm:$0xff] }
 0x3a5   :  { %1665 = vmatpush2.bf16.msra.mxu0 %v1568_v37  ;;  %v1588_v37 = vunpack.c.h.s8.bf16 %v1516_v57  ;;  %v1525_v57 = vld [vmem:[#allocation13 + $0xf8] sm:$0xff] }
 0x3a6   :  { %1666 = vmatprep.subr.bf16.mxu0 %v1567_v10  ;;  %v1438_v10 = vmul.f32 %v3247_v8, %v212_v58 }
 0x3a8   :  { %v1439_v14 = vadd.f32 %v1438_v10, %v1432_v62  ;;  %v1605_v62 = vunpack.c.h.s8.bf16 %v1525_v57 }
 0x3a9   :  { %1667 = vmatpush2.bf16.msra.mxu0 %v1566_v11  ;;  %v1587_v11 = vunpack.c.l.s8.bf16 %v3185_v2  ;;  %v1584_v2 = vunpack.c.h.s8.bf16 %v1514_v34 }
 0x3aa   :  { %1668 = vmatprep.subr.bf16.mxu0 %v1565_v13  ;;  %v1515_v13 = vld [vmem:[#allocation13 + $0xa8] sm:$0xff]  ;;  %v1638_v20 = vpack.c.bf16 %v1439_v14, %v1439_v14 }
 0x3ab   :  { %v1585_v21 = vunpack.c.h.s8.bf16 %v1515_v13  ;;  %v1583_v25 = vunpack.c.l.s8.bf16 %v1515_v13  ;;  %v1541_v13 = vld [vmem:[#allocation13 + $0x178] sm:$0xff] }
 0x3ad   :  { %1669 = vmatpush2.bf16.msra.mxu0 %v1564_v15  ;;  %v1558_v15 = vunpack.c.l.s8.bf16 %v1502_v12 }
 0x3ae   :  { %v1207_v60 = vpop.f32.mrf.mxu1  ;;  %1670 = vmatprep.subr.bf16.mxu0 %v1563_v17 }
 0x3af   :  { %v1208_v33 = vadd.f32 %v1207_v60, %v3194_v46  ;;  %v1560_v46 = vunpack.c.h.s8.bf16 %v1502_v12  ;;  %v1532_v60 = vld [vmem:[#allocation13 + $0x130] sm:$0xff] }
 0x3b0   :  { %v1209_v45 = vpop.f32.mrf.mxu1  ;;  %v1620_v31 = vunpack.c.h.s8.bf16 %v1532_v60 }
 0x3b1   :  { %v1237_v43 = vmul.f32 %v1226_v23, %v1208_v33  ;;  %v1210_v51 = vadd.f32 %v1209_v45, %v3200_v38  ;;  %1671 = vmatpush2.bf16.msra.mxu0 %v1562_v27  ;;  %v1533_v27 = vld [vmem:[#allocation13 + $0x138] sm:$0xff]  ;;  %v1618_v45 = vunpack.c.l.s8.bf16 %v1532_v60 }
 0x3b2   :  { %v1211_v47 = vpop.f32.mrf.mxu1  ;;  %1672 = vmatprep.subr.bf16.mxu0 %v1561_v29  ;;  %v1513_v29 = vld [vmem:[#allocation13 + $0x98] sm:$0xff]  ;;  %v1621_v12 = vunpack.c.h.s8.bf16 %v1533_v27  ;;  %v1619_v33 = vunpack.c.l.s8.bf16 %v1533_v27 }
 0x3b3   :  { %v1262_v49 = vadd.f32 %v1251_v35, %v1237_v43  ;;  %v1238_v50 = vmul.f32 %v1230_v36, %v1210_v51  ;;  %v1531_v35 = vld [vmem:[#allocation13 + $0x128] sm:$0xff]  ;;  %v1582_v36 = vunpack.c.l.s8.bf16 %v1514_v34  ;;  %v1581_v39 = vunpack.c.h.s8.bf16 %v1513_v29  ;;  %v1529_v47 = vld [vmem:[#allocation13 + $0x118] sm:$0xff] }
 0x3b4   :  { %v1212_v53 = vpop.f32.mrf.mxu1  ;;  %v1617_v41 = vunpack.c.h.s8.bf16 %v1531_v35  ;;  %v1579_v43 = vunpack.c.l.s8.bf16 %v1513_v29  ;;  %v1616_v51 = vunpack.c.h.s8.bf16 %v1530_v48  ;;  %v1611_v58 = vunpack.c.l.s8.bf16 %v1529_v47  ;;  %v214_v60 = vld [vmem:[#allocation2 + $0x18] sm:$0xff] }
 0x3b5   :  { %v1263_v56 = vadd.f32 %v1255_v44, %v1238_v50  ;;  %1673 = vmatpush2.bf16.msra.mxu0 %v1560_v46  ;;  %v1266_v38 = vadd.f32 %v1262_v49, %v3125_v22  ;;  %v1484_v22 = vmul.f32 %v3247_v8, %v216_v7  ;;  %v1511_v44 = vld [vmem:[#allocation13 + $0x88] sm:$0xff]  ;;  %v1615_v46 = vunpack.c.l.s8.bf16 %v1531_v35  ;;  %v1510_v50 = vld [vmem:[#allocation13 + $0x80] sm:$0xff] }
 0x3b6   :  { %1674 = vmatprep.subr.bf16.mxu0 %v1559_v26  ;;  %v1578_v26 = vunpack.c.l.s8.bf16 %v1512_v40  ;;  %v1577_v49 = vunpack.c.h.s8.bf16 %v1511_v44  ;;  %v1613_v53 = vunpack.c.h.s8.bf16 %v1529_v47  ;;  %v1576_v55 = vunpack.c.h.s8.bf16 %v1510_v50  ;;  %v1527_v7 = vld [vmem:[#allocation13 + $0x108] sm:$0xff]  ;;  %v1538_v35 = vld [vmem:[#allocation13 + $0x160] sm:$0xff] }
 0x3b7   :  { %v1267_v59 = vadd.f32 %v1263_v56, %v3127_v28  ;;  %v1320_v0 = vpack.c.bf16 %v1266_v38, %v1266_v38  ;;  %v1486_v28 = vmul.f32 %v3247_v8, %v218_v63  ;;  %v1487_v17 = vadd.f32 %v1484_v22, %v1481_v4  ;;  %v1524_v63 = vld [vmem:[#allocation13 + $0xf0] sm:$0xff]  ;;  %v1518_v47 = vld [vmem:[#allocation13 + $0xc0] sm:$0xff] }
 0x3b8   :  { %v1575_v56 = vunpack.c.l.s8.bf16 %v1511_v44  ;;  %v1612_v38 = vunpack.c.h.s8.bf16 %v1528_v54  ;;  %v1610_v4 = vunpack.c.l.s8.bf16 %v1528_v54  ;;  %v1604_v10 = vunpack.c.h.s8.bf16 %v1524_v63  ;;  %v217_v44 = vld [vmem:[#allocation2 + $0x30] sm:$0xff] }
 0x3b9   :  { %v1321_v9 = vpack.c.bf16 %v1267_v59, %v1267_v59  ;;  %v1489_v18 = vadd.f32 %v1486_v28, %v1483_v5  ;;  %1675 = vmatpush2.bf16.msra.mxu0 %v1558_v15  ;;  %v1639_v23 = vpack.c.bf16 %v1487_v17, %v1487_v17  ;;  %v1574_v59 = vunpack.c.l.s8.bf16 %v1510_v50  ;;  %v1522_v17 = vld [vmem:[#allocation13 + $0xe0] sm:$0xff]  ;;  %v1536_v50 = vld [vmem:[#allocation13 + $0x150] sm:$0xff] }
 0x3ba   :  { %1726 = vmatprep.subr.bf16.mxu0 %v1621_v12  ;;  %v1609_v5 = vunpack.c.h.s8.bf16 %v1527_v7  ;;  %v1603_v22 = vunpack.c.l.s8.bf16 %v1525_v57  ;;  %v1607_v28 = vunpack.c.l.s8.bf16 %v1527_v7  ;;  %v1602_v14 = vunpack.c.l.s8.bf16 %v1524_v63  ;;  %v1520_v12 = vld [vmem:[#allocation13 + $0xd0] sm:$0xff] }
 0x3bb   :  { %1394 = vmatprep.mubr.bf16.mxu1 %v1321_v9  ;;  %v1641_v24 = vpack.c.bf16 %v1489_v18, %v1489_v18  ;;  %1676 = vmatprep.mubr.bf16.mxu0 %v1639_v23  ;;  %v1526_v9 = vld [vmem:[#allocation13 + $0x100] sm:$0xff]  ;;  %v1521_v23 = vld [vmem:[#allocation13 + $0xd8] sm:$0xff]  ;;  %v1598_v27 = vunpack.c.l.s8.bf16 %v1522_v17  ;;  %v1596_v40 = vunpack.c.h.s8.bf16 %v1520_v12  ;;  %v1592_v54 = vunpack.c.h.s8.bf16 %v1518_v47 }
 0x3bc   :  { %1395 = vmatmul.mubr.bf16.vlgmr.msra.gmra.mxu1 %v1320_v0  ;;  %1677 = vmatmul.mubr.bf16.vlgmr.msra.gmra.mxu0 %v1638_v20  ;;  %v1608_v0 = vunpack.c.h.s8.bf16 %v1526_v9  ;;  %v1606_v18 = vunpack.c.l.s8.bf16 %v1526_v9  ;;  %v1600_v20 = vunpack.c.h.s8.bf16 %v1522_v17  ;;  %v1597_v29 = vunpack.c.h.s8.bf16 %v1521_v23  ;;  %v1804_v17 = vld [vmem:[#allocation14 + $0x28] sm:$0xff] }
 0x3bd   :  { %1686 = vmatpush1.bf16.msra.mxu1 %v1588_v37  ;;  %1717 = vmatprep.mubr.bf16.mxu1 %v1641_v24  ;;  %v1467_v37 = vrot.slane %v3209_v61, %v3089_v32  ;;  %v1637_v61 = vunpack.c.h.s8.bf16 %v1541_v13  ;;  %v1635_v24 = vunpack.c.l.s8.bf16 %v1541_v13  ;;  %v1590_v57 = vunpack.c.l.s8.bf16 %v1518_v47  ;;  %v1810_v47 = vld [vmem:[#allocation14 + $0x58] sm:$0xff] }
 0x3be   :  { %1687 = vmatprep.subr.bf16.mxu1 %v1587_v11  ;;  %1727 = vmatpush1.bf16.msra.mxu0 %v1620_v31  ;;  %v1523_v11 = vld [vmem:[#allocation13 + $0xe8] sm:$0xff] }
 0x3bf   :  { %1728 = vmatprep.subr.bf16.mxu0 %v1619_v33  ;;  %2625 = vrcp.f32 %v1467_v37  ;;  %v1601_v15 = vunpack.c.h.s8.bf16 %v1523_v11 }
 0x3c1   :  { %1688 = vmatpush1.bf16.msra.mxu1 %v1586_v19  ;;  %v1540_v19 = vld [vmem:[#allocation13 + $0x170] sm:$0xff] }
 0x3c2   :  { %1689 = vmatprep.subr.bf16.mxu1 %v1585_v21  ;;  %1729 = vmatpush1.bf16.msra.mxu0 %v1618_v45  ;;  %v1599_v21 = vunpack.c.l.s8.bf16 %v1523_v11  ;;  %v1636_v34 = vunpack.c.h.s8.bf16 %v1540_v19  ;;  %v1634_v31 = vunpack.c.l.s8.bf16 %v1540_v19  ;;  %v1595_v45 = vunpack.c.l.s8.bf16 %v1521_v23  ;;  %v1806_v11 = vld [vmem:[#allocation14 + $0x38] sm:$0xff]  ;;  %v1803_v19 = vld [vmem:[#allocation14 + $0x20] sm:$0xff] }
 0x3c3   :  { %1730 = vmatprep.subr.bf16.mxu0 %v1617_v41  ;;  %v1519_v41 = vld [vmem:[#allocation13 + $0xc8] sm:$0xff]  ;;  %v1830_v13 = vunpack.c.h.s8.bf16 %v1806_v11  ;;  %v1823_v23 = vunpack.c.l.s8.bf16 %v1803_v19 }
 0x3c5   :  { %1690 = vmatpush1.bf16.msra.mxu1 %v1584_v2  ;;  %v1448_v2 = vrot.slane %v3221_v16, %v3089_v32  ;;  %v1632_v16 = vunpack.c.h.s8.bf16 %v1538_v35 }
 0x3c6   :  { %1691 = vmatprep.subr.bf16.mxu1 %v1583_v25  ;;  %1731 = vmatpush1.bf16.msra.mxu0 %v1616_v51  ;;  %v1539_v25 = vld [vmem:[#allocation13 + $0x168] sm:$0xff]  ;;  %v1594_v51 = vunpack.c.l.s8.bf16 %v1520_v12 }
 0x3c7   :  { %1732 = vmatprep.subr.bf16.mxu0 %v1615_v46  ;;  %v1633_v33 = vunpack.c.h.s8.bf16 %v1539_v25  ;;  %v1631_v48 = vunpack.c.l.s8.bf16 %v1539_v25  ;;  %v1593_v46 = vunpack.c.h.s8.bf16 %v1519_v41 }
 0x3c9   :  { %1692 = vmatpush1.bf16.msra.mxu1 %v1582_v36  ;;  %v1457_v36 = vsub.f32 %v214_v60, %v1448_v2  ;;  %v1801_v2 = vld [vmem:[#allocation14 + $0x10] sm:$0xff]  ;;  %v1800_v60 = vld [vmem:[#allocation14 + $0x8] sm:$0xff] }
 0x3ca   :  { %1693 = vmatprep.subr.bf16.mxu1 %v1581_v39  ;;  %1733 = vmatpush1.bf16.msra.mxu0 %v1614_v52  ;;  %v1821_v25 = vunpack.c.h.s8.bf16 %v1801_v2  ;;  %v1818_v12 = vunpack.c.h.s8.bf16 %v1800_v60 }
 0x3cb   :  { %1734 = vmatprep.subr.bf16.mxu0 %v1613_v53  ;;  %v1485_v53 = vmul.f32 %v3247_v8, %v217_v44 }
 0x3cc   :  { %v2626_v39 = vpop.eup %2625 }
 0x3cd   :  { %1694 = vmatpush1.bf16.msra.mxu1 %v1580_v42  ;;  %v1478_v42 = vmul.f32 %v2626_v39, %v1457_v36  ;;  %v1814_v36 = vld [vmem:[#allocation14 + $0x78] sm:$0xff] }
 0x3ce   :  { %1695 = vmatprep.subr.bf16.mxu1 %v1579_v43  ;;  %1735 = vmatpush1.bf16.msra.mxu0 %v1612_v38  ;;  %v1537_v43 = vld [vmem:[#allocation13 + $0x158] sm:$0xff] }
 0x3cf   :  { %1736 = vmatprep.subr.bf16.mxu0 %v1611_v58  ;;  %v1482_v52 = vmul.f32 %v1478_v42, %v3240_v6  ;;  %v1627_v7 = vunpack.c.l.s8.bf16 %v1537_v43  ;;  %v1535_v6 = vld [vmem:[#allocation13 + $0x148] sm:$0xff] }
 0x3d0   :  { %v1625_v8 = vunpack.c.h.s8.bf16 %v1535_v6 }
 0x3d1   :  { %1696 = vmatpush1.bf16.msra.mxu1 %v1578_v26  ;;  %v1630_v26 = vunpack.c.l.s8.bf16 %v1538_v35  ;;  %v1488_v38 = vadd.f32 %v1485_v53, %v1482_v52  ;;  %v1816_v35 = vunpack.c.l.s8.bf16 %v1800_v60 }
 0x3d2   :  { %1697 = vmatprep.subr.bf16.mxu1 %v1577_v49  ;;  %1737 = vmatpush1.bf16.msra.mxu0 %v1610_v4  ;;  %v1629_v49 = vunpack.c.h.s8.bf16 %v1537_v43  ;;  %v1623_v4 = vunpack.c.l.s8.bf16 %v1535_v6 }
 0x3d3   :  { %1738 = vmatprep.subr.bf16.mxu0 %v1609_v5  ;;  %v1640_v58 = vpack.c.bf16 %v1488_v38, %v1488_v38 }
 0x3d5   :  { %1698 = vmatpush1.bf16.msra.mxu1 %v1576_v55  ;;  %v1591_v55 = vunpack.c.l.s8.bf16 %v1519_v41  ;;  %v1844_v41 = vunpack.c.l.s8.bf16 %v1814_v36 }
 0x3d6   :  { %1699 = vmatprep.subr.bf16.mxu1 %v1575_v56  ;;  %1739 = vmatpush1.bf16.msra.mxu0 %v1608_v0  ;;  %v1628_v56 = vunpack.c.h.s8.bf16 %v1536_v50 }
 0x3d7   :  { %1740 = vmatprep.subr.bf16.mxu0 %v1607_v28  ;;  %v1805_v28 = vld [vmem:[#allocation14 + $0x30] sm:$0xff] }
 0x3d9   :  { %1700 = vmatpush1.bf16.msra.mxu1 %v1574_v59  ;;  %v1626_v59 = vunpack.c.l.s8.bf16 %v1536_v50  ;;  %v1809_v50 = vld [vmem:[#allocation14 + $0x50] sm:$0xff] }
 0x3da   :  { %1701 = vmatprep.subr.bf16.mxu1 %v1605_v62  ;;  %1741 = vmatpush1.bf16.msra.mxu0 %v1606_v18  ;;  %v1534_v62 = vld [vmem:[#allocation13 + $0x140] sm:$0xff]  ;;  %v1827_v18 = vunpack.c.l.s8.bf16 %v1805_v28  ;;  %v1837_v52 = vunpack.c.h.s8.bf16 %v1809_v50 }
 0x3db   :  { %1742 = vmatprep.subr.bf16.mxu0 %v1637_v61  ;;  %v1624_v63 = vunpack.c.h.s8.bf16 %v1534_v62  ;;  %v1622_v5 = vunpack.c.l.s8.bf16 %v1534_v62  ;;  %v1826_v61 = vunpack.c.h.s8.bf16 %v1804_v17 }
 0x3dd   :  { %1702 = vmatpush2.bf16.msra.mxu1 %v1604_v10 }
 0x3de   :  { %1703 = vmatprep.subr.bf16.mxu1 %v1603_v22  ;;  %1743 = vmatpush2.bf16.msra.mxu0 %v1636_v34  ;;  %v1802_v34 = vld [vmem:[#allocation14 + $0x18] sm:$0xff] }
 0x3df   :  { %1744 = vmatprep.subr.bf16.mxu0 %v1635_v24  ;;  %v1822_v24 = vunpack.c.h.s8.bf16 %v1802_v34 }
 0x3e1   :  { %1704 = vmatpush2.bf16.msra.mxu1 %v1602_v14  ;;  %v1829_v14 = vunpack.c.h.s8.bf16 %v1805_v28 }
 0x3e2   :  { %1705 = vmatprep.subr.bf16.mxu1 %v1601_v15  ;;  %1745 = vmatpush2.bf16.msra.mxu0 %v1634_v31  ;;  %v1828_v15 = vunpack.c.l.s8.bf16 %v1806_v11  ;;  %v1799_v31 = vld [vmem:[#allocation14] sm:$0xff] }
 0x3e3   :  { %1746 = vmatprep.subr.bf16.mxu0 %v1633_v33  ;;  %v1817_v33 = vunpack.c.h.s8.bf16 %v1799_v31  ;;  %v1815_v39 = vunpack.c.l.s8.bf16 %v1799_v31 }
 0x3e5   :  { %1706 = vmatpush2.bf16.msra.mxu1 %v1600_v20  ;;  %v1825_v20 = vunpack.c.h.s8.bf16 %v1803_v19 }
 0x3e6   :  { %1707 = vmatprep.subr.bf16.mxu1 %v1599_v21  ;;  %1747 = vmatpush2.bf16.msra.mxu0 %v1632_v16  ;;  %v1824_v21 = vunpack.c.l.s8.bf16 %v1804_v17  ;;  %v1808_v17 = vld [vmem:[#allocation14 + $0x48] sm:$0xff] }
 0x3e7   :  { %1748 = vmatprep.subr.bf16.mxu0 %v1631_v48  ;;  %v1812_v48 = vld [vmem:[#allocation14 + $0x68] sm:$0xff] }
 0x3e8   :  { %v1842_v43 = vunpack.c.h.s8.bf16 %v1812_v48 }
 0x3e9   :  { %1708 = vmatpush2.bf16.msra.mxu1 %v1598_v27  ;;  %v1820_v27 = vunpack.c.l.s8.bf16 %v1802_v34  ;;  %v1929_v34 = vld [vmem:[#allocation16 + $0x38] sm:$0xff] }
 0x3ea   :  { %1709 = vmatprep.subr.bf16.mxu1 %v1597_v29  ;;  %1749 = vmatpush2.bf16.msra.mxu0 %v1630_v26  ;;  %v1819_v29 = vunpack.c.l.s8.bf16 %v1801_v2 }
 0x3eb   :  { %1750 = vmatprep.subr.bf16.mxu0 %v1629_v49  ;;  %v1838_v49 = vunpack.c.h.s8.bf16 %v1810_v47 }
 0x3ed   :  { %1710 = vmatpush2.bf16.msra.mxu1 %v1596_v40  ;;  %v1846_v40 = vunpack.c.h.s8.bf16 %v1814_v36 }
 0x3ee   :  { %1711 = vmatprep.subr.bf16.mxu1 %v1595_v45  ;;  %1751 = vmatpush2.bf16.msra.mxu0 %v1628_v56  ;;  %v1813_v45 = vld [vmem:[#allocation14 + $0x70] sm:$0xff]  ;;  %v2548_v56 = vld [vmem:[#allocation5 + $0x18] ss:$0 sm:$0xff] }
 0x3ef   :  { %1752 = vmatprep.subr.bf16.mxu0 %v1627_v7  ;;  %v1845_v16 = vunpack.c.h.s8.bf16 %v1813_v45  ;;  %v1843_v42 = vunpack.c.l.s8.bf16 %v1813_v45 }
 0x3f1   :  { %1712 = vmatpush2.bf16.msra.mxu1 %v1594_v51  ;;  %v1811_v51 = vld [vmem:[#allocation14 + $0x60] sm:$0xff] }
 0x3f2   :  { %1713 = vmatprep.subr.bf16.mxu1 %v1593_v46  ;;  %1753 = vmatpush2.bf16.msra.mxu0 %v1626_v59  ;;  %v1841_v44 = vunpack.c.h.s8.bf16 %v1811_v51  ;;  %v1840_v46 = vunpack.c.l.s8.bf16 %v1812_v48  ;;  %v1839_v26 = vunpack.c.l.s8.bf16 %v1811_v51  ;;  %v2549_v59 = vld [vmem:[#allocation5 + $0x19] ss:$0 sm:$0xff] }
 0x3f3   :  { %1754 = vmatprep.subr.bf16.mxu0 %v1625_v8  ;;  %v220_v8 = vld [vmem:[#allocation2 + $0x48] sm:$0xff] }
 0x3f5   :  { %1714 = vmatpush2.bf16.msra.mxu1 %v1592_v54 }
 0x3f6   :  { %1715 = vmatprep.subr.bf16.mxu1 %v1591_v55  ;;  %1755 = vmatpush2.bf16.msra.mxu0 %v1624_v63 }
 0x3f7   :  { %1756 = vmatprep.subr.bf16.mxu0 %v1623_v4 }
 0x3f9   :  { %1716 = vmatpush2.bf16.msra.mxu1 %v1590_v57 }
 0x3fa   :  { %1757 = vmatpush2.bf16.msra.mxu0 %v1622_v5  ;;  %1849 = vmatprep.subr.bf16.mxu1 %v1830_v13  ;;  %v1642_v5 = vpack.c.bf16 %v220_v8, %v220_v8 }
 0x3fc   :  { %1718 = vmatmul.mubr.bf16.vlgmr.msra.gmra.mxu1 %v1640_v58 }
 0x3fd   :  { %1850 = vmatpush1.bf16.msra.mxu1 %v1829_v14  ;;  %v1836_v14 = vunpack.c.l.s8.bf16 %v1810_v47 }
 0x3fe   :  { %1851 = vmatprep.subr.bf16.mxu1 %v1828_v15  ;;  %v1835_v15 = vunpack.c.l.s8.bf16 %v1809_v50 }
 0x401   :  { %1852 = vmatpush1.bf16.msra.mxu1 %v1827_v18  ;;  %v1834_v18 = vunpack.c.h.s8.bf16 %v1808_v17 }
 0x402   :  { %1853 = vmatprep.subr.bf16.mxu1 %v1826_v61  ;;  %v1807_v61 = vld [vmem:[#allocation14 + $0x40] sm:$0xff] }
 0x403   :  { %v1833_v19 = vunpack.c.h.s8.bf16 %v1807_v61 }
 0x405   :  { %1854 = vmatpush1.bf16.msra.mxu1 %v1825_v20  ;;  %v1832_v20 = vunpack.c.l.s8.bf16 %v1808_v17 }
 0x406   :  { %1855 = vmatprep.subr.bf16.mxu1 %v1824_v21  ;;  %v1831_v21 = vunpack.c.l.s8.bf16 %v1807_v61 }
 0x409   :  { %1856 = vmatpush1.bf16.msra.mxu1 %v1823_v23  ;;  %v1928_v23 = vld [vmem:[#allocation16 + $0x30] sm:$0xff] }
 0x40a   :  { %1857 = vmatprep.subr.bf16.mxu1 %v1822_v24  ;;  %v1953_v24 = vunpack.c.h.s8.bf16 %v1929_v34  ;;  %v1952_v2 = vunpack.c.h.s8.bf16 %v1928_v23  ;;  %v1950_v60 = vunpack.c.l.s8.bf16 %v1928_v23 }
 0x40c   :  { %1972 = vmatprep.subr.bf16.mxu0 %v1953_v24  ;;  %v1931_v24 = vld [vmem:[#allocation16 + $0x48] sm:$0xff] }
 0x40d   :  { %1858 = vmatpush1.bf16.msra.mxu1 %v1821_v25  ;;  %v1951_v25 = vunpack.c.l.s8.bf16 %v1929_v34 }
 0x40e   :  { %1859 = vmatprep.subr.bf16.mxu1 %v1820_v27  ;;  %v1927_v27 = vld [vmem:[#allocation16 + $0x28] sm:$0xff] }
 0x411   :  { %1860 = vmatpush1.bf16.msra.mxu1 %v1819_v29  ;;  %v1949_v29 = vunpack.c.h.s8.bf16 %v1927_v27 }
 0x412   :  { %1861 = vmatprep.subr.bf16.mxu1 %v1818_v12  ;;  %v1926_v12 = vld [vmem:[#allocation16 + $0x20] sm:$0xff] }
 0x413   :  { %v1948_v31 = vunpack.c.h.s8.bf16 %v1926_v12  ;;  %v1946_v36 = vunpack.c.l.s8.bf16 %v1926_v12  ;;  %v2052_v12 = vld [vmem:[#allocation17 + $0x38] sm:$0xff] }
 0x415   :  { %1862 = vmatpush1.bf16.msra.mxu1 %v1817_v33  ;;  %v1947_v33 = vunpack.c.l.s8.bf16 %v1927_v27 }
 0x416   :  { %1863 = vmatprep.subr.bf16.mxu1 %v1816_v35  ;;  %v1925_v35 = vld [vmem:[#allocation16 + $0x18] sm:$0xff] }
 0x419   :  { %1864 = vmatpush1.bf16.msra.mxu1 %v1815_v39  ;;  %v1945_v39 = vunpack.c.h.s8.bf16 %v1925_v35 }
 0x41a   :  { %1865 = vmatprep.subr.bf16.mxu1 %v1846_v40  ;;  %v1924_v40 = vld [vmem:[#allocation16 + $0x10] sm:$0xff] }
 0x41b   :  { %v1944_v45 = vunpack.c.h.s8.bf16 %v1924_v40  ;;  %v1942_v48 = vunpack.c.l.s8.bf16 %v1924_v40 }
 0x41d   :  { %1866 = vmatpush2.bf16.msra.mxu1 %v1845_v16  ;;  %v1943_v16 = vunpack.c.l.s8.bf16 %v1925_v35 }
 0x41e   :  { %1867 = vmatprep.subr.bf16.mxu1 %v1844_v41  ;;  %v1923_v41 = vld [vmem:[#allocation16 + $0x8] sm:$0xff] }
 0x421   :  { %1868 = vmatpush2.bf16.msra.mxu1 %v1843_v42  ;;  %v1941_v42 = vunpack.c.h.s8.bf16 %v1923_v41 }
 0x422   :  { %1869 = vmatprep.subr.bf16.mxu1 %v1842_v43  ;;  %v1922_v43 = vld [vmem:[#allocation16] sm:$0xff] }
 0x423   :  { %v1940_v51 = vunpack.c.h.s8.bf16 %v1922_v43  ;;  %v1938_v47 = vunpack.c.l.s8.bf16 %v1922_v43 }
 0x425   :  { %1870 = vmatpush2.bf16.msra.mxu1 %v1841_v44  ;;  %v1939_v44 = vunpack.c.l.s8.bf16 %v1923_v41 }
 0x426   :  { %1871 = vmatprep.subr.bf16.mxu1 %v1840_v46  ;;  %v1937_v46 = vld [vmem:[#allocation16 + $0x78] sm:$0xff] }
 0x429   :  { %1872 = vmatpush2.bf16.msra.mxu1 %v1839_v26  ;;  %v1969_v26 = vunpack.c.h.s8.bf16 %v1937_v46 }
 0x42a   :  { %1873 = vmatprep.subr.bf16.mxu1 %v1838_v49  ;;  %v1936_v49 = vld [vmem:[#allocation16 + $0x70] sm:$0xff] }
 0x42b   :  { %v1968_v50 = vunpack.c.h.s8.bf16 %v1936_v49 }
 0x42d   :  { %1874 = vmatpush2.bf16.msra.mxu1 %v1837_v52  ;;  %v1967_v52 = vunpack.c.l.s8.bf16 %v1937_v46 }
 0x42e   :  { %1875 = vmatprep.subr.bf16.mxu1 %v1836_v14 }
 0x431   :  { %1876 = vmatpush2.bf16.msra.mxu1 %v1835_v15 }
 0x432   :  { %1877 = vmatprep.subr.bf16.mxu1 %v1834_v18 }
 0x435   :  { %1878 = vmatpush2.bf16.msra.mxu1 %v1833_v19 }
 0x436   :  { %1879 = vmatprep.subr.bf16.mxu1 %v1832_v20 }
 0x439   :  { %1880 = vmatpush2.bf16.msra.mxu1 %v1831_v21 }
 0x43c   :  { %v2568_v9 = vpop.f32.mrf.mxu0 }
 0x43e   :  { %v2569_v37 = vpop.f32.mrf.mxu0 }
 0x43f   :  { %v3259_v10 = vadd.f32 %v2569_v37, %v2568_v9 }
 0x440   :  { %v2571_v22 = vpop.f32.mrf.mxu0 }
 0x442   :  { %v2572_v0 = vpop.f32.mrf.mxu0 }
 0x47c   :  { %v2590_v53 = vpop.f32.mrf.mxu1  ;;  %v1678_v58 = vpop.f32.mrf.mxu0 }
 0x47e   :  { %v2591_v54 = vpop.f32.mrf.mxu1  ;;  %v1680_v62 = vpop.f32.mrf.mxu0 }
 0x47f   :  { %v2592_v55 = vadd.f32 %v2591_v54, %v2590_v53  ;;  %v1935_v53 = vld [vmem:[#allocation16 + $0x68] sm:$0xff]  ;;  %v1966_v54 = vunpack.c.l.s8.bf16 %v1936_v49 }
 0x480   :  { %v2593_v38 = vpop.f32.mrf.mxu1  ;;  %v1682_v4 = vpop.f32.mrf.mxu0 }
 0x481   :  { %v1397_v57 = vadd.f32 %v2592_v55, %v3259_v10  ;;  %v1965_v55 = vunpack.c.h.s8.bf16 %v1935_v53 }
 0x482   :  { %v2594_v7 = vpop.f32.mrf.mxu1  ;;  %v1683_v37 = vpop.f32.mrf.mxu0 }
 0x483   :  { %v1406_v6 = vmul.f32 %v2548_v56, %v1397_v57  ;;  %v1934_v56 = vld [vmem:[#allocation16 + $0x60] sm:$0xff]  ;;  %v1963_v57 = vunpack.c.l.s8.bf16 %v1935_v53 }
 0x484   :  { %v1964_v38 = vunpack.c.h.s8.bf16 %v1934_v56  ;;  %v1962_v7 = vunpack.c.l.s8.bf16 %v1934_v56 }
 0x485   :  { %v1411_v63 = vadd.f32 %v2549_v59, %v1406_v6  ;;  %v1932_v6 = vld [vmem:[#allocation16 + $0x50] sm:$0xff] }
 0x486   :  { %v1960_v8 = vunpack.c.h.s8.bf16 %v1932_v6  ;;  %v1958_v23 = vunpack.c.l.s8.bf16 %v1932_v6 }
 0x487   :  { %v1643_v9 = vpack.c.bf16 %v1411_v63, %v1411_v63  ;;  %v1493_v63 = vld [vmem:[#allocation5 + $0x1b] ss:$2 sm:$0x3] }
 0x488   :  { %v1784_v37 = vrot.slane %v1493_v63, %v3085_v30  ;;  %v1788_v14 = vrot.slane %v1493_v63, %v3089_v32 }
 0x489   :  { %1758 = vmatprep.mubr.bf16.mxu0 %v1643_v9 }
 0x48a   :  { %1759 = vmatmul.mubr.bf16.vlgmr.msra.gmra.mxu0 %v1642_v5 }
 0x48b   :  { %1973 = vmatpush1.bf16.msra.mxu0 %v1952_v2  ;;  %v1957_v2 = vunpack.c.h.s8.bf16 %v1931_v24 }
 0x48c   :  { %1974 = vmatprep.subr.bf16.mxu0 %v1951_v25  ;;  %v1930_v25 = vld [vmem:[#allocation16 + $0x40] sm:$0xff] }
 0x48d   :  { %v1956_v27 = vunpack.c.h.s8.bf16 %v1930_v25 }
 0x48f   :  { %1975 = vmatpush1.bf16.msra.mxu0 %v1950_v60  ;;  %v1955_v60 = vunpack.c.l.s8.bf16 %v1931_v24 }
 0x490   :  { %1976 = vmatprep.subr.bf16.mxu0 %v1949_v29  ;;  %v1954_v29 = vunpack.c.l.s8.bf16 %v1930_v25 }
 0x493   :  { %1977 = vmatpush1.bf16.msra.mxu0 %v1948_v31  ;;  %v2051_v31 = vld [vmem:[#allocation17 + $0x30] sm:$0xff] }
 0x494   :  { %1978 = vmatprep.subr.bf16.mxu0 %v1947_v33  ;;  %v2076_v33 = vunpack.c.h.s8.bf16 %v2052_v12  ;;  %v2075_v35 = vunpack.c.h.s8.bf16 %v2051_v31  ;;  %v2073_v40 = vunpack.c.l.s8.bf16 %v2051_v31 }
 0x496   :  { %2095 = vmatprep.subr.bf16.mxu1 %v2076_v33  ;;  %v2054_v33 = vld [vmem:[#allocation17 + $0x48] sm:$0xff] }
 0x497   :  { %1979 = vmatpush1.bf16.msra.mxu0 %v1946_v36  ;;  %v2074_v36 = vunpack.c.l.s8.bf16 %v2052_v12 }
 0x498   :  { %1980 = vmatprep.subr.bf16.mxu0 %v1945_v39  ;;  %v2050_v39 = vld [vmem:[#allocation17 + $0x28] sm:$0xff] }
 0x49b   :  { %1981 = vmatpush1.bf16.msra.mxu0 %v1944_v45  ;;  %v2072_v45 = vunpack.c.h.s8.bf16 %v2050_v39 }
 0x49c   :  { %1982 = vmatprep.subr.bf16.mxu0 %v1943_v16  ;;  %v2049_v16 = vld [vmem:[#allocation17 + $0x20] sm:$0xff] }
 0x49d   :  { %v2071_v41 = vunpack.c.h.s8.bf16 %v2049_v16  ;;  %v2069_v43 = vunpack.c.l.s8.bf16 %v2049_v16  ;;  %v2175_v16 = vld [vmem:[#allocation19 + $0x38] sm:$0xff] }
 0x49f   :  { %1983 = vmatpush1.bf16.msra.mxu0 %v1942_v48  ;;  %v2070_v48 = vunpack.c.l.s8.bf16 %v2050_v39 }
 0x4a0   :  { %1984 = vmatprep.subr.bf16.mxu0 %v1941_v42  ;;  %v2048_v42 = vld [vmem:[#allocation17 + $0x18] sm:$0xff] }
 0x4a3   :  { %1985 = vmatpush1.bf16.msra.mxu0 %v1940_v51  ;;  %v2068_v51 = vunpack.c.h.s8.bf16 %v2048_v42 }
 0x4a4   :  { %1986 = vmatprep.subr.bf16.mxu0 %v1939_v44  ;;  %v2047_v44 = vld [vmem:[#allocation17 + $0x10] sm:$0xff] }
 0x4a5   :  { %v2067_v46 = vunpack.c.h.s8.bf16 %v2047_v44  ;;  %v2065_v49 = vunpack.c.l.s8.bf16 %v2047_v44 }
 0x4a7   :  { %1987 = vmatpush1.bf16.msra.mxu0 %v1938_v47  ;;  %v2066_v47 = vunpack.c.l.s8.bf16 %v2048_v42 }
 0x4a8   :  { %1988 = vmatprep.subr.bf16.mxu0 %v1969_v26  ;;  %v2046_v26 = vld [vmem:[#allocation17 + $0x8] sm:$0xff] }
 0x4ab   :  { %1989 = vmatpush2.bf16.msra.mxu0 %v1968_v50  ;;  %v2064_v50 = vunpack.c.h.s8.bf16 %v2046_v26 }
 0x4ac   :  { %1990 = vmatprep.subr.bf16.mxu0 %v1967_v52  ;;  %v2045_v52 = vld [vmem:[#allocation17] sm:$0xff] }
 0x4ad   :  { %v2063_v53 = vunpack.c.h.s8.bf16 %v2045_v52  ;;  %v2061_v56 = vunpack.c.l.s8.bf16 %v2045_v52 }
 0x4af   :  { %1991 = vmatpush2.bf16.msra.mxu0 %v1966_v54  ;;  %v2062_v54 = vunpack.c.l.s8.bf16 %v2046_v26 }
 0x4b0   :  { %1992 = vmatprep.subr.bf16.mxu0 %v1965_v55  ;;  %v2060_v55 = vld [vmem:[#allocation17 + $0x78] sm:$0xff] }
 0x4b3   :  { %1993 = vmatpush2.bf16.msra.mxu0 %v1964_v38  ;;  %v2092_v38 = vunpack.c.h.s8.bf16 %v2060_v55 }
 0x4b4   :  { %1994 = vmatprep.subr.bf16.mxu0 %v1963_v57  ;;  %v2059_v57 = vld [vmem:[#allocation17 + $0x70] sm:$0xff] }
 0x4b5   :  { %v2089_v6 = vunpack.c.l.s8.bf16 %v2059_v57 }
 0x4b7   :  { %1995 = vmatpush2.bf16.msra.mxu0 %v1962_v7  ;;  %v2090_v7 = vunpack.c.l.s8.bf16 %v2060_v55 }
 0x4bc   :  { %v1719_v22 = vpop.f32.mrf.mxu1 }
 0x4bd   :  { %v3262_v0 = vadd.f32 %v1719_v22, %v1678_v58  ;;  %v1933_v58 = vld [vmem:[#allocation16 + $0x58] sm:$0xff] }
 0x4be   :  { %v1721_v11 = vpop.f32.mrf.mxu1  ;;  %v1961_v59 = vunpack.c.h.s8.bf16 %v1933_v58 }
 0x4bf   :  { %v3264_v28 = vadd.f32 %v1721_v11, %v1680_v62  ;;  %v1491_v62 = vld [vmem:[#allocation5 + $0x1a] ss:$2 sm:$0x3] }
 0x4c0   :  { %v1723_v10 = vpop.f32.mrf.mxu1  ;;  %1996 = vmatprep.subr.bf16.mxu0 %v1961_v59  ;;  %v1771_v4 = vrot.slane %v1491_v62, %v3085_v30  ;;  %v1775_v22 = vrot.slane %v1491_v62, %v3089_v32  ;;  %v2058_v59 = vld [vmem:[#allocation17 + $0x68] sm:$0xff]  ;;  %v2057_v62 = vld [vmem:[#allocation17 + $0x60] sm:$0xff] }
 0x4c1   :  { %1997 = vmatpush2.bf16.msra.mxu0 %v1960_v8  ;;  %v2088_v8 = vunpack.c.h.s8.bf16 %v2058_v59  ;;  %v2087_v63 = vunpack.c.h.s8.bf16 %v2057_v62 }
 0x4c2   :  { %v1724_v13 = vpop.f32.mrf.mxu1 }
 0x54a   :  { %v1760_v5 = vpop.f32.mrf.mxu0 }
 0x54b   :  { %v1761_v9 = vadd.f32 %v1760_v5, %v3262_v0  ;;  %v2056_v5 = vld [vmem:[#allocation17 + $0x58] sm:$0xff] }
 0x54c   :  { %v1762_v11 = vpop.f32.mrf.mxu0  ;;  %v2082_v12 = vunpack.c.l.s8.bf16 %v2056_v5 }
 0x54d   :  { %v1778_v10 = vmul.f32 %v1771_v4, %v1761_v9  ;;  %v1763_v13 = vadd.f32 %v1762_v11, %v3264_v28  ;;  %v1959_v28 = vunpack.c.l.s8.bf16 %v1933_v58  ;;  %v2091_v58 = vunpack.c.h.s8.bf16 %v2059_v57 }
 0x54e   :  { %v1764_v15 = vpop.f32.mrf.mxu0  ;;  %v2086_v4 = vunpack.c.l.s8.bf16 %v2058_v59  ;;  %v2085_v9 = vunpack.c.l.s8.bf16 %v2057_v62 }
 0x54f   :  { %v1791_v17 = vadd.f32 %v1784_v37, %v1778_v10  ;;  %v1779_v18 = vmul.f32 %v1775_v22, %v1763_v13  ;;  %1998 = vmatprep.subr.bf16.mxu0 %v1959_v28  ;;  %v2084_v37 = vunpack.c.h.s8.bf16 %v2056_v5  ;;  %v2055_v22 = vld [vmem:[#allocation17 + $0x50] sm:$0xff]  ;;  %v1796_v10 = vld [vmem:[#allocation5 + $0x1e] ss:$2 sm:$0x3] }
 0x550   :  { %v1765_v61 = vpop.f32.mrf.mxu0  ;;  %1999 = vmatpush2.bf16.msra.mxu0 %v1958_v23  ;;  %v2083_v11 = vunpack.c.h.s8.bf16 %v2055_v22  ;;  %v1798_v13 = vld [vmem:[#allocation5 + $0x1f] ss:$2 sm:$0x3]  ;;  %v2081_v31 = vunpack.c.l.s8.bf16 %v2055_v22 }
 0x551   :  { %v1792_v19 = vadd.f32 %v1788_v14, %v1779_v18  ;;  %v3272_v20 = vmax.f32 %v1791_v17, 0.0  ;;  %2000 = vmatprep.subr.bf16.mxu0 %v1957_v2  ;;  %v1894_v14 = vrot.slane %v1796_v10, %v3085_v30  ;;  %v1907_v15 = vrot.slane %v1798_v13, %v3085_v30 }
 0x552   :  { %v1898_v17 = vrot.slane %v1796_v10, %v3089_v32  ;;  %v2180_v10 = vld [vmem:[#allocation19 + $0x60] sm:$0xff] }
 0x553   :  { %v3274_v21 = vmax.f32 %v1792_v19, 0.0  ;;  %v1847_v34 = vpack.c.bf16 %v3272_v20, %v3272_v20  ;;  %v1911_v19 = vrot.slane %v1798_v13, %v3089_v32  ;;  %v2210_v13 = vunpack.c.h.s8.bf16 %v2180_v10 }
 0x554   :  { %2001 = vmatpush2.bf16.msra.mxu0 %v1956_v27 }
 0x555   :  { %v1848_v0 = vpack.c.bf16 %v3274_v21, %v3274_v21  ;;  %2002 = vmatprep.subr.bf16.mxu0 %v1955_v60 }
 0x557   :  { %1881 = vmatprep.mubr.bf16.mxu1 %v1848_v0 }
 0x558   :  { %1882 = vmatmul.mubr.bf16.vlgmr.msra.gmra.mxu1 %v1847_v34  ;;  %2003 = vmatpush2.bf16.msra.mxu0 %v1954_v29 }
 0x559   :  { %2096 = vmatpush1.bf16.msra.mxu1 %v2075_v35  ;;  %v2080_v35 = vunpack.c.h.s8.bf16 %v2054_v33 }
 0x55a   :  { %2097 = vmatprep.subr.bf16.mxu1 %v2074_v36  ;;  %v2053_v36 = vld [vmem:[#allocation17 + $0x40] sm:$0xff] }
 0x55b   :  { %v2079_v39 = vunpack.c.h.s8.bf16 %v2053_v36 }
 0x55d   :  { %2098 = vmatpush1.bf16.msra.mxu1 %v2073_v40  ;;  %v2078_v40 = vunpack.c.l.s8.bf16 %v2054_v33 }
 0x55e   :  { %2099 = vmatprep.subr.bf16.mxu1 %v2072_v45  ;;  %v2077_v45 = vunpack.c.l.s8.bf16 %v2053_v36 }
 0x561   :  { %2100 = vmatpush1.bf16.msra.mxu1 %v2071_v41  ;;  %v2174_v41 = vld [vmem:[#allocation19 + $0x30] sm:$0xff] }
 0x562   :  { %2101 = vmatprep.subr.bf16.mxu1 %v2070_v48  ;;  %v2199_v48 = vunpack.c.h.s8.bf16 %v2175_v16  ;;  %v2198_v42 = vunpack.c.h.s8.bf16 %v2174_v41  ;;  %v2196_v44 = vunpack.c.l.s8.bf16 %v2174_v41 }
 0x564   :  { %2218 = vmatprep.subr.bf16.mxu0 %v2199_v48  ;;  %v2177_v48 = vld [vmem:[#allocation19 + $0x48] sm:$0xff] }
 0x565   :  { %2102 = vmatpush1.bf16.msra.mxu1 %v2069_v43  ;;  %v2197_v43 = vunpack.c.l.s8.bf16 %v2175_v16 }
 0x566   :  { %2103 = vmatprep.subr.bf16.mxu1 %v2068_v51  ;;  %v2173_v51 = vld [vmem:[#allocation19 + $0x28] sm:$0xff] }
 0x569   :  { %2104 = vmatpush1.bf16.msra.mxu1 %v2067_v46  ;;  %v2195_v46 = vunpack.c.h.s8.bf16 %v2173_v51 }
 0x56a   :  { %2105 = vmatprep.subr.bf16.mxu1 %v2066_v47  ;;  %v2172_v47 = vld [vmem:[#allocation19 + $0x20] sm:$0xff] }
 0x56b   :  { %v2194_v26 = vunpack.c.h.s8.bf16 %v2172_v47  ;;  %v2192_v52 = vunpack.c.l.s8.bf16 %v2172_v47  ;;  %v2303_v47 = vld [vmem:[#allocation20 + $0x60] sm:$0xff] }
 0x56d   :  { %2106 = vmatpush1.bf16.msra.mxu1 %v2065_v49  ;;  %v2193_v49 = vunpack.c.l.s8.bf16 %v2173_v51 }
 0x56e   :  { %2107 = vmatprep.subr.bf16.mxu1 %v2064_v50  ;;  %v2171_v50 = vld [vmem:[#allocation19 + $0x18] sm:$0xff] }
 0x571   :  { %2108 = vmatpush1.bf16.msra.mxu1 %v2063_v53  ;;  %v2191_v53 = vunpack.c.h.s8.bf16 %v2171_v50 }
 0x572   :  { %2109 = vmatprep.subr.bf16.mxu1 %v2062_v54  ;;  %v2170_v54 = vld [vmem:[#allocation19 + $0x10] sm:$0xff] }
 0x573   :  { %v2190_v55 = vunpack.c.h.s8.bf16 %v2170_v54  ;;  %v2188_v57 = vunpack.c.l.s8.bf16 %v2170_v54  ;;  %v2300_v54 = vld [vmem:[#allocation20 + $0x48] sm:$0xff] }
 0x575   :  { %2110 = vmatpush1.bf16.msra.mxu1 %v2061_v56  ;;  %v2189_v56 = vunpack.c.l.s8.bf16 %v2171_v50  ;;  %v2351_v50 = vunpack.c.h.s8.bf16 %v2303_v47 }
 0x576   :  { %2111 = vmatprep.subr.bf16.mxu1 %v2092_v38  ;;  %v2169_v38 = vld [vmem:[#allocation19 + $0x8] sm:$0xff] }
 0x579   :  { %2112 = vmatpush2.bf16.msra.mxu1 %v2091_v58  ;;  %v2187_v58 = vunpack.c.h.s8.bf16 %v2169_v38 }
 0x57a   :  { %2113 = vmatprep.subr.bf16.mxu1 %v2090_v7  ;;  %v2168_v7 = vld [vmem:[#allocation19] sm:$0xff] }
 0x57b   :  { %v2186_v59 = vunpack.c.h.s8.bf16 %v2168_v7  ;;  %v2184_v62 = vunpack.c.l.s8.bf16 %v2168_v7  ;;  %v2296_v7 = vld [vmem:[#allocation20 + $0x28] sm:$0xff] }
 0x57d   :  { %2114 = vmatpush2.bf16.msra.mxu1 %v2089_v6  ;;  %v2185_v6 = vunpack.c.l.s8.bf16 %v2169_v38 }
 0x57e   :  { %2115 = vmatprep.subr.bf16.mxu1 %v2088_v8  ;;  %v2183_v8 = vld [vmem:[#allocation19 + $0x78] sm:$0xff] }
 0x581   :  { %2116 = vmatpush2.bf16.msra.mxu1 %v2087_v63  ;;  %v2215_v63 = vunpack.c.h.s8.bf16 %v2183_v8 }
 0x582   :  { %2117 = vmatprep.subr.bf16.mxu1 %v2086_v4  ;;  %v2182_v4 = vld [vmem:[#allocation19 + $0x70] sm:$0xff] }
 0x583   :  { %v2214_v5 = vunpack.c.h.s8.bf16 %v2182_v4  ;;  %v2212_v22 = vunpack.c.l.s8.bf16 %v2182_v4  ;;  %v2292_v4 = vld [vmem:[#allocation20 + $0x8] sm:$0xff] }
 0x585   :  { %2118 = vmatpush2.bf16.msra.mxu1 %v2085_v9  ;;  %v2213_v9 = vunpack.c.l.s8.bf16 %v2183_v8 }
 0x586   :  { %2119 = vmatprep.subr.bf16.mxu1 %v2084_v37  ;;  %v2181_v37 = vld [vmem:[#allocation19 + $0x68] sm:$0xff] }
 0x589   :  { %2120 = vmatpush2.bf16.msra.mxu1 %v2083_v11  ;;  %v2211_v11 = vunpack.c.h.s8.bf16 %v2181_v37 }
 0x58a   :  { %2121 = vmatprep.subr.bf16.mxu1 %v2082_v12 }
 0x58d   :  { %2122 = vmatpush2.bf16.msra.mxu1 %v2081_v31 }
 0x58e   :  { %2123 = vmatprep.subr.bf16.mxu1 %v2080_v35 }
 0x591   :  { %2124 = vmatpush2.bf16.msra.mxu1 %v2079_v39 }
 0x592   :  { %2125 = vmatprep.subr.bf16.mxu1 %v2078_v40 }
 0x595   :  { %2126 = vmatpush2.bf16.msra.mxu1 %v2077_v45 }
 0x618   :  { %v1883_v18 = vpop.f32.mrf.mxu1 }
 0x619   :  { %v1901_v61 = vmul.f32 %v1894_v14, %v1883_v18  ;;  %v2209_v14 = vunpack.c.l.s8.bf16 %v2181_v37 }
 0x61a   :  { %v1885_v0 = vpop.f32.mrf.mxu1 }
 0x61b   :  { %v1914_v34 = vadd.f32 %v1907_v15, %v1901_v61  ;;  %v1902_v28 = vmul.f32 %v1898_v17, %v1885_v0  ;;  %v2179_v15 = vld [vmem:[#allocation19 + $0x58] sm:$0xff]  ;;  %v2208_v17 = vunpack.c.l.s8.bf16 %v2180_v10  ;;  %v2178_v61 = vld [vmem:[#allocation19 + $0x50] sm:$0xff]  ;;  %v1919_v0 = vld [vmem:[#allocation5 + $0x22] ss:$2 sm:$0x3] }
 0x61c   :  { %v1887_v23 = vpop.f32.mrf.mxu1  ;;  %v2207_v18 = vunpack.c.h.s8.bf16 %v2179_v15  ;;  %v2205_v16 = vunpack.c.l.s8.bf16 %v2179_v15  ;;  %v2204_v41 = vunpack.c.l.s8.bf16 %v2178_v61  ;;  %v2320_v10 = vld [vmem:[#allocation20 + $0xe8] sm:$0xff] }
 0x61d   :  { %v1915_v24 = vadd.f32 %v1911_v19, %v1902_v28  ;;  %v1916_v2 = vmax.f32 %v1914_v34, 0.0  ;;  %v2206_v19 = vunpack.c.h.s8.bf16 %v2178_v61  ;;  %v1921_v34 = vld [vmem:[#allocation5 + $0x23] ss:$2 sm:$0x3]  ;;  %v2017_v28 = vrot.slane %v1919_v0, %v3085_v30 }
 0x61e   :  { %v1888_v25 = vpop.f32.mrf.mxu1  ;;  %v2030_v23 = vrot.slane %v1921_v34, %v3085_v30  ;;  %v2316_v61 = vld [vmem:[#allocation20 + $0xc8] sm:$0xff] }
 0x61f   :  { %v1917_v27 = vmax.f32 %v1915_v24, 0.0  ;;  %v1970_v29 = vpack.c.bf16 %v1916_v2, %v1916_v2  ;;  %v2021_v24 = vrot.slane %v1919_v0, %v3089_v32  ;;  %v2315_v0 = vld [vmem:[#allocation20 + $0xc0] sm:$0xff] }
 0x621   :  { %v1971_v60 = vpack.c.bf16 %v1917_v27, %v1917_v27  ;;  %v2034_v27 = vrot.slane %v1921_v34, %v3089_v32  ;;  %v2375_v34 = vunpack.c.h.s8.bf16 %v2315_v0 }
 0x623   :  { %2004 = vmatprep.mubr.bf16.mxu0 %v1971_v60 }
 0x624   :  { %2005 = vmatmul.mubr.bf16.vlgmr.msra.gmra.mxu0 %v1970_v29 }
 0x625   :  { %2219 = vmatpush1.bf16.msra.mxu0 %v2198_v42  ;;  %v2203_v42 = vunpack.c.h.s8.bf16 %v2177_v48 }
 0x626   :  { %2220 = vmatprep.subr.bf16.mxu0 %v2197_v43 }
 0x629   :  { %2221 = vmatpush1.bf16.msra.mxu0 %v2196_v44  ;;  %v2304_v44 = vld [vmem:[#allocation20 + $0x68] sm:$0xff] }
 0x62a   :  { %2222 = vmatprep.subr.bf16.mxu0 %v2195_v46  ;;  %v3298_v46 = vld [vmem:[#allocation20 + $0x78] sm:$0xff] }
 0x62d   :  { %2223 = vmatpush1.bf16.msra.mxu0 %v2194_v26  ;;  %v2352_v26 = vunpack.c.h.s8.bf16 %v2304_v44 }
 0x62e   :  { %2224 = vmatprep.subr.bf16.mxu0 %v2193_v49  ;;  %v2354_v49 = vunpack.c.h.s8.bf16 %v3298_v46 }
 0x62f   :  { %2389 = vmatprep.subr.bf16.mxu1 %v2352_v26 }
 0x631   :  { %2225 = vmatpush1.bf16.msra.mxu0 %v2192_v52  ;;  %v2348_v52 = vunpack.c.l.s8.bf16 %v2304_v44 }
 0x632   :  { %2226 = vmatprep.subr.bf16.mxu0 %v2191_v53  ;;  %v2347_v53 = vunpack.c.l.s8.bf16 %v2303_v47 }
 0x635   :  { %2227 = vmatpush1.bf16.msra.mxu0 %v2190_v55  ;;  %v2344_v55 = vunpack.c.h.s8.bf16 %v2300_v54 }
 0x636   :  { %2228 = vmatprep.subr.bf16.mxu0 %v2189_v56  ;;  %v2299_v56 = vld [vmem:[#allocation20 + $0x40] sm:$0xff] }
 0x637   :  { %v2343_v38 = vunpack.c.h.s8.bf16 %v2299_v56 }
 0x639   :  { %2229 = vmatpush1.bf16.msra.mxu0 %v2188_v57  ;;  %v2340_v57 = vunpack.c.l.s8.bf16 %v2300_v54 }
 0x63a   :  { %2230 = vmatprep.subr.bf16.mxu0 %v2187_v58  ;;  %v2339_v58 = vunpack.c.l.s8.bf16 %v2299_v56 }
 0x63d   :  { %2231 = vmatpush1.bf16.msra.mxu0 %v2186_v59  ;;  %v2336_v59 = vunpack.c.h.s8.bf16 %v2296_v7 }
 0x63e   :  { %2232 = vmatprep.subr.bf16.mxu0 %v2185_v6  ;;  %v2295_v6 = vld [vmem:[#allocation20 + $0x20] sm:$0xff] }
 0x63f   :  { %v2335_v8 = vunpack.c.h.s8.bf16 %v2295_v6 }
 0x641   :  { %2233 = vmatpush1.bf16.msra.mxu0 %v2184_v62  ;;  %v2332_v62 = vunpack.c.l.s8.bf16 %v2296_v7 }
 0x642   :  { %2234 = vmatprep.subr.bf16.mxu0 %v2215_v63  ;;  %v2331_v63 = vunpack.c.l.s8.bf16 %v2295_v6 }
 0x645   :  { %2235 = vmatpush2.bf16.msra.mxu0 %v2214_v5  ;;  %v2328_v5 = vunpack.c.h.s8.bf16 %v2292_v4 }
 0x646   :  { %2236 = vmatprep.subr.bf16.mxu0 %v2213_v9  ;;  %v2291_v9 = vld [vmem:[#allocation20] sm:$0xff] }
 0x647   :  { %v2327_v37 = vunpack.c.h.s8.bf16 %v2291_v9 }
 0x649   :  { %2237 = vmatpush2.bf16.msra.mxu0 %v2212_v22  ;;  %v2324_v22 = vunpack.c.l.s8.bf16 %v2292_v4  ;;  %v2293_v4 = vld [vmem:[#allocation20 + $0x10] sm:$0xff] }
 0x64a   :  { %2238 = vmatprep.subr.bf16.mxu0 %v2211_v11  ;;  %v2323_v11 = vunpack.c.l.s8.bf16 %v2291_v9 }
 0x64d   :  { %2239 = vmatpush2.bf16.msra.mxu0 %v2210_v13  ;;  %v2384_v13 = vunpack.c.h.s8.bf16 %v2320_v10 }
 0x64e   :  { %2240 = vmatprep.subr.bf16.mxu0 %v2209_v14  ;;  %v2319_v14 = vld [vmem:[#allocation20 + $0xe0] sm:$0xff] }
 0x64f   :  { %v2383_v15 = vunpack.c.h.s8.bf16 %v2319_v14 }
 0x651   :  { %2241 = vmatpush2.bf16.msra.mxu0 %v2208_v17  ;;  %v2380_v17 = vunpack.c.l.s8.bf16 %v2320_v10  ;;  %v2321_v10 = vld [vmem:[#allocation20 + $0xf0] sm:$0xff] }
 0x652   :  { %2242 = vmatprep.subr.bf16.mxu0 %v2207_v18  ;;  %v2379_v18 = vunpack.c.l.s8.bf16 %v2319_v14 }
 0x655   :  { %2243 = vmatpush2.bf16.msra.mxu0 %v2206_v19  ;;  %v2376_v19 = vunpack.c.h.s8.bf16 %v2316_v61 }
 0x656   :  { %2244 = vmatprep.subr.bf16.mxu0 %v2205_v16 }
 0x659   :  { %2245 = vmatpush2.bf16.msra.mxu0 %v2204_v41 }
 0x65a   :  { %2246 = vmatprep.subr.bf16.mxu0 %v2203_v42 }
 0x6e4   :  { %v2006_v2 = vpop.f32.mrf.mxu0 }
 0x6e5   :  { %v2024_v25 = vmul.f32 %v2017_v28, %v2006_v2  ;;  %v2372_v28 = vunpack.c.l.s8.bf16 %v2316_v61  ;;  %v2317_v61 = vld [vmem:[#allocation20 + $0xd0] sm:$0xff] }
 0x6e6   :  { %v2008_v60 = vpop.f32.mrf.mxu0 }
 0x6e7   :  { %v2037_v29 = vadd.f32 %v2030_v23, %v2024_v25  ;;  %v2025_v12 = vmul.f32 %v2021_v24, %v2008_v60  ;;  %v2371_v23 = vunpack.c.l.s8.bf16 %v2315_v0  ;;  %v3301_v24 = vld [vmem:[#allocation20 + $0xa8] sm:$0xff]  ;;  %v3304_v25 = vld [vmem:[#allocation20 + $0xa0] sm:$0xff]  ;;  %v2042_v60 = vld [vmem:[#allocation5 + $0x26] ss:$2 sm:$0x3] }
 0x6e8   :  { %v2010_v31 = vpop.f32.mrf.mxu0  ;;  %v2368_v2 = vunpack.c.h.s8.bf16 %v3301_v24 }
 0x6e9   :  { %v2038_v33 = vadd.f32 %v2034_v27, %v2025_v12  ;;  %v3289_v35 = vadd.f32 %v2037_v29, %v3272_v20  ;;  %v2176_v20 = vld [vmem:[#allocation19 + $0x40] sm:$0xff]  ;;  %v2367_v27 = vunpack.c.h.s8.bf16 %v3304_v25  ;;  %v2044_v29 = vld [vmem:[#allocation5 + $0x27] ss:$2 sm:$0x3]  ;;  %v2140_v12 = vrot.slane %v2042_v60, %v3085_v30 }
 0x6ea   :  { %v2011_v36 = vpop.f32.mrf.mxu0  ;;  %v2202_v43 = vunpack.c.h.s8.bf16 %v2176_v20  ;;  %v2200_v51 = vunpack.c.l.s8.bf16 %v2176_v20  ;;  %v2153_v31 = vrot.slane %v2044_v29, %v3085_v30 }
 0x6eb   :  { %v3292_v39 = vadd.f32 %v2038_v33, %v3274_v21  ;;  %v2093_v45 = vpack.c.bf16 %v3289_v35, %v3289_v35  ;;  %v2201_v21 = vunpack.c.l.s8.bf16 %v2177_v48  ;;  %v2144_v33 = vrot.slane %v2042_v60, %v3089_v32 }
 0x6ec   :  { %2247 = vmatpush2.bf16.msra.mxu0 %v2202_v43  ;;  %v2364_v60 = vunpack.c.l.s8.bf16 %v3301_v24 }
 0x6ed   :  { %v2094_v40 = vpack.c.bf16 %v3292_v39, %v3292_v39  ;;  %2248 = vmatprep.subr.bf16.mxu0 %v2201_v21 }
 0x6ef   :  { %2127 = vmatprep.mubr.bf16.mxu1 %v2094_v40 }
 0x6f0   :  { %2128 = vmatmul.mubr.bf16.vlgmr.msra.gmra.mxu1 %v2093_v45  ;;  %2249 = vmatpush2.bf16.msra.mxu0 %v2200_v51  ;;  %v2157_v45 = vrot.slane %v2044_v29, %v3089_v32  ;;  %v2305_v51 = vld [vmem:[#allocation20 + $0x70] sm:$0xff] }
 0x6f1   :  { %2430 = vmatprep.subr.bf16.mxu0 %v2354_v49  ;;  %2390 = vmatpush1.bf16.msra.mxu1 %v2351_v50  ;;  %v2353_v26 = vunpack.c.h.s8.bf16 %v2305_v51  ;;  %v2350_v50 = vunpack.c.l.s8.bf16 %v3298_v46 }
 0x6f2   :  { %2391 = vmatprep.subr.bf16.mxu1 %v2348_v52  ;;  %v2302_v52 = vld [vmem:[#allocation20 + $0x58] sm:$0xff] }
 0x6f3   :  { %v2346_v54 = vunpack.c.h.s8.bf16 %v2302_v52 }
 0x6f5   :  { %2392 = vmatpush1.bf16.msra.mxu1 %v2347_v53  ;;  %v2349_v53 = vunpack.c.l.s8.bf16 %v2305_v51  ;;  %v2167_v51 = vld [vmem:[#allocation5 + $0x2b] ss:$2 sm:$0x3] }
 0x6f6   :  { %2393 = vmatprep.subr.bf16.mxu1 %v2344_v55  ;;  %v2301_v55 = vld [vmem:[#allocation20 + $0x50] sm:$0xff] }
 0x6f7   :  { %v2345_v56 = vunpack.c.h.s8.bf16 %v2301_v55 }
 0x6f9   :  { %2394 = vmatpush1.bf16.msra.mxu1 %v2343_v38  ;;  %v2342_v38 = vunpack.c.l.s8.bf16 %v2302_v52  ;;  %v2280_v52 = vrot.slane %v2167_v51, %v3089_v32 }
 0x6fa   :  { %2395 = vmatprep.subr.bf16.mxu1 %v2340_v57  ;;  %v2298_v57 = vld [vmem:[#allocation20 + $0x38] sm:$0xff] }
 0x6fb   :  { %v2338_v7 = vunpack.c.h.s8.bf16 %v2298_v57  ;;  %v2334_v6 = vunpack.c.l.s8.bf16 %v2298_v57 }
 0x6fd   :  { %2396 = vmatpush1.bf16.msra.mxu1 %v2339_v58  ;;  %v2341_v58 = vunpack.c.l.s8.bf16 %v2301_v55 }
 0x6fe   :  { %2397 = vmatprep.subr.bf16.mxu1 %v2336_v59  ;;  %v2297_v59 = vld [vmem:[#allocation20 + $0x30] sm:$0xff] }
 0x6ff   :  { %v2337_v46 = vunpack.c.h.s8.bf16 %v2297_v59 }
 0x701   :  { %2398 = vmatpush1.bf16.msra.mxu1 %v2335_v8  ;;  %v2294_v8 = vld [vmem:[#allocation20 + $0x18] sm:$0xff] }
 0x702   :  { %2399 = vmatprep.subr.bf16.mxu1 %v2332_v62  ;;  %v2333_v62 = vunpack.c.l.s8.bf16 %v2297_v59  ;;  %v2326_v9 = vunpack.c.l.s8.bf16 %v2294_v8 }
 0x705   :  { %2400 = vmatpush1.bf16.msra.mxu1 %v2331_v63  ;;  %v2330_v63 = vunpack.c.h.s8.bf16 %v2294_v8  ;;  %v2290_v8 = vld [vmem:[#allocation5 + $0x2f] ss:$2 sm:$0xf] }
 0x706   :  { %2401 = vmatprep.subr.bf16.mxu1 %v2328_v5  ;;  %v2329_v5 = vunpack.c.h.s8.bf16 %v2293_v4 }
 0x709   :  { %2402 = vmatpush1.bf16.msra.mxu1 %v2327_v37  ;;  %v2322_v37 = vld [vmem:[#allocation20 + $0xf8] sm:$0xff] }
 0x70a   :  { %2403 = vmatprep.subr.bf16.mxu1 %v2324_v22  ;;  %v2325_v22 = vunpack.c.l.s8.bf16 %v2293_v4  ;;  %v2382_v14 = vunpack.c.l.s8.bf16 %v2322_v37  ;;  %v2500_v4 = vrot.slane %v2290_v8, %v3085_v30 }
 0x70d   :  { %2404 = vmatpush1.bf16.msra.mxu1 %v2323_v11  ;;  %v2386_v11 = vunpack.c.h.s8.bf16 %v2322_v37 }
 0x70e   :  { %2405 = vmatprep.subr.bf16.mxu1 %v2384_v13  ;;  %v2385_v13 = vunpack.c.h.s8.bf16 %v2321_v10 }
 0x711   :  { %2406 = vmatpush2.bf16.msra.mxu1 %v2383_v15  ;;  %v2318_v15 = vld [vmem:[#allocation20 + $0xd8] sm:$0xff] }
 0x712   :  { %2407 = vmatprep.subr.bf16.mxu1 %v2380_v17  ;;  %v2381_v17 = vunpack.c.l.s8.bf16 %v2321_v10  ;;  %v2374_v0 = vunpack.c.l.s8.bf16 %v2318_v15  ;;  %v2504_v10 = vrot.slane %v2290_v8, %v3089_v32 }
 0x715   :  { %2408 = vmatpush2.bf16.msra.mxu1 %v2379_v18  ;;  %v2378_v18 = vunpack.c.h.s8.bf16 %v2318_v15 }
 0x716   :  { %2409 = vmatprep.subr.bf16.mxu1 %v2376_v19  ;;  %v2377_v19 = vunpack.c.h.s8.bf16 %v2317_v61 }
 0x719   :  { %2410 = vmatpush2.bf16.msra.mxu1 %v2375_v34  ;;  %v2314_v34 = vld [vmem:[#allocation20 + $0xb8] sm:$0xff] }
 0x71a   :  { %2411 = vmatprep.subr.bf16.mxu1 %v2372_v28  ;;  %v2373_v28 = vunpack.c.l.s8.bf16 %v2317_v61  ;;  %v2366_v29 = vunpack.c.l.s8.bf16 %v2314_v34 }
 0x71d   :  { %2412 = vmatpush2.bf16.msra.mxu1 %v2371_v23  ;;  %v2370_v23 = vunpack.c.h.s8.bf16 %v2314_v34 }
 0x71e   :  { %2413 = vmatprep.subr.bf16.mxu1 %v2368_v2  ;;  %v2313_v2 = vld [vmem:[#allocation20 + $0xb0] sm:$0xff] }
 0x721   :  { %2414 = vmatpush2.bf16.msra.mxu1 %v2367_v27  ;;  %v2369_v27 = vunpack.c.h.s8.bf16 %v2313_v2 }
 0x722   :  { %2415 = vmatprep.subr.bf16.mxu1 %v2364_v60 }
 0x7b0   :  { %v2129_v36 = vpop.f32.mrf.mxu1 }
 0x7b1   :  { %v2147_v40 = vmul.f32 %v2140_v12, %v2129_v36  ;;  %v2363_v12 = vunpack.c.l.s8.bf16 %v3304_v25  ;;  %v2310_v36 = vld [vmem:[#allocation20 + $0x98] sm:$0xff] }
 0x7b2   :  { %v2131_v16 = vpop.f32.mrf.mxu1 }
 0x7b3   :  { %v2160_v41 = vadd.f32 %v2153_v31, %v2147_v40  ;;  %v2148_v48 = vmul.f32 %v2144_v33, %v2131_v16  ;;  %v2365_v31 = vunpack.c.l.s8.bf16 %v2313_v2  ;;  %2416 = vmatpush2.bf16.msra.mxu1 %v2363_v12  ;;  %v2308_v33 = vld [vmem:[#allocation20 + $0x88] sm:$0xff]  ;;  %v2307_v16 = vld [vmem:[#allocation20 + $0x80] sm:$0xff] }
 0x7b4   :  { %v2133_v42 = vpop.f32.mrf.mxu1  ;;  %v2360_v40 = vunpack.c.h.s8.bf16 %v2308_v33  ;;  %v2356_v24 = vunpack.c.l.s8.bf16 %v2308_v33  ;;  %v2355_v25 = vunpack.c.l.s8.bf16 %v2307_v16 }
 0x7b5   :  { %v2161_v20 = vadd.f32 %v2157_v45, %v2148_v48  ;;  %v2162_v43 = vmax.f32 %v2160_v41, 0.0  ;;  %v2362_v45 = vunpack.c.h.s8.bf16 %v2310_v36  ;;  %v2309_v41 = vld [vmem:[#allocation20 + $0x90] sm:$0xff]  ;;  %v2359_v48 = vunpack.c.h.s8.bf16 %v2307_v16 }
 0x7b6   :  { %v2134_v21 = vpop.f32.mrf.mxu1  ;;  %v2361_v42 = vunpack.c.h.s8.bf16 %v2309_v41  ;;  %2417 = vmatprep.subr.bf16.mxu1 %v2360_v40 }
 0x7b7   :  { %v2163_v44 = vmax.f32 %v2161_v20, 0.0  ;;  %v2216_v49 = vpack.c.bf16 %v2162_v43, %v2162_v43  ;;  %2418 = vmatpush2.bf16.msra.mxu1 %v2359_v48  ;;  %v2358_v20 = vunpack.c.l.s8.bf16 %v2310_v36  ;;  %v2357_v43 = vunpack.c.l.s8.bf16 %v2309_v41  ;;  %v2165_v21 = vld [vmem:[#allocation5 + $0x2a] ss:$2 sm:$0x3] }
 0x7b8   :  { %2419 = vmatprep.subr.bf16.mxu1 %v2356_v24 }
 0x7b9   :  { %v2217_v47 = vpack.c.bf16 %v2163_v44, %v2163_v44  ;;  %v2263_v44 = vrot.slane %v2165_v21, %v3085_v30 }
 0x7bb   :  { %2250 = vmatprep.mubr.bf16.mxu0 %v2217_v47  ;;  %2420 = vmatpush2.bf16.msra.mxu1 %v2355_v25  ;;  %v2276_v47 = vrot.slane %v2167_v51, %v3085_v30 }
 0x7bc   :  { %2251 = vmatmul.mubr.bf16.vlgmr.msra.gmra.mxu0 %v2216_v49 }
 0x7bd   :  { %2431 = vmatpush1.bf16.msra.mxu0 %v2353_v26  ;;  %v2267_v26 = vrot.slane %v2165_v21, %v3089_v32 }
 0x7be   :  { %2432 = vmatprep.subr.bf16.mxu0 %v2350_v50 }
 0x7c1   :  { %2433 = vmatpush1.bf16.msra.mxu0 %v2349_v53 }
 0x7c2   :  { %2434 = vmatprep.subr.bf16.mxu0 %v2346_v54 }
 0x7c5   :  { %2435 = vmatpush1.bf16.msra.mxu0 %v2345_v56 }
 0x7c6   :  { %2436 = vmatprep.subr.bf16.mxu0 %v2342_v38 }
 0x7c9   :  { %2437 = vmatpush1.bf16.msra.mxu0 %v2341_v58 }
 0x7ca   :  { %2438 = vmatprep.subr.bf16.mxu0 %v2338_v7 }
 0x7cd   :  { %2439 = vmatpush1.bf16.msra.mxu0 %v2337_v46 }
 0x7ce   :  { %2440 = vmatprep.subr.bf16.mxu0 %v2334_v6  ;;  %v2288_v6 = vld [vmem:[#allocation5 + $0x2e] ss:$2 sm:$0xf] }
 0x7d1   :  { %2441 = vmatpush1.bf16.msra.mxu0 %v2333_v62  ;;  %v2475_v62 = vrot.slane %v2288_v6, %v3085_v30 }
 0x7d2   :  { %2442 = vmatprep.subr.bf16.mxu0 %v2330_v63  ;;  %v2483_v63 = vrot.slane %v2288_v6, %v3113_v1 }
 0x7d5   :  { %2443 = vmatpush1.bf16.msra.mxu0 %v2329_v5  ;;  %v2508_v5 = vrot.slane %v2290_v8, %v3113_v1 }
 0x7d6   :  { %2444 = vmatprep.subr.bf16.mxu0 %v2326_v9 }
 0x7d9   :  { %2445 = vmatpush1.bf16.msra.mxu0 %v2325_v22 }
 0x7da   :  { %2446 = vmatprep.subr.bf16.mxu0 %v2386_v11 }
 0x7dd   :  { %2447 = vmatpush2.bf16.msra.mxu0 %v2385_v13  ;;  %v2512_v13 = vrot.slane %v2290_v8, %v3115_v3 }
 0x7de   :  { %2448 = vmatprep.subr.bf16.mxu0 %v2382_v14 }
 0x7e1   :  { %2449 = vmatpush2.bf16.msra.mxu0 %v2381_v17 }
 0x7e2   :  { %2450 = vmatprep.subr.bf16.mxu0 %v2378_v18 }
 0x7e5   :  { %2451 = vmatpush2.bf16.msra.mxu0 %v2377_v19 }
 0x7e6   :  { %2452 = vmatprep.subr.bf16.mxu0 %v2374_v0 }
 0x7e9   :  { %2453 = vmatpush2.bf16.msra.mxu0 %v2373_v28 }
 0x7ea   :  { %2454 = vmatprep.subr.bf16.mxu0 %v2370_v23 }
 0x7ed   :  { %2455 = vmatpush2.bf16.msra.mxu0 %v2369_v27 }
 0x7ee   :  { %2456 = vmatprep.subr.bf16.mxu0 %v2366_v29 }
 0x7f1   :  { %2457 = vmatpush2.bf16.msra.mxu0 %v2365_v31 }
 0x7f2   :  { %2458 = vmatprep.subr.bf16.mxu0 %v2362_v45 }
 0x7f5   :  { %2459 = vmatpush2.bf16.msra.mxu0 %v2361_v42 }
 0x7f6   :  { %2460 = vmatprep.subr.bf16.mxu0 %v2358_v20 }
 0x7f9   :  { %2461 = vmatpush2.bf16.msra.mxu0 %v2357_v43 }
 0x87c   :  { %v2252_v49 = vpop.f32.mrf.mxu0 }
 0x87d   :  { %v2270_v50 = vmul.f32 %v2263_v44, %v2252_v49 }
 0x87e   :  { %v2254_v53 = vpop.f32.mrf.mxu0 }
 0x87f   :  { %v2283_v54 = vadd.f32 %v2276_v47, %v2270_v50  ;;  %v2271_v55 = vmul.f32 %v2267_v26, %v2254_v53 }
 0x880   :  { %v2256_v56 = vpop.f32.mrf.mxu0 }
 0x881   :  { %v2284_v38 = vadd.f32 %v2280_v52, %v2271_v55  ;;  %v2285_v57 = vadd.f32 %v2283_v54, %v3289_v35  ;;  %v2479_v35 = vrot.slane %v2288_v6, %v3089_v32 }
 0x882   :  { %v2257_v58 = vpop.f32.mrf.mxu0 }
 0x883   :  { %v2286_v7 = vadd.f32 %v2284_v38, %v3292_v39  ;;  %v2387_v46 = vpack.c.bf16 %v2285_v57, %v2285_v57  ;;  %v2487_v39 = vrot.slane %v2288_v6, %v3115_v3 }
 0x885   :  { %v2388_v59 = vpack.c.bf16 %v2286_v7, %v2286_v7 }
 0x887   :  { %2421 = vmatprep.mubr.bf16.mxu1 %v2388_v59  ;;  %2462 = vmatprep.mubr.bf16.mxu0 %v2388_v59 }
 0x888   :  { %2422 = vmatmul.mubr.bf16.vlgmr.msra.gmra.mxu1 %v2387_v46  ;;  %2463 = vmatmul.mubr.bf16.vlgmr.msra.gmra.mxu0 %v2387_v46 }
 0x948   :  { %v2423_v9 = vpop.f32.mrf.mxu1  ;;  %v2464_v37 = vpop.f32.mrf.mxu0 }
 0x949   :  { %v2492_v22 = vmul.f32 %v2475_v62, %v2423_v9  ;;  %v2494_v11 = vmul.f32 %v2483_v63, %v2464_v37 }
 0x94a   :  { %v2425_v14 = vpop.f32.mrf.mxu1  ;;  %v2466_v15 = vpop.f32.mrf.mxu0 }
 0x94b   :  { %v2517_v17 = vadd.f32 %v2500_v4, %v2492_v22  ;;  %v2519_v30 = vadd.f32 %v2508_v5, %v2494_v11  ;;  %v2493_v18 = vmul.f32 %v2479_v35, %v2425_v14  ;;  %v2495_v1 = vmul.f32 %v2487_v39, %v2466_v15 }
 0x94c   :  { %v2427_v61 = vpop.f32.mrf.mxu1  ;;  %v2468_v19 = vpop.f32.mrf.mxu0 }
 0x94d   :  { %2521 = vst [vmem:[#allocation22] sm:$0xff] %v2517_v17  ;;  %2523 = vst [vmem:[#allocation22 + $0x10] sm:$0xff] %v2519_v30  ;;  %v2518_v0 = vadd.f32 %v2504_v10, %v2493_v18  ;;  %v2520_v34 = vadd.f32 %v2512_v13, %v2495_v1 }
 0x94e   :  { %v2428_v28 = vpop.f32.mrf.mxu1  ;;  %v2469_v23 = vpop.f32.mrf.mxu0 }
 0x94f   :  { %2522 = vst [vmem:[#allocation22 + $0x8] sm:$0xff] %v2518_v0  ;;  %2524 = vst [vmem:[#allocation22 + $0x18] sm:$0xff] %v2520_v34 }
 0x950   :  { %2878 = shalt.err (!%p2875_p8)
}
 0x951   :  { %2534 = dma.vmem_to_hbm [thread:$0]  %s2532_s20, 512, %s3346_s15, [#allocation4]  }
 0x952   :  { %2901 = dma.done.wait [#allocation4], 512  }
 0x953   :  { %2902 = vsyncadd [#allocation4], 4294966784 }
 0x954   :  { %2538 = vsyncpa [#allocation3], 1 }
 0x955   :  { %2539 = vsyncpa [#allocation6], 1 }
 0x956   :  { %2540 = vsyncpa [#allocation9], 1 }
 0x957   :  { %2541 = vsyncpa [#allocation12], 1 }
 0x958   :  { %2542 = vsyncpa [#allocation15], 1 }
 0x959   :  { %2543 = vsyncpa [#allocation18], 1 }
 0x95a   :  { %2544 = vsyncpa [#allocation21], 1 }
 0x95b   :  { %2545 = vsyncpa [#allocation4], 1 }

</bundles_post_ra>
